<compile_context>
chip_gen: v5e
topology: v5e:2x2
jax: 0.10.0
libtpu: 0.0.40
codegen_flags: <defaults>
</compile_context>

<pallas_src>
import functools

import jax
import jax.numpy as jnp
from jax.experimental import pallas as pl
from jax.experimental.pallas import tpu as pltpu

HIDDEN = 8                       # Block(hidden=8)
KSIZE = 8                        # conv1a kernel_size=8
PAD_LO = (KSIZE - 1) // 2        # 3  (PyTorch padding='same', even kernel)
PAD_HI = (KSIZE - 1) - PAD_LO    # 4


# -----------------------------------------------------------------------------
# Fused Block stack:  for l in range(L): xy = step*conv1b(elu(conv1a(xy))) + xy
# One pallas_call, grid = (N, L); the padded field lives in a VMEM scratch and is
# carried across the (sequential) layer axis.
# -----------------------------------------------------------------------------
def _block_stack_kernel(x0_ref, mask_ref, w1a_ref, b1a_ref, w1b_ref, b1b_ref,
                        out_ref, xp_ref, *, Wp, HWIDE, LEAD, OFF_AL, step):
    """Shapes (per grid step (n, l)):
       x0_ref   : (1, 2, FLAT)        zero-padded, flattened ("wide") initial field
       mask_ref : (1, HWIDE)          1.0 on real columns, 0.0 on the Wp-W garbage cols
       w1a_ref  : (L, HIDDEN, 128)    conv1a weights (resident), col = (kh*K+kw)*2 + cin
       b1a_ref  : (L, HIDDEN, 1)
       w1b_ref  : (L, 2, HIDDEN)
       b1b_ref  : (L, 2, 1)
       out_ref  : (1, 1, 4, HWIDE)    merged lane-dense output: rows 0:2 xy, rows 2:4 v
       xp_ref   : VMEM scratch (2, FLAT), persists across the layer axis
    """
    l = pl.program_id(1)

    # layer 0: pull the padded field into VMEM once; it stays resident for all L layers
    # of this batch element (no intermediate HBM round trips).
    @pl.when(l == 0)
    def _():
        xp_ref[...] = x0_ref[0]

    w1a = w1a_ref[l]                                  # (HIDDEN, 128)
    w1b = w1b_ref[l]                                  # (2, HIDDEN)

    # conv1a: 8x8 'same' conv (2 -> HIDDEN).  One (2, HWIDE) slab load per kh; the kw
    # shifts are pltpu.roll's (XLU).  Roll wrap-around only touches the garbage columns
    # of the last row, which are never consumed.  Four independent accumulators break
    # the 64-tap dependence chain.
    parts = [None, None, None, None]
    tap = 0
    for kh in range(KSIZE):
        base = LEAD + kh * Wp
        slab = xp_ref[:, base:base + HWIDE]           # (2, HWIDE) — single load per kh
        for kw in range(KSIZE):
            xs = slab if kw == 0 else pltpu.roll(slab, shift=HWIDE - kw, axis=1)
            c0 = 2 * (kh * KSIZE + kw)
            t = (w1a[:, c0:c0 + 1] * xs[0:1, :]
                 + w1a[:, c0 + 1:c0 + 2] * xs[1:2, :])      # (HIDDEN, HWIDE)
            j = tap & 3
            parts[j] = t if parts[j] is None else parts[j] + t
            tap += 1
    bias = jnp.broadcast_to(b1a_ref[l], (HIDDEN, HWIDE)).astype(jnp.float32)
    acc = bias + ((parts[0] + parts[1]) + (parts[2] + parts[3]))

    # ELU (alpha=1); clamp the exp argument so the unselected branch never overflows.
    ha = jnp.where(acc > 0.0, acc, jnp.exp(jnp.minimum(acc, 0.0)) - 1.0)

    # conv1b: 1x1 conv (HIDDEN -> 2), lane-dense, two independent partial sums.
    vb = jnp.broadcast_to(b1b_ref[l], (2, HWIDE)).astype(jnp.float32)
    v0 = w1b[:, 0:1] * ha[0:1, :]
    v1 = w1b[:, 1:2] * ha[1:2, :]
    for ci in range(2, HIDDEN, 2):
        v0 = v0 + w1b[:, ci:ci + 1] * ha[ci:ci + 1, :]
        v1 = v1 + w1b[:, ci + 1:ci + 2] * ha[ci + 1:ci + 2, :]
    va = vb + v0 + v1

    x_cur = xp_ref[:, OFF_AL:OFF_AL + HWIDE]          # current field (wide layout)
    xy_new = step * va + x_cur

    # single merged output block (one writeback DMA per grid step)
    out_ref[0, 0, 0:2] = xy_new
    out_ref[0, 0, 2:4] = va

    # carry the field to the next layer; zero the Wp-W garbage columns so the zero
    # 'same' padding of the scratch stays intact (mask hoisted into the wrapper).
    xp_ref[:, OFF_AL:OFF_AL + HWIDE] = xy_new * mask_ref[...]


def block_stack_forward(xy_nhwc, params):
    """xy_nhwc: (N, H, W, 2).  params: stacked PyTorch-layout weights
       w1a (L, HIDDEN, 2, K, K), b1a (L, HIDDEN), w1b (L, 2, HIDDEN), b1b (L, 2).
       Returns the wide merged output (N, L, 4, H*Wp) plus (H, W, Wp)."""
    w1a, b1a, w1b, b1b = params["w1a"], params["b1a"], params["w1b"], params["b1b"]
    L = w1a.shape[0]
    N, H, W, _ = xy_nhwc.shape

    Wp = W + KSIZE                  # padded row stride (left 3 / right 5 zeros)
    Hp1 = H + KSIZE                 # padded rows       (top 3 / bottom 5 zeros)
    OFF = PAD_LO * Wp + PAD_LO      # flat offset of interior pixel (0, 0)
    LEAD = (-OFF) % 128             # leading slop so the interior slab is 128-aligned
    FLAT = LEAD + Hp1 * Wp
    HWIDE = H * Wp
    step = 1.0 / L

    # one-time pad + flatten into the lane-dense wide layout (XLA glue, done once for
    # the whole fused stack — not once per layer).
    x_nchw = jnp.transpose(xy_nhwc, (0, 3, 1, 2)).astype(jnp.float32)   # (N, 2, H, W)
    xpad = jnp.pad(x_nchw, ((0, 0), (0, 0),
                            (PAD_LO, PAD_HI + 1), (PAD_LO, PAD_HI + 1)))
    x0 = jnp.pad(xpad.reshape(N, 2, Hp1 * Wp), ((0, 0), (0, 0), (LEAD, 0)))

    # keep-zero mask for the garbage columns (computed once, resident)
    mask = (jnp.arange(HWIDE, dtype=jnp.int32) % Wp < W)
    mask = mask.astype(jnp.float32).reshape(1, HWIDE)

    # weight re-layouts (free wrapper plumbing)
    w1a_mat = jnp.transpose(w1a, (0, 1, 3, 4, 2)).reshape(L, HIDDEN, KSIZE * KSIZE * 2)
    b1a_c = b1a.reshape(L, HIDDEN, 1)
    b1b_c = b1b.reshape(L, 2, 1)

    # VMEM budget: resident scratch + double-buffered x0/out windows + resident weights
    # + in-kernel f32 temporaries (acc / ha / partials), with headroom; clamp to a
    # range that is safe on v5e/v6e (128 MiB) and v7x (64 MiB physical).
    est = 4 * (8 * FLAT * 3 + 8 * HWIDE * 4 + 8 * HWIDE * 12
               + L * 4 * 128 * 8 + 8 * 128)
    vmem_limit = int(min(32 * 2 ** 20, max(16 * 2 ** 20, 2 * est)))

    kernel = functools.partial(_block_stack_kernel, Wp=Wp, HWIDE=HWIDE,
                               LEAD=LEAD, OFF_AL=LEAD + OFF, step=float(step))
    out_wide = pl.pallas_call(
        kernel,
        out_shape=jax.ShapeDtypeStruct((N, L, 4, HWIDE), jnp.float32),
        grid=(N, L),
        in_specs=[
            pl.BlockSpec((1, 2, FLAT), lambda n, l: (n, 0, 0)),
            pl.BlockSpec((1, HWIDE), lambda n, l: (0, 0)),
            pl.BlockSpec((L, HIDDEN, KSIZE * KSIZE * 2), lambda n, l: (0, 0, 0)),
            pl.BlockSpec((L, HIDDEN, 1), lambda n, l: (0, 0, 0)),
            pl.BlockSpec((L, 2, HIDDEN), lambda n, l: (0, 0, 0)),
            pl.BlockSpec((L, 2, 1), lambda n, l: (0, 0, 0)),
        ],
        out_specs=pl.BlockSpec((1, 1, 4, HWIDE), lambda n, l: (n, l, 0, 0)),
        scratch_shapes=[pltpu.VMEM((2, FLAT), jnp.float32)],
        compiler_params=pltpu.CompilerParams(
            dimension_semantics=("parallel", "arbitrary"),
            vmem_limit_bytes=vmem_limit),
    )(x0, mask, w1a_mat, b1a_c, w1b, b1b_c)
    # TODO(synk): a row-tiled second parallel axis (halo in the scratch) would let v7x
    # use both TensorCores when N == 1; omitted — the carry would no longer be fully
    # VMEM-resident across layers.
    return out_wide, (H, W, Wp)


# -----------------------------------------------------------------------------
# grid_sample(J, xy, mode='bilinear', padding_mode='reflection',
#             align_corners=False) — separable row/column one-hot gather.
# -----------------------------------------------------------------------------
def _grid_sample_kernel(j_ref, g_ref, out_ref, *, C, Hs, Ws):
    """
      j_ref   : (1, C*Hs, Ws)  source image, pre-flattened in the wrapper (native dtype)
      g_ref   : (1, 2, PT)     sampling grid tile, channel 0 = x, channel 1 = y
      out_ref : (1, C, PT)     lane-dense output tile
    """
    PT = g_ref.shape[2]

    jmat = j_ref[0].astype(jnp.float32)   # (C*Hs, Ws), already 2-D — no block reshape
    g = g_ref[0]                          # (2, PT) — lane-dense coordinate math
    gx = g[0:1, :]
    gy = g[1:2, :]

    def to_src(c, size):
        sizef = float(size)
        # unnormalize (align_corners=False)
        c = ((c + 1.0) * sizef - 1.0) * 0.5
        # reflect about [-0.5, size - 0.5]
        c = jnp.abs(c + 0.5)
        extra = jnp.mod(c, sizef)
        flips = jnp.floor(c / sizef)
        even = jnp.mod(flips, 2.0) < 0.5
        c = jnp.where(even, extra - 0.5, sizef - extra - 0.5)
        return jnp.clip(c, 0.0, sizef - 1.0)

    ix = to_src(gx, Ws)
    iy = to_src(gy, Hs)
    ix0f = jnp.floor(ix)
    iy0f = jnp.floor(iy)
    wx1 = ix - ix0f
    wx0 = 1.0 - wx1
    wy1 = iy - iy0f
    wy0 = 1.0 - wy1
    ix0 = ix0f.astype(jnp.int32)
    iy0 = iy0f.astype(jnp.int32)

    # separable one-hot interpolation matrices (transposed: sample index on lanes).
    # Out-of-range +1 corners never match the iota and carry zero weight.
    x_iota = jax.lax.broadcasted_iota(jnp.int32, (Ws, PT), 0)
    colsT = (jnp.where(x_iota == ix0, wx0, 0.0) +
             jnp.where(x_iota == ix0 + 1, wx1, 0.0))          # (Ws, PT)
    y_iota = jax.lax.broadcasted_iota(jnp.int32, (Hs, PT), 0)
    rowsT = (jnp.where(y_iota == iy0, wy0, 0.0) +
             jnp.where(y_iota == iy0 + 1, wy1, 0.0))          # (Hs, PT)

    # x-interpolation on the MXU, y-interpolation as a VPU multiply + sublane reduce.
    xint = jnp.dot(jmat, colsT, preferred_element_type=jnp.float32)   # (C*Hs, PT)
    rows_out = [jnp.sum(xint[c * Hs:(c + 1) * Hs, :] * rowsT, axis=0, keepdims=True)
                for c in range(C)]
    res = rows_out[0] if C == 1 else jnp.concatenate(rows_out, axis=0)
    out_ref[0] = res.astype(out_ref.dtype)
    # TODO(synk): for large source images replace the dense one-hot x-interp matmul
    # with a scalar-prefetched row gather (PrefetchScalarGridSpec) — O(4 taps) per sample.


def grid_sample_bilinear_reflect(J, grid_cp, *, pt=256):
    """J: (N, C, Hs, Ws); grid_cp: (N, 2, P) with channel 0 = x, 1 = y in [-1, 1].
       Returns (N, C, P) sampled values."""
    N, C, Hs, Ws = J.shape
    P = grid_cp.shape[-1]
    n_pt = pl.cdiv(P, pt)
    P_pad = n_pt * pt
    g = grid_cp.astype(jnp.float32)
    if P_pad != P:
        g = jnp.pad(g, ((0, 0), (0, 0), (0, P_pad - P)))
    j2d = J.reshape(N, C * Hs, Ws)           # wrapper-side reshape; native dtype (no f32 copy)
    kernel = functools.partial(_grid_sample_kernel, C=C, Hs=Hs, Ws=Ws)
    out = pl.pallas_call(
        kernel,
        out_shape=jax.ShapeDtypeStruct((N, C, P_pad), J.dtype),
        grid=(N, n_pt),
        in_specs=[pl.BlockSpec((1, C * Hs, Ws), lambda n, p: (n, 0, 0)),
                  pl.BlockSpec((1, 2, pt), lambda n, p: (n, 0, p))],
        out_specs=pl.BlockSpec((1, C, pt), lambda n, p: (n, 0, p)),
        compiler_params=pltpu.CompilerParams(
            dimension_semantics=("parallel", "parallel")),
    )(j2d, g)
    return out[:, :, :P]


# -----------------------------------------------------------------------------
# ResNet forward
# -----------------------------------------------------------------------------
def init_resnet_params(key, num_layers, hidden=HIDDEN):
    k1, k2, k3, k4 = jax.random.split(key, 4)
    # TODO(synk): ResNet.__init__ also builds self.encoder; encode()/loss() are not
    # used by forward() and are intentionally not implemented here.
    return {
        "w1a": 0.05 * jax.random.normal(k1, (num_layers, hidden, 2, KSIZE, KSIZE), jnp.float32),
        "b1a": 0.05 * jax.random.normal(k2, (num_layers, hidden), jnp.float32),
        "w1b": 0.05 * jax.random.normal(k3, (num_layers, 2, hidden), jnp.float32),
        "b1b": 0.05 * jax.random.normal(k4, (num_layers, 2), jnp.float32),
    }


def resnet_forward(J, xy, params):
    """Mirrors ResNet.forward(J, xy):
       returns (J_warped, xy, {'vs': (L, N, 2, H, W), 'xys': [(N, H, W, 2), ...]})."""
    out_wide, (H, W, Wp) = block_stack_forward(xy, params)
    N, L = out_wide.shape[0], out_wide.shape[1]
    out5 = out_wide.reshape(N, L, 4, H, Wp)

    # fused strip + transpose (one pass per consumer instead of per layer)
    vs = jnp.transpose(out5[:, :, 2:4, :, :W], (1, 0, 2, 3, 4))        # (L, N, 2, H, W)
    xys_all = jnp.transpose(out5[:, :, 0:2, :, :W], (1, 0, 3, 4, 2))   # (L, N, H, W, 2)
    xys = [xys_all[l] for l in range(L)]
    xy_final = xys[-1]                                                 # (N, H, W, 2)

    # grid-sample with the final field; lane-dense (N, 2, P) grid, (N, C, P) output.
    g = out5[:, L - 1, 0:2, :, :W].reshape(N, 2, H * W)                # channel 0 = x
    C = J.shape[1]
    Jw = grid_sample_bilinear_reflect(J, g).reshape(N, C, H, W)
    return Jw, xy_final, {"vs": vs, "xys": xys}


if __name__ == "__main__":
    key = jax.random.PRNGKey(0)
    k_j, k_xy, k_p = jax.random.split(key, 3)
    N, C, H, W = 2, 1, 16, 16
    num_layers = 2

    J = jax.random.normal(k_j, (N, C, H, W), jnp.float32)
    # identity-ish sampling grid in [-1, 1] plus small noise
    ys = jnp.linspace(-1.0 + 1.0 / H, 1.0 - 1.0 / H, H)
    xs = jnp.linspace(-1.0 + 1.0 / W, 1.0 - 1.0 / W, W)
    gy, gx = jnp.meshgrid(ys, xs, indexing="ij")
    base = jnp.stack([gx, gy], axis=-1)[None]                 # (1, H, W, 2)
    xy = jnp.tile(base, (N, 1, 1, 1)) + 0.05 * jax.random.normal(k_xy, (N, H, W, 2))

    params = init_resnet_params(k_p, num_layers)

    fwd = jax.jit(resnet_forward)
    Jw, xy_out, past = fwd(J, xy, params)
    jax.block_until_ready((Jw, xy_out, past["vs"], past["xys"]))

    assert Jw.shape == (N, C, H, W)
    assert xy_out.shape == (N, H, W, 2)
    assert past["vs"].shape == (num_layers, N, 2, H, W)
    assert len(past["xys"]) == num_layers
    assert all(x.shape == (N, H, W, 2) for x in past["xys"])
    print("KERNEL_OK")
</pallas_src>

<mosaic_0001>
module attributes {stable_mosaic.version = 11 : i64} {
  func.func @_block_stack_kernel(%arg0: i32, %arg1: i32, %arg2: memref<1x2x629xf32, #tpu.memory_space<vmem>>, %arg3: memref<1x384xf32, #tpu.memory_space<vmem>>, %arg4: memref<2x8x128xf32, #tpu.memory_space<vmem>>, %arg5: memref<2x8x1xf32, #tpu.memory_space<vmem>>, %arg6: memref<2x2x8xf32, #tpu.memory_space<vmem>>, %arg7: memref<2x2x1xf32, #tpu.memory_space<vmem>>, %arg8: memref<1x1x4x384xf32, #tpu.memory_space<vmem>>, %arg9: memref<2x629xf32, #tpu.memory_space<vmem>>) attributes {dimension_semantics = [#tpu.dimension_semantics<parallel>, #tpu.dimension_semantics<arbitrary>], iteration_bounds = array<i64: 2, 2>, scalar_prefetch = 0 : i64, scratch_operands = 1 : i64, tpu.core_type = #tpu.core_type<tc>, window_params = [{transform_indices = @transform_0, window_bounds = array<i64: 1, 2, 629>}, {pipeline_mode = #tpu.pipeline_mode<synchronous>, transform_indices = @transform_1, window_bounds = array<i64: 1, 384>}, {pipeline_mode = #tpu.pipeline_mode<synchronous>, transform_indices = @transform_2, window_bounds = array<i64: 2, 8, 128>}, {pipeline_mode = #tpu.pipeline_mode<synchronous>, transform_indices = @transform_3, window_bounds = array<i64: 2, 8, 1>}, {pipeline_mode = #tpu.pipeline_mode<synchronous>, transform_indices = @transform_4, window_bounds = array<i64: 2, 2, 8>}, {pipeline_mode = #tpu.pipeline_mode<synchronous>, transform_indices = @transform_5, window_bounds = array<i64: 2, 2, 1>}, {transform_indices = @transform_6, window_bounds = array<i64: 1, 1, 4, 384>}]} {
    %c0_i32 = arith.constant 0 : i32
    %0 = arith.cmpi eq, %arg1, %c0_i32 : i32
    %1 = arith.extui %0 : i1 to i32
    %c0_i32_0 = arith.constant 0 : i32
    %2 = arith.cmpi ne, %1, %c0_i32_0 : i32
    scf.if %2 {
      %c0_80 = arith.constant 0 : index
      %c0_81 = arith.constant 0 : index
      %c0_82 = arith.constant 0 : index
      %921 = vector.load %arg2[%c0_80, %c0_81, %c0_82] : memref<1x2x629xf32, #tpu.memory_space<vmem>>, vector<1x2x629xf32>
      %922 = vector.shape_cast %921 : vector<1x2x629xf32> to vector<2x629xf32>
      %c0_83 = arith.constant 0 : index
      %c0_84 = arith.constant 0 : index
      %923 = vector.load %arg9[%c0_83, %c0_84] : memref<2x629xf32, #tpu.memory_space<vmem>>, vector<2x629xf32>
      tpu.vector_store %arg9[%c0_83, %c0_84], %922 {strides = array<i32>} : memref<2x629xf32, #tpu.memory_space<vmem>>, vector<2x629xf32>,
    } else {
    }
    %3 = arith.index_cast %arg1 : i32 to index
    %c0 = arith.constant 0 : index
    %c0_1 = arith.constant 0 : index
    %4 = vector.load %arg4[%3, %c0, %c0_1] : memref<2x8x128xf32, #tpu.memory_space<vmem>>, vector<1x8x128xf32>
    %5 = vector.shape_cast %4 : vector<1x8x128xf32> to vector<8x128xf32>
    %6 = arith.index_cast %arg1 : i32 to index
    %c0_2 = arith.constant 0 : index
    %c0_3 = arith.constant 0 : index
    %7 = vector.load %arg6[%6, %c0_2, %c0_3] : memref<2x2x8xf32, #tpu.memory_space<vmem>>, vector<1x2x8xf32>
    %8 = vector.shape_cast %7 : vector<1x2x8xf32> to vector<2x8xf32>
    %c0_4 = arith.constant 0 : index
    %c53 = arith.constant 53 : index
    %9 = vector.load %arg9[%c0_4, %c53] : memref<2x629xf32, #tpu.memory_space<vmem>>, vector<2x384xf32>
    %10 = vector.extract_strided_slice %5 {offsets = [0, 0], sizes = [8, 1], strides = [1, 1]} : vector<8x128xf32> to vector<8x1xf32>
    %11 = vector.extract_strided_slice %9 {offsets = [0, 0], sizes = [1, 384], strides = [1, 1]} : vector<2x384xf32> to vector<1x384xf32>
    %12 = vector.broadcast %10 : vector<8x1xf32> to vector<8x384xf32>
    %13 = vector.broadcast %11 : vector<1x384xf32> to vector<8x384xf32>
    %14 = arith.mulf %12, %13 : vector<8x384xf32>
    %15 = vector.extract_strided_slice %5 {offsets = [0, 1], sizes = [8, 1], strides = [1, 1]} : vector<8x128xf32> to vector<8x1xf32>
    %16 = vector.extract_strided_slice %9 {offsets = [1, 0], sizes = [1, 384], strides = [1, 1]} : vector<2x384xf32> to vector<1x384xf32>
    %17 = vector.broadcast %15 : vector<8x1xf32> to vector<8x384xf32>
    %18 = vector.broadcast %16 : vector<1x384xf32> to vector<8x384xf32>
    %19 = arith.mulf %17, %18 : vector<8x384xf32>
    %20 = arith.addf %14, %19 : vector<8x384xf32>
    %c383_i32 = arith.constant 383 : i32
    %21 = tpu.dynamic_rotate %9 by %c383_i32 dim 1 : vector<2x384xf32>, i32 -> vector<2x384xf32>
    %22 = vector.extract_strided_slice %5 {offsets = [0, 2], sizes = [8, 1], strides = [1, 1]} : vector<8x128xf32> to vector<8x1xf32>
    %23 = vector.extract_strided_slice %21 {offsets = [0, 0], sizes = [1, 384], strides = [1, 1]} : vector<2x384xf32> to vector<1x384xf32>
    %24 = vector.broadcast %22 : vector<8x1xf32> to vector<8x384xf32>
    %25 = vector.broadcast %23 : vector<1x384xf32> to vector<8x384xf32>
    %26 = arith.mulf %24, %25 : vector<8x384xf32>
    %27 = vector.extract_strided_slice %5 {offsets = [0, 3], sizes = [8, 1], strides = [1, 1]} : vector<8x128xf32> to vector<8x1xf32>
    %28 = vector.extract_strided_slice %21 {offsets = [1, 0], sizes = [1, 384], strides = [1, 1]} : vector<2x384xf32> to vector<1x384xf32>
    %29 = vector.broadcast %27 : vector<8x1xf32> to vector<8x384xf32>
    %30 = vector.broadcast %28 : vector<1x384xf32> to vector<8x384xf32>
    %31 = arith.mulf %29, %30 : vector<8x384xf32>
    %32 = arith.addf %26, %31 : vector<8x384xf32>
    %c382_i32 = arith.constant 382 : i32
    %33 = tpu.dynamic_rotate %9 by %c382_i32 dim 1 : vector<2x384xf32>, i32 -> vector<2x384xf32>
    %34 = vector.extract_strided_slice %5 {offsets = [0, 4], sizes = [8, 1], strides = [1, 1]} : vector<8x128xf32> to vector<8x1xf32>
    %35 = vector.extract_strided_slice %33 {offsets = [0, 0], sizes = [1, 384], strides = [1, 1]} : vector<2x384xf32> to vector<1x384xf32>
    %36 = vector.broadcast %34 : vector<8x1xf32> to vector<8x384xf32>
    %37 = vector.broadcast %35 : vector<1x384xf32> to vector<8x384xf32>
    %38 = arith.mulf %36, %37 : vector<8x384xf32>
    %39 = vector.extract_strided_slice %5 {offsets = [0, 5], sizes = [8, 1], strides = [1, 1]} : vector<8x128xf32> to vector<8x1xf32>
    %40 = vector.extract_strided_slice %33 {offsets = [1, 0], sizes = [1, 384], strides = [1, 1]} : vector<2x384xf32> to vector<1x384xf32>
    %41 = vector.broadcast %39 : vector<8x1xf32> to vector<8x384xf32>
    %42 = vector.broadcast %40 : vector<1x384xf32> to vector<8x384xf32>
    %43 = arith.mulf %41, %42 : vector<8x384xf32>
    %44 = arith.addf %38, %43 : vector<8x384xf32>
    %c381_i32 = arith.constant 381 : i32
    %45 = tpu.dynamic_rotate %9 by %c381_i32 dim 1 : vector<2x384xf32>, i32 -> vector<2x384xf32>
    %46 = vector.extract_strided_slice %5 {offsets = [0, 6], sizes = [8, 1], strides = [1, 1]} : vector<8x128xf32> to vector<8x1xf32>
    %47 = vector.extract_strided_slice %45 {offsets = [0, 0], sizes = [1, 384], strides = [1, 1]} : vector<2x384xf32> to vector<1x384xf32>
    %48 = vector.broadcast %46 : vector<8x1xf32> to vector<8x384xf32>
    %49 = vector.broadcast %47 : vector<1x384xf32> to vector<8x384xf32>
    %50 = arith.mulf %48, %49 : vector<8x384xf32>
    %51 = vector.extract_strided_slice %5 {offsets = [0, 7], sizes = [8, 1], strides = [1, 1]} : vector<8x128xf32> to vector<8x1xf32>
    %52 = vector.extract_strided_slice %45 {offsets = [1, 0], sizes = [1, 384], strides = [1, 1]} : vector<2x384xf32> to vector<1x384xf32>
    %53 = vector.broadcast %51 : vector<8x1xf32> to vector<8x384xf32>
    %54 = vector.broadcast %52 : vector<1x384xf32> to vector<8x384xf32>
    %55 = arith.mulf %53, %54 : vector<8x384xf32>
    %56 = arith.addf %50, %55 : vector<8x384xf32>
    %c380_i32 = arith.constant 380 : i32
    %57 = tpu.dynamic_rotate %9 by %c380_i32 dim 1 : vector<2x384xf32>, i32 -> vector<2x384xf32>
    %58 = vector.extract_strided_slice %5 {offsets = [0, 8], sizes = [8, 1], strides = [1, 1]} : vector<8x128xf32> to vector<8x1xf32>
    %59 = vector.extract_strided_slice %57 {offsets = [0, 0], sizes = [1, 384], strides = [1, 1]} : vector<2x384xf32> to vector<1x384xf32>
    %60 = vector.broadcast %58 : vector<8x1xf32> to vector<8x384xf32>
    %61 = vector.broadcast %59 : vector<1x384xf32> to vector<8x384xf32>
    %62 = arith.mulf %60, %61 : vector<8x384xf32>
    %63 = vector.extract_strided_slice %5 {offsets = [0, 9], sizes = [8, 1], strides = [1, 1]} : vector<8x128xf32> to vector<8x1xf32>
    %64 = vector.extract_strided_slice %57 {offsets = [1, 0], sizes = [1, 384], strides = [1, 1]} : vector<2x384xf32> to vector<1x384xf32>
    %65 = vector.broadcast %63 : vector<8x1xf32> to vector<8x384xf32>
    %66 = vector.broadcast %64 : vector<1x384xf32> to vector<8x384xf32>
    %67 = arith.mulf %65, %66 : vector<8x384xf32>
    %68 = arith.addf %62, %67 : vector<8x384xf32>
    %69 = arith.addf %20, %68 : vector<8x384xf32>
    %c379_i32 = arith.constant 379 : i32
    %70 = tpu.dynamic_rotate %9 by %c379_i32 dim 1 : vector<2x384xf32>, i32 -> vector<2x384xf32>
    %71 = vector.extract_strided_slice %5 {offsets = [0, 10], sizes = [8, 1], strides = [1, 1]} : vector<8x128xf32> to vector<8x1xf32>
    %72 = vector.extract_strided_slice %70 {offsets = [0, 0], sizes = [1, 384], strides = [1, 1]} : vector<2x384xf32> to vector<1x384xf32>
    %73 = vector.broadcast %71 : vector<8x1xf32> to vector<8x384xf32>
    %74 = vector.broadcast %72 : vector<1x384xf32> to vector<8x384xf32>
    %75 = arith.mulf %73, %74 : vector<8x384xf32>
    %76 = vector.extract_strided_slice %5 {offsets = [0, 11], sizes = [8, 1], strides = [1, 1]} : vector<8x128xf32> to vector<8x1xf32>
    %77 = vector.extract_strided_slice %70 {offsets = [1, 0], sizes = [1, 384], strides = [1, 1]} : vector<2x384xf32> to vector<1x384xf32>
    %78 = vector.broadcast %76 : vector<8x1xf32> to vector<8x384xf32>
    %79 = vector.broadcast %77 : vector<1x384xf32> to vector<8x384xf32>
    %80 = arith.mulf %78, %79 : vector<8x384xf32>
    %81 = arith.addf %75, %80 : vector<8x384xf32>
    %82 = arith.addf %32, %81 : vector<8x384xf32>
    %c378_i32 = arith.constant 378 : i32
    %83 = tpu.dynamic_rotate %9 by %c378_i32 dim 1 : vector<2x384xf32>, i32 -> vector<2x384xf32>
    %84 = vector.extract_strided_slice %5 {offsets = [0, 12], sizes = [8, 1], strides = [1, 1]} : vector<8x128xf32> to vector<8x1xf32>
    %85 = vector.extract_strided_slice %83 {offsets = [0, 0], sizes = [1, 384], strides = [1, 1]} : vector<2x384xf32> to vector<1x384xf32>
    %86 = vector.broadcast %84 : vector<8x1xf32> to vector<8x384xf32>
    %87 = vector.broadcast %85 : vector<1x384xf32> to vector<8x384xf32>
    %88 = arith.mulf %86, %87 : vector<8x384xf32>
    %89 = vector.extract_strided_slice %5 {offsets = [0, 13], sizes = [8, 1], strides = [1, 1]} : vector<8x128xf32> to vector<8x1xf32>
    %90 = vector.extract_strided_slice %83 {offsets = [1, 0], sizes = [1, 384], strides = [1, 1]} : vector<2x384xf32> to vector<1x384xf32>
    %91 = vector.broadcast %89 : vector<8x1xf32> to vector<8x384xf32>
    %92 = vector.broadcast %90 : vector<1x384xf32> to vector<8x384xf32>
    %93 = arith.mulf %91, %92 : vector<8x384xf32>
    %94 = arith.addf %88, %93 : vector<8x384xf32>
    %95 = arith.addf %44, %94 : vector<8x384xf32>
    %c377_i32 = arith.constant 377 : i32
    %96 = tpu.dynamic_rotate %9 by %c377_i32 dim 1 : vector<2x384xf32>, i32 -> vector<2x384xf32>
    %97 = vector.extract_strided_slice %5 {offsets = [0, 14], sizes = [8, 1], strides = [1, 1]} : vector<8x128xf32> to vector<8x1xf32>
    %98 = vector.extract_strided_slice %96 {offsets = [0, 0], sizes = [1, 384], strides = [1, 1]} : vector<2x384xf32> to vector<1x384xf32>
    %99 = vector.broadcast %97 : vector<8x1xf32> to vector<8x384xf32>
    %100 = vector.broadcast %98 : vector<1x384xf32> to vector<8x384xf32>
    %101 = arith.mulf %99, %100 : vector<8x384xf32>
    %102 = vector.extract_strided_slice %5 {offsets = [0, 15], sizes = [8, 1], strides = [1, 1]} : vector<8x128xf32> to vector<8x1xf32>
    %103 = vector.extract_strided_slice %96 {offsets = [1, 0], sizes = [1, 384], strides = [1, 1]} : vector<2x384xf32> to vector<1x384xf32>
    %104 = vector.broadcast %102 : vector<8x1xf32> to vector<8x384xf32>
    %105 = vector.broadcast %103 : vector<1x384xf32> to vector<8x384xf32>
    %106 = arith.mulf %104, %105 : vector<8x384xf32>
    %107 = arith.addf %101, %106 : vector<8x384xf32>
    %108 = arith.addf %56, %107 : vector<8x384xf32>
    %c0_5 = arith.constant 0 : index
    %c77 = arith.constant 77 : index
    %109 = vector.load %arg9[%c0_5, %c77] : memref<2x629xf32, #tpu.memory_space<vmem>>, vector<2x384xf32>
    %110 = vector.extract_strided_slice %5 {offsets = [0, 16], sizes = [8, 1], strides = [1, 1]} : vector<8x128xf32> to vector<8x1xf32>
    %111 = vector.extract_strided_slice %109 {offsets = [0, 0], sizes = [1, 384], strides = [1, 1]} : vector<2x384xf32> to vector<1x384xf32>
    %112 = vector.broadcast %110 : vector<8x1xf32> to vector<8x384xf32>
    %113 = vector.broadcast %111 : vector<1x384xf32> to vector<8x384xf32>
    %114 = arith.mulf %112, %113 : vector<8x384xf32>
    %115 = vector.extract_strided_slice %5 {offsets = [0, 17], sizes = [8, 1], strides = [1, 1]} : vector<8x128xf32> to vector<8x1xf32>
    %116 = vector.extract_strided_slice %109 {offsets = [1, 0], sizes = [1, 384], strides = [1, 1]} : vector<2x384xf32> to vector<1x384xf32>
    %117 = vector.broadcast %115 : vector<8x1xf32> to vector<8x384xf32>
    %118 = vector.broadcast %116 : vector<1x384xf32> to vector<8x384xf32>
    %119 = arith.mulf %117, %118 : vector<8x384xf32>
    %120 = arith.addf %114, %119 : vector<8x384xf32>
    %121 = arith.addf %69, %120 : vector<8x384xf32>
    %c383_i32_6 = arith.constant 383 : i32
    %122 = tpu.dynamic_rotate %109 by %c383_i32_6 dim 1 : vector<2x384xf32>, i32 -> vector<2x384xf32>
    %123 = vector.extract_strided_slice %5 {offsets = [0, 18], sizes = [8, 1], strides = [1, 1]} : vector<8x128xf32> to vector<8x1xf32>
    %124 = vector.extract_strided_slice %122 {offsets = [0, 0], sizes = [1, 384], strides = [1, 1]} : vector<2x384xf32> to vector<1x384xf32>
    %125 = vector.broadcast %123 : vector<8x1xf32> to vector<8x384xf32>
    %126 = vector.broadcast %124 : vector<1x384xf32> to vector<8x384xf32>
    %127 = arith.mulf %125, %126 : vector<8x384xf32>
    %128 = vector.extract_strided_slice %5 {offsets = [0, 19], sizes = [8, 1], strides = [1, 1]} : vector<8x128xf32> to vector<8x1xf32>
    %129 = vector.extract_strided_slice %122 {offsets = [1, 0], sizes = [1, 384], strides = [1, 1]} : vector<2x384xf32> to vector<1x384xf32>
    %130 = vector.broadcast %128 : vector<8x1xf32> to vector<8x384xf32>
    %131 = vector.broadcast %129 : vector<1x384xf32> to vector<8x384xf32>
    %132 = arith.mulf %130, %131 : vector<8x384xf32>
    %133 = arith.addf %127, %132 : vector<8x384xf32>
    %134 = arith.addf %82, %133 : vector<8x384xf32>
    %c382_i32_7 = arith.constant 382 : i32
    %135 = tpu.dynamic_rotate %109 by %c382_i32_7 dim 1 : vector<2x384xf32>, i32 -> vector<2x384xf32>
    %136 = vector.extract_strided_slice %5 {offsets = [0, 20], sizes = [8, 1], strides = [1, 1]} : vector<8x128xf32> to vector<8x1xf32>
    %137 = vector.extract_strided_slice %135 {offsets = [0, 0], sizes = [1, 384], strides = [1, 1]} : vector<2x384xf32> to vector<1x384xf32>
    %138 = vector.broadcast %136 : vector<8x1xf32> to vector<8x384xf32>
    %139 = vector.broadcast %137 : vector<1x384xf32> to vector<8x384xf32>
    %140 = arith.mulf %138, %139 : vector<8x384xf32>
    %141 = vector.extract_strided_slice %5 {offsets = [0, 21], sizes = [8, 1], strides = [1, 1]} : vector<8x128xf32> to vector<8x1xf32>
    %142 = vector.extract_strided_slice %135 {offsets = [1, 0], sizes = [1, 384], strides = [1, 1]} : vector<2x384xf32> to vector<1x384xf32>
    %143 = vector.broadcast %141 : vector<8x1xf32> to vector<8x384xf32>
    %144 = vector.broadcast %142 : vector<1x384xf32> to vector<8x384xf32>
    %145 = arith.mulf %143, %144 : vector<8x384xf32>
    %146 = arith.addf %140, %145 : vector<8x384xf32>
    %147 = arith.addf %95, %146 : vector<8x384xf32>
    %c381_i32_8 = arith.constant 381 : i32
    %148 = tpu.dynamic_rotate %109 by %c381_i32_8 dim 1 : vector<2x384xf32>, i32 -> vector<2x384xf32>
    %149 = vector.extract_strided_slice %5 {offsets = [0, 22], sizes = [8, 1], strides = [1, 1]} : vector<8x128xf32> to vector<8x1xf32>
    %150 = vector.extract_strided_slice %148 {offsets = [0, 0], sizes = [1, 384], strides = [1, 1]} : vector<2x384xf32> to vector<1x384xf32>
    %151 = vector.broadcast %149 : vector<8x1xf32> to vector<8x384xf32>
    %152 = vector.broadcast %150 : vector<1x384xf32> to vector<8x384xf32>
    %153 = arith.mulf %151, %152 : vector<8x384xf32>
    %154 = vector.extract_strided_slice %5 {offsets = [0, 23], sizes = [8, 1], strides = [1, 1]} : vector<8x128xf32> to vector<8x1xf32>
    %155 = vector.extract_strided_slice %148 {offsets = [1, 0], sizes = [1, 384], strides = [1, 1]} : vector<2x384xf32> to vector<1x384xf32>
    %156 = vector.broadcast %154 : vector<8x1xf32> to vector<8x384xf32>
    %157 = vector.broadcast %155 : vector<1x384xf32> to vector<8x384xf32>
    %158 = arith.mulf %156, %157 : vector<8x384xf32>
    %159 = arith.addf %153, %158 : vector<8x384xf32>
    %160 = arith.addf %108, %159 : vector<8x384xf32>
    %c380_i32_9 = arith.constant 380 : i32
    %161 = tpu.dynamic_rotate %109 by %c380_i32_9 dim 1 : vector<2x384xf32>, i32 -> vector<2x384xf32>
    %162 = vector.extract_strided_slice %5 {offsets = [0, 24], sizes = [8, 1], strides = [1, 1]} : vector<8x128xf32> to vector<8x1xf32>
    %163 = vector.extract_strided_slice %161 {offsets = [0, 0], sizes = [1, 384], strides = [1, 1]} : vector<2x384xf32> to vector<1x384xf32>
    %164 = vector.broadcast %162 : vector<8x1xf32> to vector<8x384xf32>
    %165 = vector.broadcast %163 : vector<1x384xf32> to vector<8x384xf32>
    %166 = arith.mulf %164, %165 : vector<8x384xf32>
    %167 = vector.extract_strided_slice %5 {offsets = [0, 25], sizes = [8, 1], strides = [1, 1]} : vector<8x128xf32> to vector<8x1xf32>
    %168 = vector.extract_strided_slice %161 {offsets = [1, 0], sizes = [1, 384], strides = [1, 1]} : vector<2x384xf32> to vector<1x384xf32>
    %169 = vector.broadcast %167 : vector<8x1xf32> to vector<8x384xf32>
    %170 = vector.broadcast %168 : vector<1x384xf32> to vector<8x384xf32>
    %171 = arith.mulf %169, %170 : vector<8x384xf32>
    %172 = arith.addf %166, %171 : vector<8x384xf32>
    %173 = arith.addf %121, %172 : vector<8x384xf32>
    %c379_i32_10 = arith.constant 379 : i32
    %174 = tpu.dynamic_rotate %109 by %c379_i32_10 dim 1 : vector<2x384xf32>, i32 -> vector<2x384xf32>
    %175 = vector.extract_strided_slice %5 {offsets = [0, 26], sizes = [8, 1], strides = [1, 1]} : vector<8x128xf32> to vector<8x1xf32>
    %176 = vector.extract_strided_slice %174 {offsets = [0, 0], sizes = [1, 384], strides = [1, 1]} : vector<2x384xf32> to vector<1x384xf32>
    %177 = vector.broadcast %175 : vector<8x1xf32> to vector<8x384xf32>
    %178 = vector.broadcast %176 : vector<1x384xf32> to vector<8x384xf32>
    %179 = arith.mulf %177, %178 : vector<8x384xf32>
    %180 = vector.extract_strided_slice %5 {offsets = [0, 27], sizes = [8, 1], strides = [1, 1]} : vector<8x128xf32> to vector<8x1xf32>
    %181 = vector.extract_strided_slice %174 {offsets = [1, 0], sizes = [1, 384], strides = [1, 1]} : vector<2x384xf32> to vector<1x384xf32>
    %182 = vector.broadcast %180 : vector<8x1xf32> to vector<8x384xf32>
    %183 = vector.broadcast %181 : vector<1x384xf32> to vector<8x384xf32>
    %184 = arith.mulf %182, %183 : vector<8x384xf32>
    %185 = arith.addf %179, %184 : vector<8x384xf32>
    %186 = arith.addf %134, %185 : vector<8x384xf32>
    %c378_i32_11 = arith.constant 378 : i32
    %187 = tpu.dynamic_rotate %109 by %c378_i32_11 dim 1 : vector<2x384xf32>, i32 -> vector<2x384xf32>
    %188 = vector.extract_strided_slice %5 {offsets = [0, 28], sizes = [8, 1], strides = [1, 1]} : vector<8x128xf32> to vector<8x1xf32>
    %189 = vector.extract_strided_slice %187 {offsets = [0, 0], sizes = [1, 384], strides = [1, 1]} : vector<2x384xf32> to vector<1x384xf32>
    %190 = vector.broadcast %188 : vector<8x1xf32> to vector<8x384xf32>
    %191 = vector.broadcast %189 : vector<1x384xf32> to vector<8x384xf32>
    %192 = arith.mulf %190, %191 : vector<8x384xf32>
    %193 = vector.extract_strided_slice %5 {offsets = [0, 29], sizes = [8, 1], strides = [1, 1]} : vector<8x128xf32> to vector<8x1xf32>
    %194 = vector.extract_strided_slice %187 {offsets = [1, 0], sizes = [1, 384], strides = [1, 1]} : vector<2x384xf32> to vector<1x384xf32>
    %195 = vector.broadcast %193 : vector<8x1xf32> to vector<8x384xf32>
    %196 = vector.broadcast %194 : vector<1x384xf32> to vector<8x384xf32>
    %197 = arith.mulf %195, %196 : vector<8x384xf32>
    %198 = arith.addf %192, %197 : vector<8x384xf32>
    %199 = arith.addf %147, %198 : vector<8x384xf32>
    %c377_i32_12 = arith.constant 377 : i32
    %200 = tpu.dynamic_rotate %109 by %c377_i32_12 dim 1 : vector<2x384xf32>, i32 -> vector<2x384xf32>
    %201 = vector.extract_strided_slice %5 {offsets = [0, 30], sizes = [8, 1], strides = [1, 1]} : vector<8x128xf32> to vector<8x1xf32>
    %202 = vector.extract_strided_slice %200 {offsets = [0, 0], sizes = [1, 384], strides = [1, 1]} : vector<2x384xf32> to vector<1x384xf32>
    %203 = vector.broadcast %201 : vector<8x1xf32> to vector<8x384xf32>
    %204 = vector.broadcast %202 : vector<1x384xf32> to vector<8x384xf32>
    %205 = arith.mulf %203, %204 : vector<8x384xf32>
    %206 = vector.extract_strided_slice %5 {offsets = [0, 31], sizes = [8, 1], strides = [1, 1]} : vector<8x128xf32> to vector<8x1xf32>
    %207 = vector.extract_strided_slice %200 {offsets = [1, 0], sizes = [1, 384], strides = [1, 1]} : vector<2x384xf32> to vector<1x384xf32>
    %208 = vector.broadcast %206 : vector<8x1xf32> to vector<8x384xf32>
    %209 = vector.broadcast %207 : vector<1x384xf32> to vector<8x384xf32>
    %210 = arith.mulf %208, %209 : vector<8x384xf32>
    %211 = arith.addf %205, %210 : vector<8x384xf32>
    %212 = arith.addf %160, %211 : vector<8x384xf32>
    %c0_13 = arith.constant 0 : index
    %c101 = arith.constant 101 : index
    %213 = vector.load %arg9[%c0_13, %c101] : memref<2x629xf32, #tpu.memory_space<vmem>>, vector<2x384xf32>
    %214 = vector.extract_strided_slice %5 {offsets = [0, 32], sizes = [8, 1], strides = [1, 1]} : vector<8x128xf32> to vector<8x1xf32>
    %215 = vector.extract_strided_slice %213 {offsets = [0, 0], sizes = [1, 384], strides = [1, 1]} : vector<2x384xf32> to vector<1x384xf32>
    %216 = vector.broadcast %214 : vector<8x1xf32> to vector<8x384xf32>
    %217 = vector.broadcast %215 : vector<1x384xf32> to vector<8x384xf32>
    %218 = arith.mulf %216, %217 : vector<8x384xf32>
    %219 = vector.extract_strided_slice %5 {offsets = [0, 33], sizes = [8, 1], strides = [1, 1]} : vector<8x128xf32> to vector<8x1xf32>
    %220 = vector.extract_strided_slice %213 {offsets = [1, 0], sizes = [1, 384], strides = [1, 1]} : vector<2x384xf32> to vector<1x384xf32>
    %221 = vector.broadcast %219 : vector<8x1xf32> to vector<8x384xf32>
    %222 = vector.broadcast %220 : vector<1x384xf32> to vector<8x384xf32>
    %223 = arith.mulf %221, %222 : vector<8x384xf32>
    %224 = arith.addf %218, %223 : vector<8x384xf32>
    %225 = arith.addf %173, %224 : vector<8x384xf32>
    %c383_i32_14 = arith.constant 383 : i32
    %226 = tpu.dynamic_rotate %213 by %c383_i32_14 dim 1 : vector<2x384xf32>, i32 -> vector<2x384xf32>
    %227 = vector.extract_strided_slice %5 {offsets = [0, 34], sizes = [8, 1], strides = [1, 1]} : vector<8x128xf32> to vector<8x1xf32>
    %228 = vector.extract_strided_slice %226 {offsets = [0, 0], sizes = [1, 384], strides = [1, 1]} : vector<2x384xf32> to vector<1x384xf32>
    %229 = vector.broadcast %227 : vector<8x1xf32> to vector<8x384xf32>
    %230 = vector.broadcast %228 : vector<1x384xf32> to vector<8x384xf32>
    %231 = arith.mulf %229, %230 : vector<8x384xf32>
    %232 = vector.extract_strided_slice %5 {offsets = [0, 35], sizes = [8, 1], strides = [1, 1]} : vector<8x128xf32> to vector<8x1xf32>
    %233 = vector.extract_strided_slice %226 {offsets = [1, 0], sizes = [1, 384], strides = [1, 1]} : vector<2x384xf32> to vector<1x384xf32>
    %234 = vector.broadcast %232 : vector<8x1xf32> to vector<8x384xf32>
    %235 = vector.broadcast %233 : vector<1x384xf32> to vector<8x384xf32>
    %236 = arith.mulf %234, %235 : vector<8x384xf32>
    %237 = arith.addf %231, %236 : vector<8x384xf32>
    %238 = arith.addf %186, %237 : vector<8x384xf32>
    %c382_i32_15 = arith.constant 382 : i32
    %239 = tpu.dynamic_rotate %213 by %c382_i32_15 dim 1 : vector<2x384xf32>, i32 -> vector<2x384xf32>
    %240 = vector.extract_strided_slice %5 {offsets = [0, 36], sizes = [8, 1], strides = [1, 1]} : vector<8x128xf32> to vector<8x1xf32>
    %241 = vector.extract_strided_slice %239 {offsets = [0, 0], sizes = [1, 384], strides = [1, 1]} : vector<2x384xf32> to vector<1x384xf32>
    %242 = vector.broadcast %240 : vector<8x1xf32> to vector<8x384xf32>
    %243 = vector.broadcast %241 : vector<1x384xf32> to vector<8x384xf32>
    %244 = arith.mulf %242, %243 : vector<8x384xf32>
    %245 = vector.extract_strided_slice %5 {offsets = [0, 37], sizes = [8, 1], strides = [1, 1]} : vector<8x128xf32> to vector<8x1xf32>
    %246 = vector.extract_strided_slice %239 {offsets = [1, 0], sizes = [1, 384], strides = [1, 1]} : vector<2x384xf32> to vector<1x384xf32>
    %247 = vector.broadcast %245 : vector<8x1xf32> to vector<8x384xf32>
    %248 = vector.broadcast %246 : vector<1x384xf32> to vector<8x384xf32>
    %249 = arith.mulf %247, %248 : vector<8x384xf32>
    %250 = arith.addf %244, %249 : vector<8x384xf32>
    %251 = arith.addf %199, %250 : vector<8x384xf32>
    %c381_i32_16 = arith.constant 381 : i32
    %252 = tpu.dynamic_rotate %213 by %c381_i32_16 dim 1 : vector<2x384xf32>, i32 -> vector<2x384xf32>
    %253 = vector.extract_strided_slice %5 {offsets = [0, 38], sizes = [8, 1], strides = [1, 1]} : vector<8x128xf32> to vector<8x1xf32>
    %254 = vector.extract_strided_slice %252 {offsets = [0, 0], sizes = [1, 384], strides = [1, 1]} : vector<2x384xf32> to vector<1x384xf32>
    %255 = vector.broadcast %253 : vector<8x1xf32> to vector<8x384xf32>
    %256 = vector.broadcast %254 : vector<1x384xf32> to vector<8x384xf32>
    %257 = arith.mulf %255, %256 : vector<8x384xf32>
    %258 = vector.extract_strided_slice %5 {offsets = [0, 39], sizes = [8, 1], strides = [1, 1]} : vector<8x128xf32> to vector<8x1xf32>
    %259 = vector.extract_strided_slice %252 {offsets = [1, 0], sizes = [1, 384], strides = [1, 1]} : vector<2x384xf32> to vector<1x384xf32>
    %260 = vector.broadcast %258 : vector<8x1xf32> to vector<8x384xf32>
    %261 = vector.broadcast %259 : vector<1x384xf32> to vector<8x384xf32>
    %262 = arith.mulf %260, %261 : vector<8x384xf32>
    %263 = arith.addf %257, %262 : vector<8x384xf32>
    %264 = arith.addf %212, %263 : vector<8x384xf32>
    %c380_i32_17 = arith.constant 380 : i32
    %265 = tpu.dynamic_rotate %213 by %c380_i32_17 dim 1 : vector<2x384xf32>, i32 -> vector<2x384xf32>
    %266 = vector.extract_strided_slice %5 {offsets = [0, 40], sizes = [8, 1], strides = [1, 1]} : vector<8x128xf32> to vector<8x1xf32>
    %267 = vector.extract_strided_slice %265 {offsets = [0, 0], sizes = [1, 384], strides = [1, 1]} : vector<2x384xf32> to vector<1x384xf32>
    %268 = vector.broadcast %266 : vector<8x1xf32> to vector<8x384xf32>
    %269 = vector.broadcast %267 : vector<1x384xf32> to vector<8x384xf32>
    %270 = arith.mulf %268, %269 : vector<8x384xf32>
    %271 = vector.extract_strided_slice %5 {offsets = [0, 41], sizes = [8, 1], strides = [1, 1]} : vector<8x128xf32> to vector<8x1xf32>
    %272 = vector.extract_strided_slice %265 {offsets = [1, 0], sizes = [1, 384], strides = [1, 1]} : vector<2x384xf32> to vector<1x384xf32>
    %273 = vector.broadcast %271 : vector<8x1xf32> to vector<8x384xf32>
    %274 = vector.broadcast %272 : vector<1x384xf32> to vector<8x384xf32>
    %275 = arith.mulf %273, %274 : vector<8x384xf32>
    %276 = arith.addf %270, %275 : vector<8x384xf32>
    %277 = arith.addf %225, %276 : vector<8x384xf32>
    %c379_i32_18 = arith.constant 379 : i32
    %278 = tpu.dynamic_rotate %213 by %c379_i32_18 dim 1 : vector<2x384xf32>, i32 -> vector<2x384xf32>
    %279 = vector.extract_strided_slice %5 {offsets = [0, 42], sizes = [8, 1], strides = [1, 1]} : vector<8x128xf32> to vector<8x1xf32>
    %280 = vector.extract_strided_slice %278 {offsets = [0, 0], sizes = [1, 384], strides = [1, 1]} : vector<2x384xf32> to vector<1x384xf32>
    %281 = vector.broadcast %279 : vector<8x1xf32> to vector<8x384xf32>
    %282 = vector.broadcast %280 : vector<1x384xf32> to vector<8x384xf32>
    %283 = arith.mulf %281, %282 : vector<8x384xf32>
    %284 = vector.extract_strided_slice %5 {offsets = [0, 43], sizes = [8, 1], strides = [1, 1]} : vector<8x128xf32> to vector<8x1xf32>
    %285 = vector.extract_strided_slice %278 {offsets = [1, 0], sizes = [1, 384], strides = [1, 1]} : vector<2x384xf32> to vector<1x384xf32>
    %286 = vector.broadcast %284 : vector<8x1xf32> to vector<8x384xf32>
    %287 = vector.broadcast %285 : vector<1x384xf32> to vector<8x384xf32>
    %288 = arith.mulf %286, %287 : vector<8x384xf32>
    %289 = arith.addf %283, %288 : vector<8x384xf32>
    %290 = arith.addf %238, %289 : vector<8x384xf32>
    %c378_i32_19 = arith.constant 378 : i32
    %291 = tpu.dynamic_rotate %213 by %c378_i32_19 dim 1 : vector<2x384xf32>, i32 -> vector<2x384xf32>
    %292 = vector.extract_strided_slice %5 {offsets = [0, 44], sizes = [8, 1], strides = [1, 1]} : vector<8x128xf32> to vector<8x1xf32>
    %293 = vector.extract_strided_slice %291 {offsets = [0, 0], sizes = [1, 384], strides = [1, 1]} : vector<2x384xf32> to vector<1x384xf32>
    %294 = vector.broadcast %292 : vector<8x1xf32> to vector<8x384xf32>
    %295 = vector.broadcast %293 : vector<1x384xf32> to vector<8x384xf32>
    %296 = arith.mulf %294, %295 : vector<8x384xf32>
    %297 = vector.extract_strided_slice %5 {offsets = [0, 45], sizes = [8, 1], strides = [1, 1]} : vector<8x128xf32> to vector<8x1xf32>
    %298 = vector.extract_strided_slice %291 {offsets = [1, 0], sizes = [1, 384], strides = [1, 1]} : vector<2x384xf32> to vector<1x384xf32>
    %299 = vector.broadcast %297 : vector<8x1xf32> to vector<8x384xf32>
    %300 = vector.broadcast %298 : vector<1x384xf32> to vector<8x384xf32>
    %301 = arith.mulf %299, %300 : vector<8x384xf32>
    %302 = arith.addf %296, %301 : vector<8x384xf32>
    %303 = arith.addf %251, %302 : vector<8x384xf32>
    %c377_i32_20 = arith.constant 377 : i32
    %304 = tpu.dynamic_rotate %213 by %c377_i32_20 dim 1 : vector<2x384xf32>, i32 -> vector<2x384xf32>
    %305 = vector.extract_strided_slice %5 {offsets = [0, 46], sizes = [8, 1], strides = [1, 1]} : vector<8x128xf32> to vector<8x1xf32>
    %306 = vector.extract_strided_slice %304 {offsets = [0, 0], sizes = [1, 384], strides = [1, 1]} : vector<2x384xf32> to vector<1x384xf32>
    %307 = vector.broadcast %305 : vector<8x1xf32> to vector<8x384xf32>
    %308 = vector.broadcast %306 : vector<1x384xf32> to vector<8x384xf32>
    %309 = arith.mulf %307, %308 : vector<8x384xf32>
    %310 = vector.extract_strided_slice %5 {offsets = [0, 47], sizes = [8, 1], strides = [1, 1]} : vector<8x128xf32> to vector<8x1xf32>
    %311 = vector.extract_strided_slice %304 {offsets = [1, 0], sizes = [1, 384], strides = [1, 1]} : vector<2x384xf32> to vector<1x384xf32>
    %312 = vector.broadcast %310 : vector<8x1xf32> to vector<8x384xf32>
    %313 = vector.broadcast %311 : vector<1x384xf32> to vector<8x384xf32>
    %314 = arith.mulf %312, %313 : vector<8x384xf32>
    %315 = arith.addf %309, %314 : vector<8x384xf32>
    %316 = arith.addf %264, %315 : vector<8x384xf32>
    %c0_21 = arith.constant 0 : index
    %c125 = arith.constant 125 : index
    %317 = vector.load %arg9[%c0_21, %c125] : memref<2x629xf32, #tpu.memory_space<vmem>>, vector<2x384xf32>
    %318 = vector.extract_strided_slice %5 {offsets = [0, 48], sizes = [8, 1], strides = [1, 1]} : vector<8x128xf32> to vector<8x1xf32>
    %319 = vector.extract_strided_slice %317 {offsets = [0, 0], sizes = [1, 384], strides = [1, 1]} : vector<2x384xf32> to vector<1x384xf32>
    %320 = vector.broadcast %318 : vector<8x1xf32> to vector<8x384xf32>
    %321 = vector.broadcast %319 : vector<1x384xf32> to vector<8x384xf32>
    %322 = arith.mulf %320, %321 : vector<8x384xf32>
    %323 = vector.extract_strided_slice %5 {offsets = [0, 49], sizes = [8, 1], strides = [1, 1]} : vector<8x128xf32> to vector<8x1xf32>
    %324 = vector.extract_strided_slice %317 {offsets = [1, 0], sizes = [1, 384], strides = [1, 1]} : vector<2x384xf32> to vector<1x384xf32>
    %325 = vector.broadcast %323 : vector<8x1xf32> to vector<8x384xf32>
    %326 = vector.broadcast %324 : vector<1x384xf32> to vector<8x384xf32>
    %327 = arith.mulf %325, %326 : vector<8x384xf32>
    %328 = arith.addf %322, %327 : vector<8x384xf32>
    %329 = arith.addf %277, %328 : vector<8x384xf32>
    %c383_i32_22 = arith.constant 383 : i32
    %330 = tpu.dynamic_rotate %317 by %c383_i32_22 dim 1 : vector<2x384xf32>, i32 -> vector<2x384xf32>
    %331 = vector.extract_strided_slice %5 {offsets = [0, 50], sizes = [8, 1], strides = [1, 1]} : vector<8x128xf32> to vector<8x1xf32>
    %332 = vector.extract_strided_slice %330 {offsets = [0, 0], sizes = [1, 384], strides = [1, 1]} : vector<2x384xf32> to vector<1x384xf32>
    %333 = vector.broadcast %331 : vector<8x1xf32> to vector<8x384xf32>
    %334 = vector.broadcast %332 : vector<1x384xf32> to vector<8x384xf32>
    %335 = arith.mulf %333, %334 : vector<8x384xf32>
    %336 = vector.extract_strided_slice %5 {offsets = [0, 51], sizes = [8, 1], strides = [1, 1]} : vector<8x128xf32> to vector<8x1xf32>
    %337 = vector.extract_strided_slice %330 {offsets = [1, 0], sizes = [1, 384], strides = [1, 1]} : vector<2x384xf32> to vector<1x384xf32>
    %338 = vector.broadcast %336 : vector<8x1xf32> to vector<8x384xf32>
    %339 = vector.broadcast %337 : vector<1x384xf32> to vector<8x384xf32>
    %340 = arith.mulf %338, %339 : vector<8x384xf32>
    %341 = arith.addf %335, %340 : vector<8x384xf32>
    %342 = arith.addf %290, %341 : vector<8x384xf32>
    %c382_i32_23 = arith.constant 382 : i32
    %343 = tpu.dynamic_rotate %317 by %c382_i32_23 dim 1 : vector<2x384xf32>, i32 -> vector<2x384xf32>
    %344 = vector.extract_strided_slice %5 {offsets = [0, 52], sizes = [8, 1], strides = [1, 1]} : vector<8x128xf32> to vector<8x1xf32>
    %345 = vector.extract_strided_slice %343 {offsets = [0, 0], sizes = [1, 384], strides = [1, 1]} : vector<2x384xf32> to vector<1x384xf32>
    %346 = vector.broadcast %344 : vector<8x1xf32> to vector<8x384xf32>
    %347 = vector.broadcast %345 : vector<1x384xf32> to vector<8x384xf32>
    %348 = arith.mulf %346, %347 : vector<8x384xf32>
    %349 = vector.extract_strided_slice %5 {offsets = [0, 53], sizes = [8, 1], strides = [1, 1]} : vector<8x128xf32> to vector<8x1xf32>
    %350 = vector.extract_strided_slice %343 {offsets = [1, 0], sizes = [1, 384], strides = [1, 1]} : vector<2x384xf32> to vector<1x384xf32>
    %351 = vector.broadcast %349 : vector<8x1xf32> to vector<8x384xf32>
    %352 = vector.broadcast %350 : vector<1x384xf32> to vector<8x384xf32>
    %353 = arith.mulf %351, %352 : vector<8x384xf32>
    %354 = arith.addf %348, %353 : vector<8x384xf32>
    %355 = arith.addf %303, %354 : vector<8x384xf32>
    %c381_i32_24 = arith.constant 381 : i32
    %356 = tpu.dynamic_rotate %317 by %c381_i32_24 dim 1 : vector<2x384xf32>, i32 -> vector<2x384xf32>
    %357 = vector.extract_strided_slice %5 {offsets = [0, 54], sizes = [8, 1], strides = [1, 1]} : vector<8x128xf32> to vector<8x1xf32>
    %358 = vector.extract_strided_slice %356 {offsets = [0, 0], sizes = [1, 384], strides = [1, 1]} : vector<2x384xf32> to vector<1x384xf32>
    %359 = vector.broadcast %357 : vector<8x1xf32> to vector<8x384xf32>
    %360 = vector.broadcast %358 : vector<1x384xf32> to vector<8x384xf32>
    %361 = arith.mulf %359, %360 : vector<8x384xf32>
    %362 = vector.extract_strided_slice %5 {offsets = [0, 55], sizes = [8, 1], strides = [1, 1]} : vector<8x128xf32> to vector<8x1xf32>
    %363 = vector.extract_strided_slice %356 {offsets = [1, 0], sizes = [1, 384], strides = [1, 1]} : vector<2x384xf32> to vector<1x384xf32>
    %364 = vector.broadcast %362 : vector<8x1xf32> to vector<8x384xf32>
    %365 = vector.broadcast %363 : vector<1x384xf32> to vector<8x384xf32>
    %366 = arith.mulf %364, %365 : vector<8x384xf32>
    %367 = arith.addf %361, %366 : vector<8x384xf32>
    %368 = arith.addf %316, %367 : vector<8x384xf32>
    %c380_i32_25 = arith.constant 380 : i32
    %369 = tpu.dynamic_rotate %317 by %c380_i32_25 dim 1 : vector<2x384xf32>, i32 -> vector<2x384xf32>
    %370 = vector.extract_strided_slice %5 {offsets = [0, 56], sizes = [8, 1], strides = [1, 1]} : vector<8x128xf32> to vector<8x1xf32>
    %371 = vector.extract_strided_slice %369 {offsets = [0, 0], sizes = [1, 384], strides = [1, 1]} : vector<2x384xf32> to vector<1x384xf32>
    %372 = vector.broadcast %370 : vector<8x1xf32> to vector<8x384xf32>
    %373 = vector.broadcast %371 : vector<1x384xf32> to vector<8x384xf32>
    %374 = arith.mulf %372, %373 : vector<8x384xf32>
    %375 = vector.extract_strided_slice %5 {offsets = [0, 57], sizes = [8, 1], strides = [1, 1]} : vector<8x128xf32> to vector<8x1xf32>
    %376 = vector.extract_strided_slice %369 {offsets = [1, 0], sizes = [1, 384], strides = [1, 1]} : vector<2x384xf32> to vector<1x384xf32>
    %377 = vector.broadcast %375 : vector<8x1xf32> to vector<8x384xf32>
    %378 = vector.broadcast %376 : vector<1x384xf32> to vector<8x384xf32>
    %379 = arith.mulf %377, %378 : vector<8x384xf32>
    %380 = arith.addf %374, %379 : vector<8x384xf32>
    %381 = arith.addf %329, %380 : vector<8x384xf32>
    %c379_i32_26 = arith.constant 379 : i32
    %382 = tpu.dynamic_rotate %317 by %c379_i32_26 dim 1 : vector<2x384xf32>, i32 -> vector<2x384xf32>
    %383 = vector.extract_strided_slice %5 {offsets = [0, 58], sizes = [8, 1], strides = [1, 1]} : vector<8x128xf32> to vector<8x1xf32>
    %384 = vector.extract_strided_slice %382 {offsets = [0, 0], sizes = [1, 384], strides = [1, 1]} : vector<2x384xf32> to vector<1x384xf32>
    %385 = vector.broadcast %383 : vector<8x1xf32> to vector<8x384xf32>
    %386 = vector.broadcast %384 : vector<1x384xf32> to vector<8x384xf32>
    %387 = arith.mulf %385, %386 : vector<8x384xf32>
    %388 = vector.extract_strided_slice %5 {offsets = [0, 59], sizes = [8, 1], strides = [1, 1]} : vector<8x128xf32> to vector<8x1xf32>
    %389 = vector.extract_strided_slice %382 {offsets = [1, 0], sizes = [1, 384], strides = [1, 1]} : vector<2x384xf32> to vector<1x384xf32>
    %390 = vector.broadcast %388 : vector<8x1xf32> to vector<8x384xf32>
    %391 = vector.broadcast %389 : vector<1x384xf32> to vector<8x384xf32>
    %392 = arith.mulf %390, %391 : vector<8x384xf32>
    %393 = arith.addf %387, %392 : vector<8x384xf32>
    %394 = arith.addf %342, %393 : vector<8x384xf32>
    %c378_i32_27 = arith.constant 378 : i32
    %395 = tpu.dynamic_rotate %317 by %c378_i32_27 dim 1 : vector<2x384xf32>, i32 -> vector<2x384xf32>
    %396 = vector.extract_strided_slice %5 {offsets = [0, 60], sizes = [8, 1], strides = [1, 1]} : vector<8x128xf32> to vector<8x1xf32>
    %397 = vector.extract_strided_slice %395 {offsets = [0, 0], sizes = [1, 384], strides = [1, 1]} : vector<2x384xf32> to vector<1x384xf32>
    %398 = vector.broadcast %396 : vector<8x1xf32> to vector<8x384xf32>
    %399 = vector.broadcast %397 : vector<1x384xf32> to vector<8x384xf32>
    %400 = arith.mulf %398, %399 : vector<8x384xf32>
    %401 = vector.extract_strided_slice %5 {offsets = [0, 61], sizes = [8, 1], strides = [1, 1]} : vector<8x128xf32> to vector<8x1xf32>
    %402 = vector.extract_strided_slice %395 {offsets = [1, 0], sizes = [1, 384], strides = [1, 1]} : vector<2x384xf32> to vector<1x384xf32>
    %403 = vector.broadcast %401 : vector<8x1xf32> to vector<8x384xf32>
    %404 = vector.broadcast %402 : vector<1x384xf32> to vector<8x384xf32>
    %405 = arith.mulf %403, %404 : vector<8x384xf32>
    %406 = arith.addf %400, %405 : vector<8x384xf32>
    %407 = arith.addf %355, %406 : vector<8x384xf32>
    %c377_i32_28 = arith.constant 377 : i32
    %408 = tpu.dynamic_rotate %317 by %c377_i32_28 dim 1 : vector<2x384xf32>, i32 -> vector<2x384xf32>
    %409 = vector.extract_strided_slice %5 {offsets = [0, 62], sizes = [8, 1], strides = [1, 1]} : vector<8x128xf32> to vector<8x1xf32>
    %410 = vector.extract_strided_slice %408 {offsets = [0, 0], sizes = [1, 384], strides = [1, 1]} : vector<2x384xf32> to vector<1x384xf32>
    %411 = vector.broadcast %409 : vector<8x1xf32> to vector<8x384xf32>
    %412 = vector.broadcast %410 : vector<1x384xf32> to vector<8x384xf32>
    %413 = arith.mulf %411, %412 : vector<8x384xf32>
    %414 = vector.extract_strided_slice %5 {offsets = [0, 63], sizes = [8, 1], strides = [1, 1]} : vector<8x128xf32> to vector<8x1xf32>
    %415 = vector.extract_strided_slice %408 {offsets = [1, 0], sizes = [1, 384], strides = [1, 1]} : vector<2x384xf32> to vector<1x384xf32>
    %416 = vector.broadcast %414 : vector<8x1xf32> to vector<8x384xf32>
    %417 = vector.broadcast %415 : vector<1x384xf32> to vector<8x384xf32>
    %418 = arith.mulf %416, %417 : vector<8x384xf32>
    %419 = arith.addf %413, %418 : vector<8x384xf32>
    %420 = arith.addf %368, %419 : vector<8x384xf32>
    %c0_29 = arith.constant 0 : index
    %c149 = arith.constant 149 : index
    %421 = vector.load %arg9[%c0_29, %c149] : memref<2x629xf32, #tpu.memory_space<vmem>>, vector<2x384xf32>
    %422 = vector.extract_strided_slice %5 {offsets = [0, 64], sizes = [8, 1], strides = [1, 1]} : vector<8x128xf32> to vector<8x1xf32>
    %423 = vector.extract_strided_slice %421 {offsets = [0, 0], sizes = [1, 384], strides = [1, 1]} : vector<2x384xf32> to vector<1x384xf32>
    %424 = vector.broadcast %422 : vector<8x1xf32> to vector<8x384xf32>
    %425 = vector.broadcast %423 : vector<1x384xf32> to vector<8x384xf32>
    %426 = arith.mulf %424, %425 : vector<8x384xf32>
    %427 = vector.extract_strided_slice %5 {offsets = [0, 65], sizes = [8, 1], strides = [1, 1]} : vector<8x128xf32> to vector<8x1xf32>
    %428 = vector.extract_strided_slice %421 {offsets = [1, 0], sizes = [1, 384], strides = [1, 1]} : vector<2x384xf32> to vector<1x384xf32>
    %429 = vector.broadcast %427 : vector<8x1xf32> to vector<8x384xf32>
    %430 = vector.broadcast %428 : vector<1x384xf32> to vector<8x384xf32>
    %431 = arith.mulf %429, %430 : vector<8x384xf32>
    %432 = arith.addf %426, %431 : vector<8x384xf32>
    %433 = arith.addf %381, %432 : vector<8x384xf32>
    %c383_i32_30 = arith.constant 383 : i32
    %434 = tpu.dynamic_rotate %421 by %c383_i32_30 dim 1 : vector<2x384xf32>, i32 -> vector<2x384xf32>
    %435 = vector.extract_strided_slice %5 {offsets = [0, 66], sizes = [8, 1], strides = [1, 1]} : vector<8x128xf32> to vector<8x1xf32>
    %436 = vector.extract_strided_slice %434 {offsets = [0, 0], sizes = [1, 384], strides = [1, 1]} : vector<2x384xf32> to vector<1x384xf32>
    %437 = vector.broadcast %435 : vector<8x1xf32> to vector<8x384xf32>
    %438 = vector.broadcast %436 : vector<1x384xf32> to vector<8x384xf32>
    %439 = arith.mulf %437, %438 : vector<8x384xf32>
    %440 = vector.extract_strided_slice %5 {offsets = [0, 67], sizes = [8, 1], strides = [1, 1]} : vector<8x128xf32> to vector<8x1xf32>
    %441 = vector.extract_strided_slice %434 {offsets = [1, 0], sizes = [1, 384], strides = [1, 1]} : vector<2x384xf32> to vector<1x384xf32>
    %442 = vector.broadcast %440 : vector<8x1xf32> to vector<8x384xf32>
    %443 = vector.broadcast %441 : vector<1x384xf32> to vector<8x384xf32>
    %444 = arith.mulf %442, %443 : vector<8x384xf32>
    %445 = arith.addf %439, %444 : vector<8x384xf32>
    %446 = arith.addf %394, %445 : vector<8x384xf32>
    %c382_i32_31 = arith.constant 382 : i32
    %447 = tpu.dynamic_rotate %421 by %c382_i32_31 dim 1 : vector<2x384xf32>, i32 -> vector<2x384xf32>
    %448 = vector.extract_strided_slice %5 {offsets = [0, 68], sizes = [8, 1], strides = [1, 1]} : vector<8x128xf32> to vector<8x1xf32>
    %449 = vector.extract_strided_slice %447 {offsets = [0, 0], sizes = [1, 384], strides = [1, 1]} : vector<2x384xf32> to vector<1x384xf32>
    %450 = vector.broadcast %448 : vector<8x1xf32> to vector<8x384xf32>
    %451 = vector.broadcast %449 : vector<1x384xf32> to vector<8x384xf32>
    %452 = arith.mulf %450, %451 : vector<8x384xf32>
    %453 = vector.extract_strided_slice %5 {offsets = [0, 69], sizes = [8, 1], strides = [1, 1]} : vector<8x128xf32> to vector<8x1xf32>
    %454 = vector.extract_strided_slice %447 {offsets = [1, 0], sizes = [1, 384], strides = [1, 1]} : vector<2x384xf32> to vector<1x384xf32>
    %455 = vector.broadcast %453 : vector<8x1xf32> to vector<8x384xf32>
    %456 = vector.broadcast %454 : vector<1x384xf32> to vector<8x384xf32>
    %457 = arith.mulf %455, %456 : vector<8x384xf32>
    %458 = arith.addf %452, %457 : vector<8x384xf32>
    %459 = arith.addf %407, %458 : vector<8x384xf32>
    %c381_i32_32 = arith.constant 381 : i32
    %460 = tpu.dynamic_rotate %421 by %c381_i32_32 dim 1 : vector<2x384xf32>, i32 -> vector<2x384xf32>
    %461 = vector.extract_strided_slice %5 {offsets = [0, 70], sizes = [8, 1], strides = [1, 1]} : vector<8x128xf32> to vector<8x1xf32>
    %462 = vector.extract_strided_slice %460 {offsets = [0, 0], sizes = [1, 384], strides = [1, 1]} : vector<2x384xf32> to vector<1x384xf32>
    %463 = vector.broadcast %461 : vector<8x1xf32> to vector<8x384xf32>
    %464 = vector.broadcast %462 : vector<1x384xf32> to vector<8x384xf32>
    %465 = arith.mulf %463, %464 : vector<8x384xf32>
    %466 = vector.extract_strided_slice %5 {offsets = [0, 71], sizes = [8, 1], strides = [1, 1]} : vector<8x128xf32> to vector<8x1xf32>
    %467 = vector.extract_strided_slice %460 {offsets = [1, 0], sizes = [1, 384], strides = [1, 1]} : vector<2x384xf32> to vector<1x384xf32>
    %468 = vector.broadcast %466 : vector<8x1xf32> to vector<8x384xf32>
    %469 = vector.broadcast %467 : vector<1x384xf32> to vector<8x384xf32>
    %470 = arith.mulf %468, %469 : vector<8x384xf32>
    %471 = arith.addf %465, %470 : vector<8x384xf32>
    %472 = arith.addf %420, %471 : vector<8x384xf32>
    %c380_i32_33 = arith.constant 380 : i32
    %473 = tpu.dynamic_rotate %421 by %c380_i32_33 dim 1 : vector<2x384xf32>, i32 -> vector<2x384xf32>
    %474 = vector.extract_strided_slice %5 {offsets = [0, 72], sizes = [8, 1], strides = [1, 1]} : vector<8x128xf32> to vector<8x1xf32>
    %475 = vector.extract_strided_slice %473 {offsets = [0, 0], sizes = [1, 384], strides = [1, 1]} : vector<2x384xf32> to vector<1x384xf32>
    %476 = vector.broadcast %474 : vector<8x1xf32> to vector<8x384xf32>
    %477 = vector.broadcast %475 : vector<1x384xf32> to vector<8x384xf32>
    %478 = arith.mulf %476, %477 : vector<8x384xf32>
    %479 = vector.extract_strided_slice %5 {offsets = [0, 73], sizes = [8, 1], strides = [1, 1]} : vector<8x128xf32> to vector<8x1xf32>
    %480 = vector.extract_strided_slice %473 {offsets = [1, 0], sizes = [1, 384], strides = [1, 1]} : vector<2x384xf32> to vector<1x384xf32>
    %481 = vector.broadcast %479 : vector<8x1xf32> to vector<8x384xf32>
    %482 = vector.broadcast %480 : vector<1x384xf32> to vector<8x384xf32>
    %483 = arith.mulf %481, %482 : vector<8x384xf32>
    %484 = arith.addf %478, %483 : vector<8x384xf32>
    %485 = arith.addf %433, %484 : vector<8x384xf32>
    %c379_i32_34 = arith.constant 379 : i32
    %486 = tpu.dynamic_rotate %421 by %c379_i32_34 dim 1 : vector<2x384xf32>, i32 -> vector<2x384xf32>
    %487 = vector.extract_strided_slice %5 {offsets = [0, 74], sizes = [8, 1], strides = [1, 1]} : vector<8x128xf32> to vector<8x1xf32>
    %488 = vector.extract_strided_slice %486 {offsets = [0, 0], sizes = [1, 384], strides = [1, 1]} : vector<2x384xf32> to vector<1x384xf32>
    %489 = vector.broadcast %487 : vector<8x1xf32> to vector<8x384xf32>
    %490 = vector.broadcast %488 : vector<1x384xf32> to vector<8x384xf32>
    %491 = arith.mulf %489, %490 : vector<8x384xf32>
    %492 = vector.extract_strided_slice %5 {offsets = [0, 75], sizes = [8, 1], strides = [1, 1]} : vector<8x128xf32> to vector<8x1xf32>
    %493 = vector.extract_strided_slice %486 {offsets = [1, 0], sizes = [1, 384], strides = [1, 1]} : vector<2x384xf32> to vector<1x384xf32>
    %494 = vector.broadcast %492 : vector<8x1xf32> to vector<8x384xf32>
    %495 = vector.broadcast %493 : vector<1x384xf32> to vector<8x384xf32>
    %496 = arith.mulf %494, %495 : vector<8x384xf32>
    %497 = arith.addf %491, %496 : vector<8x384xf32>
    %498 = arith.addf %446, %497 : vector<8x384xf32>
    %c378_i32_35 = arith.constant 378 : i32
    %499 = tpu.dynamic_rotate %421 by %c378_i32_35 dim 1 : vector<2x384xf32>, i32 -> vector<2x384xf32>
    %500 = vector.extract_strided_slice %5 {offsets = [0, 76], sizes = [8, 1], strides = [1, 1]} : vector<8x128xf32> to vector<8x1xf32>
    %501 = vector.extract_strided_slice %499 {offsets = [0, 0], sizes = [1, 384], strides = [1, 1]} : vector<2x384xf32> to vector<1x384xf32>
    %502 = vector.broadcast %500 : vector<8x1xf32> to vector<8x384xf32>
    %503 = vector.broadcast %501 : vector<1x384xf32> to vector<8x384xf32>
    %504 = arith.mulf %502, %503 : vector<8x384xf32>
    %505 = vector.extract_strided_slice %5 {offsets = [0, 77], sizes = [8, 1], strides = [1, 1]} : vector<8x128xf32> to vector<8x1xf32>
    %506 = vector.extract_strided_slice %499 {offsets = [1, 0], sizes = [1, 384], strides = [1, 1]} : vector<2x384xf32> to vector<1x384xf32>
    %507 = vector.broadcast %505 : vector<8x1xf32> to vector<8x384xf32>
    %508 = vector.broadcast %506 : vector<1x384xf32> to vector<8x384xf32>
    %509 = arith.mulf %507, %508 : vector<8x384xf32>
    %510 = arith.addf %504, %509 : vector<8x384xf32>
    %511 = arith.addf %459, %510 : vector<8x384xf32>
    %c377_i32_36 = arith.constant 377 : i32
    %512 = tpu.dynamic_rotate %421 by %c377_i32_36 dim 1 : vector<2x384xf32>, i32 -> vector<2x384xf32>
    %513 = vector.extract_strided_slice %5 {offsets = [0, 78], sizes = [8, 1], strides = [1, 1]} : vector<8x128xf32> to vector<8x1xf32>
    %514 = vector.extract_strided_slice %512 {offsets = [0, 0], sizes = [1, 384], strides = [1, 1]} : vector<2x384xf32> to vector<1x384xf32>
    %515 = vector.broadcast %513 : vector<8x1xf32> to vector<8x384xf32>
    %516 = vector.broadcast %514 : vector<1x384xf32> to vector<8x384xf32>
    %517 = arith.mulf %515, %516 : vector<8x384xf32>
    %518 = vector.extract_strided_slice %5 {offsets = [0, 79], sizes = [8, 1], strides = [1, 1]} : vector<8x128xf32> to vector<8x1xf32>
    %519 = vector.extract_strided_slice %512 {offsets = [1, 0], sizes = [1, 384], strides = [1, 1]} : vector<2x384xf32> to vector<1x384xf32>
    %520 = vector.broadcast %518 : vector<8x1xf32> to vector<8x384xf32>
    %521 = vector.broadcast %519 : vector<1x384xf32> to vector<8x384xf32>
    %522 = arith.mulf %520, %521 : vector<8x384xf32>
    %523 = arith.addf %517, %522 : vector<8x384xf32>
    %524 = arith.addf %472, %523 : vector<8x384xf32>
    %c0_37 = arith.constant 0 : index
    %c173 = arith.constant 173 : index
    %525 = vector.load %arg9[%c0_37, %c173] : memref<2x629xf32, #tpu.memory_space<vmem>>, vector<2x384xf32>
    %526 = vector.extract_strided_slice %5 {offsets = [0, 80], sizes = [8, 1], strides = [1, 1]} : vector<8x128xf32> to vector<8x1xf32>
    %527 = vector.extract_strided_slice %525 {offsets = [0, 0], sizes = [1, 384], strides = [1, 1]} : vector<2x384xf32> to vector<1x384xf32>
    %528 = vector.broadcast %526 : vector<8x1xf32> to vector<8x384xf32>
    %529 = vector.broadcast %527 : vector<1x384xf32> to vector<8x384xf32>
    %530 = arith.mulf %528, %529 : vector<8x384xf32>
    %531 = vector.extract_strided_slice %5 {offsets = [0, 81], sizes = [8, 1], strides = [1, 1]} : vector<8x128xf32> to vector<8x1xf32>
    %532 = vector.extract_strided_slice %525 {offsets = [1, 0], sizes = [1, 384], strides = [1, 1]} : vector<2x384xf32> to vector<1x384xf32>
    %533 = vector.broadcast %531 : vector<8x1xf32> to vector<8x384xf32>
    %534 = vector.broadcast %532 : vector<1x384xf32> to vector<8x384xf32>
    %535 = arith.mulf %533, %534 : vector<8x384xf32>
    %536 = arith.addf %530, %535 : vector<8x384xf32>
    %537 = arith.addf %485, %536 : vector<8x384xf32>
    %c383_i32_38 = arith.constant 383 : i32
    %538 = tpu.dynamic_rotate %525 by %c383_i32_38 dim 1 : vector<2x384xf32>, i32 -> vector<2x384xf32>
    %539 = vector.extract_strided_slice %5 {offsets = [0, 82], sizes = [8, 1], strides = [1, 1]} : vector<8x128xf32> to vector<8x1xf32>
    %540 = vector.extract_strided_slice %538 {offsets = [0, 0], sizes = [1, 384], strides = [1, 1]} : vector<2x384xf32> to vector<1x384xf32>
    %541 = vector.broadcast %539 : vector<8x1xf32> to vector<8x384xf32>
    %542 = vector.broadcast %540 : vector<1x384xf32> to vector<8x384xf32>
    %543 = arith.mulf %541, %542 : vector<8x384xf32>
    %544 = vector.extract_strided_slice %5 {offsets = [0, 83], sizes = [8, 1], strides = [1, 1]} : vector<8x128xf32> to vector<8x1xf32>
    %545 = vector.extract_strided_slice %538 {offsets = [1, 0], sizes = [1, 384], strides = [1, 1]} : vector<2x384xf32> to vector<1x384xf32>
    %546 = vector.broadcast %544 : vector<8x1xf32> to vector<8x384xf32>
    %547 = vector.broadcast %545 : vector<1x384xf32> to vector<8x384xf32>
    %548 = arith.mulf %546, %547 : vector<8x384xf32>
    %549 = arith.addf %543, %548 : vector<8x384xf32>
    %550 = arith.addf %498, %549 : vector<8x384xf32>
    %c382_i32_39 = arith.constant 382 : i32
    %551 = tpu.dynamic_rotate %525 by %c382_i32_39 dim 1 : vector<2x384xf32>, i32 -> vector<2x384xf32>
    %552 = vector.extract_strided_slice %5 {offsets = [0, 84], sizes = [8, 1], strides = [1, 1]} : vector<8x128xf32> to vector<8x1xf32>
    %553 = vector.extract_strided_slice %551 {offsets = [0, 0], sizes = [1, 384], strides = [1, 1]} : vector<2x384xf32> to vector<1x384xf32>
    %554 = vector.broadcast %552 : vector<8x1xf32> to vector<8x384xf32>
    %555 = vector.broadcast %553 : vector<1x384xf32> to vector<8x384xf32>
    %556 = arith.mulf %554, %555 : vector<8x384xf32>
    %557 = vector.extract_strided_slice %5 {offsets = [0, 85], sizes = [8, 1], strides = [1, 1]} : vector<8x128xf32> to vector<8x1xf32>
    %558 = vector.extract_strided_slice %551 {offsets = [1, 0], sizes = [1, 384], strides = [1, 1]} : vector<2x384xf32> to vector<1x384xf32>
    %559 = vector.broadcast %557 : vector<8x1xf32> to vector<8x384xf32>
    %560 = vector.broadcast %558 : vector<1x384xf32> to vector<8x384xf32>
    %561 = arith.mulf %559, %560 : vector<8x384xf32>
    %562 = arith.addf %556, %561 : vector<8x384xf32>
    %563 = arith.addf %511, %562 : vector<8x384xf32>
    %c381_i32_40 = arith.constant 381 : i32
    %564 = tpu.dynamic_rotate %525 by %c381_i32_40 dim 1 : vector<2x384xf32>, i32 -> vector<2x384xf32>
    %565 = vector.extract_strided_slice %5 {offsets = [0, 86], sizes = [8, 1], strides = [1, 1]} : vector<8x128xf32> to vector<8x1xf32>
    %566 = vector.extract_strided_slice %564 {offsets = [0, 0], sizes = [1, 384], strides = [1, 1]} : vector<2x384xf32> to vector<1x384xf32>
    %567 = vector.broadcast %565 : vector<8x1xf32> to vector<8x384xf32>
    %568 = vector.broadcast %566 : vector<1x384xf32> to vector<8x384xf32>
    %569 = arith.mulf %567, %568 : vector<8x384xf32>
    %570 = vector.extract_strided_slice %5 {offsets = [0, 87], sizes = [8, 1], strides = [1, 1]} : vector<8x128xf32> to vector<8x1xf32>
    %571 = vector.extract_strided_slice %564 {offsets = [1, 0], sizes = [1, 384], strides = [1, 1]} : vector<2x384xf32> to vector<1x384xf32>
    %572 = vector.broadcast %570 : vector<8x1xf32> to vector<8x384xf32>
    %573 = vector.broadcast %571 : vector<1x384xf32> to vector<8x384xf32>
    %574 = arith.mulf %572, %573 : vector<8x384xf32>
    %575 = arith.addf %569, %574 : vector<8x384xf32>
    %576 = arith.addf %524, %575 : vector<8x384xf32>
    %c380_i32_41 = arith.constant 380 : i32
    %577 = tpu.dynamic_rotate %525 by %c380_i32_41 dim 1 : vector<2x384xf32>, i32 -> vector<2x384xf32>
    %578 = vector.extract_strided_slice %5 {offsets = [0, 88], sizes = [8, 1], strides = [1, 1]} : vector<8x128xf32> to vector<8x1xf32>
    %579 = vector.extract_strided_slice %577 {offsets = [0, 0], sizes = [1, 384], strides = [1, 1]} : vector<2x384xf32> to vector<1x384xf32>
    %580 = vector.broadcast %578 : vector<8x1xf32> to vector<8x384xf32>
    %581 = vector.broadcast %579 : vector<1x384xf32> to vector<8x384xf32>
    %582 = arith.mulf %580, %581 : vector<8x384xf32>
    %583 = vector.extract_strided_slice %5 {offsets = [0, 89], sizes = [8, 1], strides = [1, 1]} : vector<8x128xf32> to vector<8x1xf32>
    %584 = vector.extract_strided_slice %577 {offsets = [1, 0], sizes = [1, 384], strides = [1, 1]} : vector<2x384xf32> to vector<1x384xf32>
    %585 = vector.broadcast %583 : vector<8x1xf32> to vector<8x384xf32>
    %586 = vector.broadcast %584 : vector<1x384xf32> to vector<8x384xf32>
    %587 = arith.mulf %585, %586 : vector<8x384xf32>
    %588 = arith.addf %582, %587 : vector<8x384xf32>
    %589 = arith.addf %537, %588 : vector<8x384xf32>
    %c379_i32_42 = arith.constant 379 : i32
    %590 = tpu.dynamic_rotate %525 by %c379_i32_42 dim 1 : vector<2x384xf32>, i32 -> vector<2x384xf32>
    %591 = vector.extract_strided_slice %5 {offsets = [0, 90], sizes = [8, 1], strides = [1, 1]} : vector<8x128xf32> to vector<8x1xf32>
    %592 = vector.extract_strided_slice %590 {offsets = [0, 0], sizes = [1, 384], strides = [1, 1]} : vector<2x384xf32> to vector<1x384xf32>
    %593 = vector.broadcast %591 : vector<8x1xf32> to vector<8x384xf32>
    %594 = vector.broadcast %592 : vector<1x384xf32> to vector<8x384xf32>
    %595 = arith.mulf %593, %594 : vector<8x384xf32>
    %596 = vector.extract_strided_slice %5 {offsets = [0, 91], sizes = [8, 1], strides = [1, 1]} : vector<8x128xf32> to vector<8x1xf32>
    %597 = vector.extract_strided_slice %590 {offsets = [1, 0], sizes = [1, 384], strides = [1, 1]} : vector<2x384xf32> to vector<1x384xf32>
    %598 = vector.broadcast %596 : vector<8x1xf32> to vector<8x384xf32>
    %599 = vector.broadcast %597 : vector<1x384xf32> to vector<8x384xf32>
    %600 = arith.mulf %598, %599 : vector<8x384xf32>
    %601 = arith.addf %595, %600 : vector<8x384xf32>
    %602 = arith.addf %550, %601 : vector<8x384xf32>
    %c378_i32_43 = arith.constant 378 : i32
    %603 = tpu.dynamic_rotate %525 by %c378_i32_43 dim 1 : vector<2x384xf32>, i32 -> vector<2x384xf32>
    %604 = vector.extract_strided_slice %5 {offsets = [0, 92], sizes = [8, 1], strides = [1, 1]} : vector<8x128xf32> to vector<8x1xf32>
    %605 = vector.extract_strided_slice %603 {offsets = [0, 0], sizes = [1, 384], strides = [1, 1]} : vector<2x384xf32> to vector<1x384xf32>
    %606 = vector.broadcast %604 : vector<8x1xf32> to vector<8x384xf32>
    %607 = vector.broadcast %605 : vector<1x384xf32> to vector<8x384xf32>
    %608 = arith.mulf %606, %607 : vector<8x384xf32>
    %609 = vector.extract_strided_slice %5 {offsets = [0, 93], sizes = [8, 1], strides = [1, 1]} : vector<8x128xf32> to vector<8x1xf32>
    %610 = vector.extract_strided_slice %603 {offsets = [1, 0], sizes = [1, 384], strides = [1, 1]} : vector<2x384xf32> to vector<1x384xf32>
    %611 = vector.broadcast %609 : vector<8x1xf32> to vector<8x384xf32>
    %612 = vector.broadcast %610 : vector<1x384xf32> to vector<8x384xf32>
    %613 = arith.mulf %611, %612 : vector<8x384xf32>
    %614 = arith.addf %608, %613 : vector<8x384xf32>
    %615 = arith.addf %563, %614 : vector<8x384xf32>
    %c377_i32_44 = arith.constant 377 : i32
    %616 = tpu.dynamic_rotate %525 by %c377_i32_44 dim 1 : vector<2x384xf32>, i32 -> vector<2x384xf32>
    %617 = vector.extract_strided_slice %5 {offsets = [0, 94], sizes = [8, 1], strides = [1, 1]} : vector<8x128xf32> to vector<8x1xf32>
    %618 = vector.extract_strided_slice %616 {offsets = [0, 0], sizes = [1, 384], strides = [1, 1]} : vector<2x384xf32> to vector<1x384xf32>
    %619 = vector.broadcast %617 : vector<8x1xf32> to vector<8x384xf32>
    %620 = vector.broadcast %618 : vector<1x384xf32> to vector<8x384xf32>
    %621 = arith.mulf %619, %620 : vector<8x384xf32>
    %622 = vector.extract_strided_slice %5 {offsets = [0, 95], sizes = [8, 1], strides = [1, 1]} : vector<8x128xf32> to vector<8x1xf32>
    %623 = vector.extract_strided_slice %616 {offsets = [1, 0], sizes = [1, 384], strides = [1, 1]} : vector<2x384xf32> to vector<1x384xf32>
    %624 = vector.broadcast %622 : vector<8x1xf32> to vector<8x384xf32>
    %625 = vector.broadcast %623 : vector<1x384xf32> to vector<8x384xf32>
    %626 = arith.mulf %624, %625 : vector<8x384xf32>
    %627 = arith.addf %621, %626 : vector<8x384xf32>
    %628 = arith.addf %576, %627 : vector<8x384xf32>
    %c0_45 = arith.constant 0 : index
    %c197 = arith.constant 197 : index
    %629 = vector.load %arg9[%c0_45, %c197] : memref<2x629xf32, #tpu.memory_space<vmem>>, vector<2x384xf32>
    %630 = vector.extract_strided_slice %5 {offsets = [0, 96], sizes = [8, 1], strides = [1, 1]} : vector<8x128xf32> to vector<8x1xf32>
    %631 = vector.extract_strided_slice %629 {offsets = [0, 0], sizes = [1, 384], strides = [1, 1]} : vector<2x384xf32> to vector<1x384xf32>
    %632 = vector.broadcast %630 : vector<8x1xf32> to vector<8x384xf32>
    %633 = vector.broadcast %631 : vector<1x384xf32> to vector<8x384xf32>
    %634 = arith.mulf %632, %633 : vector<8x384xf32>
    %635 = vector.extract_strided_slice %5 {offsets = [0, 97], sizes = [8, 1], strides = [1, 1]} : vector<8x128xf32> to vector<8x1xf32>
    %636 = vector.extract_strided_slice %629 {offsets = [1, 0], sizes = [1, 384], strides = [1, 1]} : vector<2x384xf32> to vector<1x384xf32>
    %637 = vector.broadcast %635 : vector<8x1xf32> to vector<8x384xf32>
    %638 = vector.broadcast %636 : vector<1x384xf32> to vector<8x384xf32>
    %639 = arith.mulf %637, %638 : vector<8x384xf32>
    %640 = arith.addf %634, %639 : vector<8x384xf32>
    %641 = arith.addf %589, %640 : vector<8x384xf32>
    %c383_i32_46 = arith.constant 383 : i32
    %642 = tpu.dynamic_rotate %629 by %c383_i32_46 dim 1 : vector<2x384xf32>, i32 -> vector<2x384xf32>
    %643 = vector.extract_strided_slice %5 {offsets = [0, 98], sizes = [8, 1], strides = [1, 1]} : vector<8x128xf32> to vector<8x1xf32>
    %644 = vector.extract_strided_slice %642 {offsets = [0, 0], sizes = [1, 384], strides = [1, 1]} : vector<2x384xf32> to vector<1x384xf32>
    %645 = vector.broadcast %643 : vector<8x1xf32> to vector<8x384xf32>
    %646 = vector.broadcast %644 : vector<1x384xf32> to vector<8x384xf32>
    %647 = arith.mulf %645, %646 : vector<8x384xf32>
    %648 = vector.extract_strided_slice %5 {offsets = [0, 99], sizes = [8, 1], strides = [1, 1]} : vector<8x128xf32> to vector<8x1xf32>
    %649 = vector.extract_strided_slice %642 {offsets = [1, 0], sizes = [1, 384], strides = [1, 1]} : vector<2x384xf32> to vector<1x384xf32>
    %650 = vector.broadcast %648 : vector<8x1xf32> to vector<8x384xf32>
    %651 = vector.broadcast %649 : vector<1x384xf32> to vector<8x384xf32>
    %652 = arith.mulf %650, %651 : vector<8x384xf32>
    %653 = arith.addf %647, %652 : vector<8x384xf32>
    %654 = arith.addf %602, %653 : vector<8x384xf32>
    %c382_i32_47 = arith.constant 382 : i32
    %655 = tpu.dynamic_rotate %629 by %c382_i32_47 dim 1 : vector<2x384xf32>, i32 -> vector<2x384xf32>
    %656 = vector.extract_strided_slice %5 {offsets = [0, 100], sizes = [8, 1], strides = [1, 1]} : vector<8x128xf32> to vector<8x1xf32>
    %657 = vector.extract_strided_slice %655 {offsets = [0, 0], sizes = [1, 384], strides = [1, 1]} : vector<2x384xf32> to vector<1x384xf32>
    %658 = vector.broadcast %656 : vector<8x1xf32> to vector<8x384xf32>
    %659 = vector.broadcast %657 : vector<1x384xf32> to vector<8x384xf32>
    %660 = arith.mulf %658, %659 : vector<8x384xf32>
    %661 = vector.extract_strided_slice %5 {offsets = [0, 101], sizes = [8, 1], strides = [1, 1]} : vector<8x128xf32> to vector<8x1xf32>
    %662 = vector.extract_strided_slice %655 {offsets = [1, 0], sizes = [1, 384], strides = [1, 1]} : vector<2x384xf32> to vector<1x384xf32>
    %663 = vector.broadcast %661 : vector<8x1xf32> to vector<8x384xf32>
    %664 = vector.broadcast %662 : vector<1x384xf32> to vector<8x384xf32>
    %665 = arith.mulf %663, %664 : vector<8x384xf32>
    %666 = arith.addf %660, %665 : vector<8x384xf32>
    %667 = arith.addf %615, %666 : vector<8x384xf32>
    %c381_i32_48 = arith.constant 381 : i32
    %668 = tpu.dynamic_rotate %629 by %c381_i32_48 dim 1 : vector<2x384xf32>, i32 -> vector<2x384xf32>
    %669 = vector.extract_strided_slice %5 {offsets = [0, 102], sizes = [8, 1], strides = [1, 1]} : vector<8x128xf32> to vector<8x1xf32>
    %670 = vector.extract_strided_slice %668 {offsets = [0, 0], sizes = [1, 384], strides = [1, 1]} : vector<2x384xf32> to vector<1x384xf32>
    %671 = vector.broadcast %669 : vector<8x1xf32> to vector<8x384xf32>
    %672 = vector.broadcast %670 : vector<1x384xf32> to vector<8x384xf32>
    %673 = arith.mulf %671, %672 : vector<8x384xf32>
    %674 = vector.extract_strided_slice %5 {offsets = [0, 103], sizes = [8, 1], strides = [1, 1]} : vector<8x128xf32> to vector<8x1xf32>
    %675 = vector.extract_strided_slice %668 {offsets = [1, 0], sizes = [1, 384], strides = [1, 1]} : vector<2x384xf32> to vector<1x384xf32>
    %676 = vector.broadcast %674 : vector<8x1xf32> to vector<8x384xf32>
    %677 = vector.broadcast %675 : vector<1x384xf32> to vector<8x384xf32>
    %678 = arith.mulf %676, %677 : vector<8x384xf32>
    %679 = arith.addf %673, %678 : vector<8x384xf32>
    %680 = arith.addf %628, %679 : vector<8x384xf32>
    %c380_i32_49 = arith.constant 380 : i32
    %681 = tpu.dynamic_rotate %629 by %c380_i32_49 dim 1 : vector<2x384xf32>, i32 -> vector<2x384xf32>
    %682 = vector.extract_strided_slice %5 {offsets = [0, 104], sizes = [8, 1], strides = [1, 1]} : vector<8x128xf32> to vector<8x1xf32>
    %683 = vector.extract_strided_slice %681 {offsets = [0, 0], sizes = [1, 384], strides = [1, 1]} : vector<2x384xf32> to vector<1x384xf32>
    %684 = vector.broadcast %682 : vector<8x1xf32> to vector<8x384xf32>
    %685 = vector.broadcast %683 : vector<1x384xf32> to vector<8x384xf32>
    %686 = arith.mulf %684, %685 : vector<8x384xf32>
    %687 = vector.extract_strided_slice %5 {offsets = [0, 105], sizes = [8, 1], strides = [1, 1]} : vector<8x128xf32> to vector<8x1xf32>
    %688 = vector.extract_strided_slice %681 {offsets = [1, 0], sizes = [1, 384], strides = [1, 1]} : vector<2x384xf32> to vector<1x384xf32>
    %689 = vector.broadcast %687 : vector<8x1xf32> to vector<8x384xf32>
    %690 = vector.broadcast %688 : vector<1x384xf32> to vector<8x384xf32>
    %691 = arith.mulf %689, %690 : vector<8x384xf32>
    %692 = arith.addf %686, %691 : vector<8x384xf32>
    %693 = arith.addf %641, %692 : vector<8x384xf32>
    %c379_i32_50 = arith.constant 379 : i32
    %694 = tpu.dynamic_rotate %629 by %c379_i32_50 dim 1 : vector<2x384xf32>, i32 -> vector<2x384xf32>
    %695 = vector.extract_strided_slice %5 {offsets = [0, 106], sizes = [8, 1], strides = [1, 1]} : vector<8x128xf32> to vector<8x1xf32>
    %696 = vector.extract_strided_slice %694 {offsets = [0, 0], sizes = [1, 384], strides = [1, 1]} : vector<2x384xf32> to vector<1x384xf32>
    %697 = vector.broadcast %695 : vector<8x1xf32> to vector<8x384xf32>
    %698 = vector.broadcast %696 : vector<1x384xf32> to vector<8x384xf32>
    %699 = arith.mulf %697, %698 : vector<8x384xf32>
    %700 = vector.extract_strided_slice %5 {offsets = [0, 107], sizes = [8, 1], strides = [1, 1]} : vector<8x128xf32> to vector<8x1xf32>
    %701 = vector.extract_strided_slice %694 {offsets = [1, 0], sizes = [1, 384], strides = [1, 1]} : vector<2x384xf32> to vector<1x384xf32>
    %702 = vector.broadcast %700 : vector<8x1xf32> to vector<8x384xf32>
    %703 = vector.broadcast %701 : vector<1x384xf32> to vector<8x384xf32>
    %704 = arith.mulf %702, %703 : vector<8x384xf32>
    %705 = arith.addf %699, %704 : vector<8x384xf32>
    %706 = arith.addf %654, %705 : vector<8x384xf32>
    %c378_i32_51 = arith.constant 378 : i32
    %707 = tpu.dynamic_rotate %629 by %c378_i32_51 dim 1 : vector<2x384xf32>, i32 -> vector<2x384xf32>
    %708 = vector.extract_strided_slice %5 {offsets = [0, 108], sizes = [8, 1], strides = [1, 1]} : vector<8x128xf32> to vector<8x1xf32>
    %709 = vector.extract_strided_slice %707 {offsets = [0, 0], sizes = [1, 384], strides = [1, 1]} : vector<2x384xf32> to vector<1x384xf32>
    %710 = vector.broadcast %708 : vector<8x1xf32> to vector<8x384xf32>
    %711 = vector.broadcast %709 : vector<1x384xf32> to vector<8x384xf32>
    %712 = arith.mulf %710, %711 : vector<8x384xf32>
    %713 = vector.extract_strided_slice %5 {offsets = [0, 109], sizes = [8, 1], strides = [1, 1]} : vector<8x128xf32> to vector<8x1xf32>
    %714 = vector.extract_strided_slice %707 {offsets = [1, 0], sizes = [1, 384], strides = [1, 1]} : vector<2x384xf32> to vector<1x384xf32>
    %715 = vector.broadcast %713 : vector<8x1xf32> to vector<8x384xf32>
    %716 = vector.broadcast %714 : vector<1x384xf32> to vector<8x384xf32>
    %717 = arith.mulf %715, %716 : vector<8x384xf32>
    %718 = arith.addf %712, %717 : vector<8x384xf32>
    %719 = arith.addf %667, %718 : vector<8x384xf32>
    %c377_i32_52 = arith.constant 377 : i32
    %720 = tpu.dynamic_rotate %629 by %c377_i32_52 dim 1 : vector<2x384xf32>, i32 -> vector<2x384xf32>
    %721 = vector.extract_strided_slice %5 {offsets = [0, 110], sizes = [8, 1], strides = [1, 1]} : vector<8x128xf32> to vector<8x1xf32>
    %722 = vector.extract_strided_slice %720 {offsets = [0, 0], sizes = [1, 384], strides = [1, 1]} : vector<2x384xf32> to vector<1x384xf32>
    %723 = vector.broadcast %721 : vector<8x1xf32> to vector<8x384xf32>
    %724 = vector.broadcast %722 : vector<1x384xf32> to vector<8x384xf32>
    %725 = arith.mulf %723, %724 : vector<8x384xf32>
    %726 = vector.extract_strided_slice %5 {offsets = [0, 111], sizes = [8, 1], strides = [1, 1]} : vector<8x128xf32> to vector<8x1xf32>
    %727 = vector.extract_strided_slice %720 {offsets = [1, 0], sizes = [1, 384], strides = [1, 1]} : vector<2x384xf32> to vector<1x384xf32>
    %728 = vector.broadcast %726 : vector<8x1xf32> to vector<8x384xf32>
    %729 = vector.broadcast %727 : vector<1x384xf32> to vector<8x384xf32>
    %730 = arith.mulf %728, %729 : vector<8x384xf32>
    %731 = arith.addf %725, %730 : vector<8x384xf32>
    %732 = arith.addf %680, %731 : vector<8x384xf32>
    %c0_53 = arith.constant 0 : index
    %c221 = arith.constant 221 : index
    %733 = vector.load %arg9[%c0_53, %c221] : memref<2x629xf32, #tpu.memory_space<vmem>>, vector<2x384xf32>
    %734 = vector.extract_strided_slice %5 {offsets = [0, 112], sizes = [8, 1], strides = [1, 1]} : vector<8x128xf32> to vector<8x1xf32>
    %735 = vector.extract_strided_slice %733 {offsets = [0, 0], sizes = [1, 384], strides = [1, 1]} : vector<2x384xf32> to vector<1x384xf32>
    %736 = vector.broadcast %734 : vector<8x1xf32> to vector<8x384xf32>
    %737 = vector.broadcast %735 : vector<1x384xf32> to vector<8x384xf32>
    %738 = arith.mulf %736, %737 : vector<8x384xf32>
    %739 = vector.extract_strided_slice %5 {offsets = [0, 113], sizes = [8, 1], strides = [1, 1]} : vector<8x128xf32> to vector<8x1xf32>
    %740 = vector.extract_strided_slice %733 {offsets = [1, 0], sizes = [1, 384], strides = [1, 1]} : vector<2x384xf32> to vector<1x384xf32>
    %741 = vector.broadcast %739 : vector<8x1xf32> to vector<8x384xf32>
    %742 = vector.broadcast %740 : vector<1x384xf32> to vector<8x384xf32>
    %743 = arith.mulf %741, %742 : vector<8x384xf32>
    %744 = arith.addf %738, %743 : vector<8x384xf32>
    %745 = arith.addf %693, %744 : vector<8x384xf32>
    %c383_i32_54 = arith.constant 383 : i32
    %746 = tpu.dynamic_rotate %733 by %c383_i32_54 dim 1 : vector<2x384xf32>, i32 -> vector<2x384xf32>
    %747 = vector.extract_strided_slice %5 {offsets = [0, 114], sizes = [8, 1], strides = [1, 1]} : vector<8x128xf32> to vector<8x1xf32>
    %748 = vector.extract_strided_slice %746 {offsets = [0, 0], sizes = [1, 384], strides = [1, 1]} : vector<2x384xf32> to vector<1x384xf32>
    %749 = vector.broadcast %747 : vector<8x1xf32> to vector<8x384xf32>
    %750 = vector.broadcast %748 : vector<1x384xf32> to vector<8x384xf32>
    %751 = arith.mulf %749, %750 : vector<8x384xf32>
    %752 = vector.extract_strided_slice %5 {offsets = [0, 115], sizes = [8, 1], strides = [1, 1]} : vector<8x128xf32> to vector<8x1xf32>
    %753 = vector.extract_strided_slice %746 {offsets = [1, 0], sizes = [1, 384], strides = [1, 1]} : vector<2x384xf32> to vector<1x384xf32>
    %754 = vector.broadcast %752 : vector<8x1xf32> to vector<8x384xf32>
    %755 = vector.broadcast %753 : vector<1x384xf32> to vector<8x384xf32>
    %756 = arith.mulf %754, %755 : vector<8x384xf32>
    %757 = arith.addf %751, %756 : vector<8x384xf32>
    %758 = arith.addf %706, %757 : vector<8x384xf32>
    %c382_i32_55 = arith.constant 382 : i32
    %759 = tpu.dynamic_rotate %733 by %c382_i32_55 dim 1 : vector<2x384xf32>, i32 -> vector<2x384xf32>
    %760 = vector.extract_strided_slice %5 {offsets = [0, 116], sizes = [8, 1], strides = [1, 1]} : vector<8x128xf32> to vector<8x1xf32>
    %761 = vector.extract_strided_slice %759 {offsets = [0, 0], sizes = [1, 384], strides = [1, 1]} : vector<2x384xf32> to vector<1x384xf32>
    %762 = vector.broadcast %760 : vector<8x1xf32> to vector<8x384xf32>
    %763 = vector.broadcast %761 : vector<1x384xf32> to vector<8x384xf32>
    %764 = arith.mulf %762, %763 : vector<8x384xf32>
    %765 = vector.extract_strided_slice %5 {offsets = [0, 117], sizes = [8, 1], strides = [1, 1]} : vector<8x128xf32> to vector<8x1xf32>
    %766 = vector.extract_strided_slice %759 {offsets = [1, 0], sizes = [1, 384], strides = [1, 1]} : vector<2x384xf32> to vector<1x384xf32>
    %767 = vector.broadcast %765 : vector<8x1xf32> to vector<8x384xf32>
    %768 = vector.broadcast %766 : vector<1x384xf32> to vector<8x384xf32>
    %769 = arith.mulf %767, %768 : vector<8x384xf32>
    %770 = arith.addf %764, %769 : vector<8x384xf32>
    %771 = arith.addf %719, %770 : vector<8x384xf32>
    %c381_i32_56 = arith.constant 381 : i32
    %772 = tpu.dynamic_rotate %733 by %c381_i32_56 dim 1 : vector<2x384xf32>, i32 -> vector<2x384xf32>
    %773 = vector.extract_strided_slice %5 {offsets = [0, 118], sizes = [8, 1], strides = [1, 1]} : vector<8x128xf32> to vector<8x1xf32>
    %774 = vector.extract_strided_slice %772 {offsets = [0, 0], sizes = [1, 384], strides = [1, 1]} : vector<2x384xf32> to vector<1x384xf32>
    %775 = vector.broadcast %773 : vector<8x1xf32> to vector<8x384xf32>
    %776 = vector.broadcast %774 : vector<1x384xf32> to vector<8x384xf32>
    %777 = arith.mulf %775, %776 : vector<8x384xf32>
    %778 = vector.extract_strided_slice %5 {offsets = [0, 119], sizes = [8, 1], strides = [1, 1]} : vector<8x128xf32> to vector<8x1xf32>
    %779 = vector.extract_strided_slice %772 {offsets = [1, 0], sizes = [1, 384], strides = [1, 1]} : vector<2x384xf32> to vector<1x384xf32>
    %780 = vector.broadcast %778 : vector<8x1xf32> to vector<8x384xf32>
    %781 = vector.broadcast %779 : vector<1x384xf32> to vector<8x384xf32>
    %782 = arith.mulf %780, %781 : vector<8x384xf32>
    %783 = arith.addf %777, %782 : vector<8x384xf32>
    %784 = arith.addf %732, %783 : vector<8x384xf32>
    %c380_i32_57 = arith.constant 380 : i32
    %785 = tpu.dynamic_rotate %733 by %c380_i32_57 dim 1 : vector<2x384xf32>, i32 -> vector<2x384xf32>
    %786 = vector.extract_strided_slice %5 {offsets = [0, 120], sizes = [8, 1], strides = [1, 1]} : vector<8x128xf32> to vector<8x1xf32>
    %787 = vector.extract_strided_slice %785 {offsets = [0, 0], sizes = [1, 384], strides = [1, 1]} : vector<2x384xf32> to vector<1x384xf32>
    %788 = vector.broadcast %786 : vector<8x1xf32> to vector<8x384xf32>
    %789 = vector.broadcast %787 : vector<1x384xf32> to vector<8x384xf32>
    %790 = arith.mulf %788, %789 : vector<8x384xf32>
    %791 = vector.extract_strided_slice %5 {offsets = [0, 121], sizes = [8, 1], strides = [1, 1]} : vector<8x128xf32> to vector<8x1xf32>
    %792 = vector.extract_strided_slice %785 {offsets = [1, 0], sizes = [1, 384], strides = [1, 1]} : vector<2x384xf32> to vector<1x384xf32>
    %793 = vector.broadcast %791 : vector<8x1xf32> to vector<8x384xf32>
    %794 = vector.broadcast %792 : vector<1x384xf32> to vector<8x384xf32>
    %795 = arith.mulf %793, %794 : vector<8x384xf32>
    %796 = arith.addf %790, %795 : vector<8x384xf32>
    %797 = arith.addf %745, %796 : vector<8x384xf32>
    %c379_i32_58 = arith.constant 379 : i32
    %798 = tpu.dynamic_rotate %733 by %c379_i32_58 dim 1 : vector<2x384xf32>, i32 -> vector<2x384xf32>
    %799 = vector.extract_strided_slice %5 {offsets = [0, 122], sizes = [8, 1], strides = [1, 1]} : vector<8x128xf32> to vector<8x1xf32>
    %800 = vector.extract_strided_slice %798 {offsets = [0, 0], sizes = [1, 384], strides = [1, 1]} : vector<2x384xf32> to vector<1x384xf32>
    %801 = vector.broadcast %799 : vector<8x1xf32> to vector<8x384xf32>
    %802 = vector.broadcast %800 : vector<1x384xf32> to vector<8x384xf32>
    %803 = arith.mulf %801, %802 : vector<8x384xf32>
    %804 = vector.extract_strided_slice %5 {offsets = [0, 123], sizes = [8, 1], strides = [1, 1]} : vector<8x128xf32> to vector<8x1xf32>
    %805 = vector.extract_strided_slice %798 {offsets = [1, 0], sizes = [1, 384], strides = [1, 1]} : vector<2x384xf32> to vector<1x384xf32>
    %806 = vector.broadcast %804 : vector<8x1xf32> to vector<8x384xf32>
    %807 = vector.broadcast %805 : vector<1x384xf32> to vector<8x384xf32>
    %808 = arith.mulf %806, %807 : vector<8x384xf32>
    %809 = arith.addf %803, %808 : vector<8x384xf32>
    %810 = arith.addf %758, %809 : vector<8x384xf32>
    %c378_i32_59 = arith.constant 378 : i32
    %811 = tpu.dynamic_rotate %733 by %c378_i32_59 dim 1 : vector<2x384xf32>, i32 -> vector<2x384xf32>
    %812 = vector.extract_strided_slice %5 {offsets = [0, 124], sizes = [8, 1], strides = [1, 1]} : vector<8x128xf32> to vector<8x1xf32>
    %813 = vector.extract_strided_slice %811 {offsets = [0, 0], sizes = [1, 384], strides = [1, 1]} : vector<2x384xf32> to vector<1x384xf32>
    %814 = vector.broadcast %812 : vector<8x1xf32> to vector<8x384xf32>
    %815 = vector.broadcast %813 : vector<1x384xf32> to vector<8x384xf32>
    %816 = arith.mulf %814, %815 : vector<8x384xf32>
    %817 = vector.extract_strided_slice %5 {offsets = [0, 125], sizes = [8, 1], strides = [1, 1]} : vector<8x128xf32> to vector<8x1xf32>
    %818 = vector.extract_strided_slice %811 {offsets = [1, 0], sizes = [1, 384], strides = [1, 1]} : vector<2x384xf32> to vector<1x384xf32>
    %819 = vector.broadcast %817 : vector<8x1xf32> to vector<8x384xf32>
    %820 = vector.broadcast %818 : vector<1x384xf32> to vector<8x384xf32>
    %821 = arith.mulf %819, %820 : vector<8x384xf32>
    %822 = arith.addf %816, %821 : vector<8x384xf32>
    %823 = arith.addf %771, %822 : vector<8x384xf32>
    %c377_i32_60 = arith.constant 377 : i32
    %824 = tpu.dynamic_rotate %733 by %c377_i32_60 dim 1 : vector<2x384xf32>, i32 -> vector<2x384xf32>
    %825 = vector.extract_strided_slice %5 {offsets = [0, 126], sizes = [8, 1], strides = [1, 1]} : vector<8x128xf32> to vector<8x1xf32>
    %826 = vector.extract_strided_slice %824 {offsets = [0, 0], sizes = [1, 384], strides = [1, 1]} : vector<2x384xf32> to vector<1x384xf32>
    %827 = vector.broadcast %825 : vector<8x1xf32> to vector<8x384xf32>
    %828 = vector.broadcast %826 : vector<1x384xf32> to vector<8x384xf32>
    %829 = arith.mulf %827, %828 : vector<8x384xf32>
    %830 = vector.extract_strided_slice %5 {offsets = [0, 127], sizes = [8, 1], strides = [1, 1]} : vector<8x128xf32> to vector<8x1xf32>
    %831 = vector.extract_strided_slice %824 {offsets = [1, 0], sizes = [1, 384], strides = [1, 1]} : vector<2x384xf32> to vector<1x384xf32>
    %832 = vector.broadcast %830 : vector<8x1xf32> to vector<8x384xf32>
    %833 = vector.broadcast %831 : vector<1x384xf32> to vector<8x384xf32>
    %834 = arith.mulf %832, %833 : vector<8x384xf32>
    %835 = arith.addf %829, %834 : vector<8x384xf32>
    %836 = arith.addf %784, %835 : vector<8x384xf32>
    %837 = arith.index_cast %arg1 : i32 to index
    %c0_61 = arith.constant 0 : index
    %c0_62 = arith.constant 0 : index
    %838 = vector.load %arg5[%837, %c0_61, %c0_62] : memref<2x8x1xf32, #tpu.memory_space<vmem>>, vector<1x8x1xf32>
    %839 = vector.shape_cast %838 : vector<1x8x1xf32> to vector<8x1xf32>
    %840 = vector.shape_cast %839 : vector<8x1xf32> to vector<8x1xf32>
    %841 = vector.broadcast %840 : vector<8x1xf32> to vector<8x384xf32>
    %842 = arith.addf %797, %810 : vector<8x384xf32>
    %843 = arith.addf %823, %836 : vector<8x384xf32>
    %844 = arith.addf %842, %843 : vector<8x384xf32>
    %845 = arith.addf %841, %844 : vector<8x384xf32>
    %cst = arith.constant 0.000000e+00 : f32
    %846 = vector.broadcast %cst : f32 to vector<8x384xf32>
    %847 = arith.cmpf ogt, %845, %846 : vector<8x384xf32>
    %cst_63 = arith.constant 0.000000e+00 : f32
    %848 = vector.broadcast %cst_63 : f32 to vector<8x384xf32>
    %849 = arith.minimumf %845, %848 : vector<8x384xf32>
    %850 = math.exp %849 : vector<8x384xf32>
    %cst_64 = arith.constant 1.000000e+00 : f32
    %851 = vector.broadcast %cst_64 : f32 to vector<8x384xf32>
    %852 = arith.subf %850, %851 : vector<8x384xf32>
    %853 = arith.select %847, %845, %852 : vector<8x384xi1>, vector<8x384xf32>
    %854 = arith.index_cast %arg1 : i32 to index
    %c0_65 = arith.constant 0 : index
    %c0_66 = arith.constant 0 : index
    %855 = vector.load %arg7[%854, %c0_65, %c0_66] : memref<2x2x1xf32, #tpu.memory_space<vmem>>, vector<1x2x1xf32>
    %856 = vector.shape_cast %855 : vector<1x2x1xf32> to vector<2x1xf32>
    %857 = vector.shape_cast %856 : vector<2x1xf32> to vector<2x1xf32>
    %858 = vector.broadcast %857 : vector<2x1xf32> to vector<2x384xf32>
    %859 = vector.extract_strided_slice %8 {offsets = [0, 0], sizes = [2, 1], strides = [1, 1]} : vector<2x8xf32> to vector<2x1xf32>
    %860 = vector.extract_strided_slice %853 {offsets = [0, 0], sizes = [1, 384], strides = [1, 1]} : vector<8x384xf32> to vector<1x384xf32>
    %861 = vector.broadcast %859 : vector<2x1xf32> to vector<2x384xf32>
    %862 = vector.broadcast %860 : vector<1x384xf32> to vector<2x384xf32>
    %863 = arith.mulf %861, %862 : vector<2x384xf32>
    %864 = vector.extract_strided_slice %8 {offsets = [0, 1], sizes = [2, 1], strides = [1, 1]} : vector<2x8xf32> to vector<2x1xf32>
    %865 = vector.extract_strided_slice %853 {offsets = [1, 0], sizes = [1, 384], strides = [1, 1]} : vector<8x384xf32> to vector<1x384xf32>
    %866 = vector.broadcast %864 : vector<2x1xf32> to vector<2x384xf32>
    %867 = vector.broadcast %865 : vector<1x384xf32> to vector<2x384xf32>
    %868 = arith.mulf %866, %867 : vector<2x384xf32>
    %869 = vector.extract_strided_slice %8 {offsets = [0, 2], sizes = [2, 1], strides = [1, 1]} : vector<2x8xf32> to vector<2x1xf32>
    %870 = vector.extract_strided_slice %853 {offsets = [2, 0], sizes = [1, 384], strides = [1, 1]} : vector<8x384xf32> to vector<1x384xf32>
    %871 = vector.broadcast %869 : vector<2x1xf32> to vector<2x384xf32>
    %872 = vector.broadcast %870 : vector<1x384xf32> to vector<2x384xf32>
    %873 = arith.mulf %871, %872 : vector<2x384xf32>
    %874 = arith.addf %863, %873 : vector<2x384xf32>
    %875 = vector.extract_strided_slice %8 {offsets = [0, 3], sizes = [2, 1], strides = [1, 1]} : vector<2x8xf32> to vector<2x1xf32>
    %876 = vector.extract_strided_slice %853 {offsets = [3, 0], sizes = [1, 384], strides = [1, 1]} : vector<8x384xf32> to vector<1x384xf32>
    %877 = vector.broadcast %875 : vector<2x1xf32> to vector<2x384xf32>
    %878 = vector.broadcast %876 : vector<1x384xf32> to vector<2x384xf32>
    %879 = arith.mulf %877, %878 : vector<2x384xf32>
    %880 = arith.addf %868, %879 : vector<2x384xf32>
    %881 = vector.extract_strided_slice %8 {offsets = [0, 4], sizes = [2, 1], strides = [1, 1]} : vector<2x8xf32> to vector<2x1xf32>
    %882 = vector.extract_strided_slice %853 {offsets = [4, 0], sizes = [1, 384], strides = [1, 1]} : vector<8x384xf32> to vector<1x384xf32>
    %883 = vector.broadcast %881 : vector<2x1xf32> to vector<2x384xf32>
    %884 = vector.broadcast %882 : vector<1x384xf32> to vector<2x384xf32>
    %885 = arith.mulf %883, %884 : vector<2x384xf32>
    %886 = arith.addf %874, %885 : vector<2x384xf32>
    %887 = vector.extract_strided_slice %8 {offsets = [0, 5], sizes = [2, 1], strides = [1, 1]} : vector<2x8xf32> to vector<2x1xf32>
    %888 = vector.extract_strided_slice %853 {offsets = [5, 0], sizes = [1, 384], strides = [1, 1]} : vector<8x384xf32> to vector<1x384xf32>
    %889 = vector.broadcast %887 : vector<2x1xf32> to vector<2x384xf32>
    %890 = vector.broadcast %888 : vector<1x384xf32> to vector<2x384xf32>
    %891 = arith.mulf %889, %890 : vector<2x384xf32>
    %892 = arith.addf %880, %891 : vector<2x384xf32>
    %893 = vector.extract_strided_slice %8 {offsets = [0, 6], sizes = [2, 1], strides = [1, 1]} : vector<2x8xf32> to vector<2x1xf32>
    %894 = vector.extract_strided_slice %853 {offsets = [6, 0], sizes = [1, 384], strides = [1, 1]} : vector<8x384xf32> to vector<1x384xf32>
    %895 = vector.broadcast %893 : vector<2x1xf32> to vector<2x384xf32>
    %896 = vector.broadcast %894 : vector<1x384xf32> to vector<2x384xf32>
    %897 = arith.mulf %895, %896 : vector<2x384xf32>
    %898 = arith.addf %886, %897 : vector<2x384xf32>
    %899 = vector.extract_strided_slice %8 {offsets = [0, 7], sizes = [2, 1], strides = [1, 1]} : vector<2x8xf32> to vector<2x1xf32>
    %900 = vector.extract_strided_slice %853 {offsets = [7, 0], sizes = [1, 384], strides = [1, 1]} : vector<8x384xf32> to vector<1x384xf32>
    %901 = vector.broadcast %899 : vector<2x1xf32> to vector<2x384xf32>
    %902 = vector.broadcast %900 : vector<1x384xf32> to vector<2x384xf32>
    %903 = arith.mulf %901, %902 : vector<2x384xf32>
    %904 = arith.addf %892, %903 : vector<2x384xf32>
    %905 = arith.addf %858, %898 : vector<2x384xf32>
    %906 = arith.addf %905, %904 : vector<2x384xf32>
    %c0_67 = arith.constant 0 : index
    %c128 = arith.constant 128 : index
    %907 = vector.load %arg9[%c0_67, %c128] : memref<2x629xf32, #tpu.memory_space<vmem>>, vector<2x384xf32>
    %cst_68 = arith.constant 5.000000e-01 : f32
    %908 = vector.broadcast %cst_68 : f32 to vector<2x384xf32>
    %909 = arith.mulf %908, %906 : vector<2x384xf32>
    %910 = arith.addf %909, %907 : vector<2x384xf32>
    %c0_69 = arith.constant 0 : index
    %c0_70 = arith.constant 0 : index
    %c0_71 = arith.constant 0 : index
    %c0_72 = arith.constant 0 : index
    %911 = vector.load %arg8[%c0_69, %c0_70, %c0_71, %c0_72] : memref<1x1x4x384xf32, #tpu.memory_space<vmem>>, vector<1x1x2x384xf32>
    %912 = vector.shape_cast %911 : vector<1x1x2x384xf32> to vector<2x384xf32>
    %913 = vector.shape_cast %910 : vector<2x384xf32> to vector<1x1x2x384xf32>
    tpu.vector_store %arg8[%c0_69, %c0_70, %c0_71, %c0_72], %913 {strides = array<i32>} : memref<1x1x4x384xf32, #tpu.memory_space<vmem>>, vector<1x1x2x384xf32>,
    %c0_73 = arith.constant 0 : index
    %c0_74 = arith.constant 0 : index
    %c2 = arith.constant 2 : index
    %c0_75 = arith.constant 0 : index
    %914 = vector.load %arg8[%c0_73, %c0_74, %c2, %c0_75] : memref<1x1x4x384xf32, #tpu.memory_space<vmem>>, vector<1x1x2x384xf32>
    %915 = vector.shape_cast %914 : vector<1x1x2x384xf32> to vector<2x384xf32>
    %916 = vector.shape_cast %906 : vector<2x384xf32> to vector<1x1x2x384xf32>
    tpu.vector_store %arg8[%c0_73, %c0_74, %c2, %c0_75], %916 {strides = array<i32>} : memref<1x1x4x384xf32, #tpu.memory_space<vmem>>, vector<1x1x2x384xf32>,
    %c0_76 = arith.constant 0 : index
    %c0_77 = arith.constant 0 : index
    %917 = vector.load %arg3[%c0_76, %c0_77] : memref<1x384xf32, #tpu.memory_space<vmem>>, vector<1x384xf32>
    %918 = vector.broadcast %917 : vector<1x384xf32> to vector<2x384xf32>
    %919 = arith.mulf %910, %918 : vector<2x384xf32>
    %c0_78 = arith.constant 0 : index
    %c128_79 = arith.constant 128 : index
    %920 = vector.load %arg9[%c0_78, %c128_79] : memref<2x629xf32, #tpu.memory_space<vmem>>, vector<2x384xf32>
    tpu.vector_store %arg9[%c0_78, %c128_79], %919 {strides = array<i32>} : memref<2x629xf32, #tpu.memory_space<vmem>>, vector<2x384xf32>,
    return
  }
  func.func @transform_0(%arg0: i32, %arg1: i32) -> (i32, i32, i32) {
    %c0_i32 = arith.constant 0 : i32
    %c0_i32_0 = arith.constant 0 : i32
    %c0_i32_1 = arith.constant 0 : i32
    return %arg0, %c0_i32, %c0_i32_0 : i32, i32, i32
  }
  func.func @transform_1(%arg0: i32, %arg1: i32) -> (i32, i32) {
    %c0_i32 = arith.constant 0 : i32
    %c0_i32_0 = arith.constant 0 : i32
    %c0_i32_1 = arith.constant 0 : i32
    return %c0_i32, %c0_i32_0 : i32, i32
  }
  func.func @transform_2(%arg0: i32, %arg1: i32) -> (i32, i32, i32) {
    %c0_i32 = arith.constant 0 : i32
    %c0_i32_0 = arith.constant 0 : i32
    %c0_i32_1 = arith.constant 0 : i32
    %c0_i32_2 = arith.constant 0 : i32
    return %c0_i32, %c0_i32_0, %c0_i32_1 : i32, i32, i32
  }
  func.func @transform_3(%arg0: i32, %arg1: i32) -> (i32, i32, i32) {
    %c0_i32 = arith.constant 0 : i32
    %c0_i32_0 = arith.constant 0 : i32
    %c0_i32_1 = arith.constant 0 : i32
    %c0_i32_2 = arith.constant 0 : i32
    return %c0_i32, %c0_i32_0, %c0_i32_1 : i32, i32, i32
  }
  func.func @transform_4(%arg0: i32, %arg1: i32) -> (i32, i32, i32) {
    %c0_i32 = arith.constant 0 : i32
    %c0_i32_0 = arith.constant 0 : i32
    %c0_i32_1 = arith.constant 0 : i32
    %c0_i32_2 = arith.constant 0 : i32
    return %c0_i32, %c0_i32_0, %c0_i32_1 : i32, i32, i32
  }
  func.func @transform_5(%arg0: i32, %arg1: i32) -> (i32, i32, i32) {
    %c0_i32 = arith.constant 0 : i32
    %c0_i32_0 = arith.constant 0 : i32
    %c0_i32_1 = arith.constant 0 : i32
    %c0_i32_2 = arith.constant 0 : i32
    return %c0_i32, %c0_i32_0, %c0_i32_1 : i32, i32, i32
  }
  func.func @transform_6(%arg0: i32, %arg1: i32) -> (i32, i32, i32, i32) {
    %c0_i32 = arith.constant 0 : i32
    %c0_i32_0 = arith.constant 0 : i32
    %c0_i32_1 = arith.constant 0 : i32
    return %arg0, %arg1, %c0_i32, %c0_i32_0 : i32, i32, i32, i32
  }
}

module attributes {stable_mosaic.version = 11 : i64} {
  func.func @_grid_sample_kernel(%arg0: i32, %arg1: i32, %arg2: memref<1x16x16xf32, #tpu.memory_space<vmem>>, %arg3: memref<1x2x256xf32, #tpu.memory_space<vmem>>, %arg4: memref<1x1x256xf32, #tpu.memory_space<vmem>>) attributes {dimension_semantics = [#tpu.dimension_semantics<parallel>, #tpu.dimension_semantics<parallel>], iteration_bounds = array<i64: 2, 1>, scalar_prefetch = 0 : i64, scratch_operands = 0 : i64, tpu.core_type = #tpu.core_type<tc>, window_params = [{transform_indices = @transform_0, window_bounds = array<i64: 1, 16, 16>}, {transform_indices = @transform_1, window_bounds = array<i64: 1, 2, 256>}, {transform_indices = @transform_2, window_bounds = array<i64: 1, 1, 256>}]} {
    %c0 = arith.constant 0 : index
    %c0_0 = arith.constant 0 : index
    %c0_1 = arith.constant 0 : index
    %0 = vector.load %arg2[%c0, %c0_0, %c0_1] : memref<1x16x16xf32, #tpu.memory_space<vmem>>, vector<1x16x16xf32>
    %1 = vector.shape_cast %0 : vector<1x16x16xf32> to vector<16x16xf32>
    %c0_2 = arith.constant 0 : index
    %c0_3 = arith.constant 0 : index
    %c0_4 = arith.constant 0 : index
    %2 = vector.load %arg3[%c0_2, %c0_3, %c0_4] : memref<1x2x256xf32, #tpu.memory_space<vmem>>, vector<1x2x256xf32>
    %3 = vector.shape_cast %2 : vector<1x2x256xf32> to vector<2x256xf32>
    %4 = vector.extract_strided_slice %3 {offsets = [0, 0], sizes = [1, 256], strides = [1, 1]} : vector<2x256xf32> to vector<1x256xf32>
    %5 = vector.extract_strided_slice %3 {offsets = [1, 0], sizes = [1, 256], strides = [1, 1]} : vector<2x256xf32> to vector<1x256xf32>
    %cst = arith.constant 1.000000e+00 : f32
    %6 = vector.broadcast %cst : f32 to vector<1x256xf32>
    %7 = arith.addf %4, %6 : vector<1x256xf32>
    %cst_5 = arith.constant 1.600000e+01 : f32
    %8 = vector.broadcast %cst_5 : f32 to vector<1x256xf32>
    %9 = arith.mulf %7, %8 : vector<1x256xf32>
    %cst_6 = arith.constant 1.000000e+00 : f32
    %10 = vector.broadcast %cst_6 : f32 to vector<1x256xf32>
    %11 = arith.subf %9, %10 : vector<1x256xf32>
    %cst_7 = arith.constant 5.000000e-01 : f32
    %12 = vector.broadcast %cst_7 : f32 to vector<1x256xf32>
    %13 = arith.mulf %11, %12 : vector<1x256xf32>
    %cst_8 = arith.constant 5.000000e-01 : f32
    %14 = vector.broadcast %cst_8 : f32 to vector<1x256xf32>
    %15 = arith.addf %13, %14 : vector<1x256xf32>
    %16 = math.absf %15 : vector<1x256xf32>
    %cst_9 = arith.constant 1.600000e+01 : f32
    %17 = vector.broadcast %cst_9 : f32 to vector<1x256xf32>
    %18 = arith.remf %16, %17 : vector<1x256xf32>
    %cst_10 = arith.constant 0.000000e+00 : f32
    %19 = vector.broadcast %cst_10 : f32 to vector<1x256xf32>
    %20 = arith.cmpf one, %18, %19 : vector<1x256xf32>
    %cst_11 = arith.constant 0.000000e+00 : f32
    %21 = vector.broadcast %cst_11 : f32 to vector<1x256xf32>
    %22 = arith.cmpf olt, %18, %21 : vector<1x256xf32>
    %cst_12 = arith.constant 0.000000e+00 : f32
    %23 = arith.cmpf olt, %cst_9, %cst_12 : f32
    %24 = vector.broadcast %23 : i1 to vector<1x256xi1>
    %25 = vector.broadcast %24 : vector<1x256xi1> to vector<1x256xi1>
    %26 = arith.xori %22, %25 : vector<1x256xi1>
    %27 = arith.andi %26, %20 : vector<1x256xi1>
    %28 = vector.broadcast %cst_9 : f32 to vector<1x256xf32>
    %29 = arith.addf %18, %28 : vector<1x256xf32>
    %30 = arith.select %27, %29, %18 : vector<1x256xi1>, vector<1x256xf32>
    %cst_13 = arith.constant 1.600000e+01 : f32
    %31 = vector.broadcast %cst_13 : f32 to vector<1x256xf32>
    %32 = arith.divf %16, %31 : vector<1x256xf32>
    %33 = math.floor %32 : vector<1x256xf32>
    %cst_14 = arith.constant 2.000000e+00 : f32
    %34 = vector.broadcast %cst_14 : f32 to vector<1x256xf32>
    %35 = arith.remf %33, %34 : vector<1x256xf32>
    %cst_15 = arith.constant 0.000000e+00 : f32
    %36 = vector.broadcast %cst_15 : f32 to vector<1x256xf32>
    %37 = arith.cmpf one, %35, %36 : vector<1x256xf32>
    %cst_16 = arith.constant 0.000000e+00 : f32
    %38 = vector.broadcast %cst_16 : f32 to vector<1x256xf32>
    %39 = arith.cmpf olt, %35, %38 : vector<1x256xf32>
    %cst_17 = arith.constant 0.000000e+00 : f32
    %40 = arith.cmpf olt, %cst_14, %cst_17 : f32
    %41 = vector.broadcast %40 : i1 to vector<1x256xi1>
    %42 = vector.broadcast %41 : vector<1x256xi1> to vector<1x256xi1>
    %43 = arith.xori %39, %42 : vector<1x256xi1>
    %44 = arith.andi %43, %37 : vector<1x256xi1>
    %45 = vector.broadcast %cst_14 : f32 to vector<1x256xf32>
    %46 = arith.addf %35, %45 : vector<1x256xf32>
    %47 = arith.select %44, %46, %35 : vector<1x256xi1>, vector<1x256xf32>
    %cst_18 = arith.constant 5.000000e-01 : f32
    %48 = vector.broadcast %cst_18 : f32 to vector<1x256xf32>
    %49 = arith.cmpf olt, %47, %48 : vector<1x256xf32>
    %cst_19 = arith.constant 5.000000e-01 : f32
    %50 = vector.broadcast %cst_19 : f32 to vector<1x256xf32>
    %51 = arith.subf %30, %50 : vector<1x256xf32>
    %cst_20 = arith.constant 1.600000e+01 : f32
    %52 = vector.broadcast %cst_20 : f32 to vector<1x256xf32>
    %53 = arith.subf %52, %30 : vector<1x256xf32>
    %cst_21 = arith.constant 5.000000e-01 : f32
    %54 = vector.broadcast %cst_21 : f32 to vector<1x256xf32>
    %55 = arith.subf %53, %54 : vector<1x256xf32>
    %56 = arith.select %49, %51, %55 : vector<1x256xi1>, vector<1x256xf32>
    %cst_22 = arith.constant 0.000000e+00 : f32
    %cst_23 = arith.constant 1.500000e+01 : f32
    %57 = vector.broadcast %cst_22 : f32 to vector<1x256xf32>
    %58 = arith.maximumf %57, %56 : vector<1x256xf32>
    %59 = vector.broadcast %cst_23 : f32 to vector<1x256xf32>
    %60 = arith.minimumf %59, %58 : vector<1x256xf32>
    %cst_24 = arith.constant 1.000000e+00 : f32
    %61 = vector.broadcast %cst_24 : f32 to vector<1x256xf32>
    %62 = arith.addf %5, %61 : vector<1x256xf32>
    %cst_25 = arith.constant 1.600000e+01 : f32
    %63 = vector.broadcast %cst_25 : f32 to vector<1x256xf32>
    %64 = arith.mulf %62, %63 : vector<1x256xf32>
    %cst_26 = arith.constant 1.000000e+00 : f32
    %65 = vector.broadcast %cst_26 : f32 to vector<1x256xf32>
    %66 = arith.subf %64, %65 : vector<1x256xf32>
    %cst_27 = arith.constant 5.000000e-01 : f32
    %67 = vector.broadcast %cst_27 : f32 to vector<1x256xf32>
    %68 = arith.mulf %66, %67 : vector<1x256xf32>
    %cst_28 = arith.constant 5.000000e-01 : f32
    %69 = vector.broadcast %cst_28 : f32 to vector<1x256xf32>
    %70 = arith.addf %68, %69 : vector<1x256xf32>
    %71 = math.absf %70 : vector<1x256xf32>
    %cst_29 = arith.constant 1.600000e+01 : f32
    %72 = vector.broadcast %cst_29 : f32 to vector<1x256xf32>
    %73 = arith.remf %71, %72 : vector<1x256xf32>
    %cst_30 = arith.constant 0.000000e+00 : f32
    %74 = vector.broadcast %cst_30 : f32 to vector<1x256xf32>
    %75 = arith.cmpf one, %73, %74 : vector<1x256xf32>
    %cst_31 = arith.constant 0.000000e+00 : f32
    %76 = vector.broadcast %cst_31 : f32 to vector<1x256xf32>
    %77 = arith.cmpf olt, %73, %76 : vector<1x256xf32>
    %cst_32 = arith.constant 0.000000e+00 : f32
    %78 = arith.cmpf olt, %cst_29, %cst_32 : f32
    %79 = vector.broadcast %78 : i1 to vector<1x256xi1>
    %80 = vector.broadcast %79 : vector<1x256xi1> to vector<1x256xi1>
    %81 = arith.xori %77, %80 : vector<1x256xi1>
    %82 = arith.andi %81, %75 : vector<1x256xi1>
    %83 = vector.broadcast %cst_29 : f32 to vector<1x256xf32>
    %84 = arith.addf %73, %83 : vector<1x256xf32>
    %85 = arith.select %82, %84, %73 : vector<1x256xi1>, vector<1x256xf32>
    %cst_33 = arith.constant 1.600000e+01 : f32
    %86 = vector.broadcast %cst_33 : f32 to vector<1x256xf32>
    %87 = arith.divf %71, %86 : vector<1x256xf32>
    %88 = math.floor %87 : vector<1x256xf32>
    %cst_34 = arith.constant 2.000000e+00 : f32
    %89 = vector.broadcast %cst_34 : f32 to vector<1x256xf32>
    %90 = arith.remf %88, %89 : vector<1x256xf32>
    %cst_35 = arith.constant 0.000000e+00 : f32
    %91 = vector.broadcast %cst_35 : f32 to vector<1x256xf32>
    %92 = arith.cmpf one, %90, %91 : vector<1x256xf32>
    %cst_36 = arith.constant 0.000000e+00 : f32
    %93 = vector.broadcast %cst_36 : f32 to vector<1x256xf32>
    %94 = arith.cmpf olt, %90, %93 : vector<1x256xf32>
    %cst_37 = arith.constant 0.000000e+00 : f32
    %95 = arith.cmpf olt, %cst_34, %cst_37 : f32
    %96 = vector.broadcast %95 : i1 to vector<1x256xi1>
    %97 = vector.broadcast %96 : vector<1x256xi1> to vector<1x256xi1>
    %98 = arith.xori %94, %97 : vector<1x256xi1>
    %99 = arith.andi %98, %92 : vector<1x256xi1>
    %100 = vector.broadcast %cst_34 : f32 to vector<1x256xf32>
    %101 = arith.addf %90, %100 : vector<1x256xf32>
    %102 = arith.select %99, %101, %90 : vector<1x256xi1>, vector<1x256xf32>
    %cst_38 = arith.constant 5.000000e-01 : f32
    %103 = vector.broadcast %cst_38 : f32 to vector<1x256xf32>
    %104 = arith.cmpf olt, %102, %103 : vector<1x256xf32>
    %cst_39 = arith.constant 5.000000e-01 : f32
    %105 = vector.broadcast %cst_39 : f32 to vector<1x256xf32>
    %106 = arith.subf %85, %105 : vector<1x256xf32>
    %cst_40 = arith.constant 1.600000e+01 : f32
    %107 = vector.broadcast %cst_40 : f32 to vector<1x256xf32>
    %108 = arith.subf %107, %85 : vector<1x256xf32>
    %cst_41 = arith.constant 5.000000e-01 : f32
    %109 = vector.broadcast %cst_41 : f32 to vector<1x256xf32>
    %110 = arith.subf %108, %109 : vector<1x256xf32>
    %111 = arith.select %104, %106, %110 : vector<1x256xi1>, vector<1x256xf32>
    %cst_42 = arith.constant 0.000000e+00 : f32
    %cst_43 = arith.constant 1.500000e+01 : f32
    %112 = vector.broadcast %cst_42 : f32 to vector<1x256xf32>
    %113 = arith.maximumf %112, %111 : vector<1x256xf32>
    %114 = vector.broadcast %cst_43 : f32 to vector<1x256xf32>
    %115 = arith.minimumf %114, %113 : vector<1x256xf32>
    %116 = math.floor %60 : vector<1x256xf32>
    %117 = math.floor %115 : vector<1x256xf32>
    %118 = arith.subf %60, %116 : vector<1x256xf32>
    %cst_44 = arith.constant 1.000000e+00 : f32
    %119 = vector.broadcast %cst_44 : f32 to vector<1x256xf32>
    %120 = arith.subf %119, %118 : vector<1x256xf32>
    %121 = arith.subf %115, %117 : vector<1x256xf32>
    %cst_45 = arith.constant 1.000000e+00 : f32
    %122 = vector.broadcast %cst_45 : f32 to vector<1x256xf32>
    %123 = arith.subf %122, %121 : vector<1x256xf32>
    %124 = arith.fptosi %116 : vector<1x256xf32> to vector<1x256xi32>
    %125 = arith.fptosi %117 : vector<1x256xf32> to vector<1x256xi32>
    %126 = tpu.iota {dimensions = array<i32: 0>} : vector<16x256xi32>
    %127 = vector.broadcast %124 : vector<1x256xi32> to vector<16x256xi32>
    %128 = arith.cmpi eq, %126, %127 : vector<16x256xi32>
    %cst_46 = arith.constant 0.000000e+00 : f32
    %129 = vector.shape_cast %120 : vector<1x256xf32> to vector<1x256xf32>
    %130 = vector.broadcast %129 : vector<1x256xf32> to vector<16x256xf32>
    %131 = vector.broadcast %cst_46 : f32 to vector<16x256xf32>
    %132 = arith.select %128, %130, %131 : vector<16x256xi1>, vector<16x256xf32>
    %c1_i32 = arith.constant 1 : i32
    %133 = vector.broadcast %c1_i32 : i32 to vector<1x256xi32>
    %134 = arith.addi %124, %133 : vector<1x256xi32>
    %135 = vector.broadcast %134 : vector<1x256xi32> to vector<16x256xi32>
    %136 = arith.cmpi eq, %126, %135 : vector<16x256xi32>
    %cst_47 = arith.constant 0.000000e+00 : f32
    %137 = vector.shape_cast %118 : vector<1x256xf32> to vector<1x256xf32>
    %138 = vector.broadcast %137 : vector<1x256xf32> to vector<16x256xf32>
    %139 = vector.broadcast %cst_47 : f32 to vector<16x256xf32>
    %140 = arith.select %136, %138, %139 : vector<16x256xi1>, vector<16x256xf32>
    %141 = arith.addf %132, %140 : vector<16x256xf32>
    %142 = tpu.iota {dimensions = array<i32: 0>} : vector<16x256xi32>
    %143 = vector.broadcast %125 : vector<1x256xi32> to vector<16x256xi32>
    %144 = arith.cmpi eq, %142, %143 : vector<16x256xi32>
    %cst_48 = arith.constant 0.000000e+00 : f32
    %145 = vector.shape_cast %123 : vector<1x256xf32> to vector<1x256xf32>
    %146 = vector.broadcast %145 : vector<1x256xf32> to vector<16x256xf32>
    %147 = vector.broadcast %cst_48 : f32 to vector<16x256xf32>
    %148 = arith.select %144, %146, %147 : vector<16x256xi1>, vector<16x256xf32>
    %c1_i32_49 = arith.constant 1 : i32
    %149 = vector.broadcast %c1_i32_49 : i32 to vector<1x256xi32>
    %150 = arith.addi %125, %149 : vector<1x256xi32>
    %151 = vector.broadcast %150 : vector<1x256xi32> to vector<16x256xi32>
    %152 = arith.cmpi eq, %142, %151 : vector<16x256xi32>
    %cst_50 = arith.constant 0.000000e+00 : f32
    %153 = vector.shape_cast %121 : vector<1x256xf32> to vector<1x256xf32>
    %154 = vector.broadcast %153 : vector<1x256xf32> to vector<16x256xf32>
    %155 = vector.broadcast %cst_50 : f32 to vector<16x256xf32>
    %156 = arith.select %152, %154, %155 : vector<16x256xi1>, vector<16x256xf32>
    %157 = arith.addf %148, %156 : vector<16x256xf32>
    %cst_51 = arith.constant dense<0.000000e+00> : vector<16x256xf32>
    %158 = tpu.matmul %1, %141, %cst_51 {dimension_numbers = #tpu.dot_dimension_numbers<[1], [0], [0], [1], [0, 0, 1, 1], [], []>} : vector<16x16xf32>, vector<16x256xf32>, vector<16x256xf32> -> vector<16x256xf32>
    %159 = arith.mulf %158, %157 : vector<16x256xf32>
    %cst_52 = arith.constant dense<0.000000e+00> : vector<256xf32>
    %160 = vector.multi_reduction <add>, %159, %cst_52 [0] : vector<16x256xf32> to vector<256xf32>
    %161 = vector.shape_cast %160 : vector<256xf32> to vector<1x256xf32>
    %c0_53 = arith.constant 0 : index
    %c0_54 = arith.constant 0 : index
    %c0_55 = arith.constant 0 : index
    %162 = vector.load %arg4[%c0_53, %c0_54, %c0_55] : memref<1x1x256xf32, #tpu.memory_space<vmem>>, vector<1x1x256xf32>
    %163 = vector.shape_cast %162 : vector<1x1x256xf32> to vector<1x256xf32>
    %164 = vector.shape_cast %161 : vector<1x256xf32> to vector<1x1x256xf32>
    tpu.vector_store %arg4[%c0_53, %c0_54, %c0_55], %164 {strides = array<i32>} : memref<1x1x256xf32, #tpu.memory_space<vmem>>, vector<1x1x256xf32>,
    return
  }
  func.func @transform_0(%arg0: i32, %arg1: i32) -> (i32, i32, i32) {
    %c0_i32 = arith.constant 0 : i32
    %c0_i32_0 = arith.constant 0 : i32
    %c0_i32_1 = arith.constant 0 : i32
    return %arg0, %c0_i32, %c0_i32_0 : i32, i32, i32
  }
  func.func @transform_1(%arg0: i32, %arg1: i32) -> (i32, i32, i32) {
    %c0_i32 = arith.constant 0 : i32
    %c0_i32_0 = arith.constant 0 : i32
    return %arg0, %c0_i32, %arg1 : i32, i32, i32
  }
  func.func @transform_2(%arg0: i32, %arg1: i32) -> (i32, i32, i32) {
    %c0_i32 = arith.constant 0 : i32
    %c0_i32_0 = arith.constant 0 : i32
    return %arg0, %c0_i32, %arg1 : i32, i32, i32
  }
}

</mosaic_0001>

<bundles_post_ra>
// kernel: squeeze.5
= control target key start
LH: loop header
LB: loop body
LE: loop exit
PB: predicated region body
PF: predicated region fallthrough
CT: control target
= control target key end

     0   :  { %s15_s6 = smov 3  ;;  %s18_s7 = smov 12  ;;  %vm20_vm0 = vcmask 1043458   ;;  %vm25_vm1 = vcmask 1045508   ;;  %vm30_vm2 = vcmask 1047558   ;;  %vm4_vm3 = vcmask 1047556   ;;  %s412_s0 = inlined_call_operand.vmem [shape: f32[2,1,2,16,16], index: 0, kind: input, shape index: {}]   ;;  %s413_s1 = inlined_call_operand.vmem [shape: f32[2,2,256], index: 1, kind: output, shape index: {}]  }
   0x1   :  { %v234_v0 = vld [vmem:[%s412_s0 + $0x7] ss:$16 sm:%s15_s6]   ;;  %v235_v1 = vld [vmem:[%s412_s0 - $0x11] ss:$16 sm:%s18_s7]   ;;  %s23_s12 = smov 48  ;;  %s28_s13 = smov 192 }
   0x2   :  { %v21_v2 = vsel %vm20_vm0, %v235_v1, %v234_v0  ;;  %v236_v3 = vld [vmem:[%s412_s0 - $0x19] ss:$16 sm:%s23_s12]   ;;  %v237_v4 = vld [vmem:[%s412_s0 - $0x31] ss:$16 sm:%s28_s13]   ;;  %s71_s18 = smov 3  ;;  %s74_s21 = smov 12 }
   0x3   :  { %v26_v5 = vsel %vm25_vm1, %v236_v3, %v21_v2  ;;  %v242_v6 = vld [vmem:[%s412_s0 + $0x5] ss:$16 sm:%s71_s18]   ;;  %s79_s22 = smov 48  ;;  %v243_v8 = vld [vmem:[%s412_s0 - $0x13] ss:$16 sm:%s74_s21]   ;;  %s84_s27 = smov 192 }
   0x4   :  { %v31_v7 = vsel %vm30_vm2, %v237_v4, %v26_v5  ;;  %v244_v9 = vld [vmem:[%s412_s0 - $0x1b] ss:$16 sm:%s79_s22]   ;;  %s272_s28 = smov 112   ;;  %v77_v10 = vsel %vm20_vm0, %v243_v8, %v242_v6  ;;  %v245_v11 = vld [vmem:[%s412_s0 - $0x33] ss:$16 sm:%s84_s27]   ;;  %s43_s2 = smov 3 }
   0x5   :  { %32 = vrot.lane.b32.xlu0 %v31_v7, %s272_s28  ;;  %s46_s3 = smov 12  ;;  %v82_v12 = vsel %vm25_vm1, %v244_v9, %v77_v10  ;;  %v238_v13 = vld [vmem:[%s412_s0 + $0x6] ss:$16 sm:%s43_s2]   ;;  %s51_s8 = smov 48  ;;  %vm6_vm4 = vcmask 130048   ;;  %vm34_vm5 = vcmask 1048448  }
   0x6   :  { %v239_v14 = vld [vmem:[%s412_s0 - $0x12] ss:$16 sm:%s46_s3]   ;;  %s56_s9 = smov 192  ;;  %v87_v15 = vsel %vm30_vm2, %v245_v11, %v82_v12  ;;  %v240_v17 = vld [vmem:[%s412_s0 - $0x1a] ss:$16 sm:%s51_s8]   ;;  %s99_s14 = smov 3 }
   0x7   :  { %v49_v16 = vsel %vm20_vm0, %v239_v14, %v238_v13  ;;  %v241_v18 = vld [vmem:[%s412_s0 - $0x32] ss:$16 sm:%s56_s9]   ;;  %s273_s15 = smov 80   ;;  %v246_v20 = vld [vmem:[%s412_s0 + $0x4] ss:$16 sm:%s99_s14]   ;;  %s102_s18 = smov 12 }
   0x8   :  { %88 = vrot.lane.b32.xlu1 %v87_v15, %s273_s15  ;;  %v54_v19 = vsel %vm25_vm1, %v240_v17, %v49_v16  ;;  %s107_s19 = smov 48  ;;  %v247_v21 = vld [vmem:[%s412_s0 - $0x14] ss:$16 sm:%s102_s18]   ;;  %s112_s24 = smov 192  ;;  %vm62_vm6 = vcmask 917248   ;;  %vm90_vm7 = vcmask 786048  }
   0x9   :  { %v248_v22 = vld [vmem:[%s412_s0 - $0x1c] ss:$16 sm:%s107_s19]   ;;  %v59_v23 = vsel %vm30_vm2, %v241_v18, %v54_v19  ;;  %v105_v24 = vsel %vm20_vm0, %v247_v21, %v246_v20  ;;  %v249_v25 = vld [vmem:[%s412_s0 - $0x34] ss:$16 sm:%s112_s24]   ;;  %s183_s27 = smov 3  ;;  %s186_s28 = smov 12 }
   0xa   :  { %v110_v26 = vsel %vm25_vm1, %v248_v22, %v105_v24  ;;  %v258_v27 = vld [vmem:[%s412_s0 + $0x1] ss:$16 sm:%s183_s27]   ;;  %v259_v28 = vld [vmem:[%s412_s0 - $0x17] ss:$16 sm:%s186_s28]   ;;  %s191_s4 = smov 48  ;;  %s196_s7 = smov 192 }
   0xb   :  { %v189_v29 = vsel %vm20_vm0, %v259_v28, %v258_v27  ;;  %v260_v30 = vld [vmem:[%s412_s0 - $0x1f] ss:$16 sm:%s191_s4]   ;;  %s127_s8 = smov 3  ;;  %s274_s9 = smov 96   ;;  %v115_v31 = vsel %vm30_vm2, %v249_v25, %v110_v26  ;;  %v261_v36 = vld [vmem:[%s412_s0 - $0x37] ss:$16 sm:%s196_s7]  }
   0xc   :  { %v250_v32 = vld [vmem:[%s412_s0 + $0x3] ss:$16 sm:%s127_s8]   ;;  %s130_s12 = smov 12  ;;  %s135_s13 = smov 48  ;;  %v194_v35 = vsel %vm25_vm1, %v260_v30, %v189_v29  ;;  %vm118_vm8 = vcmask 654848   ;;  %vm146_vm9 = vcmask 523648  }
   0xd   :  { %60 = vrot.lane.b32.xlu0 %v59_v23, %s274_s9  ;;  %v251_v33 = vld [vmem:[%s412_s0 - $0x15] ss:$16 sm:%s130_s12]   ;;  %s140_s18 = smov 192  ;;  %s155_s23 = smov 3  ;;  %v199_v44 = vsel %vm30_vm2, %v261_v36, %v194_v35  ;;  %vm174_vm10 = vcmask 392448   ;;  %vm202_vm11 = vcmask 261248  }
   0xe   :  { %v252_v34 = vld [vmem:[%s412_s0 - $0x1d] ss:$16 sm:%s135_s13]   ;;  %v133_v37 = vsel %vm20_vm0, %v251_v33, %v250_v32  ;;  %v253_v38 = vld [vmem:[%s412_s0 - $0x35] ss:$16 sm:%s140_s18]   ;;  %s158_s24 = smov 12  ;;  %s275_s25 = smov 64  }
   0xf   :  { %v138_v39 = vsel %vm25_vm1, %v252_v34, %v133_v37  ;;  %v254_v40 = vld [vmem:[%s412_s0 + $0x2] ss:$16 sm:%s155_s23]   ;;  %s163_s28 = smov 48  ;;  %v255_v42 = vld [vmem:[%s412_s0 - $0x16] ss:$16 sm:%s158_s24]   ;;  %s168_s4 = smov 192 }
  0x10   :  { %116 = vrot.lane.b32.xlu1 %v115_v31, %s275_s25  ;;  %v143_v41 = vsel %vm30_vm2, %v253_v38, %v138_v39  ;;  %v256_v43 = vld [vmem:[%s412_s0 - $0x1e] ss:$16 sm:%s163_s28]   ;;  %s276_s5 = smov 48   ;;  %v161_v45 = vsel %vm20_vm0, %v255_v42, %v254_v40  ;;  %s277_s8 = smov 16  }
  0x11   :  { %144 = vrot.lane.b32.xlu2 %v143_v41, %s276_s5  ;;  %v166_v46 = vsel %vm25_vm1, %v256_v43, %v161_v45  ;;  %v257_v47 = vld [vmem:[%s412_s0 - $0x36] ss:$16 sm:%s168_s4]   ;;  %s278_s9 = smov 32   ;;  %v2_v49 = vld [vmem:[%s412_s0] ss:$8 sm:$0xf]  }
  0x12   :  { %v171_v48 = vsel %vm30_vm2, %v257_v47, %v166_v46  ;;  %v3_v50 = vld [vmem:[%s412_s0] ss:$8 sm:$0xf0]  }
  0x13   :  { %v5_v51 = vsel %vm4_vm3, %v3_v50, %v2_v49 }
  0x14   :  { %7 = vst.msk [vmem:[#allocation0] ss:$8 sm:$0x3] %vm6_vm4, %v5_v51  }
  0x15   :  { %200 = vrot.lane.b32.xlu0 %v199_v44, %s277_s8  ;;  %9 = vst.msk [vmem:[#allocation0 - $0xf] ss:$8 sm:$0xc] %vm6_vm4, %v5_v51  }
  0x16   :  { %11 = vst.msk [vmem:[#allocation0 - $0x10] ss:$8 sm:$0x30] %vm6_vm4, %v5_v51  }
  0x17   :  { %13 = vst.msk [vmem:[#allocation0 - $0x1f] ss:$8 sm:$0xc0] %vm6_vm4, %v5_v51  }
  0x19   :  { %172 = vrot.lane.b32.xlu2 %v171_v48, %s278_s9 }
  0x6b   :  { %v145_v52 = vpop.permute.xlu2 %144  }
  0x73   :  { %v173_v53 = vpop.permute.xlu2 %172  }
  0x77   :  { %v33_v54 = vpop.permute.xlu0 %32  }
  0x78   :  { %35 = vst.msk [vmem:[#allocation0] sm:$0x3] %vm34_vm5, %v33_v54  }
  0x79   :  { %37 = vst.msk [vmem:[#allocation0 + $0x6] sm:$0xc] %vm34_vm5, %v33_v54  }
  0x7a   :  { %39 = vst.msk [vmem:[#allocation0 + $0xc] sm:$0x30] %vm34_vm5, %v33_v54   ;;  %v89_v55 = vpop.permute.xlu1 %88  }
  0x7b   :  { %41 = vst.msk [vmem:[#allocation0 + $0x12] sm:$0xc0] %vm34_vm5, %v33_v54  }
  0x7f   :  { %v61_v56 = vpop.permute.xlu0 %60  }
  0x80   :  { %63 = vst.msk [vmem:[#allocation0] sm:$0x3] %vm62_vm6, %v61_v56  }
  0x81   :  { %65 = vst.msk [vmem:[#allocation0 + $0x6] sm:$0xc] %vm62_vm6, %v61_v56  }
  0x82   :  { %67 = vst.msk [vmem:[#allocation0 + $0xc] sm:$0x30] %vm62_vm6, %v61_v56   ;;  %v117_v57 = vpop.permute.xlu1 %116  }
  0x83   :  { %69 = vst.msk [vmem:[#allocation0 + $0x12] sm:$0xc0] %vm62_vm6, %v61_v56  }
  0x84   :  { %91 = vst.msk [vmem:[#allocation0] sm:$0x3] %vm90_vm7, %v89_v55  }
  0x85   :  { %93 = vst.msk [vmem:[#allocation0 + $0x6] sm:$0xc] %vm90_vm7, %v89_v55  }
  0x86   :  { %95 = vst.msk [vmem:[#allocation0 + $0xc] sm:$0x30] %vm90_vm7, %v89_v55  }
  0x87   :  { %97 = vst.msk [vmem:[#allocation0 + $0x12] sm:$0xc0] %vm90_vm7, %v89_v55   ;;  %v201_v58 = vpop.permute.xlu0 %200  }
  0x88   :  { %119 = vst.msk [vmem:[#allocation0] sm:$0x3] %vm118_vm8, %v117_v57  }
  0x89   :  { %121 = vst.msk [vmem:[#allocation0 + $0x6] sm:$0xc] %vm118_vm8, %v117_v57  }
  0x8a   :  { %123 = vst.msk [vmem:[#allocation0 + $0xc] sm:$0x30] %vm118_vm8, %v117_v57  }
  0x8b   :  { %125 = vst.msk [vmem:[#allocation0 + $0x12] sm:$0xc0] %vm118_vm8, %v117_v57  }
  0x8c   :  { %147 = vst.msk [vmem:[#allocation0] sm:$0x3] %vm146_vm9, %v145_v52  }
  0x8d   :  { %149 = vst.msk [vmem:[#allocation0 + $0x6] sm:$0xc] %vm146_vm9, %v145_v52  }
  0x8e   :  { %151 = vst.msk [vmem:[#allocation0 + $0xc] sm:$0x30] %vm146_vm9, %v145_v52  }
  0x8f   :  { %153 = vst.msk [vmem:[#allocation0 + $0x12] sm:$0xc0] %vm146_vm9, %v145_v52  }
  0x90   :  { %175 = vst.msk [vmem:[#allocation0] sm:$0x3] %vm174_vm10, %v173_v53  }
  0x91   :  { %177 = vst.msk [vmem:[#allocation0 + $0x6] sm:$0xc] %vm174_vm10, %v173_v53  }
  0x92   :  { %179 = vst.msk [vmem:[#allocation0 + $0xc] sm:$0x30] %vm174_vm10, %v173_v53  }
  0x93   :  { %181 = vst.msk [vmem:[#allocation0 + $0x12] sm:$0xc0] %vm174_vm10, %v173_v53  }
  0x94   :  { %203 = vst.msk [vmem:[#allocation0] sm:$0x3] %vm202_vm11, %v201_v58  }
  0x95   :  { %205 = vst.msk [vmem:[#allocation0 + $0x6] sm:$0xc] %vm202_vm11, %v201_v58  }
  0x96   :  { %207 = vst.msk [vmem:[#allocation0 + $0xc] sm:$0x30] %vm202_vm11, %v201_v58  }
  0x97   :  { %209 = vst.msk [vmem:[#allocation0 + $0x12] sm:$0xc0] %vm202_vm11, %v201_v58  }
  0x9b   :  { %v212_v59 = vld [vmem:[#allocation0] sm:$0x3] }
  0x9c   :  { %215 = vst [vmem:[%s413_s1] sm:$0x3] %v212_v59  ;;  %v217_v60 = vld [vmem:[#allocation0 + $0x8] sm:$0x3] }
  0x9d   :  { %262 = vst [vmem:[%s413_s1 + $0x2] sm:$0x3] %v217_v60  ;;  %v223_v61 = vld [vmem:[#allocation0 + $0x10] sm:$0x3] }
  0x9e   :  { %263 = vst [vmem:[%s413_s1 + $0x4] sm:$0x3] %v223_v61  ;;  %v229_v62 = vld [vmem:[#allocation0 + $0x18] sm:$0x3] }
  0x9f   :  { %264 = vst [vmem:[%s413_s1 + $0x6] sm:$0x3] %v229_v62 }

// kernel: resnet_forward.3
= control target key start
LH: loop header
LB: loop body
LE: loop exit
PB: predicated region body
PF: predicated region fallthrough
CT: control target
= control target key end

     0   :  { %s633_s9 = smov 0   ;;  %s635_s10 = smov 0   ;;  %s723_s0 = inlined_call_operand.vmem [shape: f32[2,16,16], index: 0, kind: input, shape index: {}]   ;;  %s724_s1 = inlined_call_operand.vmem [shape: f32[2,2,256], index: 1, kind: input, shape index: {}]   ;;  %s725_s2 = inlined_call_operand.vmem [shape: f32[2,1,256], index: 2, kind: output, shape index: {}]  }
   0x1   :  { %s637_s11 = smov 0  }
   0x2 LB: > { %s24_s12 = sadd.s32 1, %s610_s10  ;;  %p539_p0 = scmp.ge.s32.totalorder %s614_s11, 1  ;;  %s614_s11 = sphi %s637_s11, %s12_s11   ;;  %s610_s10 = sphi %s635_s10, %s727_s10   ;;  %s606_s9 = sphi %s633_s9, %s726_s9  }
   0x3   : > { %p26_p1 = scmp.ge.s32.totalorder %s24_s12, 2  ;;  %p143_p2 = scmp.lt.s32.totalorder %s614_s11, 3 }
   0x5   : > { %s729_s12 = smov (%p26_p1, %s24_s12), 0  ;;  %p144_p3 = pnand %p539_p0, %p143_p2 }
   0x6   : > { %p177_p4 = scmp.lt.s32.totalorder (!%p144_p3), %s606_s9, 1 }
   0x7   : > { %147 = sbr.rel (%p144_p3) target bundleno = 228 (0xe4), region = 28 }
   0xc   : > { %v616_v0 = vmov 16.0   ;;  %s731_s9 = smov (!%p177_p4, %s606_s9), 1  ;;  %v617_v1 = vmov 2.0   ;;  %v274_v46 = vlaneseq }
   0xd   : > { %588 = vrcp.f32 %v616_v0  ;;  %s555_s13 = sshll.u32 %s731_s9, 2  ;;  %s554_s17 = sshll.u32 %s731_s9, 4 }
   0xe   : > { %590 = vrcp.f32 %v617_v1  ;;  %s190_s16 = scalar_lea.vmem %s724_s1, %s555_s13  ;;  %v658_v49 = vshrl.u32 %v274_v46, 7  ;;  %s181_s20 = scalar_lea.vmem %s723_s0, %s554_s17 }
   0xf   : > { %v203_v2 = vld [vmem:[%s190_s16] sm:$0xf]  ;;  %s544_s21 = sshll.u32 %s731_s9, 1 }
  0x10   : > { %v204_v4 = vadd.f32 1.0, %v203_v2  ;;  %v665_v53 = vadd.s32 8, %v658_v49  ;;  %s199_s24 = scalar_lea.vmem %s725_s2, %s544_s21 }
  0x12   : > { %v205_v7 = vmul.f32 16.0, %v204_v4 }
  0x13   : > { %v589_v3 = vpop.eup %588 }
  0x14   : > { %v591_v5 = vpop.eup %590  ;;  %v212_v6 = vmul.f32 16.0, %v589_v3  ;;  %v545_v10 = vadd.f32 -1.0, %v205_v7  ;;  %vm216_vm0 = vweird.f32 %v589_v3 }
  0x15   : > { %v243_v8 = vmul.f32 2.0, %v591_v5  ;;  %vm247_vm1 = vweird.f32 %v591_v5 }
  0x16   : > { %v213_v9 = vsub.f32 1.0, %v212_v6  ;;  %v207_v13 = vmul.f32 0.5, %v545_v10 }
  0x17   : > { %v244_v11 = vsub.f32 1.0, %v243_v8 }
  0x18   : > { %v214_v12 = vmul.f32 %v589_v3, %v213_v9  ;;  %v208_v16 = vadd.f32 0.5, %v207_v13 }
  0x19   : > { %v245_v15 = vmul.f32 %v591_v5, %v244_v11 }
  0x1a   : > { %v215_v14 = vadd.f32 %v589_v3, %v214_v12  ;;  %v209_v18 = vand.u32 2147483647, %v208_v16 }
  0x1b   : > { %v246_v19 = vadd.f32 %v591_v5, %v245_v15 }
  0x1c   : > { %v217_v17 = vsel %vm216_vm0, %v589_v3, %v215_v14  ;;  %v225_v27 = vand.u32 2147483648, %v209_v18 }
  0x1d   : > { %v218_v20 = vmul.f32 %v217_v17, %v209_v18  ;;  %v248_v22 = vsel %vm247_vm1, %v591_v5, %v246_v19  ;;  %v202_v19 = vld [vmem:[%s181_s20 + $0x8] sm:$0xff] }
  0x1f   : > { %v219_v21 = vfloor.f32 %v218_v20 }
  0x21   : > { %v220_v23 = vmul.f32 16.0, %v219_v21  ;;  %v241_v24 = vand.u32 2147483647, %v219_v21  ;;  %v256_v34 = vand.u32 2147483648, %v219_v21  ;;  %v201_v21 = vld [vmem:[%s181_s20] sm:$0xff] }
  0x23   : > { %v221_v25 = vsub.f32 %v209_v18, %v220_v23  ;;  %v249_v26 = vmul.f32 %v248_v22, %v241_v24 }
  0x25   : > { %vm222_vm2 = vcmp.eq.f32.partialorder %v221_v25, 16.0  ;;  %v250_v28 = vfloor.f32 %v249_v26 }
  0x26   : > { %v223_v29 = vsel %vm222_vm2, 0.0, %v221_v25 }
  0x27   : > { %v224_v30 = vand.u32 2147483647, %v223_v29  ;;  %v251_v31 = vmul.f32 2.0, %v250_v28 }
  0x29   : > { %v226_v32 = vor.u32 %v225_v27, %v224_v30  ;;  %v252_v33 = vsub.f32 %v241_v24, %v251_v31 }
  0x2b   : > { %vm227_vm3 = vcmp.ne.f32.partialorder %v226_v32, 0.0  ;;  %vm228_vm4 = vcmp.lt.f32.partialorder %v226_v32, 0.0  ;;  %v230_v35 = vadd.f32 16.0, %v226_v32  ;;  %vm253_vm5 = vcmp.eq.f32.partialorder %v252_v33, 2.0 }
  0x2c   : > { %vm229_vm6 = vmand %vm228_vm4, %vm227_vm3  ;;  %v254_v36 = vsel %vm253_vm5, 0.0, %v252_v33  ;;  %vm360_vm3 = vcmask 130048  }
  0x2d   : > { %v231_v37 = vsel %vm229_vm6, %v230_v35, %v226_v32  ;;  %v255_v38 = vand.u32 2147483647, %v254_v36 }
  0x2e   : > { %v265_v39 = vsub.f32 16.0, %v231_v37  ;;  %v546_v41 = vadd.f32 -0.5, %v231_v37 }
  0x2f   : > { %v257_v40 = vor.u32 %v256_v34, %v255_v38 }
  0x30   : > { %v547_v43 = vadd.f32 -0.5, %v265_v39 }
  0x31   : > { %vm258_vm7 = vcmp.ne.f32.partialorder %v257_v40, 0.0  ;;  %vm259_vm8 = vcmp.lt.f32.partialorder %v257_v40, 0.0  ;;  %v261_v42 = vadd.f32 2.0, %v257_v40 }
  0x32   : > { %vm260_vm9 = vmand %vm259_vm8, %vm258_vm7 }
  0x33   : > { %v262_v44 = vsel %vm260_vm9, %v261_v42, %v257_v40 }
  0x34   : > { %vm263_vm10 = vcmp.lt.f32.partialorder %v262_v44, 0.5 }
  0x35   : > { %v267_v45 = vsel %vm263_vm10, %v546_v41, %v547_v43 }
  0x36   : > { %v268_v47 = vmax.f32 %v267_v45, 0.0 }
  0x38   : > { %v269_v48 = vmin.f32 %v268_v47, 15.0 }
  0x3a   : > { %v270_v50 = vfloor.f32 %v269_v48 }
  0x3c   : > { %v660_v51 = vsub.f32 %v269_v48, %v270_v50  ;;  %v662_v52 = vcvt.f32.s32 %v270_v50 }
  0x3e   : > { %v668_v54 = vsub.f32 1.0, %v660_v51  ;;  %v277_v55 = vperm.slane %v662_v52, 0  ;;  %v672_v56 = vadd.s32 1, %v662_v52  ;;  %v306_v57 = vperm.slane %v660_v51, 0 }
  0x3f   : > { %v278_v58 = vperm.slane %v662_v52, 2  ;;  %v307_v59 = vperm.slane %v660_v51, 2  ;;  %v320_v22 = vperm.slane %v662_v52, 1  ;;  %v321_v24 = vperm.slane %v662_v52, 3 }
  0x40   : > { %v279_v60 = vperm.slane %v277_v55, 0  ;;  %v286_v61 = vperm.slane %v668_v54, 0  ;;  %v297_v62 = vperm.slane %v672_v56, 0  ;;  %v310_v63 = vperm.slane %v306_v57, 0 }
  0x41   : > { %v280_v0 = vperm.slane %v278_v58, 0  ;;  %v287_v1 = vperm.slane %v668_v54, 2  ;;  %v298_v2 = vperm.slane %v672_v56, 2  ;;  %v311_v3 = vperm.slane %v307_v59, 0 }
  0x42   : > { %vm283_vm11 = vcmp.eq.s32.totalorder %v665_v53, %v279_v60  ;;  %v290_v4 = vperm.slane %v286_v61, 0  ;;  %v299_v5 = vperm.slane %v297_v62, 0  ;;  %vm281_vm12 = vcmp.eq.s32.totalorder %v658_v49, %v279_v60 }
  0x43   : > { %vm284_vm13 = vcmp.eq.s32.totalorder %v665_v53, %v280_v0  ;;  %v291_v6 = vperm.slane %v287_v1, 0  ;;  %v300_v7 = vperm.slane %v298_v2, 0  ;;  %vm282_vm14 = vcmp.eq.s32.totalorder %v658_v49, %v280_v0 }
  0x44   : > { %v294_v8 = vsel %vm283_vm11, %v290_v4, 0.0  ;;  %vm303_vm15 = vcmp.eq.s32.totalorder %v665_v53, %v299_v5  ;;  %v292_v9 = vsel %vm281_vm12, %v290_v4, 0.0  ;;  %vm301_vm0 = vcmp.eq.s32.totalorder %v658_v49, %v299_v5 }
  0x45   : > { %v314_v10 = vsel %vm303_vm15, %v310_v63, 0.0  ;;  %v295_v11 = vsel %vm284_vm13, %v291_v6, 0.0  ;;  %vm304_vm1 = vcmp.eq.s32.totalorder %v665_v53, %v300_v7  ;;  %v312_v12 = vsel %vm301_vm0, %v310_v63, 0.0 }
  0x46   : > { %v318_v13 = vadd.f32 %v314_v10, %v294_v8  ;;  %v315_v14 = vsel %vm304_vm1, %v311_v3, 0.0  ;;  %v316_v15 = vadd.f32 %v312_v12, %v292_v9  ;;  %v293_v16 = vsel %vm282_vm14, %v291_v6, 0.0 }
  0x47   : > { %v319_v17 = vadd.f32 %v315_v14, %v295_v11  ;;  %vm302_vm2 = vcmp.eq.s32.totalorder %v658_v49, %v300_v7  ;;  %v338_v23 = vperm.slane %v672_v56, 1  ;;  %v339_v25 = vperm.slane %v672_v56, 3 }
  0x48   : > { %556 = vmatpush.msra.mxu2 %v318_v13  ;;  %v313_v18 = vsel %vm302_vm2, %v311_v3, 0.0  ;;  %381 = vmatpush.msra.mxu0 %v318_v13  ;;  %v328_v26 = vperm.slane %v668_v54, 1  ;;  %v346_v27 = vperm.slane %v660_v51, 1  ;;  %v322_v28 = vperm.slane %v320_v22, 1 }
  0x49   : > { %558 = vmatpush.msra.mxu3 %v319_v17  ;;  %v317_v20 = vadd.f32 %v313_v18, %v293_v16  ;;  %404 = vmatpush.msra.mxu1 %v319_v17  ;;  %v340_v29 = vperm.slane %v338_v23, 1  ;;  %v329_v30 = vperm.slane %v668_v54, 3  ;;  %v347_v31 = vperm.slane %v660_v51, 3 }
  0x4a   : > { %557 = vmatpush.msra.mxu2 %v316_v15  ;;  %382 = vmatpush.msra.mxu0 %v316_v15  ;;  %v323_v32 = vperm.slane %v321_v24, 1  ;;  %v341_v33 = vperm.slane %v339_v25, 1  ;;  %v332_v34 = vperm.slane %v328_v26, 1  ;;  %v350_v35 = vperm.slane %v346_v27, 1 }
  0x4b   : > { %559 = vmatpush.msra.mxu3 %v317_v20  ;;  %549 = vmatmul.msk.f32.vlgmr.msra.gmra.mxu2 %vm360_vm3, %v202_v19  ;;  %vm324_vm4 = vcmp.eq.s32.totalorder %v658_v49, %v322_v28  ;;  %vm342_vm5 = vcmp.eq.s32.totalorder %v658_v49, %v340_v29  ;;  %v333_v36 = vperm.slane %v329_v30, 1  ;;  %v351_v37 = vperm.slane %v347_v31, 1 }
  0x4c   : > { %551 = vmatmul.msk.f32.vlgmr.msra.gmra.mxu3 %vm360_vm3, %v202_v19  ;;  %405 = vmatpush.msra.mxu1 %v317_v20  ;;  %vm325_vm6 = vcmp.eq.s32.totalorder %v658_v49, %v323_v32  ;;  %vm343_vm7 = vcmp.eq.s32.totalorder %v658_v49, %v341_v33  ;;  %vm326_vm8 = vcmp.eq.s32.totalorder %v665_v53, %v322_v28  ;;  %v334_v38 = vsel %vm324_vm4, %v332_v34, 0.0 }
  0x4d   : > { %548 = vmatmul.msk.f32.vlgmr.msra.gmra.mxu0 %vm360_vm3, %v201_v21  ;;  %550 = vmatmul.msk.f32.vlgmr.msra.gmra.mxu1 %vm360_vm3, %v201_v21  ;;  %vm344_vm9 = vcmp.eq.s32.totalorder %v665_v53, %v340_v29  ;;  %v352_v39 = vsel %vm342_vm5, %v350_v35, 0.0  ;;  %vm327_vm10 = vcmp.eq.s32.totalorder %v665_v53, %v323_v32  ;;  %vm345_vm11 = vcmp.eq.s32.totalorder %v665_v53, %v341_v33 }
  0x4e   : > { %v335_v40 = vsel %vm325_vm6, %v333_v36, 0.0  ;;  %v353_v41 = vsel %vm343_vm7, %v351_v37, 0.0  ;;  %v336_v42 = vsel %vm326_vm8, %v332_v34, 0.0  ;;  %v354_v43 = vsel %vm344_vm9, %v350_v35, 0.0 }
  0x4f   : > { %v356_v44 = vadd.f32 %v352_v39, %v334_v38  ;;  %v337_v45 = vsel %vm327_vm10, %v333_v36, 0.0  ;;  %v355_v47 = vsel %vm345_vm11, %v351_v37, 0.0  ;;  %v357_v50 = vadd.f32 %v353_v41, %v335_v40 }
  0x50   : > { %v358_v49 = vadd.f32 %v354_v43, %v336_v42  ;;  %v359_v52 = vadd.f32 %v355_v47, %v337_v45  ;;  %vm434_vm12 = vcmask 1040384   ;;  %vm439_vm13 = vcmp.lt.s32.totalorder %v274_v46, 256 }
  0xca   : > { %v384_v48 = vpop.f32.mrf.mxu0  ;;  %v407_v51 = vpop.f32.mrf.mxu1 }
  0xcb   : > { %v413_v54 = vmul.f32 %v384_v48, %v356_v44  ;;  %v414_v56 = vmul.f32 %v407_v51, %v357_v50 }
  0xce   : > { %v387_v55 = vpop.f32.mrf.mxu2 }
  0xcf   : > { %v415_v57 = vmul.f32 %v387_v55, %v358_v49  ;;  %v410_v58 = vpop.f32.mrf.mxu3 }
  0xd0   : > { %v416_v59 = vmul.f32 %v410_v58, %v359_v52 }
  0xd1   : > { %v417_v53 = vadd.f32 %v415_v57, %v413_v54 }
  0xd2   : > { %v424_v60 = vadd.f32 %v416_v59, %v414_v56 }
  0xd3   : > { %v418_v61 = vrot.slane %v417_v53, 4 }
  0xd4   : > { %v425_v62 = vrot.slane %v424_v60, 4 }
  0xd5   : > { %v419_v63 = vadd.f32 %v418_v61, %v417_v53 }
  0xd6   : > { %v426_v0 = vadd.f32 %v425_v62, %v424_v60 }
  0xd7   : > { %v420_v1 = vrot.slane %v419_v63, 2 }
  0xd8   : > { %v427_v2 = vrot.slane %v426_v0, 2 }
  0xd9   : > { %v421_v3 = vadd.f32 %v420_v1, %v419_v63 }
  0xda   : > { %v428_v4 = vadd.f32 %v427_v2, %v426_v0 }
  0xdb   : > { %v422_v5 = vrot.slane %v421_v3, 1 }
  0xdc   : > { %v429_v6 = vrot.slane %v428_v4, 1 }
  0xdd   : > { %v423_v8 = vadd.f32 %v422_v5, %v421_v3 }
  0xde   : > { %v430_v7 = vadd.f32 %v429_v6, %v428_v4 }
  0xe0   : > { %v433_v9 = vrot.slane %v430_v7, 7 }
  0xe2   : > { %v435_v10 = vsel %vm434_vm12, %v423_v8, %v433_v9 }
  0xe3   : > { %441 = vst.msk [vmem:[%s199_s24] sm:$0x3] %vm439_vm13, %v435_v10 }
  0xe4 PF: > { %s12_s11 = sadd.s32 1, %s614_s11   ;;  %s726_s9 = smov %s610_s10 }
  0xe5   : > { %p9_p5 = scmp.ge.s32.totalorder %s12_s11, 4   ;;  %s727_s10 = smov %s729_s12 }
  0xe7   :  { %11 = sbr.rel (!%p9_p5) target bundleno = 2 (0x2), region = 61 }

// kernel: resnet_forward.2
= control target key start
LH: loop header
LB: loop body
LE: loop exit
PB: predicated region body
PF: predicated region fallthrough
CT: control target
= control target key end

     0   :  { %s4991_s21 = smov 0   ;;  %s4993_s22 = smov 0   ;;  %s7703_s0 = inlined_call_operand.vmem [shape: f32[2,2,629], index: 0, kind: input, shape index: {}]   ;;  %s7704_s1 = inlined_call_operand.vmem [shape: f32[1,384], index: 1, kind: input, shape index: {}]   ;;  %s7705_s2 = inlined_call_operand.vmem [shape: f32[2,8,128], index: 2, kind: input, shape index: {}]   ;;  %s7706_s3 = inlined_call_operand.vmem [shape: f32[2,8,1], index: 3, kind: input, shape index: {}]   ;;  %s7707_s4 = inlined_call_operand.vmem [shape: f32[2,2,8], index: 4, kind: input, shape index: {}]   ;;  %s7708_s5 = inlined_call_operand.vmem [shape: f32[2,2,1], index: 5, kind: input, shape index: {}]   ;;  %s7709_s6 = inlined_call_operand.vmem [shape: f32[2,2,4,384], index: 6, kind: output, shape index: {}]  }
   0x1   :  { %s4995_s23 = smov 0   ;;  %s4997_s24 = smov 0  }
   0x2   :  { %s4999_s25 = smov 0  }
   0x3 LB: > { %s25_s26 = sadd.s32 1, %s4795_s23  ;;  %s28_s27 = sadd.s32 1, %s4799_s24  ;;  %s4803_s25 = sphi %s4999_s25, %s16_s25   ;;  %s4799_s24 = sphi %s4997_s24, %s8461_s24   ;;  %s4795_s23 = sphi %s4995_s23, %s8460_s23   ;;  %s4791_s22 = sphi %s4993_s22, %s8459_s22   ;;  %s4787_s21 = sphi %s4991_s21, %s8458_s21  }
   0x4   : > { %p26_p0 = scmp.ge.s32.totalorder %s25_s26, 2  ;;  %p4407_p1 = scmp.ge.s32.totalorder %s4803_s25, 1 }
   0x5   : > { %p226_p2 = scmp.lt.s32.totalorder %s4803_s25, 5 }
   0x6   : > { %s8463_s26 = smov (%p26_p0, %s25_s26), 0  ;;  %s8465_s27 = smov (!%p26_p0, %s28_s27), %s4799_s24 }
   0x7   : > { %p227_p3 = pnand %p4407_p1, %p226_p2  ;;  %p30_p4 = scmp.ge.s32.totalorder %s8465_s27, 2 }
   0x9   : > { %s8467_s27 = smov (%p30_p4, %s8465_s27), 0  ;;  %230 = sbr.rel (%p227_p3) target bundleno = 8607 (0x219f), region = 44 }
   0xe   : > { %p260_p5 = scmp.lt.s32.totalorder %s4791_s22, 1  ;;  %p267_p6 = scmp.lt.s32.totalorder %s4787_s21, 1 }
   0xf   : > { %p4410_p7 = scmp.ne.s32.totalorder %s4787_s21, 0 }
  0x10   : > { %s8469_s22 = smov (!%p260_p5, %s4791_s22), 1 }
  0x11   : > { %s268_s28 = scalar_select %p267_p6, %s4787_s21, 1 }
  0x12   : > { %s4419_s29 = smul.u32 10, %s8469_s22 }
  0x13   : > { %s4420_s30 = smul.u32 3, %s268_s28 }
  0x14   : > { %s264_s9 = scalar_lea.vmem %s7703_s0, %s4419_s29  ;;  %s4421_s10 = smul.u32 6, %s8469_s22 }
  0x15   : > { %277 = sbr.rel (%p4410_p7) target bundleno = 29 (0x1d), region = 48 }
  0x16   : > { %s271_s11 = sadd.s32 %s4421_s10, %s4420_s30 }
  0x17   : > { %s4409_s12 = sshll.u32 %s271_s11, 2 }
  0x18   : > { %s5031_s15 = scalar_lea.vmem %s7709_s6, %s4409_s12 }
  0x1a   : > { %v278_v0 = vld [vmem:[%s264_s9] sm:$0xff]  ;;  %v279_v1 = vld [vmem:[%s264_s9 + $0x8] sm:$0x3]  ;;  %vm281_vm0 = vcmask 951296  }
  0x1b   : > { %280 = vst [vmem:[#allocation2] sm:$0xff] %v278_v0 }
  0x1c   : > { %282 = vst.msk [vmem:[#allocation2 + $0x8] sm:$0x3] %vm281_vm0, %v279_v1 }
  0x1d PF: > { %s4411_s16 = sshll.u32 %s4787_s21, 3  ;;  %v7718_v3 = vmov 0   ;;  %v7717_v4 = vmov 2   ;;  %v7714_v6 = vmov 3   ;;  %s4808_s20 = smov 75   ;;  %v7715_v11 = vmov 1  }
  0x1e   : > { %4613 = vset.pattern.permute.xlu0 %v7718_v3  ;;  %s5043_s19 = scalar_lea.vmem %s7705_s2, %s4411_s16  ;;  %4615 = vset.pattern.permute.xlu1 %v7717_v4  ;;  %v7713_v20 = vmov 4   ;;  %v7716_v21 = vmov 5   ;;  %v7710_v30 = vmov 6   ;;  %v7711_v31 = vmov 7   ;;  %s4822_s22 = smov 127  }
  0x1f   : > { %v5048_v5 = vld [vmem:[%s5043_s19] sm:$0xff]  ;;  %4616 = vset.pattern.permute.xlu2 %v7714_v6  ;;  %v4814_v36 = vmov 8   ;;  %v4815_v37 = vmov 9   ;;  %v4816_v38 = vmov 10   ;;  %v4817_v39 = vmov 11   ;;  %s4823_s28 = smov 126  }
  0x20   : > { %292 = vperm.xlu0 %4613, %v5048_v5   ;;  %v4818_v44 = vmov 12   ;;  %v4819_v45 = vmov 13   ;;  %vm349_vm1 = vcmask 613376   ;;  %v4820_v49 = vmov 14   ;;  %s4824_s29 = smov 125   ;;  %s4825_s30 = smov 124  }
  0x21   : > { %v4821_v50 = vmov 15   ;;  %s4826_s7 = smov 123   ;;  %s4829_s8 = smov 122   ;;  %vm815_vm2 = vcmask 416768   ;;  %vm1280_vm4 = vcmask 220160   ;;  %vm1745_vm5 = vcmask 23552  }
  0x22   : > { %v5035_v2 = vld [vmem:[#allocation2] sm:$0xff]  ;;  %s4830_s9 = smov 121   ;;  %s4831_s10 = smov 104   ;;  %vm2210_vm6 = vcmask 875520   ;;  %vm2675_vm7 = vcmask 678912   ;;  %vm3140_vm8 = vcmask 482304  }
  0x23   : > { %336 = vst [vmem:[#allocation1] ss:$4 sm:$0xff] %v5035_v2  ;;  %v760_v4 = vperm.slane %v5035_v2, 5  ;;  %s4832_s11 = smov 51   ;;  %s4837_s12 = smov 53   ;;  %vm556_vm11 = vcmask 433152  }
  0x24   : > { %s4850_s13 = smov 80   ;;  %s4851_s14 = smov 27   ;;  %vm790_vm0 = vcmask 850944  }
  0x25   : > { %s4868_s17 = smov 56   ;;  %s4869_s18 = smov 3  }
  0x28   : > { %4614 = vset.pattern.permute.xlu0 %v7715_v11 }
  0x29   : > { %313 = vperm.xlu0 %4614, %v5048_v5  }
  0x2a   : > { %v337_v7 = vld.sshfl [vmem:[#allocation1] sm:$0xff pattern:$0x73625140]  ;;  %v340_v8 = vld.sshfl [vmem:[#allocation1 + $0x18] sm:$0xff pattern:$0x73625140] }
  0x2b   : > { %341 = vrot.lane.b32.xlu1 %v337_v7, %s4808_s20  ;;  %v339_v9 = vld.sshfl [vmem:[#allocation1 + $0x10] sm:$0xff pattern:$0x73625140]  ;;  %v338_v10 = vld.sshfl [vmem:[#allocation1 + $0x8] sm:$0xff pattern:$0x73625140] }
  0x2c   : > { %345 = vrot.lane.b32.xlu2 %v339_v9, %s4808_s20  ;;  %391 = vst [vmem:[#allocation1] ss:$4 sm:$0xff] %v5035_v2 }
  0x33   : > { %343 = vrot.lane.b32.xlu1 %v338_v10, %s4808_s20  ;;  %v392_v12 = vld.sshfl [vmem:[#allocation1] sm:$0xff pattern:$0x73625140]  ;;  %v394_v13 = vld.sshfl [vmem:[#allocation1 + $0x10] sm:$0xff pattern:$0x73625140] }
  0x34   : > { %347 = vrot.lane.b32.xlu2 %v340_v8, %s4808_s20  ;;  %v395_v14 = vld.sshfl [vmem:[#allocation1 + $0x18] sm:$0xff pattern:$0x73625140]  ;;  %v393_v15 = vld.sshfl [vmem:[#allocation1 + $0x8] sm:$0xff pattern:$0x73625140]  ;;  %396 = vrot.lane.b32.xlu0 %v392_v12, %s4808_s20 }
  0x35   : > { %443 = vst [vmem:[#allocation1] ss:$4 sm:$0xff] %v5035_v2 }
  0x3b   : > { %369 = vperm.xlu1 %4615, %v5048_v5  }
  0x3c   : > { %379 = vperm.xlu2 %4616, %v5048_v5   ;;  %v444_v16 = vld.sshfl [vmem:[#allocation1] sm:$0xff pattern:$0x73625140]  ;;  %v446_v17 = vld.sshfl [vmem:[#allocation1 + $0x10] sm:$0xff pattern:$0x73625140]  ;;  %402 = vrot.lane.b32.xlu0 %v395_v14, %s4808_s20 }
  0x3d   : > { %v447_v18 = vld.sshfl [vmem:[#allocation1 + $0x18] sm:$0xff pattern:$0x73625140]  ;;  %v445_v19 = vld.sshfl [vmem:[#allocation1 + $0x8] sm:$0xff pattern:$0x73625140] }
  0x3e   : > { %495 = vst [vmem:[#allocation1] ss:$4 sm:$0xff] %v5035_v2 }
  0x43   : > { %398 = vrot.lane.b32.xlu1 %v393_v15, %s4808_s20 }
  0x44   : > { %400 = vrot.lane.b32.xlu2 %v394_v13, %s4808_s20  ;;  %4617 = vset.pattern.permute.xlu1 %v7713_v20 }
  0x45   : > { %4618 = vset.pattern.permute.xlu2 %v7716_v21  ;;  %v496_v22 = vld.sshfl [vmem:[#allocation1] sm:$0xff pattern:$0x73625140]  ;;  %v498_v23 = vld.sshfl [vmem:[#allocation1 + $0x10] sm:$0xff pattern:$0x73625140]  ;;  %448 = vrot.lane.b32.xlu0 %v444_v16, %s4808_s20 }
  0x46   : > { %v499_v24 = vld.sshfl [vmem:[#allocation1 + $0x18] sm:$0xff pattern:$0x73625140]  ;;  %v497_v25 = vld.sshfl [vmem:[#allocation1 + $0x8] sm:$0xff pattern:$0x73625140] }
  0x47   : > { %567 = vst [vmem:[#allocation1] ss:$4 sm:$0xff] %v5035_v2  ;;  %v740_v21 = vperm.slane %v5035_v2, 4 }
  0x4b   : > { %421 = vperm.xlu1 %4617, %v5048_v5  }
  0x4c   : > { %431 = vperm.xlu2 %4618, %v5048_v5  }
  0x4d   : > { %454 = vrot.lane.b32.xlu0 %v447_v18, %s4808_s20 }
  0x4e   : > { %v568_v26 = vld.sshfl [vmem:[#allocation1] sm:$0xff pattern:$0x73625140]  ;;  %v570_v27 = vld.sshfl [vmem:[#allocation1 + $0x10] sm:$0xff pattern:$0x73625140] }
  0x4f   : > { %v571_v28 = vld.sshfl [vmem:[#allocation1 + $0x18] sm:$0xff pattern:$0x73625140]  ;;  %v569_v29 = vld.sshfl [vmem:[#allocation1 + $0x8] sm:$0xff pattern:$0x73625140] }
  0x50   : > { %622 = vst [vmem:[#allocation1] ss:$4 sm:$0xff] %v5035_v2 }
  0x53   : > { %450 = vrot.lane.b32.xlu1 %v445_v19, %s4808_s20 }
  0x54   : > { %452 = vrot.lane.b32.xlu2 %v446_v17, %s4808_s20  ;;  %4619 = vset.pattern.permute.xlu1 %v7710_v30 }
  0x55   : > { %4620 = vset.pattern.permute.xlu2 %v7711_v31  ;;  %500 = vrot.lane.b32.xlu0 %v496_v22, %s4808_s20 }
  0x57   : > { %v625_v32 = vld.sshfl [vmem:[#allocation1 + $0x10] sm:$0xff pattern:$0x73625140]  ;;  %v626_v33 = vld.sshfl [vmem:[#allocation1 + $0x18] sm:$0xff pattern:$0x73625140] }
  0x58   : > { %v623_v34 = vld.sshfl [vmem:[#allocation1] sm:$0xff pattern:$0x73625140]  ;;  %v624_v35 = vld.sshfl [vmem:[#allocation1 + $0x8] sm:$0xff pattern:$0x73625140] }
  0x59   : > { %677 = vst [vmem:[#allocation1] ss:$4 sm:$0xff] %v5035_v2 }
  0x5b   : > { %473 = vperm.xlu1 %4619, %v5048_v5  }
  0x5c   : > { %483 = vperm.xlu2 %4620, %v5048_v5  }
  0x5d   : > { %506 = vrot.lane.b32.xlu0 %v499_v24, %s4808_s20 }
  0x60   : > { %v678_v40 = vld.sshfl [vmem:[#allocation1] sm:$0xff pattern:$0x73625140]  ;;  %v681_v41 = vld.sshfl [vmem:[#allocation1 + $0x18] sm:$0xff pattern:$0x73625140] }
  0x61   : > { %v679_v42 = vld.sshfl [vmem:[#allocation1 + $0x8] sm:$0xff pattern:$0x73625140]  ;;  %v680_v43 = vld.sshfl [vmem:[#allocation1 + $0x10] sm:$0xff pattern:$0x73625140] }
  0x62   : > { %802 = vst [vmem:[#allocation1] ss:$4 sm:$0xff] %v5035_v2 }
  0x63   : > { %502 = vrot.lane.b32.xlu1 %v497_v25, %s4808_s20 }
  0x64   : > { %504 = vrot.lane.b32.xlu2 %v498_v23, %s4808_s20  ;;  %4621 = vset.pattern.permute.xlu1 %v4814_v36 }
  0x65   : > { %4622 = vset.pattern.permute.xlu2 %v4815_v37  ;;  %572 = vrot.lane.b32.xlu0 %v568_v26, %s4808_s20 }
  0x6b   : > { %525 = vperm.xlu1 %4621, %v5048_v5  }
  0x6c   : > { %535 = vperm.xlu2 %4622, %v5048_v5  }
  0x6d   : > { %578 = vrot.lane.b32.xlu0 %v571_v28, %s4808_s20 }
  0x73   : > { %574 = vrot.lane.b32.xlu1 %v569_v29, %s4808_s20 }
  0x74   : > { %576 = vrot.lane.b32.xlu2 %v570_v27, %s4808_s20  ;;  %4623 = vset.pattern.permute.xlu1 %v4816_v38 }
  0x75   : > { %4624 = vset.pattern.permute.xlu2 %v4817_v39  ;;  %627 = vrot.lane.b32.xlu0 %v623_v34, %s4808_s20 }
  0x7b   : > { %597 = vperm.xlu1 %4623, %v5048_v5  }
  0x7c   : > { %607 = vperm.xlu2 %4624, %v5048_v5  }
  0x7d   : > { %633 = vrot.lane.b32.xlu0 %v626_v33, %s4808_s20 }
  0x83   : > { %629 = vrot.lane.b32.xlu1 %v624_v35, %s4808_s20 }
  0x84   : > { %631 = vrot.lane.b32.xlu2 %v625_v32, %s4808_s20  ;;  %4625 = vset.pattern.permute.xlu1 %v4818_v44  ;;  %v4828_v44 = vmov 16  }
  0x85   : > { %4626 = vset.pattern.permute.xlu2 %v4819_v45  ;;  %682 = vrot.lane.b32.xlu0 %v678_v40, %s4808_s20 }
  0x86   : > { %v346_v46 = vpop.permute.xlu2 %345  ;;  %4629 = vset.pattern.permute.xlu0 %v4828_v44  ;;  %v741_v44 = vperm.slane %v5035_v2, 6 }
  0x8b   : > { %652 = vperm.xlu1 %4625, %v5048_v5  }
  0x8c   : > { %662 = vperm.xlu2 %4626, %v5048_v5  }
  0x8d   : > { %688 = vrot.lane.b32.xlu0 %v681_v41, %s4808_s20 }
  0x8e   : > { %v348_v47 = vpop.permute.xlu2 %347 }
  0x8f   : > { %v352_v48 = vsel %vm349_vm1, %v346_v46, %v348_v47 }
  0x92   : > { %v5109_v52 = vpop.permute.xlu0 %292 }
  0x93   : > { %684 = vrot.lane.b32.xlu1 %v679_v42, %s4808_s20  ;;  %7957 = vst [vmem:[#allocation4_spill] sm:$0xff] %v5109_v52  ;;  %v5267_v52 = vperm.slane %v760_v4, 1 }
  0x94   : > { %686 = vrot.lane.b32.xlu2 %v680_v43, %s4808_s20  ;;  %4627 = vset.pattern.permute.xlu1 %v4820_v49  ;;  %v4827_v43 = vmov 17  }
  0x95   : > { %4628 = vset.pattern.permute.xlu2 %v4821_v50  ;;  %360 = vrot.lane.b32.xlu0 %v352_v48, %s4822_s22  ;;  %7983 = vst [vmem:[#allocation30_spill] sm:$0xff] %v5267_v52 }
  0x96   : > { %v5107_v51 = vpop.permute.xlu2 %379 }
  0x97   : > { %7956 = vst [vmem:[#allocation3_spill] sm:$0xff] %v5107_v51 }
  0x9b   : > { %707 = vperm.xlu1 %4627, %v5048_v5   ;;  %v5113_v55 = vpop.permute.xlu0 %313 }
  0x9c   : > { %717 = vperm.xlu2 %4628, %v5048_v5   ;;  %7958 = vst [vmem:[#allocation5_spill] sm:$0xff] %v5113_v55 }
  0x9d   : > { %v342_v53 = vpop.permute.xlu1 %341 }
  0x9e   : > { %v401_v54 = vpop.permute.xlu2 %400 }
  0xa3   : > { %4630 = vset.pattern.permute.xlu1 %v4827_v43 }
  0xa5   : > { %v344_v56 = vpop.permute.xlu1 %343 }
  0xa6   : > { %v351_v57 = vsel %vm349_vm1, %v344_v56, %v346_v46  ;;  %v350_v58 = vsel %vm349_vm1, %v342_v53, %v344_v56  ;;  %v5117_v59 = vpop.permute.xlu2 %431  ;;  %v397_v60 = vpop.permute.xlu0 %396 }
  0xa7   : > { %7959 = vst [vmem:[#allocation6_spill] sm:$0xff] %v5117_v59  ;;  %358 = vrot.lane.b32.xlu2 %v351_v57, %s4822_s22  ;;  %356 = vrot.lane.b32.xlu1 %v350_v58, %s4822_s22 }
  0xad   : > { %v5121_v61 = vpop.permute.xlu1 %369 }
  0xae   : > { %v403_v62 = vpop.permute.xlu0 %402  ;;  %v453_v63 = vpop.permute.xlu2 %452 }
  0xaf   : > { %v406_v0 = vsel %vm349_vm1, %v401_v54, %v403_v62 }
  0xb0   : > { %414 = vrot.lane.b32.xlu0 %v406_v0, %s4823_s28 }
  0xb5   : > { %v399_v1 = vpop.permute.xlu1 %398 }
  0xb6   : > { %v405_v7 = vsel %vm349_vm1, %v399_v1, %v401_v54  ;;  %v404_v8 = vsel %vm349_vm1, %v397_v60, %v399_v1  ;;  %v5129_v10 = vpop.permute.xlu2 %483 }
  0xb7   : > { %412 = vrot.lane.b32.xlu2 %v405_v7, %s4823_s28  ;;  %410 = vrot.lane.b32.xlu1 %v404_v8, %s4823_s28  ;;  %v449_v9 = vpop.permute.xlu0 %448  ;;  %7960 = vst [vmem:[#allocation7_spill] sm:$0xff] %v5129_v10 }
  0xbd   : > { %v5131_v12 = vpop.permute.xlu1 %421 }
  0xbe   : > { %7961 = vst [vmem:[#allocation8_spill] sm:$0xff] %v5131_v12  ;;  %v505_v15 = vpop.permute.xlu2 %504 }
  0xbf   : > { %v455_v13 = vpop.permute.xlu0 %454 }
  0xc0   : > { %v458_v14 = vsel %vm349_vm1, %v453_v63, %v455_v13 }
  0xc1   : > { %466 = vrot.lane.b32.xlu0 %v458_v14, %s4824_s29 }
  0xc5   : > { %v451_v16 = vpop.permute.xlu1 %450 }
  0xc6   : > { %v457_v17 = vsel %vm349_vm1, %v451_v16, %v453_v63  ;;  %v456_v18 = vsel %vm349_vm1, %v449_v9, %v451_v16  ;;  %v5141_v23 = vpop.permute.xlu2 %535 }
  0xc7   : > { %464 = vrot.lane.b32.xlu2 %v457_v17, %s4824_s29  ;;  %462 = vrot.lane.b32.xlu1 %v456_v18, %s4824_s29  ;;  %v501_v19 = vpop.permute.xlu0 %500  ;;  %v803_v17 = vld.sshfl [vmem:[#allocation1] sm:$0xff pattern:$0x73625140]  ;;  %v5197_v18 = vld.sshfl [vmem:[#allocation1 + $0x8] sm:$0xff pattern:$0x73625140] }
  0xcd   : > { %v5139_v22 = vpop.permute.xlu1 %473 }
  0xce   : > { %7962 = vst [vmem:[#allocation9_spill] sm:$0xff] %v5139_v22  ;;  %v577_v29 = vpop.permute.xlu2 %576 }
  0xcf   : > { %v507_v24 = vpop.permute.xlu0 %506 }
  0xd0   : > { %v510_v25 = vsel %vm349_vm1, %v505_v15, %v507_v24  ;;  %v805_v24 = vld.sshfl [vmem:[#allocation1 + $0x10] sm:$0xff pattern:$0x73625140] }
  0xd1   : > { %518 = vrot.lane.b32.xlu0 %v510_v25, %s4825_s30  ;;  %v806_v25 = vld.sshfl [vmem:[#allocation1 + $0x18] sm:$0xff pattern:$0x73625140] }
  0xd2   : > { %857 = vst [vmem:[#allocation1] ss:$4 sm:$0xff] %v5035_v2 }
  0xd5   : > { %v503_v26 = vpop.permute.xlu1 %502 }
  0xd6   : > { %v509_v27 = vsel %vm349_vm1, %v503_v26, %v505_v15  ;;  %v508_v28 = vsel %vm349_vm1, %v501_v19, %v503_v26  ;;  %v5152_v36 = vpop.permute.xlu2 %607 }
  0xd7   : > { %516 = vrot.lane.b32.xlu2 %v509_v27, %s4825_s30  ;;  %514 = vrot.lane.b32.xlu1 %v508_v28, %s4825_s30  ;;  %v573_v32 = vpop.permute.xlu0 %572  ;;  %7963 = vst [vmem:[#allocation10_spill] sm:$0xff] %v5152_v36 }
  0xd9   : > { %v5206_v28 = vld.sshfl [vmem:[#allocation1] sm:$0xff pattern:$0x73625140] }
  0xdd   : > { %v5149_v33 = vpop.permute.xlu1 %525 }
  0xde   : > { %v632_v41 = vpop.permute.xlu2 %631 }
  0xdf   : > { %v579_v34 = vpop.permute.xlu0 %578 }
  0xe0   : > { %v582_v35 = vsel %vm349_vm1, %v577_v29, %v579_v34  ;;  %v5212_v34 = vld.sshfl [vmem:[#allocation1 + $0x18] sm:$0xff pattern:$0x73625140] }
  0xe1   : > { %590 = vrot.lane.b32.xlu0 %v582_v35, %s4826_s7 }
  0xe5   : > { %v575_v37 = vpop.permute.xlu1 %574 }
  0xe6   : > { %v581_v38 = vsel %vm349_vm1, %v575_v37, %v577_v29  ;;  %v580_v39 = vsel %vm349_vm1, %v573_v32, %v575_v37  ;;  %v5163_v48 = vpop.permute.xlu2 %662  ;;  %v5208_v29 = vld.sshfl [vmem:[#allocation1 + $0x8] sm:$0xff pattern:$0x73625140]  ;;  %v5210_v32 = vld.sshfl [vmem:[#allocation1 + $0x10] sm:$0xff pattern:$0x73625140] }
  0xe7   : > { %588 = vrot.lane.b32.xlu2 %v581_v38, %s4826_s7  ;;  %586 = vrot.lane.b32.xlu1 %v580_v39, %s4826_s7  ;;  %v628_v40 = vpop.permute.xlu0 %627  ;;  %7965 = vst [vmem:[#allocation12_spill] sm:$0xff] %v5163_v48 }
  0xe8   : > { %911 = vst [vmem:[#allocation1] ss:$4 sm:$0xff] %v5035_v2 }
  0xed   : > { %v5159_v42 = vpop.permute.xlu1 %597 }
  0xee   : > { %7964 = vst [vmem:[#allocation11_spill] sm:$0xff] %v5159_v42  ;;  %v687_v56 = vpop.permute.xlu2 %686 }
  0xef   : > { %v634_v45 = vpop.permute.xlu0 %633  ;;  %v5219_v38 = vld.sshfl [vmem:[#allocation1] sm:$0xff pattern:$0x73625140]  ;;  %v5221_v39 = vld.sshfl [vmem:[#allocation1 + $0x8] sm:$0xff pattern:$0x73625140] }
  0xf0   : > { %v637_v46 = vsel %vm349_vm1, %v632_v41, %v634_v45  ;;  %v739_v45 = vperm.slane %v5035_v2, 2 }
  0xf1   : > { %645 = vrot.lane.b32.xlu0 %v637_v46, %s4829_s8  ;;  %v738_v46 = vperm.slane %v5035_v2, 0 }
  0xf5   : > { %v630_v47 = vpop.permute.xlu1 %629 }
  0xf6   : > { %v636_v49 = vsel %vm349_vm1, %v630_v47, %v632_v41  ;;  %v635_v50 = vsel %vm349_vm1, %v628_v40, %v630_v47  ;;  %v5223_v40 = vld.sshfl [vmem:[#allocation1 + $0x10] sm:$0xff pattern:$0x73625140]  ;;  %v5225_v41 = vld.sshfl [vmem:[#allocation1 + $0x18] sm:$0xff pattern:$0x73625140] }
  0xf7   : > { %643 = vrot.lane.b32.xlu2 %v636_v49, %s4829_s8  ;;  %641 = vrot.lane.b32.xlu1 %v635_v50, %s4829_s8  ;;  %v683_v53 = vpop.permute.xlu0 %682  ;;  %965 = vst [vmem:[#allocation1] ss:$4 sm:$0xff] %v5035_v2  ;;  %v761_v47 = vperm.slane %v5035_v2, 7  ;;  %v759_v49 = vperm.slane %v5035_v2, 3  ;;  %v758_v50 = vperm.slane %v5035_v2, 1 }
  0xfd   : > { %v5169_v54 = vpop.permute.xlu1 %652 }
  0xfe   : > { %7966 = vst [vmem:[#allocation13_spill] sm:$0xff] %v5169_v54  ;;  %v5249_v31 = vld.sshfl [vmem:[#allocation1] sm:$0xff pattern:$0x73625140] }
  0xff   : > { %v689_v57 = vpop.permute.xlu0 %688  ;;  %v5251_v20 = vld.sshfl [vmem:[#allocation1 + $0x8] sm:$0xff pattern:$0x73625140]  ;;  %v5255_v11 = vld.sshfl [vmem:[#allocation1 + $0x10] sm:$0xff pattern:$0x73625140] }
 0x100   : > { %v692_v58 = vsel %vm349_vm1, %v687_v56, %v689_v57  ;;  %v5238_v57 = vperm.slane %v739_v45, 0 }
 0x101   : > { %700 = vrot.lane.b32.xlu0 %v692_v58, %s4830_s9  ;;  %v5240_v58 = vperm.slane %v738_v46, 0  ;;  %v5257_v46 = vld.sshfl [vmem:[#allocation1 + $0x18] sm:$0xff pattern:$0x73625140] }
 0x102   : > { %7977 = vst [vmem:[#allocation24_spill] sm:$0xff] %v5238_v57 }
 0x103   : > { %7978 = vst [vmem:[#allocation25_spill] sm:$0xff] %v5240_v58 }
 0x104   : > { %1035 = vst [vmem:[#allocation1] ss:$4 sm:$0xff] %v5035_v2 }
 0x105   : > { %v685_v60 = vpop.permute.xlu1 %684 }
 0x106   : > { %v691_v62 = vsel %vm349_vm1, %v685_v60, %v687_v56  ;;  %v690_v63 = vsel %vm349_vm1, %v683_v53, %v685_v60  ;;  %v5236_v56 = vperm.slane %v741_v44, 0  ;;  %v5242_v60 = vperm.slane %v761_v47, 1 }
 0x107   : > { %698 = vrot.lane.b32.xlu2 %v691_v62, %s4830_s9  ;;  %696 = vrot.lane.b32.xlu1 %v690_v63, %s4830_s9  ;;  %v5181_v1 = vpop.permute.xlu0 %360  ;;  %v5244_v62 = vperm.slane %v759_v49, 1  ;;  %v5246_v63 = vperm.slane %v758_v50, 1 }
 0x108   : > { %7976 = vst [vmem:[#allocation23_spill] sm:$0xff] %v5236_v56 }
 0x109   : > { %734 = vperm.xlu0 %4629, %v5048_v5   ;;  %7979 = vst [vmem:[#allocation26_spill] sm:$0xff] %v5242_v60 }
 0x10a   : > { %7980 = vst [vmem:[#allocation27_spill] sm:$0xff] %v5244_v62 }
 0x10b   : > { %7981 = vst [vmem:[#allocation28_spill] sm:$0xff] %v5246_v63 }
 0x10d   : > { %v5179_v0 = vpop.permute.xlu1 %707 }
 0x10e   : > { %7967 = vst [vmem:[#allocation14_spill] sm:$0xff] %v5179_v0 }
 0x10f   : > { %755 = vperm.xlu1 %4630, %v5048_v5  }
 0x119   : > { %v5183_v7 = vpop.permute.xlu1 %356 }
 0x122   : > { %v5185_v8 = vpop.permute.xlu0 %414 }
 0x123   : > { %7968 = vst [vmem:[#allocation15_spill] sm:$0xff] %v5185_v8 }
 0x129   : > { %v5187_v9 = vpop.permute.xlu1 %410 }
 0x12a   : > { %7969 = vst [vmem:[#allocation16_spill] sm:$0xff] %v5187_v9 }
 0x133   : > { %v5189_v13 = vpop.permute.xlu0 %466 }
 0x134   : > { %7970 = vst [vmem:[#allocation17_spill] sm:$0xff] %v5189_v13 }
 0x139   : > { %v5191_v14 = vpop.permute.xlu1 %462 }
 0x13a   : > { %7971 = vst [vmem:[#allocation18_spill] sm:$0xff] %v5191_v14 }
 0x143   : > { %v5193_v15 = vpop.permute.xlu0 %518 }
 0x149   : > { %v5195_v16 = vpop.permute.xlu1 %514 }
 0x153   : > { %v5199_v19 = vpop.permute.xlu0 %590 }
 0x159   : > { %v5202_v26 = vpop.permute.xlu1 %586 }
 0x163   : > { %v5204_v27 = vpop.permute.xlu0 %645 }
 0x164   : > { %7972 = vst [vmem:[#allocation19_spill] sm:$0xff] %v5204_v27 }
 0x169   : > { %v5215_v35 = vpop.permute.xlu1 %641 }
 0x16a   : > { %7973 = vst [vmem:[#allocation20_spill] sm:$0xff] %v5215_v35 }
 0x173   : > { %v5217_v37 = vpop.permute.xlu0 %700 }
 0x174   : > { %7974 = vst [vmem:[#allocation21_spill] sm:$0xff] %v5217_v37 }
 0x179   : > { %v5227_v43 = vpop.permute.xlu1 %696 }
 0x17a   : > { %7975 = vst [vmem:[#allocation22_spill] sm:$0xff] %v5227_v43 }
 0x17b   : > { %v735_v53 = vpop.permute.xlu0 %734 }
 0x17c   : > { %v753_v30 = vmul.f32 %v5236_v56, %v735_v53  ;;  %v751_v6 = vmul.f32 %v5238_v57, %v735_v53  ;;  %v750_v44 = vmul.f32 %v5240_v58, %v735_v53  ;;  %v5265_v56 = vperm.slane %v740_v21, 0 }
 0x17e   : > { %7982 = vst [vmem:[#allocation29_spill] sm:$0xff] %v5265_v56 }
 0x181   : > { %v756_v45 = vpop.permute.xlu1 %755 }
 0x182   : > { %v773_v47 = vmul.f32 %v5242_v60, %v756_v45  ;;  %v771_v49 = vmul.f32 %v5244_v62, %v756_v45  ;;  %v770_v50 = vmul.f32 %v5246_v63, %v756_v45  ;;  %v752_v60 = vmul.f32 %v5265_v56, %v735_v53 }
 0x183   : > { %v772_v62 = vmul.f32 %v5267_v52, %v756_v45 }
 0x184   : > { %v777_v3 = vadd.f32 %v773_v47, %v753_v30  ;;  %v775_v57 = vadd.f32 %v771_v49, %v751_v6  ;;  %v774_v58 = vadd.f32 %v770_v50, %v750_v44 }
 0x185   : > { %v776_v63 = vadd.f32 %v772_v62, %v752_v60  ;;  %v4834_v62 = vmov 18  }
 0x186   : > { %788 = vrot.lane.b32.xlu0 %v777_v3, %s4831_s10  ;;  %784 = vrot.lane.b32.xlu1 %v775_v57, %s4831_s10  ;;  %v5276_v3 = vpop.permute.xlu2 %717 }
 0x187   : > { %782 = vrot.lane.b32.xlu2 %v774_v58, %s4831_s10  ;;  %7984 = vst [vmem:[#allocation31_spill] sm:$0xff] %v5276_v3 }
 0x188   : > { %4631 = vset.pattern.permute.xlu2 %v4834_v62  ;;  %v4835_v62 = vmov 20  }
 0x18e   : > { %811 = vrot.lane.b32.xlu0 %v805_v24, %s4832_s11  ;;  %807 = vrot.lane.b32.xlu1 %v803_v17, %s4832_s11  ;;  %v5278_v4 = vpop.permute.xlu2 %358 }
 0x18f   : > { %786 = vrot.lane.b32.xlu2 %v776_v63, %s4831_s10  ;;  %s4886_s10 = smov 32  }
 0x196   : > { %813 = vrot.lane.b32.xlu1 %v806_v25, %s4832_s11  ;;  %v5280_v6 = vpop.permute.xlu2 %412  ;;  %v4833_v25 = vmov 19  }
 0x197   : > { %809 = vrot.lane.b32.xlu2 %v5197_v18, %s4832_s11  ;;  %7985 = vst [vmem:[#allocation32_spill] sm:$0xff] %v5280_v6  ;;  %4632 = vset.pattern.permute.xlu0 %v4833_v25 }
 0x19e   : > { %v5282_v21 = vpop.permute.xlu2 %464 }
 0x19f   : > { %7986 = vst [vmem:[#allocation33_spill] sm:$0xff] %v5282_v21 }
 0x1a6   : > { %v5284_v30 = vpop.permute.xlu2 %516 }
 0x1ae   : > { %v5286_v53 = vpop.permute.xlu2 %588 }
 0x1b6   : > { %v5288_v24 = vpop.permute.xlu2 %643 }
 0x1b7   : > { %7987 = vst [vmem:[#allocation34_spill] sm:$0xff] %v5288_v24 }
 0x1be   : > { %v5290_v17 = vpop.permute.xlu2 %698 }
 0x1bf   : > { %7988 = vst [vmem:[#allocation35_spill] sm:$0xff] %v5290_v17 }
 0x1e1   : > { %v5292_v57 = vpop.permute.xlu2 %782 }
 0x1e2   : > { %7989 = vst [vmem:[#allocation36_spill] sm:$0xff] %v5292_v57 }
 0x1e9   : > { %v5294_v18 = vpop.permute.xlu2 %786 }
 0x1ea   : > { %7990 = vst [vmem:[#allocation37_spill] sm:$0xff] %v5294_v18 }
 0x1f1   : > { %v810_v63 = vpop.permute.xlu2 %809 }
 0x1f8   : > { %v5296_v58 = vpop.permute.xlu0 %788  ;;  %v5298_v60 = vpop.permute.xlu1 %784 }
 0x1f9   : > { %7991 = vst [vmem:[#allocation38_spill] sm:$0xff] %v5296_v58 }
 0x1fa   : > { %7992 = vst [vmem:[#allocation39_spill] sm:$0xff] %v5298_v60 }
 0x200   : > { %v812_v44 = vpop.permute.xlu0 %811  ;;  %v808_v45 = vpop.permute.xlu1 %807 }
 0x201   : > { %v817_v47 = vsel %vm815_vm2, %v810_v63, %v812_v44  ;;  %v816_v49 = vsel %vm815_vm2, %v808_v45, %v810_v63 }
 0x202   : > { %824 = vrot.lane.b32.xlu0 %v817_v47, %s4822_s22  ;;  %822 = vrot.lane.b32.xlu2 %v816_v49, %s4822_s22 }
 0x208   : > { %v814_v50 = vpop.permute.xlu1 %813 }
 0x209   : > { %v818_v25 = vsel %vm815_vm2, %v812_v44, %v814_v50  ;;  %v4836_v44 = vmov 21  }
 0x20a   : > { %826 = vrot.lane.b32.xlu1 %v818_v25, %s4822_s22  ;;  %842 = vperm.xlu0 %4632, %v5048_v5  }
 0x20b   : > { %832 = vperm.xlu2 %4631, %v5048_v5   ;;  %4634 = vset.pattern.permute.xlu1 %v4836_v44 }
 0x212   : > { %862 = vrot.lane.b32.xlu1 %v5206_v28, %s4832_s11  ;;  %4633 = vset.pattern.permute.xlu0 %v4835_v62 }
 0x213   : > { %864 = vrot.lane.b32.xlu2 %v5208_v29, %s4832_s11 }
 0x21a   : > { %866 = vrot.lane.b32.xlu1 %v5210_v32, %s4832_s11  ;;  %v362_v32 = vlaneseq }
 0x21b   : > { %868 = vrot.lane.b32.xlu2 %v5212_v34, %s4832_s11 }
 0x21c   : > { %v5326_v57 = vand.u32 127, %v362_v32 }
 0x21e   : > { %vm520_vm3 = vcmp.lt.s32.totalorder %v5326_v57, 124  ;;  %vm416_vm9 = vcmp.lt.s32.totalorder %v5326_v57, 126  ;;  %vm468_vm10 = vcmp.lt.s32.totalorder %v5326_v57, 125  ;;  %vm592_vm12 = vcmp.lt.s32.totalorder %v5326_v57, 123 }
 0x21f   : > { %v522_v44 = vsel %vm520_vm3, %v5195_v16, %v5284_v30  ;;  %v521_v60 = vsel %vm520_vm3, %v5284_v30, %v5193_v15  ;;  %vm364_vm13 = vcmp.lt.s32.totalorder %v5326_v57, 127  ;;  %vm647_vm14 = vcmp.lt.s32.totalorder %v5326_v57, 122 }
 0x220   : > { %v529_v18 = vperm.slane %v521_v60, 0  ;;  %vm702_vm15 = vcmp.lt.s32.totalorder %v5326_v57, 121 }
 0x222   : > { %v532_v30 = vmul.f32 %v529_v18, %v5149_v33 }
 0x25c   : > { %v5316_v63 = vpop.permute.xlu2 %822 }
 0x265   : > { %v5318_v45 = vpop.permute.xlu2 %832 }
 0x266   : > { %7993 = vst [vmem:[#allocation40_spill] sm:$0xff] %v5318_v45 }
 0x26d   : > { %v865_v28 = vpop.permute.xlu2 %864 }
 0x275   : > { %v869_v50 = vpop.permute.xlu2 %868 }
 0x27c   : > { %v5320_v47 = vpop.permute.xlu1 %826 }
 0x284   : > { %v863_v49 = vpop.permute.xlu1 %862 }
 0x285   : > { %v870_v29 = vsel %vm815_vm2, %v863_v49, %v865_v28  ;;  %v528_v49 = vperm.slane %v522_v44, 0 }
 0x286   : > { %876 = vrot.lane.b32.xlu0 %v870_v29, %s4823_s28  ;;  %v538_v29 = vperm.slane %v522_v44, 1  ;;  %v4838_v44 = vmov 22  }
 0x288   : > { %v541_v32 = vmul.f32 %v538_v29, %v5141_v23  ;;  %v4839_v29 = vmov 23  }
 0x289   : > { %4636 = vset.pattern.permute.xlu2 %v4839_v29  ;;  %v539_v29 = vperm.slane %v521_v60, 1 }
 0x28c   : > { %v867_v25 = vpop.permute.xlu1 %866 }
 0x28d   : > { %v871_v34 = vsel %vm815_vm2, %v865_v28, %v867_v25  ;;  %v872_v62 = vsel %vm815_vm2, %v867_v25, %v869_v50  ;;  %v531_v28 = vmul.f32 %v528_v49, %v5149_v33  ;;  %v5348_v25 = vpop.permute.xlu0 %824 }
 0x28e   : > { %878 = vrot.lane.b32.xlu1 %v871_v34, %s4823_s28  ;;  %886 = vperm.xlu0 %4633, %v5048_v5  }
 0x28f   : > { %880 = vrot.lane.b32.xlu2 %v872_v62, %s4823_s28  ;;  %v544_v50 = vadd.f32 %v541_v32, %v531_v28 }
 0x296   : > { %896 = vperm.xlu1 %4634, %v5048_v5   ;;  %922 = vrot.lane.b32.xlu0 %v5225_v41, %s4832_s11  ;;  %v5350_v41 = vpop.permute.xlu0 %842 }
 0x297   : > { %916 = vrot.lane.b32.xlu2 %v5219_v38, %s4832_s11  ;;  %7994 = vst [vmem:[#allocation41_spill] sm:$0xff] %v5350_v41 }
 0x29e   : > { %918 = vrot.lane.b32.xlu1 %v5221_v39, %s4832_s11  ;;  %550 = vrot.lane.b32.xlu0 %v544_v50, %s4837_s12 }
 0x29f   : > { %920 = vrot.lane.b32.xlu2 %v5223_v40, %s4832_s11  ;;  %4635 = vset.pattern.permute.xlu1 %v4838_v44  ;;  %v523_v44 = vsel %vm520_vm3, %v5193_v15, %v5195_v16  ;;  %v542_v15 = vmul.f32 %v539_v29, %v5141_v23  ;;  %v1036_v29 = vld.sshfl [vmem:[#allocation1] sm:$0xff pattern:$0x73625140] }
 0x2a0   : > { %v530_v56 = vperm.slane %v523_v44, 0  ;;  %v540_v52 = vperm.slane %v523_v44, 1 }
 0x2a2   : > { %v533_v16 = vmul.f32 %v530_v56, %v5149_v33  ;;  %v543_v60 = vmul.f32 %v540_v52, %v5141_v23  ;;  %v4840_v33 = vmov 24  }
 0x2a4   : > { %v546_v44 = vadd.f32 %v543_v60, %v533_v16 }
 0x2e9   : > { %v5352_v34 = vpop.permute.xlu2 %880 }
 0x2ea   : > { %7995 = vst [vmem:[#allocation42_spill] sm:$0xff] %v5352_v34 }
 0x2f1   : > { %v917_v62 = vpop.permute.xlu2 %916 }
 0x2f8   : > { %v5354_v38 = vpop.permute.xlu0 %876 }
 0x2f9   : > { %7996 = vst [vmem:[#allocation43_spill] sm:$0xff] %v5354_v38  ;;  %v921_v28 = vpop.permute.xlu2 %920 }
 0x300   : > { %v5356_v49 = vpop.permute.xlu1 %878  ;;  %v5358_v39 = vpop.permute.xlu0 %886 }
 0x301   : > { %7997 = vst [vmem:[#allocation44_spill] sm:$0xff] %v5356_v49 }
 0x302   : > { %7998 = vst [vmem:[#allocation45_spill] sm:$0xff] %v5358_v39 }
 0x308   : > { %v5360_v32 = vpop.permute.xlu1 %896  ;;  %v923_v40 = vpop.permute.xlu0 %922 }
 0x309   : > { %7999 = vst [vmem:[#allocation46_spill] sm:$0xff] %v5360_v32  ;;  %v926_v50 = vsel %vm815_vm2, %v921_v28, %v923_v40 }
 0x30a   : > { %934 = vrot.lane.b32.xlu0 %v926_v50, %s4824_s29  ;;  %v545_v50 = vadd.f32 %v542_v15, %v532_v30  ;;  %v1039_v30 = vld.sshfl [vmem:[#allocation1 + $0x18] sm:$0xff pattern:$0x73625140]  ;;  %v1038_v15 = vld.sshfl [vmem:[#allocation1 + $0x10] sm:$0xff pattern:$0x73625140] }
 0x310   : > { %v919_v58 = vpop.permute.xlu1 %918  ;;  %v5394_v52 = vpop.permute.xlu0 %550 }
 0x311   : > { %v924_v55 = vsel %vm815_vm2, %v917_v62, %v919_v58  ;;  %v925_v40 = vsel %vm815_vm2, %v919_v58, %v921_v28  ;;  %8001 = vst [vmem:[#allocation48_spill] sm:$0xff] %v5394_v52  ;;  %v4841_v58 = vmov 25  }
 0x312   : > { %930 = vrot.lane.b32.xlu1 %v924_v55, %s4824_s29  ;;  %970 = vrot.lane.b32.xlu0 %v5249_v31, %s4832_s11 }
 0x313   : > { %932 = vrot.lane.b32.xlu2 %v925_v40, %s4824_s29  ;;  %v1037_v40 = vld.sshfl [vmem:[#allocation1 + $0x8] sm:$0xff pattern:$0x73625140] }
 0x314   : > { %1089 = vst [vmem:[#allocation1] ss:$4 sm:$0xff] %v5035_v2 }
 0x31a   : > { %552 = vrot.lane.b32.xlu1 %v545_v50, %s4837_s12  ;;  %976 = vrot.lane.b32.xlu0 %v5257_v46, %s4832_s11 }
 0x31b   : > { %554 = vrot.lane.b32.xlu2 %v546_v44, %s4837_s12 }
 0x322   : > { %940 = vperm.xlu1 %4635, %v5048_v5  }
 0x323   : > { %950 = vperm.xlu2 %4636, %v5048_v5  }
 0x32a   : > { %972 = vrot.lane.b32.xlu1 %v5251_v20, %s4832_s11 }
 0x32b   : > { %974 = vrot.lane.b32.xlu2 %v5255_v11, %s4832_s11  ;;  %4637 = vset.pattern.permute.xlu1 %v4840_v33 }
 0x32c   : > { %4638 = vset.pattern.permute.xlu2 %v4841_v58 }
 0x36d   : > { %v5392_v31 = vpop.permute.xlu2 %932 }
 0x36e   : > { %8000 = vst [vmem:[#allocation47_spill] sm:$0xff] %v5392_v31 }
 0x375   : > { %v5396_v55 = vpop.permute.xlu2 %554 }
 0x376   : > { %8002 = vst [vmem:[#allocation49_spill] sm:$0xff] %v5396_v55 }
 0x37c   : > { %v5398_v23 = vpop.permute.xlu0 %934 }
 0x37d   : > { %8003 = vst [vmem:[#allocation50_spill] sm:$0xff] %v5398_v23  ;;  %v5400_v56 = vpop.permute.xlu2 %950 }
 0x37e   : > { %8004 = vst [vmem:[#allocation51_spill] sm:$0xff] %v5400_v56  ;;  %v1092_v56 = vld.sshfl [vmem:[#allocation1 + $0x10] sm:$0xff pattern:$0x73625140] }
 0x384   : > { %v5402_v46 = vpop.permute.xlu1 %930  ;;  %v971_v18 = vpop.permute.xlu0 %970 }
 0x385   : > { %8005 = vst [vmem:[#allocation52_spill] sm:$0xff] %v5402_v46  ;;  %v975_v20 = vpop.permute.xlu2 %974 }
 0x38c   : > { %v5404_v62 = vpop.permute.xlu1 %552  ;;  %v977_v11 = vpop.permute.xlu0 %976 }
 0x38d   : > { %8006 = vst [vmem:[#allocation53_spill] sm:$0xff] %v5404_v62  ;;  %v980_v28 = vsel %vm815_vm2, %v975_v20, %v977_v11  ;;  %v4842_v11 = vmov 26   ;;  %v1093_v62 = vld.sshfl [vmem:[#allocation1 + $0x18] sm:$0xff pattern:$0x73625140] }
 0x38e   : > { %988 = vrot.lane.b32.xlu0 %v980_v28, %s4825_s30 }
 0x394   : > { %v5409_v16 = vpop.permute.xlu1 %940 }
 0x395   : > { %8007 = vst [vmem:[#allocation54_spill] sm:$0xff] %v5409_v16  ;;  %v4843_v16 = vmov 27  }
 0x396   : > { %1040 = vrot.lane.b32.xlu0 %v1036_v29, %s4832_s11 }
 0x39c   : > { %v973_v60 = vpop.permute.xlu1 %972 }
 0x39d   : > { %v978_v50 = vsel %vm815_vm2, %v971_v18, %v973_v60  ;;  %v979_v44 = vsel %vm815_vm2, %v973_v60, %v975_v20 }
 0x39e   : > { %984 = vrot.lane.b32.xlu1 %v978_v50, %s4825_s30  ;;  %986 = vrot.lane.b32.xlu2 %v979_v44, %s4825_s30  ;;  %v1090_v44 = vld.sshfl [vmem:[#allocation1] sm:$0xff pattern:$0x73625140] }
 0x39f   : > { %1046 = vrot.lane.b32.xlu0 %v1039_v30, %s4832_s11 }
 0x3a6   : > { %994 = vperm.xlu1 %4637, %v5048_v5   ;;  %1004 = vperm.xlu2 %4638, %v5048_v5  }
 0x3ae   : > { %1042 = vrot.lane.b32.xlu1 %v1037_v40, %s4832_s11  ;;  %1044 = vrot.lane.b32.xlu2 %v1038_v15, %s4832_s11  ;;  %v1091_v40 = vld.sshfl [vmem:[#allocation1 + $0x8] sm:$0xff pattern:$0x73625140] }
 0x3af   : > { %4639 = vset.pattern.permute.xlu1 %v4842_v11  ;;  %4640 = vset.pattern.permute.xlu2 %v4843_v16  ;;  %1143 = vst [vmem:[#allocation1] ss:$4 sm:$0xff] %v5035_v2 }
 0x3f8   : > { %v987_v58 = vpop.permute.xlu2 %986 }
 0x400   : > { %v989_v33 = vpop.permute.xlu0 %988  ;;  %v1005_v60 = vpop.permute.xlu2 %1004 }
 0x401   : > { %v990_v11 = vsel %vm520_vm3, %v987_v58, %v989_v33 }
 0x408   : > { %v1041_v29 = vpop.permute.xlu0 %1040  ;;  %v1045_v23 = vpop.permute.xlu2 %1044 }
 0x410   : > { %v985_v18 = vpop.permute.xlu1 %984 }
 0x411   : > { %v991_v20 = vsel %vm520_vm3, %v985_v18, %v987_v58  ;;  %v1047_v10 = vpop.permute.xlu0 %1046 }
 0x412   : > { %v1007_v28 = vperm.slane %v991_v20, 1  ;;  %v997_v30 = vperm.slane %v991_v20, 0  ;;  %v992_v20 = vsel %vm520_vm3, %v989_v33, %v985_v18  ;;  %v1050_v2 = vsel %vm815_vm2, %v1045_v23, %v1047_v10 }
 0x413   : > { %v999_v16 = vperm.slane %v992_v20, 0  ;;  %v1009_v3 = vperm.slane %v992_v20, 1 }
 0x414   : > { %v1010_v52 = vmul.f32 %v1007_v28, %v1005_v60  ;;  %v998_v28 = vperm.slane %v990_v11, 0 }
 0x415   : > { %v1012_v18 = vmul.f32 %v1009_v3, %v1005_v60  ;;  %v4844_v3 = vmov 28  }
 0x418   : > { %v995_v50 = vpop.permute.xlu1 %994 }
 0x419   : > { %v1000_v55 = vmul.f32 %v997_v30, %v995_v50  ;;  %v1001_v58 = vmul.f32 %v998_v28, %v995_v50 }
 0x41b   : > { %v1013_v15 = vadd.f32 %v1010_v52, %v1000_v55  ;;  %v1008_v55 = vperm.slane %v990_v11, 1 }
 0x41d   : > { %1019 = vrot.lane.b32.xlu0 %v1013_v15, %s4837_s12  ;;  %v1002_v15 = vmul.f32 %v999_v16, %v995_v50  ;;  %v1011_v33 = vmul.f32 %v1008_v55, %v1005_v60  ;;  %v4845_v50 = vmov 29   ;;  %v1147_v55 = vld.sshfl [vmem:[#allocation1 + $0x18] sm:$0xff pattern:$0x73625140] }
 0x41e   : > { %v1145_v16 = vld.sshfl [vmem:[#allocation1 + $0x8] sm:$0xff pattern:$0x73625140] }
 0x41f   : > { %v1014_v0 = vadd.f32 %v1011_v33, %v1001_v58  ;;  %v1015_v46 = vadd.f32 %v1012_v18, %v1002_v15  ;;  %v4846_v58 = vmov 30   ;;  %v4847_v18 = vmov 32  }
 0x420   : > { %v1043_v30 = vpop.permute.xlu1 %1042  ;;  %4645 = vset.pattern.permute.xlu0 %v4847_v18 }
 0x421   : > { %v1048_v22 = vsel %vm815_vm2, %v1041_v29, %v1043_v30  ;;  %v1049_v52 = vsel %vm815_vm2, %v1043_v30, %v1045_v23 }
 0x422   : > { %1054 = vrot.lane.b32.xlu1 %v1048_v22, %s4826_s7  ;;  %1056 = vrot.lane.b32.xlu2 %v1049_v52, %s4826_s7  ;;  %v1144_v52 = vld.sshfl [vmem:[#allocation1] sm:$0xff pattern:$0x73625140] }
 0x425   : > { %1058 = vrot.lane.b32.xlu0 %v1050_v2, %s4826_s7  ;;  %v1146_v2 = vld.sshfl [vmem:[#allocation1 + $0x10] sm:$0xff pattern:$0x73625140] }
 0x42a   : > { %1021 = vrot.lane.b32.xlu1 %v1014_v0, %s4837_s12  ;;  %1023 = vrot.lane.b32.xlu2 %v1015_v46, %s4837_s12 }
 0x42d   : > { %1094 = vrot.lane.b32.xlu0 %v1090_v44, %s4832_s11 }
 0x432   : > { %1064 = vperm.xlu1 %4639, %v5048_v5   ;;  %1074 = vperm.xlu2 %4640, %v5048_v5  }
 0x435   : > { %1100 = vrot.lane.b32.xlu0 %v1093_v62, %s4832_s11 }
 0x43a   : > { %1096 = vrot.lane.b32.xlu1 %v1091_v40, %s4832_s11  ;;  %1098 = vrot.lane.b32.xlu2 %v1092_v56, %s4832_s11 }
 0x43b   : > { %4641 = vset.pattern.permute.xlu1 %v4844_v3  ;;  %4642 = vset.pattern.permute.xlu2 %v4845_v50  ;;  %v4848_v50 = vmov 31  }
 0x47c   : > { %v5443_v10 = vpop.permute.xlu2 %1056 }
 0x484   : > { %v5449_v23 = vpop.permute.xlu2 %1023 }
 0x485   : > { %8009 = vst [vmem:[#allocation56_spill] sm:$0xff] %v5449_v23 }
 0x48c   : > { %v5455_v60 = vpop.permute.xlu2 %1074 }
 0x48d   : > { %8011 = vst [vmem:[#allocation58_spill] sm:$0xff] %v5455_v60 }
 0x48f   : > { %v5445_v22 = vpop.permute.xlu0 %1019 }
 0x490   : > { %8008 = vst [vmem:[#allocation55_spill] sm:$0xff] %v5445_v22 }
 0x494   : > { %v5447_v0 = vpop.permute.xlu1 %1054  ;;  %v1099_v44 = vpop.permute.xlu2 %1098 }
 0x497   : > { %v5451_v46 = vpop.permute.xlu0 %1058 }
 0x49c   : > { %v5453_v29 = vpop.permute.xlu1 %1021 }
 0x49d   : > { %8010 = vst [vmem:[#allocation57_spill] sm:$0xff] %v5453_v29 }
 0x49f   : > { %v1095_v62 = vpop.permute.xlu0 %1094 }
 0x4a4   : > { %v5457_v56 = vpop.permute.xlu1 %1064 }
 0x4a5   : > { %8012 = vst [vmem:[#allocation59_spill] sm:$0xff] %v5457_v56 }
 0x4a7   : > { %v1101_v40 = vpop.permute.xlu0 %1100 }
 0x4a8   : > { %v1104_v11 = vsel %vm815_vm2, %v1099_v44, %v1101_v40 }
 0x4a9   : > { %1112 = vrot.lane.b32.xlu0 %v1104_v11, %s4829_s8 }
 0x4ac   : > { %v1097_v20 = vpop.permute.xlu1 %1096 }
 0x4ad   : > { %v1102_v30 = vsel %vm815_vm2, %v1095_v62, %v1097_v20  ;;  %v1103_v28 = vsel %vm815_vm2, %v1097_v20, %v1099_v44 }
 0x4ae   : > { %1108 = vrot.lane.b32.xlu1 %v1102_v30, %s4829_s8  ;;  %1110 = vrot.lane.b32.xlu2 %v1103_v28, %s4829_s8 }
 0x4b1   : > { %1148 = vrot.lane.b32.xlu0 %v1144_v52, %s4832_s11 }
 0x4b6   : > { %1118 = vperm.xlu1 %4641, %v5048_v5   ;;  %1128 = vperm.xlu2 %4642, %v5048_v5  }
 0x4b9   : > { %1154 = vrot.lane.b32.xlu0 %v1147_v55, %s4832_s11  ;;  %v5488_v55 = vld [vmem:[%s5043_s19] sm:$0xff] }
 0x4be   : > { %1150 = vrot.lane.b32.xlu1 %v1145_v16, %s4832_s11  ;;  %1152 = vrot.lane.b32.xlu2 %v1146_v2, %s4832_s11  ;;  %v4849_v16 = vmov 33   ;;  %v5494_v2 = vld [vmem:[#allocation2] sm:$0xff]  ;;  %s4887_s11 = smov 107  }
 0x4bf   : > { %4643 = vset.pattern.permute.xlu1 %v4846_v58  ;;  %4644 = vset.pattern.permute.xlu2 %v4848_v50  ;;  %1267 = vst [vmem:[#allocation1] ss:$4 sm:$0xff] %v5494_v2  ;;  %v1226_v23 = vperm.slane %v5494_v2, 7  ;;  %v1223_v22 = vperm.slane %v5494_v2, 1 }
 0x4c1   : > { %v5518_v14 = vperm.slane %v1226_v23, 1  ;;  %v5520_v43 = vperm.slane %v1223_v22, 1 }
 0x4c6   : > { %v1268_v50 = vld.sshfl [vmem:[#allocation1] sm:$0xff pattern:$0x73625140] }
 0x508   : > { %v5471_v15 = vpop.permute.xlu2 %1110 }
 0x509   : > { %8013 = vst [vmem:[#allocation60_spill] sm:$0xff] %v5471_v15 }
 0x510   : > { %v5477_v5 = vpop.permute.xlu2 %1128 }
 0x511   : > { %8016 = vst [vmem:[#allocation63_spill] sm:$0xff] %v5477_v5 }
 0x518   : > { %v1153_v40 = vpop.permute.xlu2 %1152 }
 0x51b   : > { %v5473_v33 = vpop.permute.xlu0 %1112 }
 0x51c   : > { %8014 = vst [vmem:[#allocation61_spill] sm:$0xff] %v5473_v33 }
 0x520   : > { %v5475_v3 = vpop.permute.xlu1 %1108 }
 0x521   : > { %8015 = vst [vmem:[#allocation62_spill] sm:$0xff] %v5475_v3 }
 0x523   : > { %v1149_v62 = vpop.permute.xlu0 %1148 }
 0x528   : > { %v5479_v44 = vpop.permute.xlu1 %1118 }
 0x529   : > { %8017 = vst [vmem:[#allocation64_spill] sm:$0xff] %v5479_v44 }
 0x52b   : > { %v1155_v11 = vpop.permute.xlu0 %1154 }
 0x52c   : > { %v1158_v20 = vsel %vm815_vm2, %v1153_v40, %v1155_v11  ;;  %v1269_v11 = vld.sshfl [vmem:[#allocation1 + $0x8] sm:$0xff pattern:$0x73625140] }
 0x52d   : > { %1166 = vrot.lane.b32.xlu0 %v1158_v20, %s4830_s9 }
 0x530   : > { %v1151_v30 = vpop.permute.xlu1 %1150 }
 0x531   : > { %v1156_v28 = vsel %vm815_vm2, %v1149_v62, %v1151_v30  ;;  %v1157_v52 = vsel %vm815_vm2, %v1151_v30, %v1153_v40  ;;  %v1270_v62 = vld.sshfl [vmem:[#allocation1 + $0x10] sm:$0xff pattern:$0x73625140]  ;;  %v1271_v40 = vld.sshfl [vmem:[#allocation1 + $0x18] sm:$0xff pattern:$0x73625140] }
 0x532   : > { %1162 = vrot.lane.b32.xlu1 %v1156_v28, %s4830_s9  ;;  %1164 = vrot.lane.b32.xlu2 %v1157_v52, %s4830_s9  ;;  %1322 = vst [vmem:[#allocation1] ss:$4 sm:$0xff] %v5494_v2  ;;  %v1204_v30 = vperm.slane %v5494_v2, 2  ;;  %v1206_v28 = vperm.slane %v5494_v2, 6  ;;  %v1203_v52 = vperm.slane %v5494_v2, 0  ;;  %vm1255_vm2 = vcmask 654336  }
 0x534   : > { %v5510_v29 = vperm.slane %v1204_v30, 0  ;;  %v1225_v30 = vperm.slane %v5494_v2, 5 }
 0x535   : > { %1199 = vperm.xlu0 %4645, %v5488_v55  }
 0x536   : > { %v5530_v3 = vperm.slane %v1225_v30, 1 }
 0x53a   : > { %1172 = vperm.xlu1 %4643, %v5488_v55   ;;  %1182 = vperm.xlu2 %4644, %v5488_v55  }
 0x542   : > { %4646 = vset.pattern.permute.xlu1 %v4849_v16  ;;  %v1224_v16 = vperm.slane %v5494_v2, 3 }
 0x543   : > { %1220 = vperm.xlu1 %4646, %v5488_v55  }
 0x59f   : > { %v5499_v18 = vpop.permute.xlu0 %1166 }
 0x5a0   : > { %8019 = vst [vmem:[#allocation66_spill] sm:$0xff] %v5499_v18  ;;  %v5514_v18 = vperm.slane %v1203_v52, 0 }
 0x5a4   : > { %v5497_v58 = vpop.permute.xlu1 %1162 }
 0x5a5   : > { %8018 = vst [vmem:[#allocation65_spill] sm:$0xff] %v5497_v58  ;;  %v5512_v58 = vperm.slane %v1206_v28, 0  ;;  %v1205_v28 = vperm.slane %v5494_v2, 4 }
 0x5a7   : > { %v1200_v31 = vpop.permute.xlu0 %1199  ;;  %v5532_v39 = vperm.slane %v1205_v28, 0 }
 0x5a8   : > { %v1216_v21 = vmul.f32 %v5510_v29, %v1200_v31  ;;  %v1218_v13 = vmul.f32 %v5512_v58, %v1200_v31  ;;  %v1215_v17 = vmul.f32 %v5514_v18, %v1200_v31 }
 0x5a9   : > { %v1217_v33 = vmul.f32 %v5532_v39, %v1200_v31 }
 0x5ac   : > { %v5502_v20 = vpop.permute.xlu1 %1172 }
 0x5ad   : > { %8020 = vst [vmem:[#allocation67_spill] sm:$0xff] %v5502_v20  ;;  %v5516_v20 = vperm.slane %v1224_v16, 1 }
 0x5b5   : > { %v1221_v37 = vpop.permute.xlu1 %1220 }
 0x5b6   : > { %v1236_v52 = vmul.f32 %v5516_v20, %v1221_v37  ;;  %v1238_v16 = vmul.f32 %v5518_v14, %v1221_v37  ;;  %v1235_v23 = vmul.f32 %v5520_v43, %v1221_v37  ;;  %v1237_v15 = vmul.f32 %v5530_v3, %v1221_v37 }
 0x5b8   : > { %v1242_v5 = vadd.f32 %v1238_v16, %v1218_v13  ;;  %v1240_v22 = vadd.f32 %v1236_v52, %v1216_v21  ;;  %v1239_v44 = vadd.f32 %v1235_v23, %v1215_v17  ;;  %v1241_v32 = vadd.f32 %v1237_v15, %v1217_v33  ;;  %v5540_v13 = vpop.permute.xlu2 %1164 }
 0x5b9   : > { %8021 = vst [vmem:[#allocation68_spill] sm:$0xff] %v5540_v13  ;;  %v4852_v17 = vmov 35  }
 0x5ba   : > { %1253 = vrot.lane.b32.xlu0 %v1242_v5, %s4850_s13  ;;  %1249 = vrot.lane.b32.xlu1 %v1240_v22, %s4850_s13  ;;  %v1323_v5 = vld.sshfl [vmem:[#allocation1] sm:$0xff pattern:$0x73625140]  ;;  %v4854_v22 = vmov 36  }
 0x5bb   : > { %1247 = vrot.lane.b32.xlu2 %v1239_v44, %s4850_s13  ;;  %4648 = vset.pattern.permute.xlu0 %v4852_v17  ;;  %v4853_v44 = vmov 34  }
 0x5bc   : > { %4647 = vset.pattern.permute.xlu2 %v4853_v44  ;;  %v4855_v44 = vmov 37  }
 0x5bd   : > { %4650 = vset.pattern.permute.xlu1 %v4855_v44 }
 0x5c0   : > { %v5542_v21 = vpop.permute.xlu2 %1182 }
 0x5c1   : > { %8022 = vst [vmem:[#allocation69_spill] sm:$0xff] %v5542_v21 }
 0x5c2   : > { %1276 = vrot.lane.b32.xlu0 %v1270_v62, %s4851_s14  ;;  %1272 = vrot.lane.b32.xlu1 %v1268_v50, %s4851_s14  ;;  %v1324_v62 = vld.sshfl [vmem:[#allocation1 + $0x8] sm:$0xff pattern:$0x73625140]  ;;  %v1326_v50 = vld.sshfl [vmem:[#allocation1 + $0x18] sm:$0xff pattern:$0x73625140] }
 0x5c3   : > { %1251 = vrot.lane.b32.xlu2 %v1241_v32, %s4850_s13  ;;  %v1325_v32 = vld.sshfl [vmem:[#allocation1 + $0x10] sm:$0xff pattern:$0x73625140]  ;;  %s4904_s13 = smov 8  }
 0x5c4   : > { %1376 = vst [vmem:[#allocation1] ss:$4 sm:$0xff] %v5494_v2 }
 0x5ca   : > { %1278 = vrot.lane.b32.xlu1 %v1271_v40, %s4851_s14 }
 0x5cb   : > { %1274 = vrot.lane.b32.xlu2 %v1269_v11, %s4851_s14 }
 0x615   : > { %v5544_v37 = vpop.permute.xlu2 %1247 }
 0x616   : > { %8023 = vst [vmem:[#allocation70_spill] sm:$0xff] %v5544_v37 }
 0x61d   : > { %v5546_v31 = vpop.permute.xlu2 %1251 }
 0x61e   : > { %8024 = vst [vmem:[#allocation71_spill] sm:$0xff] %v5546_v31 }
 0x625   : > { %v1275_v40 = vpop.permute.xlu2 %1274 }
 0x62c   : > { %v5548_v15 = vpop.permute.xlu0 %1253  ;;  %v5550_v33 = vpop.permute.xlu1 %1249 }
 0x62d   : > { %8025 = vst [vmem:[#allocation72_spill] sm:$0xff] %v5548_v15 }
 0x62e   : > { %8026 = vst [vmem:[#allocation73_spill] sm:$0xff] %v5550_v33 }
 0x634   : > { %v1277_v11 = vpop.permute.xlu0 %1276  ;;  %v1273_v30 = vpop.permute.xlu1 %1272 }
 0x635   : > { %v1282_v28 = vsel %vm1280_vm4, %v1275_v40, %v1277_v11  ;;  %v1281_v52 = vsel %vm1280_vm4, %v1273_v30, %v1275_v40  ;;  %v1380_v30 = vld.sshfl [vmem:[#allocation1 + $0x18] sm:$0xff pattern:$0x73625140] }
 0x636   : > { %1289 = vrot.lane.b32.xlu0 %v1282_v28, %s4822_s22  ;;  %1287 = vrot.lane.b32.xlu2 %v1281_v52, %s4822_s22  ;;  %v1378_v28 = vld.sshfl [vmem:[#allocation1 + $0x8] sm:$0xff pattern:$0x73625140]  ;;  %v1377_v52 = vld.sshfl [vmem:[#allocation1] sm:$0xff pattern:$0x73625140] }
 0x63c   : > { %v1279_v16 = vpop.permute.xlu1 %1278 }
 0x63d   : > { %v1283_v23 = vsel %vm1280_vm4, %v1277_v11, %v1279_v16 }
 0x63e   : > { %1291 = vrot.lane.b32.xlu1 %v1283_v23, %s4822_s22  ;;  %1307 = vperm.xlu0 %4648, %v5488_v55  }
 0x63f   : > { %1297 = vperm.xlu2 %4647, %v5488_v55  }
 0x646   : > { %1327 = vrot.lane.b32.xlu1 %v1323_v5, %s4851_s14  ;;  %4649 = vset.pattern.permute.xlu0 %v4854_v22  ;;  %v1379_v5 = vld.sshfl [vmem:[#allocation1 + $0x10] sm:$0xff pattern:$0x73625140] }
 0x647   : > { %1329 = vrot.lane.b32.xlu2 %v1324_v62, %s4851_s14  ;;  %1430 = vst [vmem:[#allocation1] ss:$4 sm:$0xff] %v5494_v2 }
 0x64e   : > { %1331 = vrot.lane.b32.xlu1 %v1325_v32, %s4851_s14  ;;  %v1434_v37 = vld.sshfl [vmem:[#allocation1 + $0x18] sm:$0xff pattern:$0x73625140]  ;;  %v1433_v33 = vld.sshfl [vmem:[#allocation1 + $0x10] sm:$0xff pattern:$0x73625140] }
 0x64f   : > { %1333 = vrot.lane.b32.xlu2 %v1326_v50, %s4851_s14 }
 0x690   : > { %v5565_v17 = vpop.permute.xlu2 %1287 }
 0x699   : > { %v5567_v40 = vpop.permute.xlu2 %1297 }
 0x69a   : > { %8027 = vst [vmem:[#allocation74_spill] sm:$0xff] %v5567_v40 }
 0x6a1   : > { %v1330_v16 = vpop.permute.xlu2 %1329 }
 0x6a9   : > { %v1334_v50 = vpop.permute.xlu2 %1333 }
 0x6b0   : > { %v5569_v11 = vpop.permute.xlu1 %1291 }
 0x6b8   : > { %v1328_v32 = vpop.permute.xlu1 %1327 }
 0x6b9   : > { %v1335_v62 = vsel %vm1280_vm4, %v1328_v32, %v1330_v16  ;;  %v5584_v32 = vpop.permute.xlu0 %1289 }
 0x6ba   : > { %1341 = vrot.lane.b32.xlu0 %v1335_v62, %s4823_s28 }
 0x6c0   : > { %v1332_v23 = vpop.permute.xlu1 %1331 }
 0x6c1   : > { %v1337_v22 = vsel %vm1280_vm4, %v1332_v23, %v1334_v50  ;;  %v1336_v44 = vsel %vm1280_vm4, %v1330_v16, %v1332_v23  ;;  %v5586_v62 = vpop.permute.xlu0 %1307  ;;  %v4856_v50 = vmov 38  }
 0x6c2   : > { %1343 = vrot.lane.b32.xlu1 %v1336_v44, %s4823_s28  ;;  %1351 = vperm.xlu0 %4649, %v5488_v55   ;;  %8028 = vst [vmem:[#allocation75_spill] sm:$0xff] %v5586_v62 }
 0x6c3   : > { %1345 = vrot.lane.b32.xlu2 %v1337_v22, %s4823_s28 }
 0x6ca   : > { %1361 = vperm.xlu1 %4650, %v5488_v55   ;;  %1387 = vrot.lane.b32.xlu0 %v1380_v30, %s4851_s14 }
 0x6cb   : > { %1381 = vrot.lane.b32.xlu2 %v1377_v52, %s4851_s14  ;;  %v1431_v52 = vld.sshfl [vmem:[#allocation1] sm:$0xff pattern:$0x73625140] }
 0x6d2   : > { %1383 = vrot.lane.b32.xlu1 %v1378_v28, %s4851_s14  ;;  %v1432_v28 = vld.sshfl [vmem:[#allocation1 + $0x8] sm:$0xff pattern:$0x73625140] }
 0x6d3   : > { %1385 = vrot.lane.b32.xlu2 %v1379_v5, %s4851_s14  ;;  %4651 = vset.pattern.permute.xlu1 %v4856_v50  ;;  %v4857_v5 = vmov 39   ;;  %1500 = vst [vmem:[#allocation1] ss:$4 sm:$0xff] %v5494_v2 }
 0x6d4   : > { %4652 = vset.pattern.permute.xlu2 %v4857_v5 }
 0x71d   : > { %v5588_v16 = vpop.permute.xlu2 %1345 }
 0x71e   : > { %8029 = vst [vmem:[#allocation76_spill] sm:$0xff] %v5588_v16 }
 0x725   : > { %v1382_v22 = vpop.permute.xlu2 %1381 }
 0x72c   : > { %v5590_v23 = vpop.permute.xlu0 %1341 }
 0x72d   : > { %8030 = vst [vmem:[#allocation77_spill] sm:$0xff] %v5590_v23  ;;  %v1386_v31 = vpop.permute.xlu2 %1385 }
 0x734   : > { %v5592_v44 = vpop.permute.xlu1 %1343  ;;  %v5594_v30 = vpop.permute.xlu0 %1351 }
 0x735   : > { %8031 = vst [vmem:[#allocation78_spill] sm:$0xff] %v5592_v44 }
 0x736   : > { %8032 = vst [vmem:[#allocation79_spill] sm:$0xff] %v5594_v30 }
 0x73c   : > { %v5597_v15 = vpop.permute.xlu1 %1361  ;;  %v1388_v21 = vpop.permute.xlu0 %1387 }
 0x73d   : > { %8033 = vst [vmem:[#allocation80_spill] sm:$0xff] %v5597_v15  ;;  %v1391_v50 = vsel %vm1280_vm4, %v1386_v31, %v1388_v21  ;;  %v4858_v21 = vmov 40  }
 0x73e   : > { %1399 = vrot.lane.b32.xlu0 %v1391_v50, %s4824_s29 }
 0x744   : > { %v1384_v13 = vpop.permute.xlu1 %1383 }
 0x745   : > { %v1389_v16 = vsel %vm1280_vm4, %v1382_v22, %v1384_v13  ;;  %v1390_v30 = vsel %vm1280_vm4, %v1384_v13, %v1386_v31  ;;  %v4859_v31 = vmov 41  }
 0x746   : > { %1395 = vrot.lane.b32.xlu1 %v1389_v16, %s4824_s29  ;;  %1435 = vrot.lane.b32.xlu0 %v1431_v52, %s4851_s14 }
 0x747   : > { %1397 = vrot.lane.b32.xlu2 %v1390_v30, %s4824_s29 }
 0x74e   : > { %1405 = vperm.xlu1 %4651, %v5488_v55   ;;  %1441 = vrot.lane.b32.xlu0 %v1434_v37, %s4851_s14 }
 0x74f   : > { %1415 = vperm.xlu2 %4652, %v5488_v55  }
 0x756   : > { %1437 = vrot.lane.b32.xlu1 %v1432_v28, %s4851_s14 }
 0x757   : > { %1439 = vrot.lane.b32.xlu2 %v1433_v33, %s4851_s14  ;;  %4653 = vset.pattern.permute.xlu1 %v4858_v21 }
 0x758   : > { %4654 = vset.pattern.permute.xlu2 %v4859_v31 }
 0x7a1   : > { %v5611_v22 = vpop.permute.xlu2 %1397 }
 0x7a2   : > { %8034 = vst [vmem:[#allocation81_spill] sm:$0xff] %v5611_v22 }
 0x7a9   : > { %v5615_v16 = vpop.permute.xlu2 %1415 }
 0x7aa   : > { %8036 = vst [vmem:[#allocation83_spill] sm:$0xff] %v5615_v16  ;;  %v1502_v16 = vld.sshfl [vmem:[#allocation1 + $0x8] sm:$0xff pattern:$0x73625140] }
 0x7b0   : > { %v5613_v13 = vpop.permute.xlu0 %1399 }
 0x7b1   : > { %8035 = vst [vmem:[#allocation82_spill] sm:$0xff] %v5613_v13  ;;  %v1440_v37 = vpop.permute.xlu2 %1439  ;;  %v1503_v13 = vld.sshfl [vmem:[#allocation1 + $0x10] sm:$0xff pattern:$0x73625140] }
 0x7b8   : > { %v5617_v30 = vpop.permute.xlu1 %1395  ;;  %v1436_v52 = vpop.permute.xlu0 %1435 }
 0x7b9   : > { %8037 = vst [vmem:[#allocation84_spill] sm:$0xff] %v5617_v30 }
 0x7c0   : > { %v5619_v5 = vpop.permute.xlu1 %1405  ;;  %v1442_v50 = vpop.permute.xlu0 %1441 }
 0x7c1   : > { %8038 = vst [vmem:[#allocation85_spill] sm:$0xff] %v5619_v5  ;;  %v1445_v28 = vsel %vm1280_vm4, %v1440_v37, %v1442_v50  ;;  %v1501_v5 = vld.sshfl [vmem:[#allocation1] sm:$0xff pattern:$0x73625140] }
 0x7c2   : > { %1453 = vrot.lane.b32.xlu0 %v1445_v28, %s4825_s30  ;;  %v1504_v50 = vld.sshfl [vmem:[#allocation1 + $0x18] sm:$0xff pattern:$0x73625140] }
 0x7c3   : > { %1554 = vst [vmem:[#allocation1] ss:$4 sm:$0xff] %v5494_v2 }
 0x7c8   : > { %v1438_v33 = vpop.permute.xlu1 %1437 }
 0x7c9   : > { %v1443_v21 = vsel %vm1280_vm4, %v1436_v52, %v1438_v33  ;;  %v1444_v22 = vsel %vm1280_vm4, %v1438_v33, %v1440_v37 }
 0x7ca   : > { %1449 = vrot.lane.b32.xlu1 %v1443_v21, %s4825_s30  ;;  %1451 = vrot.lane.b32.xlu2 %v1444_v22, %s4825_s30 }
 0x7d2   : > { %1459 = vperm.xlu1 %4653, %v5488_v55   ;;  %1469 = vperm.xlu2 %4654, %v5488_v55  }
 0x824   : > { %v1452_v31 = vpop.permute.xlu2 %1451 }
 0x82c   : > { %v1470_v15 = vpop.permute.xlu2 %1469 }
 0x834   : > { %v1454_v30 = vpop.permute.xlu0 %1453 }
 0x835   : > { %v1455_v52 = vsel %vm520_vm3, %v1452_v31, %v1454_v30 }
 0x836   : > { %v1473_v33 = vperm.slane %v1455_v52, 1  ;;  %v1463_v44 = vperm.slane %v1455_v52, 0 }
 0x838   : > { %v1476_v54 = vmul.f32 %v1473_v33, %v1470_v15 }
 0x83c   : > { %v1450_v28 = vpop.permute.xlu1 %1449 }
 0x83d   : > { %v1456_v37 = vsel %vm520_vm3, %v1450_v28, %v1452_v31  ;;  %v1457_v22 = vsel %vm520_vm3, %v1454_v30, %v1450_v28  ;;  %v4862_v30 = vmov 44  }
 0x83e   : > { %v1472_v21 = vperm.slane %v1456_v37, 1  ;;  %v1474_v23 = vperm.slane %v1457_v22, 1  ;;  %v1462_v34 = vperm.slane %v1456_v37, 0  ;;  %v1464_v48 = vperm.slane %v1457_v22, 0 }
 0x840   : > { %v1475_v59 = vmul.f32 %v1472_v21, %v1470_v15  ;;  %v1477_v38 = vmul.f32 %v1474_v23, %v1470_v15 }
 0x844   : > { %v1460_v12 = vpop.permute.xlu1 %1459 }
 0x845   : > { %v1465_v49 = vmul.f32 %v1462_v34, %v1460_v12  ;;  %v1466_v35 = vmul.f32 %v1463_v44, %v1460_v12  ;;  %v1467_v9 = vmul.f32 %v1464_v48, %v1460_v12  ;;  %v4860_v34 = vmov 42  }
 0x846   : > { %4655 = vset.pattern.permute.xlu1 %v4860_v34 }
 0x847   : > { %v1480_v24 = vadd.f32 %v1477_v38, %v1467_v9  ;;  %v1479_v27 = vadd.f32 %v1476_v54, %v1466_v35  ;;  %v1478_v31 = vadd.f32 %v1475_v59, %v1465_v49  ;;  %v1556_v54 = vld.sshfl [vmem:[#allocation1 + $0x8] sm:$0xff pattern:$0x73625140]  ;;  %v1555_v9 = vld.sshfl [vmem:[#allocation1] sm:$0xff pattern:$0x73625140] }
 0x848   : > { %v1557_v35 = vld.sshfl [vmem:[#allocation1 + $0x10] sm:$0xff pattern:$0x73625140] }
 0x849   : > { %1488 = vrot.lane.b32.xlu2 %v1480_v24, %s4837_s12  ;;  %1486 = vrot.lane.b32.xlu1 %v1479_v27, %s4837_s12  ;;  %v1558_v27 = vld.sshfl [vmem:[#allocation1 + $0x18] sm:$0xff pattern:$0x73625140]  ;;  %v4861_v24 = vmov 43  }
 0x84a   : > { %1484 = vrot.lane.b32.xlu0 %v1478_v31, %s4837_s12  ;;  %4656 = vset.pattern.permute.xlu2 %v4861_v24  ;;  %1608 = vst [vmem:[#allocation1] ss:$4 sm:$0xff] %v5494_v2  ;;  %v4863_v31 = vmov 45  }
 0x851   : > { %1507 = vrot.lane.b32.xlu1 %v1502_v16, %s4851_s14  ;;  %1509 = vrot.lane.b32.xlu2 %v1503_v13, %s4851_s14  ;;  %v1610_v22 = vld.sshfl [vmem:[#allocation1 + $0x8] sm:$0xff pattern:$0x73625140]  ;;  %v1609_v33 = vld.sshfl [vmem:[#allocation1] sm:$0xff pattern:$0x73625140] }
 0x852   : > { %1505 = vrot.lane.b32.xlu0 %v1501_v5, %s4851_s14  ;;  %v1612_v21 = vld.sshfl [vmem:[#allocation1 + $0x18] sm:$0xff pattern:$0x73625140]  ;;  %v1611_v34 = vld.sshfl [vmem:[#allocation1 + $0x10] sm:$0xff pattern:$0x73625140] }
 0x853   : > { %1732 = vst [vmem:[#allocation1] ss:$4 sm:$0xff] %v5494_v2 }
 0x85a   : > { %1511 = vrot.lane.b32.xlu0 %v1504_v50, %s4851_s14 }
 0x8a3   : > { %v5643_v12 = vpop.permute.xlu2 %1488 }
 0x8a4   : > { %8039 = vst [vmem:[#allocation86_spill] sm:$0xff] %v5643_v12 }
 0x8ab   : > { %v1510_v38 = vpop.permute.xlu2 %1509 }
 0x8bb   : > { %v5645_v48 = vpop.permute.xlu1 %1486 }
 0x8bc   : > { %8040 = vst [vmem:[#allocation87_spill] sm:$0xff] %v5645_v48  ;;  %v5647_v59 = vpop.permute.xlu0 %1484 }
 0x8bd   : > { %8041 = vst [vmem:[#allocation88_spill] sm:$0xff] %v5647_v59 }
 0x8c3   : > { %v1508_v49 = vpop.permute.xlu1 %1507 }
 0x8c4   : > { %v1506_v15 = vpop.permute.xlu0 %1505  ;;  %v1514_v23 = vsel %vm1280_vm4, %v1508_v49, %v1510_v38 }
 0x8c5   : > { %v1513_v44 = vsel %vm1280_vm4, %v1506_v15, %v1508_v49  ;;  %1521 = vrot.lane.b32.xlu2 %v1514_v23, %s4826_s7  ;;  %v4864_v15 = vmov 46   ;;  %v4865_v23 = vmov 48  }
 0x8c6   : > { %1519 = vrot.lane.b32.xlu1 %v1513_v44, %s4826_s7  ;;  %4661 = vset.pattern.permute.xlu0 %v4865_v23  ;;  %v1736_v23 = vld.sshfl [vmem:[#allocation1 + $0x18] sm:$0xff pattern:$0x73625140] }
 0x8cc   : > { %v1512_v13 = vpop.permute.xlu0 %1511 }
 0x8cd   : > { %v1515_v16 = vsel %vm1280_vm4, %v1510_v38, %v1512_v13  ;;  %1539 = vperm.xlu2 %4656, %v5488_v55  }
 0x8ce   : > { %1529 = vperm.xlu1 %4655, %v5488_v55   ;;  %1523 = vrot.lane.b32.xlu0 %v1515_v16, %s4826_s7  ;;  %v4866_v16 = vmov 47  }
 0x8d5   : > { %1563 = vrot.lane.b32.xlu2 %v1557_v35, %s4851_s14 }
 0x8d6   : > { %1561 = vrot.lane.b32.xlu1 %v1556_v54, %s4851_s14  ;;  %1559 = vrot.lane.b32.xlu0 %v1555_v9, %s4851_s14 }
 0x8d7   : > { %4657 = vset.pattern.permute.xlu1 %v4862_v30  ;;  %4658 = vset.pattern.permute.xlu2 %v4863_v31 }
 0x8de   : > { %1565 = vrot.lane.b32.xlu0 %v1558_v27, %s4851_s14 }
 0x91f   : > { %v5662_v5 = vpop.permute.xlu2 %1521 }
 0x927   : > { %v5666_v28 = vpop.permute.xlu2 %1539 }
 0x928   : > { %8043 = vst [vmem:[#allocation90_spill] sm:$0xff] %v5666_v28 }
 0x92f   : > { %v1564_v54 = vpop.permute.xlu2 %1563 }
 0x938   : > { %v5664_v50 = vpop.permute.xlu1 %1519 }
 0x939   : > { %8042 = vst [vmem:[#allocation89_spill] sm:$0xff] %v5664_v50 }
 0x940   : > { %v5668_v52 = vpop.permute.xlu1 %1529  ;;  %v5670_v37 = vpop.permute.xlu0 %1523 }
 0x941   : > { %8044 = vst [vmem:[#allocation91_spill] sm:$0xff] %v5668_v52 }
 0x942   : > { %8045 = vst [vmem:[#allocation92_spill] sm:$0xff] %v5670_v37 }
 0x948   : > { %v1562_v9 = vpop.permute.xlu1 %1561  ;;  %v1560_v27 = vpop.permute.xlu0 %1559 }
 0x949   : > { %v1567_v35 = vsel %vm1280_vm4, %v1560_v27, %v1562_v9  ;;  %v1568_v24 = vsel %vm1280_vm4, %v1562_v9, %v1564_v54 }
 0x94a   : > { %1575 = vrot.lane.b32.xlu2 %v1568_v24, %s4829_s8  ;;  %1573 = vrot.lane.b32.xlu1 %v1567_v35, %s4829_s8  ;;  %v4867_v24 = vmov 49  }
 0x950   : > { %v1566_v38 = vpop.permute.xlu0 %1565 }
 0x951   : > { %v1569_v49 = vsel %vm1280_vm4, %v1564_v54, %v1566_v38 }
 0x952   : > { %1583 = vperm.xlu1 %4657, %v5488_v55   ;;  %1577 = vrot.lane.b32.xlu0 %v1569_v49, %s4829_s8  ;;  %v1735_v49 = vld.sshfl [vmem:[#allocation1 + $0x10] sm:$0xff pattern:$0x73625140] }
 0x953   : > { %1593 = vperm.xlu2 %4658, %v5488_v55  }
 0x95a   : > { %1615 = vrot.lane.b32.xlu1 %v1610_v22, %s4851_s14  ;;  %1613 = vrot.lane.b32.xlu0 %v1609_v33, %s4851_s14 }
 0x95b   : > { %1617 = vrot.lane.b32.xlu2 %v1611_v34, %s4851_s14  ;;  %4659 = vset.pattern.permute.xlu1 %v4864_v15  ;;  %v1733_v15 = vld.sshfl [vmem:[#allocation1] sm:$0xff pattern:$0x73625140] }
 0x95c   : > { %4660 = vset.pattern.permute.xlu2 %v4866_v16  ;;  %v1734_v16 = vld.sshfl [vmem:[#allocation1 + $0x8] sm:$0xff pattern:$0x73625140] }
 0x95d   : > { %1787 = vst [vmem:[#allocation1] ss:$4 sm:$0xff] %v5494_v2 }
 0x962   : > { %1619 = vrot.lane.b32.xlu0 %v1612_v21, %s4851_s14  ;;  %s4905_s14 = smov 83  }
 0x9a4   : > { %v5685_v44 = vpop.permute.xlu2 %1575 }
 0x9a5   : > { %8046 = vst [vmem:[#allocation93_spill] sm:$0xff] %v5685_v44 }
 0x9ad   : > { %v5689_v30 = vpop.permute.xlu2 %1593 }
 0x9ae   : > { %8048 = vst [vmem:[#allocation95_spill] sm:$0xff] %v5689_v30 }
 0x9b5   : > { %v1618_v33 = vpop.permute.xlu2 %1617 }
 0x9bc   : > { %v5687_v13 = vpop.permute.xlu1 %1573 }
 0x9bd   : > { %8047 = vst [vmem:[#allocation94_spill] sm:$0xff] %v5687_v13 }
 0x9c4   : > { %v5691_v31 = vpop.permute.xlu1 %1583  ;;  %v5693_v22 = vpop.permute.xlu0 %1577 }
 0x9c5   : > { %8049 = vst [vmem:[#allocation96_spill] sm:$0xff] %v5691_v31 }
 0x9c6   : > { %8050 = vst [vmem:[#allocation97_spill] sm:$0xff] %v5693_v22 }
 0x9cc   : > { %v1616_v34 = vpop.permute.xlu1 %1615  ;;  %v1614_v54 = vpop.permute.xlu0 %1613 }
 0x9cd   : > { %v1621_v21 = vsel %vm1280_vm4, %v1614_v54, %v1616_v34  ;;  %v1622_v9 = vsel %vm1280_vm4, %v1616_v34, %v1618_v33 }
 0x9ce   : > { %1629 = vrot.lane.b32.xlu2 %v1622_v9, %s4830_s9  ;;  %1627 = vrot.lane.b32.xlu1 %v1621_v21, %s4830_s9 }
 0x9d4   : > { %v1620_v27 = vpop.permute.xlu0 %1619 }
 0x9d5   : > { %v1623_v35 = vsel %vm1280_vm4, %v1618_v33, %v1620_v27  ;;  %vm1720_vm4 = vcmask 457728  }
 0x9d6   : > { %1637 = vperm.xlu1 %4659, %v5488_v55   ;;  %1631 = vrot.lane.b32.xlu0 %v1623_v35, %s4830_s9 }
 0x9d7   : > { %1647 = vperm.xlu2 %4660, %v5488_v55  }
 0x9de   : > { %4662 = vset.pattern.permute.xlu1 %v4867_v24  ;;  %1664 = vperm.xlu0 %4661, %v5488_v55  }
 0x9df   : > { %1685 = vperm.xlu1 %4662, %v5488_v55  }
 0xa40   : > { %v5705_v38 = vpop.permute.xlu1 %1627 }
 0xa41   : > { %8051 = vst [vmem:[#allocation98_spill] sm:$0xff] %v5705_v38 }
 0xa48   : > { %v5708_v33 = vpop.permute.xlu1 %1637  ;;  %v5710_v34 = vpop.permute.xlu0 %1631 }
 0xa49   : > { %8052 = vst [vmem:[#allocation99_spill] sm:$0xff] %v5708_v33 }
 0xa4a   : > { %8053 = vst [vmem:[#allocation100_spill] sm:$0xff] %v5710_v34 }
 0xa50   : > { %v1665_v54 = vpop.permute.xlu0 %1664 }
 0xa51   : > { %v1686_v21 = vpop.permute.xlu1 %1685  ;;  %v1680_v9 = vmul.f32 %v1665_v54, %v5514_v18  ;;  %v1681_v27 = vmul.f32 %v1665_v54, %v5510_v29  ;;  %v1683_v35 = vmul.f32 %v1665_v54, %v5512_v58  ;;  %v1682_v18 = vmul.f32 %v1665_v54, %v5532_v39 }
 0xa52   : > { %v1700_v24 = vmul.f32 %v1686_v21, %v5520_v43  ;;  %v1701_v59 = vmul.f32 %v1686_v21, %v5516_v20  ;;  %v1703_v48 = vmul.f32 %v1686_v21, %v5518_v14  ;;  %v1702_v33 = vmul.f32 %v1686_v21, %v5530_v3  ;;  %v5724_v14 = vpop.permute.xlu2 %1629 }
 0xa53   : > { %8054 = vst [vmem:[#allocation101_spill] sm:$0xff] %v5724_v14  ;;  %v4870_v58 = vmov 51  }
 0xa54   : > { %v1707_v12 = vadd.f32 %v1703_v48, %v1683_v35  ;;  %v1705_v38 = vadd.f32 %v1701_v59, %v1681_v27  ;;  %v1704_v30 = vadd.f32 %v1700_v24, %v1680_v9  ;;  %v1706_v29 = vadd.f32 %v1702_v33, %v1682_v18  ;;  %4664 = vset.pattern.permute.xlu0 %v4870_v58  ;;  %v1788_v48 = vld.sshfl [vmem:[#allocation1] sm:$0xff pattern:$0x73625140]  ;;  %v1790_v59 = vld.sshfl [vmem:[#allocation1 + $0x10] sm:$0xff pattern:$0x73625140] }
 0xa55   : > { %v4872_v27 = vmov 52   ;;  %v4873_v24 = vmov 53  }
 0xa56   : > { %1718 = vrot.lane.b32.xlu0 %v1707_v12, %s4868_s17  ;;  %1714 = vrot.lane.b32.xlu1 %v1705_v38, %s4868_s17  ;;  %v1789_v38 = vld.sshfl [vmem:[#allocation1 + $0x8] sm:$0xff pattern:$0x73625140] }
 0xa57   : > { %1712 = vrot.lane.b32.xlu2 %v1704_v30, %s4868_s17  ;;  %v4871_v30 = vmov 50   ;;  %4666 = vset.pattern.permute.xlu1 %v4873_v24  ;;  %v4874_v24 = vmov 54  }
 0xa58   : > { %4663 = vset.pattern.permute.xlu2 %v4871_v30 }
 0xa5a   : > { %v5726_v43 = vpop.permute.xlu2 %1647 }
 0xa5b   : > { %8055 = vst [vmem:[#allocation102_spill] sm:$0xff] %v5726_v43 }
 0xa5e   : > { %1741 = vrot.lane.b32.xlu0 %v1735_v49, %s4869_s18  ;;  %1737 = vrot.lane.b32.xlu1 %v1733_v15, %s4869_s18  ;;  %v1791_v49 = vld.sshfl [vmem:[#allocation1 + $0x18] sm:$0xff pattern:$0x73625140] }
 0xa5f   : > { %1716 = vrot.lane.b32.xlu2 %v1706_v29, %s4868_s17  ;;  %1841 = vst [vmem:[#allocation1] ss:$4 sm:$0xff] %v5494_v2  ;;  %s4922_s17 = smov 112  }
 0xa66   : > { %1743 = vrot.lane.b32.xlu1 %v1736_v23, %s4869_s18  ;;  %v1845_v58 = vld.sshfl [vmem:[#allocation1 + $0x18] sm:$0xff pattern:$0x73625140]  ;;  %v1843_v30 = vld.sshfl [vmem:[#allocation1 + $0x8] sm:$0xff pattern:$0x73625140] }
 0xa67   : > { %1739 = vrot.lane.b32.xlu2 %v1734_v16, %s4869_s18 }
 0xab1   : > { %v5728_v3 = vpop.permute.xlu2 %1712 }
 0xab2   : > { %8056 = vst [vmem:[#allocation103_spill] sm:$0xff] %v5728_v3 }
 0xab9   : > { %v5730_v39 = vpop.permute.xlu2 %1716 }
 0xaba   : > { %8057 = vst [vmem:[#allocation104_spill] sm:$0xff] %v5730_v39 }
 0xac1   : > { %v1740_v15 = vpop.permute.xlu2 %1739 }
 0xac8   : > { %v5732_v20 = vpop.permute.xlu0 %1718  ;;  %v5734_v12 = vpop.permute.xlu1 %1714 }
 0xac9   : > { %8058 = vst [vmem:[#allocation105_spill] sm:$0xff] %v5732_v20 }
 0xaca   : > { %8059 = vst [vmem:[#allocation106_spill] sm:$0xff] %v5734_v12 }
 0xad0   : > { %v1742_v23 = vpop.permute.xlu0 %1741  ;;  %v1738_v16 = vpop.permute.xlu1 %1737 }
 0xad1   : > { %v1747_v33 = vsel %vm1745_vm5, %v1740_v15, %v1742_v23  ;;  %v1746_v54 = vsel %vm1745_vm5, %v1738_v16, %v1740_v15  ;;  %v1842_v15 = vld.sshfl [vmem:[#allocation1] sm:$0xff pattern:$0x73625140] }
 0xad2   : > { %1754 = vrot.lane.b32.xlu0 %v1747_v33, %s4822_s22  ;;  %1752 = vrot.lane.b32.xlu2 %v1746_v54, %s4822_s22 }
 0xad8   : > { %v1744_v21 = vpop.permute.xlu1 %1743 }
 0xad9   : > { %v1748_v9 = vsel %vm1745_vm5, %v1742_v23, %v1744_v21 }
 0xada   : > { %1756 = vrot.lane.b32.xlu1 %v1748_v9, %s4822_s22  ;;  %1772 = vperm.xlu0 %4664, %v5488_v55  }
 0xadb   : > { %1762 = vperm.xlu2 %4663, %v5488_v55  }
 0xae2   : > { %1792 = vrot.lane.b32.xlu1 %v1788_v48, %s4869_s18  ;;  %4665 = vset.pattern.permute.xlu0 %v4872_v27  ;;  %v1844_v48 = vld.sshfl [vmem:[#allocation1 + $0x10] sm:$0xff pattern:$0x73625140] }
 0xae3   : > { %1794 = vrot.lane.b32.xlu2 %v1789_v38, %s4869_s18  ;;  %1895 = vst [vmem:[#allocation1] ss:$4 sm:$0xff] %v5494_v2 }
 0xaea   : > { %1796 = vrot.lane.b32.xlu1 %v1790_v59, %s4869_s18 }
 0xaeb   : > { %1798 = vrot.lane.b32.xlu2 %v1791_v49, %s4869_s18 }
 0xb2c   : > { %v5749_v35 = vpop.permute.xlu2 %1752 }
 0xb2d   : > { %8060 = vst [vmem:[#allocation107_spill] sm:$0xff] %v5749_v35 }
 0xb35   : > { %v5751_v18 = vpop.permute.xlu2 %1762 }
 0xb36   : > { %8061 = vst [vmem:[#allocation108_spill] sm:$0xff] %v5751_v18 }
 0xb3d   : > { %v1795_v23 = vpop.permute.xlu2 %1794 }
 0xb44   : > { %v5768_v21 = vpop.permute.xlu0 %1754 }
 0xb45   : > { %v1799_v49 = vpop.permute.xlu2 %1798  ;;  %8063 = vst [vmem:[#allocation110_spill] sm:$0xff] %v5768_v21 }
 0xb4c   : > { %v5753_v29 = vpop.permute.xlu1 %1756  ;;  %v5770_v9 = vpop.permute.xlu0 %1772 }
 0xb4d   : > { %8062 = vst [vmem:[#allocation109_spill] sm:$0xff] %v5753_v29 }
 0xb4e   : > { %8064 = vst [vmem:[#allocation111_spill] sm:$0xff] %v5770_v9 }
 0xb54   : > { %v1793_v59 = vpop.permute.xlu1 %1792 }
 0xb55   : > { %v1800_v38 = vsel %vm1745_vm5, %v1793_v59, %v1795_v23 }
 0xb56   : > { %1806 = vrot.lane.b32.xlu0 %v1800_v38, %s4823_s28 }
 0xb5c   : > { %v1797_v16 = vpop.permute.xlu1 %1796 }
 0xb5d   : > { %v1802_v33 = vsel %vm1745_vm5, %v1797_v16, %v1799_v49  ;;  %v1801_v54 = vsel %vm1745_vm5, %v1795_v23, %v1797_v16  ;;  %v1899_v49 = vld.sshfl [vmem:[#allocation1 + $0x18] sm:$0xff pattern:$0x73625140]  ;;  %v1898_v16 = vld.sshfl [vmem:[#allocation1 + $0x10] sm:$0xff pattern:$0x73625140] }
 0xb5e   : > { %1808 = vrot.lane.b32.xlu1 %v1801_v54, %s4823_s28  ;;  %1816 = vperm.xlu0 %4665, %v5488_v55  }
 0xb5f   : > { %1810 = vrot.lane.b32.xlu2 %v1802_v33, %s4823_s28 }
 0xb66   : > { %1826 = vperm.xlu1 %4666, %v5488_v55   ;;  %1852 = vrot.lane.b32.xlu0 %v1845_v58, %s4869_s18 }
 0xb67   : > { %1846 = vrot.lane.b32.xlu2 %v1842_v15, %s4869_s18  ;;  %v1896_v15 = vld.sshfl [vmem:[#allocation1] sm:$0xff pattern:$0x73625140] }
 0xb6e   : > { %1848 = vrot.lane.b32.xlu1 %v1843_v30, %s4869_s18  ;;  %v1897_v30 = vld.sshfl [vmem:[#allocation1 + $0x8] sm:$0xff pattern:$0x73625140] }
 0xb6f   : > { %1850 = vrot.lane.b32.xlu2 %v1844_v48, %s4869_s18  ;;  %4667 = vset.pattern.permute.xlu1 %v4874_v24  ;;  %v4875_v48 = vmov 55   ;;  %1965 = vst [vmem:[#allocation1] ss:$4 sm:$0xff] %v5494_v2 }
 0xb70   : > { %4668 = vset.pattern.permute.xlu2 %v4875_v48 }
 0xbb9   : > { %v5772_v27 = vpop.permute.xlu2 %1810 }
 0xbba   : > { %8065 = vst [vmem:[#allocation112_spill] sm:$0xff] %v5772_v27 }
 0xbc1   : > { %v1847_v59 = vpop.permute.xlu2 %1846 }
 0xbc8   : > { %v5774_v23 = vpop.permute.xlu0 %1806 }
 0xbc9   : > { %8066 = vst [vmem:[#allocation113_spill] sm:$0xff] %v5774_v23  ;;  %v1851_v33 = vpop.permute.xlu2 %1850 }
 0xbd0   : > { %v5776_v38 = vpop.permute.xlu1 %1808  ;;  %v5778_v58 = vpop.permute.xlu0 %1816 }
 0xbd1   : > { %8067 = vst [vmem:[#allocation114_spill] sm:$0xff] %v5776_v38 }
 0xbd2   : > { %8068 = vst [vmem:[#allocation115_spill] sm:$0xff] %v5778_v58 }
 0xbd8   : > { %v5781_v54 = vpop.permute.xlu1 %1826  ;;  %v1853_v3 = vpop.permute.xlu0 %1852 }
 0xbd9   : > { %8069 = vst [vmem:[#allocation116_spill] sm:$0xff] %v5781_v54  ;;  %v1856_v24 = vsel %vm1745_vm5, %v1851_v33, %v1853_v3  ;;  %v4876_v3 = vmov 56  }
 0xbda   : > { %1864 = vrot.lane.b32.xlu0 %v1856_v24, %s4824_s29 }
 0xbe0   : > { %v1849_v12 = vpop.permute.xlu1 %1848 }
 0xbe1   : > { %v1854_v39 = vsel %vm1745_vm5, %v1847_v59, %v1849_v12  ;;  %v1855_v20 = vsel %vm1745_vm5, %v1849_v12, %v1851_v33 }
 0xbe2   : > { %1860 = vrot.lane.b32.xlu1 %v1854_v39, %s4824_s29  ;;  %1900 = vrot.lane.b32.xlu0 %v1896_v15, %s4869_s18  ;;  %v4877_v39 = vmov 57  }
 0xbe3   : > { %1862 = vrot.lane.b32.xlu2 %v1855_v20, %s4824_s29 }
 0xbea   : > { %1870 = vperm.xlu1 %4667, %v5488_v55   ;;  %1906 = vrot.lane.b32.xlu0 %v1899_v49, %s4869_s18 }
 0xbeb   : > { %1880 = vperm.xlu2 %4668, %v5488_v55  }
 0xbf2   : > { %1902 = vrot.lane.b32.xlu1 %v1897_v30, %s4869_s18 }
 0xbf3   : > { %1904 = vrot.lane.b32.xlu2 %v1898_v16, %s4869_s18  ;;  %4669 = vset.pattern.permute.xlu1 %v4876_v3 }
 0xbf4   : > { %4670 = vset.pattern.permute.xlu2 %v4877_v39 }
 0xc3d   : > { %v5795_v59 = vpop.permute.xlu2 %1862 }
 0xc3e   : > { %8070 = vst [vmem:[#allocation117_spill] sm:$0xff] %v5795_v59  ;;  %v1968_v59 = vld.sshfl [vmem:[#allocation1 + $0x10] sm:$0xff pattern:$0x73625140] }
 0xc45   : > { %v5799_v15 = vpop.permute.xlu2 %1880 }
 0xc46   : > { %8072 = vst [vmem:[#allocation119_spill] sm:$0xff] %v5799_v15  ;;  %v1967_v15 = vld.sshfl [vmem:[#allocation1 + $0x8] sm:$0xff pattern:$0x73625140] }
 0xc4c   : > { %v5797_v12 = vpop.permute.xlu0 %1864 }
 0xc4d   : > { %8071 = vst [vmem:[#allocation118_spill] sm:$0xff] %v5797_v12  ;;  %v1905_v49 = vpop.permute.xlu2 %1904 }
 0xc54   : > { %v5801_v20 = vpop.permute.xlu1 %1860  ;;  %v1901_v48 = vpop.permute.xlu0 %1900 }
 0xc55   : > { %8073 = vst [vmem:[#allocation120_spill] sm:$0xff] %v5801_v20 }
 0xc5c   : > { %v5803_v33 = vpop.permute.xlu1 %1870  ;;  %v1907_v24 = vpop.permute.xlu0 %1906 }
 0xc5d   : > { %8074 = vst [vmem:[#allocation121_spill] sm:$0xff] %v5803_v33  ;;  %v1910_v30 = vsel %vm1745_vm5, %v1905_v49, %v1907_v24  ;;  %v1966_v33 = vld.sshfl [vmem:[#allocation1] sm:$0xff pattern:$0x73625140] }
 0xc5e   : > { %1918 = vrot.lane.b32.xlu0 %v1910_v30, %s4825_s30  ;;  %v1969_v24 = vld.sshfl [vmem:[#allocation1 + $0x18] sm:$0xff pattern:$0x73625140] }
 0xc5f   : > { %2019 = vst [vmem:[#allocation1] ss:$4 sm:$0xff] %v5494_v2 }
 0xc64   : > { %v1903_v16 = vpop.permute.xlu1 %1902 }
 0xc65   : > { %v1908_v3 = vsel %vm1745_vm5, %v1901_v48, %v1903_v16  ;;  %v1909_v12 = vsel %vm1745_vm5, %v1903_v16, %v1905_v49 }
 0xc66   : > { %1914 = vrot.lane.b32.xlu1 %v1908_v3, %s4825_s30  ;;  %1916 = vrot.lane.b32.xlu2 %v1909_v12, %s4825_s30 }
 0xc6e   : > { %1924 = vperm.xlu1 %4669, %v5488_v55   ;;  %1934 = vperm.xlu2 %4670, %v5488_v55  }
 0xcc0   : > { %v1917_v39 = vpop.permute.xlu2 %1916 }
 0xcc8   : > { %v1935_v43 = vpop.permute.xlu2 %1934 }
 0xcd0   : > { %v1919_v20 = vpop.permute.xlu0 %1918 }
 0xcd1   : > { %v1920_v48 = vsel %vm520_vm3, %v1917_v39, %v1919_v20 }
 0xcd2   : > { %v1938_v16 = vperm.slane %v1920_v48, 1  ;;  %v1928_v34 = vperm.slane %v1920_v48, 0  ;;  %v4881_v48 = vmov 61  }
 0xcd4   : > { %v1941_v23 = vmul.f32 %v1938_v16, %v1935_v43 }
 0xcd8   : > { %v1915_v30 = vpop.permute.xlu1 %1914 }
 0xcd9   : > { %v1921_v49 = vsel %vm520_vm3, %v1915_v30, %v1917_v39  ;;  %v1922_v12 = vsel %vm520_vm3, %v1919_v20, %v1915_v30 }
 0xcda   : > { %v1937_v3 = vperm.slane %v1921_v49, 1  ;;  %v1939_v14 = vperm.slane %v1922_v12, 1  ;;  %v1927_v58 = vperm.slane %v1921_v49, 0  ;;  %v1929_v54 = vperm.slane %v1922_v12, 0 }
 0xcdc   : > { %v1940_v38 = vmul.f32 %v1937_v3, %v1935_v43  ;;  %v1942_v31 = vmul.f32 %v1939_v14, %v1935_v43  ;;  %v4878_v14 = vmov 58   ;;  %v4879_v43 = vmov 59  }
 0xcdd   : > { %4671 = vset.pattern.permute.xlu1 %v4878_v14  ;;  %4672 = vset.pattern.permute.xlu2 %v4879_v43 }
 0xce0   : > { %v1925_v27 = vpop.permute.xlu1 %1924 }
 0xce1   : > { %v1930_v22 = vmul.f32 %v1927_v58, %v1925_v27  ;;  %v1931_v13 = vmul.f32 %v1928_v34, %v1925_v27  ;;  %v1932_v44 = vmul.f32 %v1929_v54, %v1925_v27 }
 0xce3   : > { %v1945_v6 = vadd.f32 %v1942_v31, %v1932_v44  ;;  %v1944_v8 = vadd.f32 %v1941_v23, %v1931_v13  ;;  %v1943_v39 = vadd.f32 %v1940_v38, %v1930_v22  ;;  %v2023_v31 = vld.sshfl [vmem:[#allocation1 + $0x18] sm:$0xff pattern:$0x73625140]  ;;  %v2022_v22 = vld.sshfl [vmem:[#allocation1 + $0x10] sm:$0xff pattern:$0x73625140] }
 0xce5   : > { %1953 = vrot.lane.b32.xlu2 %v1945_v6, %s4837_s12  ;;  %1951 = vrot.lane.b32.xlu1 %v1944_v8, %s4837_s12  ;;  %v2021_v6 = vld.sshfl [vmem:[#allocation1 + $0x8] sm:$0xff pattern:$0x73625140]  ;;  %v2020_v8 = vld.sshfl [vmem:[#allocation1] sm:$0xff pattern:$0x73625140] }
 0xce6   : > { %1949 = vrot.lane.b32.xlu0 %v1943_v39, %s4837_s12  ;;  %2073 = vst [vmem:[#allocation1] ss:$4 sm:$0xff] %v5494_v2  ;;  %v4880_v2 = vmov 60  }
 0xced   : > { %1972 = vrot.lane.b32.xlu1 %v1967_v15, %s4869_s18  ;;  %1974 = vrot.lane.b32.xlu2 %v1968_v59, %s4869_s18  ;;  %v2076_v43 = vld.sshfl [vmem:[#allocation1 + $0x10] sm:$0xff pattern:$0x73625140] }
 0xcee   : > { %1970 = vrot.lane.b32.xlu0 %v1966_v33, %s4869_s18 }
 0xcf6   : > { %1976 = vrot.lane.b32.xlu0 %v1969_v24, %s4869_s18 }
 0xd3f   : > { %v5827_v34 = vpop.permute.xlu2 %1953 }
 0xd40   : > { %8075 = vst [vmem:[#allocation122_spill] sm:$0xff] %v5827_v34 }
 0xd47   : > { %v1975_v27 = vpop.permute.xlu2 %1974 }
 0xd57   : > { %v5829_v44 = vpop.permute.xlu1 %1951 }
 0xd58   : > { %8076 = vst [vmem:[#allocation123_spill] sm:$0xff] %v5829_v44  ;;  %v5831_v13 = vpop.permute.xlu0 %1949 }
 0xd59   : > { %8077 = vst [vmem:[#allocation124_spill] sm:$0xff] %v5831_v13 }
 0xd5f   : > { %v1973_v23 = vpop.permute.xlu1 %1972 }
 0xd60   : > { %v1971_v38 = vpop.permute.xlu0 %1970  ;;  %v1979_v58 = vsel %vm1745_vm5, %v1973_v23, %v1975_v27 }
 0xd61   : > { %v1978_v54 = vsel %vm1745_vm5, %v1971_v38, %v1973_v23  ;;  %1986 = vrot.lane.b32.xlu2 %v1979_v58, %s4826_s7  ;;  %v4882_v23 = vmov 62   ;;  %v4883_v38 = vmov 64  }
 0xd62   : > { %1984 = vrot.lane.b32.xlu1 %v1978_v54, %s4826_s7  ;;  %4677 = vset.pattern.permute.xlu0 %v4883_v38 }
 0xd68   : > { %v1977_v59 = vpop.permute.xlu0 %1976 }
 0xd69   : > { %v1980_v15 = vsel %vm1745_vm5, %v1975_v27, %v1977_v59  ;;  %2004 = vperm.xlu2 %4672, %v5488_v55   ;;  %v2077_v27 = vld.sshfl [vmem:[#allocation1 + $0x18] sm:$0xff pattern:$0x73625140]  ;;  %v4884_v59 = vmov 63  }
 0xd6a   : > { %1994 = vperm.xlu1 %4671, %v5488_v55   ;;  %1988 = vrot.lane.b32.xlu0 %v1980_v15, %s4826_s7 }
 0xd71   : > { %2028 = vrot.lane.b32.xlu2 %v2022_v22, %s4869_s18  ;;  %v2074_v22 = vld.sshfl [vmem:[#allocation1] sm:$0xff pattern:$0x73625140] }
 0xd72   : > { %2026 = vrot.lane.b32.xlu1 %v2021_v6, %s4869_s18  ;;  %2024 = vrot.lane.b32.xlu0 %v2020_v8, %s4869_s18  ;;  %v5862_v8 = vld [vmem:[%s5043_s19] sm:$0xff] }
 0xd73   : > { %4673 = vset.pattern.permute.xlu1 %v4880_v2  ;;  %4674 = vset.pattern.permute.xlu2 %v4881_v48 }
 0xd7a   : > { %2030 = vrot.lane.b32.xlu0 %v2023_v31, %s4869_s18  ;;  %v2075_v31 = vld.sshfl [vmem:[#allocation1 + $0x8] sm:$0xff pattern:$0x73625140] }
 0xdbb   : > { %v5846_v20 = vpop.permute.xlu2 %1986 }
 0xdbc   : > { %8078 = vst [vmem:[#allocation125_spill] sm:$0xff] %v5846_v20 }
 0xdc3   : > { %v5850_v24 = vpop.permute.xlu2 %2004 }
 0xdc4   : > { %8080 = vst [vmem:[#allocation127_spill] sm:$0xff] %v5850_v24 }
 0xdcb   : > { %v2029_v49 = vpop.permute.xlu2 %2028 }
 0xdd4   : > { %v5848_v33 = vpop.permute.xlu1 %1984 }
 0xdd5   : > { %8079 = vst [vmem:[#allocation126_spill] sm:$0xff] %v5848_v33 }
 0xddc   : > { %v5852_v55 = vpop.permute.xlu1 %1994  ;;  %v5854_v30 = vpop.permute.xlu0 %1988 }
 0xddd   : > { %8081 = vst [vmem:[#allocation128_spill] sm:$0xff] %v5852_v55 }
 0xdde   : > { %8082 = vst [vmem:[#allocation129_spill] sm:$0xff] %v5854_v30 }
 0xde4   : > { %v2027_v12 = vpop.permute.xlu1 %2026  ;;  %v2025_v16 = vpop.permute.xlu0 %2024 }
 0xde5   : > { %v2032_v3 = vsel %vm1745_vm5, %v2025_v16, %v2027_v12  ;;  %v2033_v39 = vsel %vm1745_vm5, %v2027_v12, %v2029_v49 }
 0xde6   : > { %2040 = vrot.lane.b32.xlu2 %v2033_v39, %s4829_s8  ;;  %2038 = vrot.lane.b32.xlu1 %v2032_v3, %s4829_s8 }
 0xdec   : > { %v2031_v14 = vpop.permute.xlu0 %2030 }
 0xded   : > { %v2034_v6 = vsel %vm1745_vm5, %v2029_v49, %v2031_v14 }
 0xdee   : > { %2048 = vperm.xlu1 %4673, %v5862_v8   ;;  %2042 = vrot.lane.b32.xlu0 %v2034_v6, %s4829_s8 }
 0xdef   : > { %2058 = vperm.xlu2 %4674, %v5862_v8  }
 0xdf6   : > { %2080 = vrot.lane.b32.xlu1 %v2075_v31, %s4869_s18  ;;  %2078 = vrot.lane.b32.xlu0 %v2074_v22, %s4869_s18  ;;  %v4885_v31 = vmov 65   ;;  %v5891_v22 = vld [vmem:[#allocation2 + $0x2] sm:$0xff] }
 0xdf7   : > { %2082 = vrot.lane.b32.xlu2 %v2076_v43, %s4869_s18  ;;  %4675 = vset.pattern.permute.xlu1 %v4882_v23  ;;  %2197 = vst [vmem:[#allocation1] ss:$4 sm:$0xff] %v5891_v22 }
 0xdf8   : > { %4676 = vset.pattern.permute.xlu2 %v4884_v59 }
 0xdfe   : > { %2084 = vrot.lane.b32.xlu0 %v2077_v27, %s4869_s18  ;;  %v2200_v27 = vld.sshfl [vmem:[#allocation1 + $0x10] sm:$0xff pattern:$0x73625140]  ;;  %v2198_v23 = vld.sshfl [vmem:[#allocation1] sm:$0xff pattern:$0x73625140] }
 0xdff   : > { %v2201_v38 = vld.sshfl [vmem:[#allocation1 + $0x18] sm:$0xff pattern:$0x73625140]  ;;  %v2199_v59 = vld.sshfl [vmem:[#allocation1 + $0x8] sm:$0xff pattern:$0x73625140] }
 0xe00   : > { %2252 = vst [vmem:[#allocation1] ss:$4 sm:$0xff] %v5891_v22  ;;  %s4923_s18 = smov 59  }
 0xe40   : > { %v5871_v58 = vpop.permute.xlu2 %2040 }
 0xe41   : > { %8083 = vst [vmem:[#allocation130_spill] sm:$0xff] %v5871_v58 }
 0xe49   : > { %v5875_v15 = vpop.permute.xlu2 %2058 }
 0xe4a   : > { %8085 = vst [vmem:[#allocation132_spill] sm:$0xff] %v5875_v15  ;;  %v2155_v15 = vperm.slane %v5891_v22, 5 }
 0xe4c   : > { %v5927_v18 = vperm.slane %v2155_v15, 1 }
 0xe51   : > { %v2083_v49 = vpop.permute.xlu2 %2082 }
 0xe58   : > { %v5873_v54 = vpop.permute.xlu1 %2038 }
 0xe59   : > { %8084 = vst [vmem:[#allocation131_spill] sm:$0xff] %v5873_v54  ;;  %v2135_v54 = vperm.slane %v5891_v22, 4 }
 0xe5b   : > { %v5929_v9 = vperm.slane %v2135_v54, 0 }
 0xe60   : > { %v5877_v2 = vpop.permute.xlu1 %2048  ;;  %v5879_v48 = vpop.permute.xlu0 %2042 }
 0xe61   : > { %8086 = vst [vmem:[#allocation133_spill] sm:$0xff] %v5877_v2 }
 0xe62   : > { %8087 = vst [vmem:[#allocation134_spill] sm:$0xff] %v5879_v48 }
 0xe68   : > { %v2081_v12 = vpop.permute.xlu1 %2080  ;;  %v2079_v16 = vpop.permute.xlu0 %2078 }
 0xe69   : > { %v2086_v3 = vsel %vm1745_vm5, %v2079_v16, %v2081_v12  ;;  %v2087_v39 = vsel %vm1745_vm5, %v2081_v12, %v2083_v49  ;;  %v2133_v16 = vperm.slane %v5891_v22, 0 }
 0xe6a   : > { %2094 = vrot.lane.b32.xlu2 %v2087_v39, %s4830_s9  ;;  %2092 = vrot.lane.b32.xlu1 %v2086_v3, %s4830_s9  ;;  %v2134_v3 = vperm.slane %v5891_v22, 2  ;;  %v2136_v39 = vperm.slane %v5891_v22, 6 }
 0xe6b   : > { %v5907_v13 = vperm.slane %v2133_v16, 0 }
 0xe6c   : > { %v5909_v44 = vperm.slane %v2134_v3, 0  ;;  %v5911_v34 = vperm.slane %v2136_v39, 0 }
 0xe70   : > { %v2085_v14 = vpop.permute.xlu0 %2084 }
 0xe71   : > { %v2088_v6 = vsel %vm1745_vm5, %v2083_v49, %v2085_v14  ;;  %v2153_v14 = vperm.slane %v5891_v22, 1  ;;  %vm2185_vm5 = vcmask 261120  }
 0xe72   : > { %2102 = vperm.xlu1 %4675, %v5862_v8   ;;  %2096 = vrot.lane.b32.xlu0 %v2088_v6, %s4830_s9  ;;  %v2154_v6 = vperm.slane %v5891_v22, 3 }
 0xe73   : > { %2112 = vperm.xlu2 %4676, %v5862_v8  }
 0xe7a   : > { %4678 = vset.pattern.permute.xlu1 %v4885_v31  ;;  %2129 = vperm.xlu0 %4677, %v5862_v8   ;;  %v2156_v31 = vperm.slane %v5891_v22, 7 }
 0xe7b   : > { %2150 = vperm.xlu1 %4678, %v5862_v8  }
 0xedc   : > { %v5894_v43 = vpop.permute.xlu1 %2092 }
 0xedd   : > { %8088 = vst [vmem:[#allocation135_spill] sm:$0xff] %v5894_v43  ;;  %v5915_v43 = vperm.slane %v2154_v6, 1 }
 0xee4   : > { %v5897_v49 = vpop.permute.xlu1 %2102  ;;  %v5899_v12 = vpop.permute.xlu0 %2096 }
 0xee5   : > { %8089 = vst [vmem:[#allocation136_spill] sm:$0xff] %v5897_v49  ;;  %v5913_v49 = vperm.slane %v2153_v14, 1 }
 0xee6   : > { %8090 = vst [vmem:[#allocation137_spill] sm:$0xff] %v5899_v12  ;;  %v5917_v12 = vperm.slane %v2156_v31, 1 }
 0xeec   : > { %v2130_v2 = vpop.permute.xlu0 %2129 }
 0xeed   : > { %v2151_v48 = vpop.permute.xlu1 %2150  ;;  %v2145_v58 = vmul.f32 %v5907_v13, %v2130_v2  ;;  %v2146_v16 = vmul.f32 %v5909_v44, %v2130_v2  ;;  %v2148_v3 = vmul.f32 %v5911_v34, %v2130_v2  ;;  %v2147_v30 = vmul.f32 %v5929_v9, %v2130_v2  ;;  %v2253_v2 = vld.sshfl [vmem:[#allocation1] sm:$0xff pattern:$0x73625140] }
 0xeee   : > { %v2165_v39 = vmul.f32 %v5913_v49, %v2151_v48  ;;  %v2166_v14 = vmul.f32 %v5915_v43, %v2151_v48  ;;  %v2168_v6 = vmul.f32 %v5917_v12, %v2151_v48  ;;  %v2167_v28 = vmul.f32 %v5927_v18, %v2151_v48 }
 0xeef   : > { %v4889_v48 = vmov 66  }
 0xef0   : > { %v2172_v31 = vadd.f32 %v2168_v6, %v2148_v3  ;;  %v2170_v24 = vadd.f32 %v2166_v14, %v2146_v16  ;;  %v2169_v55 = vadd.f32 %v2165_v39, %v2145_v58  ;;  %v2171_v33 = vadd.f32 %v2167_v28, %v2147_v30  ;;  %v5937_v58 = vpop.permute.xlu2 %2094  ;;  %4679 = vset.pattern.permute.xlu2 %v4889_v48 }
 0xef1   : > { %8091 = vst [vmem:[#allocation138_spill] sm:$0xff] %v5937_v58  ;;  %v4891_v48 = vmov 69  }
 0xef2   : > { %2183 = vrot.lane.b32.xlu0 %v2172_v31, %s4886_s10  ;;  %2179 = vrot.lane.b32.xlu1 %v2170_v24, %s4886_s10  ;;  %v4888_v24 = vmov 67   ;;  %v4890_v31 = vmov 68  }
 0xef3   : > { %2177 = vrot.lane.b32.xlu2 %v2169_v55, %s4886_s10  ;;  %4680 = vset.pattern.permute.xlu0 %v4888_v24 }
 0xef4   : > { %4682 = vset.pattern.permute.xlu1 %v4891_v48 }
 0xef8   : > { %v5939_v54 = vpop.permute.xlu2 %2112 }
 0xef9   : > { %8092 = vst [vmem:[#allocation139_spill] sm:$0xff] %v5939_v54 }
 0xefa   : > { %2206 = vrot.lane.b32.xlu0 %v2200_v27, %s4887_s11  ;;  %2202 = vrot.lane.b32.xlu1 %v2198_v23, %s4887_s11  ;;  %v2254_v27 = vld.sshfl [vmem:[#allocation1 + $0x8] sm:$0xff pattern:$0x73625140]  ;;  %v2256_v23 = vld.sshfl [vmem:[#allocation1 + $0x18] sm:$0xff pattern:$0x73625140] }
 0xefb   : > { %2181 = vrot.lane.b32.xlu2 %v2171_v33, %s4886_s10  ;;  %v2255_v33 = vld.sshfl [vmem:[#allocation1 + $0x10] sm:$0xff pattern:$0x73625140]  ;;  %s4940_s10 = smov 88  }
 0xefc   : > { %2306 = vst [vmem:[#allocation1] ss:$4 sm:$0xff] %v5891_v22 }
 0xf02   : > { %2208 = vrot.lane.b32.xlu1 %v2201_v38, %s4887_s11 }
 0xf03   : > { %2204 = vrot.lane.b32.xlu2 %v2199_v59, %s4887_s11 }
 0xf4d   : > { %v5941_v55 = vpop.permute.xlu2 %2177 }
 0xf4e   : > { %8093 = vst [vmem:[#allocation140_spill] sm:$0xff] %v5941_v55 }
 0xf55   : > { %v5943_v15 = vpop.permute.xlu2 %2181 }
 0xf56   : > { %8094 = vst [vmem:[#allocation141_spill] sm:$0xff] %v5943_v15 }
 0xf5d   : > { %v2205_v38 = vpop.permute.xlu2 %2204 }
 0xf64   : > { %v5945_v28 = vpop.permute.xlu0 %2183  ;;  %v5947_v30 = vpop.permute.xlu1 %2179 }
 0xf65   : > { %8095 = vst [vmem:[#allocation142_spill] sm:$0xff] %v5945_v28 }
 0xf66   : > { %8096 = vst [vmem:[#allocation143_spill] sm:$0xff] %v5947_v30 }
 0xf6c   : > { %v2207_v59 = vpop.permute.xlu0 %2206  ;;  %v2203_v16 = vpop.permute.xlu1 %2202 }
 0xf6d   : > { %v2212_v3 = vsel %vm2210_vm6, %v2205_v38, %v2207_v59  ;;  %v2211_v39 = vsel %vm2210_vm6, %v2203_v16, %v2205_v38  ;;  %v2310_v16 = vld.sshfl [vmem:[#allocation1 + $0x18] sm:$0xff pattern:$0x73625140] }
 0xf6e   : > { %2219 = vrot.lane.b32.xlu0 %v2212_v3, %s4822_s22  ;;  %2217 = vrot.lane.b32.xlu2 %v2211_v39, %s4822_s22  ;;  %v2308_v3 = vld.sshfl [vmem:[#allocation1 + $0x8] sm:$0xff pattern:$0x73625140]  ;;  %v2307_v39 = vld.sshfl [vmem:[#allocation1] sm:$0xff pattern:$0x73625140] }
 0xf74   : > { %v2209_v14 = vpop.permute.xlu1 %2208 }
 0xf75   : > { %v2213_v6 = vsel %vm2210_vm6, %v2207_v59, %v2209_v14 }
 0xf76   : > { %2221 = vrot.lane.b32.xlu1 %v2213_v6, %s4822_s22  ;;  %2237 = vperm.xlu0 %4680, %v5862_v8  }
 0xf77   : > { %2227 = vperm.xlu2 %4679, %v5862_v8  }
 0xf7e   : > { %2257 = vrot.lane.b32.xlu1 %v2253_v2, %s4887_s11  ;;  %4681 = vset.pattern.permute.xlu0 %v4890_v31  ;;  %v2309_v2 = vld.sshfl [vmem:[#allocation1 + $0x10] sm:$0xff pattern:$0x73625140] }
 0xf7f   : > { %2259 = vrot.lane.b32.xlu2 %v2254_v27, %s4887_s11  ;;  %2360 = vst [vmem:[#allocation1] ss:$4 sm:$0xff] %v5891_v22 }
 0xf86   : > { %2261 = vrot.lane.b32.xlu1 %v2255_v33, %s4887_s11  ;;  %v2364_v55 = vld.sshfl [vmem:[#allocation1 + $0x18] sm:$0xff pattern:$0x73625140]  ;;  %v2363_v30 = vld.sshfl [vmem:[#allocation1 + $0x10] sm:$0xff pattern:$0x73625140] }
 0xf87   : > { %2263 = vrot.lane.b32.xlu2 %v2256_v23, %s4887_s11 }
 0xfc8   : > { %v5962_v24 = vpop.permute.xlu2 %2217 }
 0xfc9   : > { %8097 = vst [vmem:[#allocation144_spill] sm:$0xff] %v5962_v24 }
 0xfd1   : > { %v5964_v38 = vpop.permute.xlu2 %2227 }
 0xfd2   : > { %8098 = vst [vmem:[#allocation145_spill] sm:$0xff] %v5964_v38 }
 0xfd9   : > { %v2260_v14 = vpop.permute.xlu2 %2259 }
 0xfe1   : > { %v2264_v23 = vpop.permute.xlu2 %2263 }
 0xfe8   : > { %v5966_v59 = vpop.permute.xlu1 %2221 }
 0xfe9   : > { %8099 = vst [vmem:[#allocation146_spill] sm:$0xff] %v5966_v59 }
 0xff0   : > { %v2258_v33 = vpop.permute.xlu1 %2257 }
 0xff1   : > { %v2265_v27 = vsel %vm2210_vm6, %v2258_v33, %v2260_v14  ;;  %v5981_v33 = vpop.permute.xlu0 %2219 }
 0xff2   : > { %2271 = vrot.lane.b32.xlu0 %v2265_v27, %s4823_s28  ;;  %8100 = vst [vmem:[#allocation147_spill] sm:$0xff] %v5981_v33 }
 0xff8   : > { %v2262_v6 = vpop.permute.xlu1 %2261 }
 0xff9   : > { %v2267_v31 = vsel %vm2210_vm6, %v2262_v6, %v2264_v23  ;;  %v2266_v48 = vsel %vm2210_vm6, %v2260_v14, %v2262_v6  ;;  %v5983_v27 = vpop.permute.xlu0 %2237  ;;  %v4892_v23 = vmov 70  }
 0xffa   : > { %2273 = vrot.lane.b32.xlu1 %v2266_v48, %s4823_s28  ;;  %2281 = vperm.xlu0 %4681, %v5862_v8   ;;  %8101 = vst [vmem:[#allocation148_spill] sm:$0xff] %v5983_v27 }
 0xffb   : > { %2275 = vrot.lane.b32.xlu2 %v2267_v31, %s4823_s28 }
0x1002   : > { %2291 = vperm.xlu1 %4682, %v5862_v8   ;;  %2317 = vrot.lane.b32.xlu0 %v2310_v16, %s4887_s11 }
0x1003   : > { %2311 = vrot.lane.b32.xlu2 %v2307_v39, %s4887_s11  ;;  %v2361_v39 = vld.sshfl [vmem:[#allocation1] sm:$0xff pattern:$0x73625140] }
0x100a   : > { %2313 = vrot.lane.b32.xlu1 %v2308_v3, %s4887_s11  ;;  %v2362_v3 = vld.sshfl [vmem:[#allocation1 + $0x8] sm:$0xff pattern:$0x73625140] }
0x100b   : > { %2315 = vrot.lane.b32.xlu2 %v2309_v2, %s4887_s11  ;;  %4683 = vset.pattern.permute.xlu1 %v4892_v23  ;;  %v4893_v2 = vmov 71   ;;  %2430 = vst [vmem:[#allocation1] ss:$4 sm:$0xff] %v5891_v22 }
0x100c   : > { %4684 = vset.pattern.permute.xlu2 %v4893_v2 }
0x1055   : > { %v5985_v14 = vpop.permute.xlu2 %2275 }
0x1056   : > { %8102 = vst [vmem:[#allocation149_spill] sm:$0xff] %v5985_v14 }
0x105d   : > { %v2312_v31 = vpop.permute.xlu2 %2311 }
0x1064   : > { %v5987_v6 = vpop.permute.xlu0 %2271 }
0x1065   : > { %8103 = vst [vmem:[#allocation150_spill] sm:$0xff] %v5987_v6  ;;  %v2316_v15 = vpop.permute.xlu2 %2315 }
0x106c   : > { %v5989_v48 = vpop.permute.xlu1 %2273  ;;  %v5991_v16 = vpop.permute.xlu0 %2281 }
0x106d   : > { %8104 = vst [vmem:[#allocation151_spill] sm:$0xff] %v5989_v48 }
0x106e   : > { %8105 = vst [vmem:[#allocation152_spill] sm:$0xff] %v5991_v16 }
0x1074   : > { %v5994_v28 = vpop.permute.xlu1 %2291  ;;  %v2318_v54 = vpop.permute.xlu0 %2317 }
0x1075   : > { %8106 = vst [vmem:[#allocation153_spill] sm:$0xff] %v5994_v28  ;;  %v2321_v23 = vsel %vm2210_vm6, %v2316_v15, %v2318_v54  ;;  %v4894_v54 = vmov 72  }
0x1076   : > { %2329 = vrot.lane.b32.xlu0 %v2321_v23, %s4824_s29 }
0x107c   : > { %v2314_v58 = vpop.permute.xlu1 %2313 }
0x107d   : > { %v2319_v14 = vsel %vm2210_vm6, %v2312_v31, %v2314_v58  ;;  %v2320_v16 = vsel %vm2210_vm6, %v2314_v58, %v2316_v15  ;;  %v4895_v15 = vmov 73  }
0x107e   : > { %2325 = vrot.lane.b32.xlu1 %v2319_v14, %s4824_s29  ;;  %2365 = vrot.lane.b32.xlu0 %v2361_v39, %s4887_s11 }
0x107f   : > { %2327 = vrot.lane.b32.xlu2 %v2320_v16, %s4824_s29 }
0x1086   : > { %2335 = vperm.xlu1 %4683, %v5862_v8   ;;  %2371 = vrot.lane.b32.xlu0 %v2364_v55, %s4887_s11 }
0x1087   : > { %2345 = vperm.xlu2 %4684, %v5862_v8  }
0x108e   : > { %2367 = vrot.lane.b32.xlu1 %v2362_v3, %s4887_s11 }
0x108f   : > { %2369 = vrot.lane.b32.xlu2 %v2363_v30, %s4887_s11  ;;  %4685 = vset.pattern.permute.xlu1 %v4894_v54 }
0x1090   : > { %4686 = vset.pattern.permute.xlu2 %v4895_v15 }
0x10d9   : > { %v6008_v31 = vpop.permute.xlu2 %2327 }
0x10da   : > { %8107 = vst [vmem:[#allocation154_spill] sm:$0xff] %v6008_v31 }
0x10e1   : > { %v6012_v14 = vpop.permute.xlu2 %2345 }
0x10e2   : > { %8109 = vst [vmem:[#allocation156_spill] sm:$0xff] %v6012_v14  ;;  %v2432_v14 = vld.sshfl [vmem:[#allocation1 + $0x8] sm:$0xff pattern:$0x73625140] }
0x10e8   : > { %v6010_v58 = vpop.permute.xlu0 %2329 }
0x10e9   : > { %8108 = vst [vmem:[#allocation155_spill] sm:$0xff] %v6010_v58  ;;  %v2370_v55 = vpop.permute.xlu2 %2369  ;;  %v2433_v58 = vld.sshfl [vmem:[#allocation1 + $0x10] sm:$0xff pattern:$0x73625140] }
0x10f0   : > { %v6014_v16 = vpop.permute.xlu1 %2325  ;;  %v2366_v39 = vpop.permute.xlu0 %2365 }
0x10f1   : > { %8110 = vst [vmem:[#allocation157_spill] sm:$0xff] %v6014_v16 }
0x10f8   : > { %v6016_v2 = vpop.permute.xlu1 %2335  ;;  %v2372_v23 = vpop.permute.xlu0 %2371 }
0x10f9   : > { %8111 = vst [vmem:[#allocation158_spill] sm:$0xff] %v6016_v2  ;;  %v2375_v3 = vsel %vm2210_vm6, %v2370_v55, %v2372_v23  ;;  %v2431_v2 = vld.sshfl [vmem:[#allocation1] sm:$0xff pattern:$0x73625140] }
0x10fa   : > { %2383 = vrot.lane.b32.xlu0 %v2375_v3, %s4825_s30  ;;  %v2434_v23 = vld.sshfl [vmem:[#allocation1 + $0x18] sm:$0xff pattern:$0x73625140] }
0x10fb   : > { %2484 = vst [vmem:[#allocation1] ss:$4 sm:$0xff] %v5891_v22 }
0x1100   : > { %v2368_v30 = vpop.permute.xlu1 %2367 }
0x1101   : > { %v2373_v54 = vsel %vm2210_vm6, %v2366_v39, %v2368_v30  ;;  %v2374_v31 = vsel %vm2210_vm6, %v2368_v30, %v2370_v55 }
0x1102   : > { %2379 = vrot.lane.b32.xlu1 %v2373_v54, %s4825_s30  ;;  %2381 = vrot.lane.b32.xlu2 %v2374_v31, %s4825_s30 }
0x110a   : > { %2389 = vperm.xlu1 %4685, %v5862_v8   ;;  %2399 = vperm.xlu2 %4686, %v5862_v8  }
0x115c   : > { %v2382_v15 = vpop.permute.xlu2 %2381 }
0x1164   : > { %v2400_v28 = vpop.permute.xlu2 %2399 }
0x116c   : > { %v2384_v16 = vpop.permute.xlu0 %2383 }
0x116d   : > { %v2385_v39 = vsel %vm520_vm3, %v2382_v15, %v2384_v16 }
0x116e   : > { %v2403_v30 = vperm.slane %v2385_v39, 1  ;;  %v2393_v48 = vperm.slane %v2385_v39, 0 }
0x1170   : > { %v2406_v59 = vmul.f32 %v2403_v30, %v2400_v28 }
0x1174   : > { %v2380_v3 = vpop.permute.xlu1 %2379 }
0x1175   : > { %v2386_v55 = vsel %vm520_vm3, %v2380_v3, %v2382_v15  ;;  %v2387_v31 = vsel %vm520_vm3, %v2384_v16, %v2380_v3  ;;  %v4898_v16 = vmov 76  }
0x1176   : > { %v2402_v54 = vperm.slane %v2386_v55, 1  ;;  %v2404_v6 = vperm.slane %v2387_v31, 1  ;;  %v2392_v38 = vperm.slane %v2386_v55, 0  ;;  %v2394_v27 = vperm.slane %v2387_v31, 0 }
0x1178   : > { %v2405_v24 = vmul.f32 %v2402_v54, %v2400_v28  ;;  %v2407_v20 = vmul.f32 %v2404_v6, %v2400_v28  ;;  %v4896_v28 = vmov 74  }
0x1179   : > { %4687 = vset.pattern.permute.xlu1 %v4896_v28 }
0x117c   : > { %v2390_v33 = vpop.permute.xlu1 %2389 }
0x117d   : > { %v2395_v52 = vmul.f32 %v2392_v38, %v2390_v33  ;;  %v2396_v29 = vmul.f32 %v2393_v48, %v2390_v33  ;;  %v2397_v35 = vmul.f32 %v2394_v27, %v2390_v33 }
0x117f   : > { %v2410_v21 = vadd.f32 %v2407_v20, %v2397_v35  ;;  %v2409_v62 = vadd.f32 %v2406_v59, %v2396_v29  ;;  %v2408_v15 = vadd.f32 %v2405_v24, %v2395_v52  ;;  %v2486_v29 = vld.sshfl [vmem:[#allocation1 + $0x8] sm:$0xff pattern:$0x73625140]  ;;  %v2487_v20 = vld.sshfl [vmem:[#allocation1 + $0x10] sm:$0xff pattern:$0x73625140] }
0x1180   : > { %v4897_v24 = vmov 75  }
0x1181   : > { %2418 = vrot.lane.b32.xlu2 %v2410_v21, %s4837_s12  ;;  %2416 = vrot.lane.b32.xlu1 %v2409_v62, %s4837_s12  ;;  %v2485_v62 = vld.sshfl [vmem:[#allocation1] sm:$0xff pattern:$0x73625140]  ;;  %v2488_v21 = vld.sshfl [vmem:[#allocation1 + $0x18] sm:$0xff pattern:$0x73625140] }
0x1182   : > { %2414 = vrot.lane.b32.xlu0 %v2408_v15, %s4837_s12  ;;  %4688 = vset.pattern.permute.xlu2 %v4897_v24  ;;  %2538 = vst [vmem:[#allocation1] ss:$4 sm:$0xff] %v5891_v22  ;;  %v4899_v15 = vmov 77  }
0x1189   : > { %2437 = vrot.lane.b32.xlu1 %v2432_v14, %s4887_s11  ;;  %2439 = vrot.lane.b32.xlu2 %v2433_v58, %s4887_s11  ;;  %v2540_v31 = vld.sshfl [vmem:[#allocation1 + $0x8] sm:$0xff pattern:$0x73625140]  ;;  %v2539_v30 = vld.sshfl [vmem:[#allocation1] sm:$0xff pattern:$0x73625140] }
0x118a   : > { %2435 = vrot.lane.b32.xlu0 %v2431_v2, %s4887_s11  ;;  %v2542_v54 = vld.sshfl [vmem:[#allocation1 + $0x18] sm:$0xff pattern:$0x73625140]  ;;  %v2541_v28 = vld.sshfl [vmem:[#allocation1 + $0x10] sm:$0xff pattern:$0x73625140] }
0x118b   : > { %2662 = vst [vmem:[#allocation1] ss:$4 sm:$0xff] %v5891_v22 }
0x1192   : > { %2441 = vrot.lane.b32.xlu0 %v2434_v23, %s4887_s11 }
0x11db   : > { %v6040_v38 = vpop.permute.xlu2 %2418 }
0x11dc   : > { %8112 = vst [vmem:[#allocation159_spill] sm:$0xff] %v6040_v38 }
0x11e3   : > { %v2440_v59 = vpop.permute.xlu2 %2439 }
0x11f3   : > { %v6042_v35 = vpop.permute.xlu1 %2416 }
0x11f4   : > { %8113 = vst [vmem:[#allocation160_spill] sm:$0xff] %v6042_v35  ;;  %v6044_v52 = vpop.permute.xlu0 %2414 }
0x11f5   : > { %8114 = vst [vmem:[#allocation161_spill] sm:$0xff] %v6044_v52 }
0x11fb   : > { %v2438_v33 = vpop.permute.xlu1 %2437 }
0x11fc   : > { %v2436_v27 = vpop.permute.xlu0 %2435  ;;  %v2444_v6 = vsel %vm2210_vm6, %v2438_v33, %v2440_v59 }
0x11fd   : > { %v2443_v48 = vsel %vm2210_vm6, %v2436_v27, %v2438_v33  ;;  %2451 = vrot.lane.b32.xlu2 %v2444_v6, %s4826_s7  ;;  %v4900_v27 = vmov 78   ;;  %v4901_v6 = vmov 80  }
0x11fe   : > { %2449 = vrot.lane.b32.xlu1 %v2443_v48, %s4826_s7  ;;  %4693 = vset.pattern.permute.xlu0 %v4901_v6  ;;  %v2666_v6 = vld.sshfl [vmem:[#allocation1 + $0x18] sm:$0xff pattern:$0x73625140] }
0x1204   : > { %v2442_v58 = vpop.permute.xlu0 %2441 }
0x1205   : > { %v2445_v14 = vsel %vm2210_vm6, %v2440_v59, %v2442_v58  ;;  %2469 = vperm.xlu2 %4688, %v5862_v8  }
0x1206   : > { %2459 = vperm.xlu1 %4687, %v5862_v8   ;;  %2453 = vrot.lane.b32.xlu0 %v2445_v14, %s4826_s7  ;;  %v4902_v14 = vmov 79  }
0x120d   : > { %2493 = vrot.lane.b32.xlu2 %v2487_v20, %s4887_s11 }
0x120e   : > { %2491 = vrot.lane.b32.xlu1 %v2486_v29, %s4887_s11  ;;  %2489 = vrot.lane.b32.xlu0 %v2485_v62, %s4887_s11 }
0x120f   : > { %4689 = vset.pattern.permute.xlu1 %v4898_v16  ;;  %4690 = vset.pattern.permute.xlu2 %v4899_v15 }
0x1216   : > { %2495 = vrot.lane.b32.xlu0 %v2488_v21, %s4887_s11 }
0x1257   : > { %v6059_v2 = vpop.permute.xlu2 %2451 }
0x125f   : > { %v6063_v3 = vpop.permute.xlu2 %2469 }
0x1260   : > { %8115 = vst [vmem:[#allocation162_spill] sm:$0xff] %v6063_v3 }
0x1267   : > { %v2494_v29 = vpop.permute.xlu2 %2493 }
0x1270   : > { %v6061_v23 = vpop.permute.xlu1 %2449 }
0x1278   : > { %v6065_v39 = vpop.permute.xlu1 %2459  ;;  %v6067_v55 = vpop.permute.xlu0 %2453 }
0x1279   : > { %8116 = vst [vmem:[#allocation163_spill] sm:$0xff] %v6065_v39 }
0x1280   : > { %v2492_v62 = vpop.permute.xlu1 %2491  ;;  %v2490_v21 = vpop.permute.xlu0 %2489 }
0x1281   : > { %v2497_v20 = vsel %vm2210_vm6, %v2490_v21, %v2492_v62  ;;  %v2498_v24 = vsel %vm2210_vm6, %v2492_v62, %v2494_v29 }
0x1282   : > { %2505 = vrot.lane.b32.xlu2 %v2498_v24, %s4829_s8  ;;  %2503 = vrot.lane.b32.xlu1 %v2497_v20, %s4829_s8  ;;  %v4903_v24 = vmov 81  }
0x1288   : > { %v2496_v59 = vpop.permute.xlu0 %2495 }
0x1289   : > { %v2499_v33 = vsel %vm2210_vm6, %v2494_v29, %v2496_v59 }
0x128a   : > { %2513 = vperm.xlu1 %4689, %v5862_v8   ;;  %2507 = vrot.lane.b32.xlu0 %v2499_v33, %s4829_s8  ;;  %v2665_v33 = vld.sshfl [vmem:[#allocation1 + $0x10] sm:$0xff pattern:$0x73625140] }
0x128b   : > { %2523 = vperm.xlu2 %4690, %v5862_v8  }
0x1292   : > { %2545 = vrot.lane.b32.xlu1 %v2540_v31, %s4887_s11  ;;  %2543 = vrot.lane.b32.xlu0 %v2539_v30, %s4887_s11 }
0x1293   : > { %2547 = vrot.lane.b32.xlu2 %v2541_v28, %s4887_s11  ;;  %4691 = vset.pattern.permute.xlu1 %v4900_v27  ;;  %v2663_v27 = vld.sshfl [vmem:[#allocation1] sm:$0xff pattern:$0x73625140] }
0x1294   : > { %4692 = vset.pattern.permute.xlu2 %v4902_v14  ;;  %v2664_v14 = vld.sshfl [vmem:[#allocation1 + $0x8] sm:$0xff pattern:$0x73625140] }
0x1295   : > { %2717 = vst [vmem:[#allocation1] ss:$4 sm:$0xff] %v5891_v22 }
0x129a   : > { %2549 = vrot.lane.b32.xlu0 %v2542_v54, %s4887_s11  ;;  %s4941_s11 = smov 35  }
0x12dc   : > { %v6082_v48 = vpop.permute.xlu2 %2505 }
0x12dd   : > { %8117 = vst [vmem:[#allocation164_spill] sm:$0xff] %v6082_v48 }
0x12e5   : > { %v6086_v16 = vpop.permute.xlu2 %2523 }
0x12e6   : > { %8119 = vst [vmem:[#allocation166_spill] sm:$0xff] %v6086_v16 }
0x12ed   : > { %v2548_v30 = vpop.permute.xlu2 %2547 }
0x12f4   : > { %v6084_v58 = vpop.permute.xlu1 %2503 }
0x12f5   : > { %8118 = vst [vmem:[#allocation165_spill] sm:$0xff] %v6084_v58 }
0x12fc   : > { %v6088_v15 = vpop.permute.xlu1 %2513  ;;  %v6090_v31 = vpop.permute.xlu0 %2507 }
0x12fd   : > { %8120 = vst [vmem:[#allocation167_spill] sm:$0xff] %v6088_v15 }
0x12fe   : > { %8121 = vst [vmem:[#allocation168_spill] sm:$0xff] %v6090_v31 }
0x1304   : > { %v2546_v28 = vpop.permute.xlu1 %2545  ;;  %v2544_v29 = vpop.permute.xlu0 %2543 }
0x1305   : > { %v2551_v54 = vsel %vm2210_vm6, %v2544_v29, %v2546_v28  ;;  %v2552_v62 = vsel %vm2210_vm6, %v2546_v28, %v2548_v30 }
0x1306   : > { %2559 = vrot.lane.b32.xlu2 %v2552_v62, %s4830_s9  ;;  %2557 = vrot.lane.b32.xlu1 %v2551_v54, %s4830_s9 }
0x130c   : > { %v2550_v21 = vpop.permute.xlu0 %2549 }
0x130d   : > { %v2553_v20 = vsel %vm2210_vm6, %v2548_v30, %v2550_v21  ;;  %vm2650_vm6 = vcmask 64512  }
0x130e   : > { %2567 = vperm.xlu1 %4691, %v5862_v8   ;;  %2561 = vrot.lane.b32.xlu0 %v2553_v20, %s4830_s9 }
0x130f   : > { %2577 = vperm.xlu2 %4692, %v5862_v8  }
0x1316   : > { %4694 = vset.pattern.permute.xlu1 %v4903_v24  ;;  %2594 = vperm.xlu0 %4693, %v5862_v8  }
0x1317   : > { %2615 = vperm.xlu1 %4694, %v5862_v8  }
0x1378   : > { %v6102_v59 = vpop.permute.xlu1 %2557 }
0x1379   : > { %8122 = vst [vmem:[#allocation169_spill] sm:$0xff] %v6102_v59 }
0x1380   : > { %v6105_v30 = vpop.permute.xlu1 %2567  ;;  %v6107_v28 = vpop.permute.xlu0 %2561 }
0x1381   : > { %8123 = vst [vmem:[#allocation170_spill] sm:$0xff] %v6105_v30 }
0x1382   : > { %8124 = vst [vmem:[#allocation171_spill] sm:$0xff] %v6107_v28 }
0x1388   : > { %v2595_v29 = vpop.permute.xlu0 %2594 }
0x1389   : > { %v2616_v54 = vpop.permute.xlu1 %2615  ;;  %v2610_v62 = vmul.f32 %v2595_v29, %v5907_v13  ;;  %v2611_v21 = vmul.f32 %v2595_v29, %v5909_v44  ;;  %v2613_v20 = vmul.f32 %v2595_v29, %v5911_v34  ;;  %v2612_v13 = vmul.f32 %v2595_v29, %v5929_v9  ;;  %v6121_v34 = vpop.permute.xlu2 %2559 }
0x138a   : > { %v2630_v24 = vmul.f32 %v2616_v54, %v5913_v49  ;;  %v2631_v52 = vmul.f32 %v2616_v54, %v5915_v43  ;;  %v2633_v35 = vmul.f32 %v2616_v54, %v5917_v12  ;;  %v2632_v30 = vmul.f32 %v2616_v54, %v5927_v18  ;;  %8125 = vst [vmem:[#allocation172_spill] sm:$0xff] %v6121_v34 }
0x138b   : > { %v4906_v49 = vmov 83  }
0x138c   : > { %v2637_v38 = vadd.f32 %v2633_v35, %v2613_v20  ;;  %v2635_v59 = vadd.f32 %v2631_v52, %v2611_v21  ;;  %v2634_v16 = vadd.f32 %v2630_v24, %v2610_v62  ;;  %v2636_v44 = vadd.f32 %v2632_v30, %v2612_v13  ;;  %4696 = vset.pattern.permute.xlu0 %v4906_v49  ;;  %v2718_v35 = vld.sshfl [vmem:[#allocation1] sm:$0xff pattern:$0x73625140]  ;;  %v2720_v52 = vld.sshfl [vmem:[#allocation1 + $0x10] sm:$0xff pattern:$0x73625140] }
0x138d   : > { %v4908_v21 = vmov 84   ;;  %v4909_v24 = vmov 85  }
0x138e   : > { %2648 = vrot.lane.b32.xlu0 %v2637_v38, %s4904_s13  ;;  %2644 = vrot.lane.b32.xlu1 %v2635_v59, %s4904_s13  ;;  %v2719_v59 = vld.sshfl [vmem:[#allocation1 + $0x8] sm:$0xff pattern:$0x73625140] }
0x138f   : > { %2642 = vrot.lane.b32.xlu2 %v2634_v16, %s4904_s13  ;;  %v4907_v16 = vmov 82   ;;  %4698 = vset.pattern.permute.xlu1 %v4909_v24  ;;  %v4910_v24 = vmov 86  }
0x1390   : > { %4695 = vset.pattern.permute.xlu2 %v4907_v16 }
0x1391   : > { %v6123_v43 = vpop.permute.xlu2 %2577 }
0x1392   : > { %8126 = vst [vmem:[#allocation173_spill] sm:$0xff] %v6123_v43 }
0x1396   : > { %2671 = vrot.lane.b32.xlu0 %v2665_v33, %s4905_s14  ;;  %2667 = vrot.lane.b32.xlu1 %v2663_v27, %s4905_s14  ;;  %v2721_v33 = vld.sshfl [vmem:[#allocation1 + $0x18] sm:$0xff pattern:$0x73625140] }
0x1397   : > { %2646 = vrot.lane.b32.xlu2 %v2636_v44, %s4904_s13  ;;  %2771 = vst [vmem:[#allocation1] ss:$4 sm:$0xff] %v5891_v22 }
0x139e   : > { %2673 = vrot.lane.b32.xlu1 %v2666_v6, %s4905_s14  ;;  %v2775_v49 = vld.sshfl [vmem:[#allocation1 + $0x18] sm:$0xff pattern:$0x73625140]  ;;  %v2773_v16 = vld.sshfl [vmem:[#allocation1 + $0x8] sm:$0xff pattern:$0x73625140] }
0x139f   : > { %2669 = vrot.lane.b32.xlu2 %v2664_v14, %s4905_s14 }
0x13e9   : > { %v6125_v18 = vpop.permute.xlu2 %2642 }
0x13ea   : > { %8127 = vst [vmem:[#allocation174_spill] sm:$0xff] %v6125_v18 }
0x13f1   : > { %v6127_v9 = vpop.permute.xlu2 %2646 }
0x13f2   : > { %8128 = vst [vmem:[#allocation175_spill] sm:$0xff] %v6127_v9 }
0x13f9   : > { %v2670_v27 = vpop.permute.xlu2 %2669 }
0x1400   : > { %v6129_v12 = vpop.permute.xlu0 %2648  ;;  %v6131_v38 = vpop.permute.xlu1 %2644 }
0x1401   : > { %8129 = vst [vmem:[#allocation176_spill] sm:$0xff] %v6129_v12 }
0x1402   : > { %8130 = vst [vmem:[#allocation177_spill] sm:$0xff] %v6131_v38 }
0x1408   : > { %v2672_v6 = vpop.permute.xlu0 %2671  ;;  %v2668_v14 = vpop.permute.xlu1 %2667 }
0x1409   : > { %v2677_v30 = vsel %vm2675_vm7, %v2670_v27, %v2672_v6  ;;  %v2676_v29 = vsel %vm2675_vm7, %v2668_v14, %v2670_v27  ;;  %v2772_v27 = vld.sshfl [vmem:[#allocation1] sm:$0xff pattern:$0x73625140] }
0x140a   : > { %2684 = vrot.lane.b32.xlu0 %v2677_v30, %s4822_s22  ;;  %2682 = vrot.lane.b32.xlu2 %v2676_v29, %s4822_s22 }
0x1410   : > { %v2674_v54 = vpop.permute.xlu1 %2673 }
0x1411   : > { %v2678_v62 = vsel %vm2675_vm7, %v2672_v6, %v2674_v54 }
0x1412   : > { %2686 = vrot.lane.b32.xlu1 %v2678_v62, %s4822_s22  ;;  %2702 = vperm.xlu0 %4696, %v5862_v8  }
0x1413   : > { %2692 = vperm.xlu2 %4695, %v5862_v8  }
0x141a   : > { %2722 = vrot.lane.b32.xlu1 %v2718_v35, %s4905_s14  ;;  %4697 = vset.pattern.permute.xlu0 %v4908_v21  ;;  %v2774_v35 = vld.sshfl [vmem:[#allocation1 + $0x10] sm:$0xff pattern:$0x73625140] }
0x141b   : > { %2724 = vrot.lane.b32.xlu2 %v2719_v59, %s4905_s14  ;;  %2825 = vst [vmem:[#allocation1] ss:$4 sm:$0xff] %v5891_v22 }
0x1422   : > { %2726 = vrot.lane.b32.xlu1 %v2720_v52, %s4905_s14 }
0x1423   : > { %2728 = vrot.lane.b32.xlu2 %v2721_v33, %s4905_s14 }
0x1464   : > { %v6146_v20 = vpop.permute.xlu2 %2682 }
0x1465   : > { %8131 = vst [vmem:[#allocation178_spill] sm:$0xff] %v6146_v20 }
0x146d   : > { %v6148_v13 = vpop.permute.xlu2 %2692 }
0x146e   : > { %8132 = vst [vmem:[#allocation179_spill] sm:$0xff] %v6148_v13 }
0x1475   : > { %v2725_v6 = vpop.permute.xlu2 %2724 }
0x147c   : > { %v6165_v54 = vpop.permute.xlu0 %2684 }
0x147d   : > { %v2729_v33 = vpop.permute.xlu2 %2728 }
0x1484   : > { %v6150_v44 = vpop.permute.xlu1 %2686  ;;  %v6167_v62 = vpop.permute.xlu0 %2702 }
0x1485   : > { %8133 = vst [vmem:[#allocation180_spill] sm:$0xff] %v6150_v44 }
0x1486   : > { %8134 = vst [vmem:[#allocation181_spill] sm:$0xff] %v6167_v62 }
0x148c   : > { %v2723_v52 = vpop.permute.xlu1 %2722 }
0x148d   : > { %v2730_v59 = vsel %vm2675_vm7, %v2723_v52, %v2725_v6 }
0x148e   : > { %2736 = vrot.lane.b32.xlu0 %v2730_v59, %s4823_s28 }
0x1494   : > { %v2727_v14 = vpop.permute.xlu1 %2726 }
0x1495   : > { %v2732_v30 = vsel %vm2675_vm7, %v2727_v14, %v2729_v33  ;;  %v2731_v29 = vsel %vm2675_vm7, %v2725_v6, %v2727_v14  ;;  %v2829_v33 = vld.sshfl [vmem:[#allocation1 + $0x18] sm:$0xff pattern:$0x73625140]  ;;  %v2828_v14 = vld.sshfl [vmem:[#allocation1 + $0x10] sm:$0xff pattern:$0x73625140] }
0x1496   : > { %2738 = vrot.lane.b32.xlu1 %v2731_v29, %s4823_s28  ;;  %2746 = vperm.xlu0 %4697, %v5862_v8  }
0x1497   : > { %2740 = vrot.lane.b32.xlu2 %v2732_v30, %s4823_s28 }
0x149e   : > { %2756 = vperm.xlu1 %4698, %v5862_v8   ;;  %2782 = vrot.lane.b32.xlu0 %v2775_v49, %s4905_s14 }
0x149f   : > { %2776 = vrot.lane.b32.xlu2 %v2772_v27, %s4905_s14  ;;  %v2826_v27 = vld.sshfl [vmem:[#allocation1] sm:$0xff pattern:$0x73625140] }
0x14a6   : > { %2778 = vrot.lane.b32.xlu1 %v2773_v16, %s4905_s14  ;;  %v2827_v16 = vld.sshfl [vmem:[#allocation1 + $0x8] sm:$0xff pattern:$0x73625140] }
0x14a7   : > { %2780 = vrot.lane.b32.xlu2 %v2774_v35, %s4905_s14  ;;  %4699 = vset.pattern.permute.xlu1 %v4910_v24  ;;  %v4911_v35 = vmov 87   ;;  %2895 = vst [vmem:[#allocation1] ss:$4 sm:$0xff] %v5891_v22 }
0x14a8   : > { %4700 = vset.pattern.permute.xlu2 %v4911_v35 }
0x14f1   : > { %v6169_v21 = vpop.permute.xlu2 %2740 }
0x14f2   : > { %8135 = vst [vmem:[#allocation182_spill] sm:$0xff] %v6169_v21 }
0x14f9   : > { %v2777_v52 = vpop.permute.xlu2 %2776 }
0x1500   : > { %v6171_v6 = vpop.permute.xlu0 %2736 }
0x1501   : > { %8136 = vst [vmem:[#allocation183_spill] sm:$0xff] %v6171_v6  ;;  %v2781_v30 = vpop.permute.xlu2 %2780 }
0x1508   : > { %v6173_v59 = vpop.permute.xlu1 %2738  ;;  %v6175_v49 = vpop.permute.xlu0 %2746 }
0x1509   : > { %8137 = vst [vmem:[#allocation184_spill] sm:$0xff] %v6173_v59 }
0x150a   : > { %8138 = vst [vmem:[#allocation185_spill] sm:$0xff] %v6175_v49 }
0x1510   : > { %v6178_v29 = vpop.permute.xlu1 %2756  ;;  %v2783_v18 = vpop.permute.xlu0 %2782 }
0x1511   : > { %8139 = vst [vmem:[#allocation186_spill] sm:$0xff] %v6178_v29  ;;  %v2786_v24 = vsel %vm2675_vm7, %v2781_v30, %v2783_v18  ;;  %v4912_v18 = vmov 88  }
0x1512   : > { %2794 = vrot.lane.b32.xlu0 %v2786_v24, %s4824_s29 }
0x1518   : > { %v2779_v38 = vpop.permute.xlu1 %2778 }
0x1519   : > { %v2784_v9 = vsel %vm2675_vm7, %v2777_v52, %v2779_v38  ;;  %v2785_v12 = vsel %vm2675_vm7, %v2779_v38, %v2781_v30 }
0x151a   : > { %2790 = vrot.lane.b32.xlu1 %v2784_v9, %s4824_s29  ;;  %2830 = vrot.lane.b32.xlu0 %v2826_v27, %s4905_s14  ;;  %v4913_v9 = vmov 89  }
0x151b   : > { %2792 = vrot.lane.b32.xlu2 %v2785_v12, %s4824_s29 }
0x1522   : > { %2800 = vperm.xlu1 %4699, %v5862_v8   ;;  %2836 = vrot.lane.b32.xlu0 %v2829_v33, %s4905_s14 }
0x1523   : > { %2810 = vperm.xlu2 %4700, %v5862_v8  }
0x152a   : > { %2832 = vrot.lane.b32.xlu1 %v2827_v16, %s4905_s14 }
0x152b   : > { %2834 = vrot.lane.b32.xlu2 %v2828_v14, %s4905_s14  ;;  %4701 = vset.pattern.permute.xlu1 %v4912_v18 }
0x152c   : > { %4702 = vset.pattern.permute.xlu2 %v4913_v9 }
0x1575   : > { %v6192_v52 = vpop.permute.xlu2 %2792 }
0x1576   : > { %8140 = vst [vmem:[#allocation187_spill] sm:$0xff] %v6192_v52  ;;  %v2898_v52 = vld.sshfl [vmem:[#allocation1 + $0x10] sm:$0xff pattern:$0x73625140] }
0x157d   : > { %v6196_v27 = vpop.permute.xlu2 %2810 }
0x157e   : > { %8142 = vst [vmem:[#allocation189_spill] sm:$0xff] %v6196_v27  ;;  %v2897_v27 = vld.sshfl [vmem:[#allocation1 + $0x8] sm:$0xff pattern:$0x73625140] }
0x1584   : > { %v6194_v38 = vpop.permute.xlu0 %2794 }
0x1585   : > { %8141 = vst [vmem:[#allocation188_spill] sm:$0xff] %v6194_v38  ;;  %v2835_v33 = vpop.permute.xlu2 %2834 }
0x158c   : > { %v6198_v12 = vpop.permute.xlu1 %2790  ;;  %v2831_v35 = vpop.permute.xlu0 %2830 }
0x158d   : > { %8143 = vst [vmem:[#allocation190_spill] sm:$0xff] %v6198_v12 }
0x1594   : > { %v6200_v30 = vpop.permute.xlu1 %2800  ;;  %v2837_v24 = vpop.permute.xlu0 %2836 }
0x1595   : > { %8144 = vst [vmem:[#allocation191_spill] sm:$0xff] %v6200_v30  ;;  %v2840_v16 = vsel %vm2675_vm7, %v2835_v33, %v2837_v24  ;;  %v2896_v30 = vld.sshfl [vmem:[#allocation1] sm:$0xff pattern:$0x73625140] }
0x1596   : > { %2848 = vrot.lane.b32.xlu0 %v2840_v16, %s4825_s30  ;;  %v2899_v24 = vld.sshfl [vmem:[#allocation1 + $0x18] sm:$0xff pattern:$0x73625140] }
0x1597   : > { %2949 = vst [vmem:[#allocation1] ss:$4 sm:$0xff] %v5891_v22 }
0x159c   : > { %v2833_v14 = vpop.permute.xlu1 %2832 }
0x159d   : > { %v2838_v18 = vsel %vm2675_vm7, %v2831_v35, %v2833_v14  ;;  %v2839_v38 = vsel %vm2675_vm7, %v2833_v14, %v2835_v33 }
0x159e   : > { %2844 = vrot.lane.b32.xlu1 %v2838_v18, %s4825_s30  ;;  %2846 = vrot.lane.b32.xlu2 %v2839_v38, %s4825_s30 }
0x15a6   : > { %2854 = vperm.xlu1 %4701, %v5862_v8   ;;  %2864 = vperm.xlu2 %4702, %v5862_v8  }
0x15f8   : > { %v2847_v9 = vpop.permute.xlu2 %2846 }
0x1600   : > { %v2865_v18 = vpop.permute.xlu2 %2864 }
0x1608   : > { %v2849_v12 = vpop.permute.xlu0 %2848 }
0x1609   : > { %v2850_v35 = vsel %vm520_vm3, %v2847_v9, %v2849_v12 }
0x160a   : > { %v2868_v14 = vperm.slane %v2850_v35, 1  ;;  %v2858_v28 = vperm.slane %v2850_v35, 0 }
0x160c   : > { %v2871_v29 = vmul.f32 %v2868_v14, %v2865_v18  ;;  %v4917_v14 = vmov 93  }
0x1610   : > { %v2845_v16 = vpop.permute.xlu1 %2844 }
0x1611   : > { %v2851_v33 = vsel %vm520_vm3, %v2845_v16, %v2847_v9  ;;  %v2852_v38 = vsel %vm520_vm3, %v2849_v12, %v2845_v16 }
0x1612   : > { %v2867_v8 = vperm.slane %v2851_v33, 1  ;;  %v2869_v43 = vperm.slane %v2852_v38, 1  ;;  %v2857_v34 = vperm.slane %v2851_v33, 0  ;;  %v2859_v49 = vperm.slane %v2852_v38, 0 }
0x1614   : > { %v2870_v21 = vmul.f32 %v2867_v8, %v2865_v18  ;;  %v2872_v59 = vmul.f32 %v2869_v43, %v2865_v18  ;;  %v2953_v43 = vld.sshfl [vmem:[#allocation1 + $0x18] sm:$0xff pattern:$0x73625140] }
0x1618   : > { %v2855_v6 = vpop.permute.xlu1 %2854 }
0x1619   : > { %v2860_v15 = vmul.f32 %v2857_v34, %v2855_v6  ;;  %v2861_v31 = vmul.f32 %v2858_v28, %v2855_v6  ;;  %v2862_v58 = vmul.f32 %v2859_v49, %v2855_v6  ;;  %v4914_v34 = vmov 90  }
0x161a   : > { %4703 = vset.pattern.permute.xlu1 %v4914_v34 }
0x161b   : > { %v2875_v48 = vadd.f32 %v2872_v59, %v2862_v58  ;;  %v2874_v13 = vadd.f32 %v2871_v29, %v2861_v31  ;;  %v2873_v9 = vadd.f32 %v2870_v21, %v2860_v15  ;;  %v2950_v31 = vld.sshfl [vmem:[#allocation1] sm:$0xff pattern:$0x73625140]  ;;  %v4915_v21 = vmov 91  }
0x161c   : > { %4704 = vset.pattern.permute.xlu2 %v4915_v21 }
0x161d   : > { %2883 = vrot.lane.b32.xlu2 %v2875_v48, %s4837_s12  ;;  %2881 = vrot.lane.b32.xlu1 %v2874_v13, %s4837_s12  ;;  %v2951_v48 = vld.sshfl [vmem:[#allocation1 + $0x8] sm:$0xff pattern:$0x73625140]  ;;  %v2952_v13 = vld.sshfl [vmem:[#allocation1 + $0x10] sm:$0xff pattern:$0x73625140] }
0x161e   : > { %2879 = vrot.lane.b32.xlu0 %v2873_v9, %s4837_s12  ;;  %3003 = vst [vmem:[#allocation1] ss:$4 sm:$0xff] %v5891_v22  ;;  %v4916_v22 = vmov 92  }
0x1625   : > { %2902 = vrot.lane.b32.xlu1 %v2897_v27, %s4905_s14  ;;  %2904 = vrot.lane.b32.xlu2 %v2898_v52, %s4905_s14  ;;  %v3004_v21 = vld.sshfl [vmem:[#allocation1] sm:$0xff pattern:$0x73625140] }
0x1626   : > { %2900 = vrot.lane.b32.xlu0 %v2896_v30, %s4905_s14  ;;  %v6237_v30 = vld [vmem:[%s5043_s19] sm:$0xff] }
0x162e   : > { %2906 = vrot.lane.b32.xlu0 %v2899_v24, %s4905_s14 }
0x1677   : > { %v6224_v28 = vpop.permute.xlu2 %2883 }
0x1678   : > { %8145 = vst [vmem:[#allocation192_spill] sm:$0xff] %v6224_v28 }
0x167f   : > { %v2905_v6 = vpop.permute.xlu2 %2904 }
0x168f   : > { %v6226_v58 = vpop.permute.xlu1 %2881 }
0x1690   : > { %8146 = vst [vmem:[#allocation193_spill] sm:$0xff] %v6226_v58  ;;  %v6228_v15 = vpop.permute.xlu0 %2879 }
0x1691   : > { %8147 = vst [vmem:[#allocation194_spill] sm:$0xff] %v6228_v15 }
0x1697   : > { %v2903_v59 = vpop.permute.xlu1 %2902 }
0x1698   : > { %v2901_v49 = vpop.permute.xlu0 %2900  ;;  %v2909_v29 = vsel %vm2675_vm7, %v2903_v59, %v2905_v6 }
0x1699   : > { %v2908_v52 = vsel %vm2675_vm7, %v2901_v49, %v2903_v59  ;;  %2916 = vrot.lane.b32.xlu2 %v2909_v29, %s4826_s7  ;;  %v3007_v59 = vld.sshfl [vmem:[#allocation1 + $0x18] sm:$0xff pattern:$0x73625140]  ;;  %v4918_v49 = vmov 94   ;;  %v4919_v29 = vmov 96  }
0x169a   : > { %2914 = vrot.lane.b32.xlu1 %v2908_v52, %s4826_s7  ;;  %4709 = vset.pattern.permute.xlu0 %v4919_v29 }
0x16a0   : > { %v2907_v27 = vpop.permute.xlu0 %2906 }
0x16a1   : > { %v2910_v12 = vsel %vm2675_vm7, %v2905_v6, %v2907_v27  ;;  %2934 = vperm.xlu2 %4704, %v6237_v30   ;;  %v3006_v6 = vld.sshfl [vmem:[#allocation1 + $0x10] sm:$0xff pattern:$0x73625140] }
0x16a2   : > { %2924 = vperm.xlu1 %4703, %v6237_v30   ;;  %2918 = vrot.lane.b32.xlu0 %v2910_v12, %s4826_s7  ;;  %v4920_v12 = vmov 95  }
0x16a9   : > { %2958 = vrot.lane.b32.xlu2 %v2952_v13, %s4905_s14  ;;  %v3005_v13 = vld.sshfl [vmem:[#allocation1 + $0x8] sm:$0xff pattern:$0x73625140] }
0x16aa   : > { %2956 = vrot.lane.b32.xlu1 %v2951_v48, %s4905_s14  ;;  %2954 = vrot.lane.b32.xlu0 %v2950_v31, %s4905_s14 }
0x16ab   : > { %4705 = vset.pattern.permute.xlu1 %v4916_v22  ;;  %4706 = vset.pattern.permute.xlu2 %v4917_v14 }
0x16b2   : > { %2960 = vrot.lane.b32.xlu0 %v2953_v43, %s4905_s14 }
0x16f3   : > { %v6246_v24 = vpop.permute.xlu2 %2916 }
0x16fb   : > { %v6250_v35 = vpop.permute.xlu2 %2934 }
0x16fc   : > { %8149 = vst [vmem:[#allocation196_spill] sm:$0xff] %v6250_v35 }
0x1703   : > { %v2959_v8 = vpop.permute.xlu2 %2958 }
0x170c   : > { %v6248_v16 = vpop.permute.xlu1 %2914 }
0x170d   : > { %8148 = vst [vmem:[#allocation195_spill] sm:$0xff] %v6248_v16 }
0x1714   : > { %v6252_v33 = vpop.permute.xlu1 %2924  ;;  %v6254_v38 = vpop.permute.xlu0 %2918 }
0x1715   : > { %8150 = vst [vmem:[#allocation197_spill] sm:$0xff] %v6252_v33 }
0x1716   : > { %8151 = vst [vmem:[#allocation198_spill] sm:$0xff] %v6254_v38 }
0x171c   : > { %v2957_v18 = vpop.permute.xlu1 %2956  ;;  %v2955_v9 = vpop.permute.xlu0 %2954 }
0x171d   : > { %v2962_v34 = vsel %vm2675_vm7, %v2955_v9, %v2957_v18  ;;  %v2963_v48 = vsel %vm2675_vm7, %v2957_v18, %v2959_v8 }
0x171e   : > { %2970 = vrot.lane.b32.xlu2 %v2963_v48, %s4829_s8  ;;  %2968 = vrot.lane.b32.xlu1 %v2962_v34, %s4829_s8 }
0x1724   : > { %v2961_v31 = vpop.permute.xlu0 %2960 }
0x1725   : > { %v2964_v43 = vsel %vm2675_vm7, %v2959_v8, %v2961_v31 }
0x1726   : > { %2978 = vperm.xlu1 %4705, %v6237_v30   ;;  %2972 = vrot.lane.b32.xlu0 %v2964_v43, %s4829_s8 }
0x1727   : > { %2988 = vperm.xlu2 %4706, %v6237_v30  }
0x172e   : > { %3010 = vrot.lane.b32.xlu1 %v3005_v13, %s4905_s14  ;;  %3008 = vrot.lane.b32.xlu0 %v3004_v21, %s4905_s14  ;;  %v4921_v21 = vmov 97  }
0x172f   : > { %3012 = vrot.lane.b32.xlu2 %v3006_v6, %s4905_s14  ;;  %4707 = vset.pattern.permute.xlu1 %v4918_v49  ;;  %v6288_v6 = vld [vmem:[#allocation2 + $0x2] sm:$0xff] }
0x1730   : > { %4708 = vset.pattern.permute.xlu2 %v4920_v12  ;;  %3127 = vst [vmem:[#allocation1] ss:$4 sm:$0xff] %v6288_v6  ;;  %v3086_v15 = vperm.slane %v6288_v6, 7 }
0x1736   : > { %3014 = vrot.lane.b32.xlu0 %v3007_v59, %s4905_s14 }
0x1737   : > { %v3130_v49 = vld.sshfl [vmem:[#allocation1 + $0x10] sm:$0xff pattern:$0x73625140]  ;;  %v3128_v29 = vld.sshfl [vmem:[#allocation1] sm:$0xff pattern:$0x73625140] }
0x1738   : > { %v3131_v12 = vld.sshfl [vmem:[#allocation1 + $0x18] sm:$0xff pattern:$0x73625140] }
0x1778   : > { %v6268_v52 = vpop.permute.xlu2 %2970 }
0x1779   : > { %8152 = vst [vmem:[#allocation199_spill] sm:$0xff] %v6268_v52  ;;  %v3065_v52 = vperm.slane %v6288_v6, 4 }
0x177b   : > { %v6326_v38 = vperm.slane %v3065_v52, 0 }
0x177d   : > { %8167 = vst [vmem:[#allocation214_spill] sm:$0xff] %v6326_v38 }
0x1781   : > { %v6272_v22 = vpop.permute.xlu2 %2988 }
0x1782   : > { %8154 = vst [vmem:[#allocation201_spill] sm:$0xff] %v6272_v22  ;;  %v6314_v22 = vperm.slane %v3086_v15, 1 }
0x1784   : > { %8165 = vst [vmem:[#allocation212_spill] sm:$0xff] %v6314_v22 }
0x1789   : > { %v3013_v18 = vpop.permute.xlu2 %3012 }
0x1790   : > { %v6270_v27 = vpop.permute.xlu1 %2968 }
0x1791   : > { %8153 = vst [vmem:[#allocation200_spill] sm:$0xff] %v6270_v27 }
0x1798   : > { %v6274_v14 = vpop.permute.xlu1 %2978  ;;  %v6276_v8 = vpop.permute.xlu0 %2972 }
0x1799   : > { %8155 = vst [vmem:[#allocation202_spill] sm:$0xff] %v6274_v14  ;;  %v3085_v14 = vperm.slane %v6288_v6, 5 }
0x179a   : > { %8156 = vst [vmem:[#allocation203_spill] sm:$0xff] %v6276_v8 }
0x179b   : > { %v6324_v3 = vperm.slane %v3085_v14, 1 }
0x179d   : > { %8166 = vst [vmem:[#allocation213_spill] sm:$0xff] %v6324_v3 }
0x17a0   : > { %v3011_v9 = vpop.permute.xlu1 %3010  ;;  %v3009_v34 = vpop.permute.xlu0 %3008 }
0x17a1   : > { %v3016_v48 = vsel %vm2675_vm7, %v3009_v34, %v3011_v9  ;;  %v3017_v31 = vsel %vm2675_vm7, %v3011_v9, %v3013_v18 }
0x17a2   : > { %3024 = vrot.lane.b32.xlu2 %v3017_v31, %s4830_s9  ;;  %3022 = vrot.lane.b32.xlu1 %v3016_v48, %s4830_s9  ;;  %v3063_v48 = vperm.slane %v6288_v6, 0  ;;  %v3064_v31 = vperm.slane %v6288_v6, 2 }
0x17a4   : > { %v6304_v58 = vperm.slane %v3063_v48, 0  ;;  %v6306_v28 = vperm.slane %v3064_v31, 0 }
0x17a6   : > { %8160 = vst [vmem:[#allocation207_spill] sm:$0xff] %v6304_v58 }
0x17a7   : > { %8161 = vst [vmem:[#allocation208_spill] sm:$0xff] %v6306_v28 }
0x17a8   : > { %v3015_v43 = vpop.permute.xlu0 %3014 }
0x17a9   : > { %v3018_v13 = vsel %vm2675_vm7, %v3013_v18, %v3015_v43  ;;  %v3129_v18 = vld.sshfl [vmem:[#allocation1 + $0x8] sm:$0xff pattern:$0x73625140]  ;;  %v3066_v43 = vperm.slane %v6288_v6, 6  ;;  %vm3115_vm7 = vcmask 916480  }
0x17aa   : > { %3032 = vperm.xlu1 %4707, %v6237_v30   ;;  %3026 = vrot.lane.b32.xlu0 %v3018_v13, %s4830_s9  ;;  %3182 = vst [vmem:[#allocation1] ss:$4 sm:$0xff] %v6288_v6  ;;  %v3083_v13 = vperm.slane %v6288_v6, 1 }
0x17ab   : > { %3042 = vperm.xlu2 %4708, %v6237_v30  }
0x17b2   : > { %4710 = vset.pattern.permute.xlu1 %v4921_v21  ;;  %3059 = vperm.xlu0 %4709, %v6237_v30   ;;  %v3084_v21 = vperm.slane %v6288_v6, 3 }
0x17b3   : > { %3080 = vperm.xlu1 %4710, %v6237_v30  }
0x1814   : > { %v6291_v59 = vpop.permute.xlu1 %3022 }
0x1815   : > { %8157 = vst [vmem:[#allocation204_spill] sm:$0xff] %v6291_v59  ;;  %v6308_v59 = vperm.slane %v3066_v43, 0 }
0x1817   : > { %8162 = vst [vmem:[#allocation209_spill] sm:$0xff] %v6308_v59 }
0x181c   : > { %v6294_v9 = vpop.permute.xlu1 %3032  ;;  %v6296_v34 = vpop.permute.xlu0 %3026 }
0x181d   : > { %8158 = vst [vmem:[#allocation205_spill] sm:$0xff] %v6294_v9  ;;  %v6310_v9 = vperm.slane %v3083_v13, 1 }
0x181e   : > { %8159 = vst [vmem:[#allocation206_spill] sm:$0xff] %v6296_v34  ;;  %v6312_v34 = vperm.slane %v3084_v21, 1 }
0x181f   : > { %8163 = vst [vmem:[#allocation210_spill] sm:$0xff] %v6310_v9 }
0x1820   : > { %8164 = vst [vmem:[#allocation211_spill] sm:$0xff] %v6312_v34 }
0x1824   : > { %v3060_v8 = vpop.permute.xlu0 %3059 }
0x1825   : > { %v3081_v27 = vpop.permute.xlu1 %3080  ;;  %v3075_v35 = vmul.f32 %v6304_v58, %v3060_v8  ;;  %v3076_v48 = vmul.f32 %v6306_v28, %v3060_v8  ;;  %v3078_v31 = vmul.f32 %v6308_v59, %v3060_v8  ;;  %v3077_v59 = vmul.f32 %v6326_v38, %v3060_v8  ;;  %v3183_v8 = vld.sshfl [vmem:[#allocation1] sm:$0xff pattern:$0x73625140] }
0x1826   : > { %v3095_v43 = vmul.f32 %v6310_v9, %v3081_v27  ;;  %v3096_v13 = vmul.f32 %v6312_v34, %v3081_v27  ;;  %v3098_v21 = vmul.f32 %v6314_v22, %v3081_v27  ;;  %v3097_v28 = vmul.f32 %v6324_v3, %v3081_v27 }
0x1827   : > { %v4929_v22 = vmov 103  }
0x1828   : > { %v3102_v15 = vadd.f32 %v3098_v21, %v3078_v31  ;;  %v3100_v33 = vadd.f32 %v3096_v13, %v3076_v48  ;;  %v3099_v62 = vadd.f32 %v3095_v43, %v3075_v35  ;;  %v3101_v9 = vadd.f32 %v3097_v28, %v3077_v59  ;;  %v6334_v35 = vpop.permute.xlu2 %3024  ;;  %v3185_v59 = vld.sshfl [vmem:[#allocation1 + $0x10] sm:$0xff pattern:$0x73625140] }
0x1829   : > { %8168 = vst [vmem:[#allocation215_spill] sm:$0xff] %v6334_v35 }
0x182a   : > { %3113 = vrot.lane.b32.xlu0 %v3102_v15, %s4922_s17  ;;  %3109 = vrot.lane.b32.xlu1 %v3100_v33, %s4922_s17  ;;  %v4926_v15 = vmov 100  }
0x182b   : > { %3107 = vrot.lane.b32.xlu2 %v3099_v62, %s4922_s17  ;;  %v4924_v62 = vmov 99  }
0x182c   : > { %4712 = vset.pattern.permute.xlu0 %v4924_v62 }
0x1830   : > { %v6336_v52 = vpop.permute.xlu2 %3042 }
0x1831   : > { %8169 = vst [vmem:[#allocation216_spill] sm:$0xff] %v6336_v52 }
0x1832   : > { %3136 = vrot.lane.b32.xlu0 %v3130_v49, %s4923_s18  ;;  %3132 = vrot.lane.b32.xlu1 %v3128_v29, %s4923_s18  ;;  %v4925_v49 = vmov 98   ;;  %v3184_v29 = vld.sshfl [vmem:[#allocation1 + $0x8] sm:$0xff pattern:$0x73625140] }
0x1833   : > { %3111 = vrot.lane.b32.xlu2 %v3101_v9, %s4922_s17 }
0x1834   : > { %4711 = vset.pattern.permute.xlu2 %v4925_v49  ;;  %v4927_v49 = vmov 101  }
0x1835   : > { %4714 = vset.pattern.permute.xlu1 %v4927_v49 }
0x183a   : > { %3138 = vrot.lane.b32.xlu1 %v3131_v12, %s4923_s18  ;;  %v3186_v12 = vld.sshfl [vmem:[#allocation1 + $0x18] sm:$0xff pattern:$0x73625140] }
0x183b   : > { %3134 = vrot.lane.b32.xlu2 %v3129_v18, %s4923_s18  ;;  %3236 = vst [vmem:[#allocation1] ss:$4 sm:$0xff] %v6288_v6 }
0x1885   : > { %v6338_v33 = vpop.permute.xlu2 %3107 }
0x1886   : > { %8170 = vst [vmem:[#allocation217_spill] sm:$0xff] %v6338_v33 }
0x188d   : > { %v6340_v27 = vpop.permute.xlu2 %3111 }
0x188e   : > { %8171 = vst [vmem:[#allocation218_spill] sm:$0xff] %v6340_v27 }
0x1895   : > { %v3135_v18 = vpop.permute.xlu2 %3134 }
0x189c   : > { %v6342_v28 = vpop.permute.xlu0 %3113  ;;  %v6344_v14 = vpop.permute.xlu1 %3109 }
0x189d   : > { %8172 = vst [vmem:[#allocation219_spill] sm:$0xff] %v6342_v28 }
0x189e   : > { %8173 = vst [vmem:[#allocation220_spill] sm:$0xff] %v6344_v14 }
0x18a4   : > { %v3137_v9 = vpop.permute.xlu0 %3136  ;;  %v3133_v48 = vpop.permute.xlu1 %3132 }
0x18a5   : > { %v3142_v31 = vsel %vm3140_vm8, %v3135_v18, %v3137_v9  ;;  %v3141_v43 = vsel %vm3140_vm8, %v3133_v48, %v3135_v18  ;;  %v3240_v48 = vld.sshfl [vmem:[#allocation1 + $0x18] sm:$0xff pattern:$0x73625140] }
0x18a6   : > { %3149 = vrot.lane.b32.xlu0 %v3142_v31, %s4822_s22  ;;  %3147 = vrot.lane.b32.xlu2 %v3141_v43, %s4822_s22  ;;  %v3238_v31 = vld.sshfl [vmem:[#allocation1 + $0x8] sm:$0xff pattern:$0x73625140]  ;;  %v3237_v43 = vld.sshfl [vmem:[#allocation1] sm:$0xff pattern:$0x73625140] }
0x18ac   : > { %v3139_v13 = vpop.permute.xlu1 %3138 }
0x18ad   : > { %v3143_v21 = vsel %vm3140_vm8, %v3137_v9, %v3139_v13 }
0x18ae   : > { %3151 = vrot.lane.b32.xlu1 %v3143_v21, %s4822_s22  ;;  %3167 = vperm.xlu0 %4712, %v6237_v30  }
0x18af   : > { %3157 = vperm.xlu2 %4711, %v6237_v30  }
0x18b6   : > { %3187 = vrot.lane.b32.xlu1 %v3183_v8, %s4923_s18  ;;  %4713 = vset.pattern.permute.xlu0 %v4926_v15  ;;  %v3239_v8 = vld.sshfl [vmem:[#allocation1 + $0x10] sm:$0xff pattern:$0x73625140] }
0x18b7   : > { %3189 = vrot.lane.b32.xlu2 %v3184_v29, %s4923_s18  ;;  %3290 = vst [vmem:[#allocation1] ss:$4 sm:$0xff] %v6288_v6 }
0x18b8   : > { %4716 = vset.pattern.permute.xlu2 %v4929_v22 }
0x18be   : > { %3191 = vrot.lane.b32.xlu1 %v3185_v59, %s4923_s18  ;;  %v3294_v14 = vld.sshfl [vmem:[#allocation1 + $0x18] sm:$0xff pattern:$0x73625140]  ;;  %v3292_v28 = vld.sshfl [vmem:[#allocation1 + $0x8] sm:$0xff pattern:$0x73625140] }
0x18bf   : > { %3193 = vrot.lane.b32.xlu2 %v3186_v12, %s4923_s18  ;;  %v3293_v38 = vld.sshfl [vmem:[#allocation1 + $0x10] sm:$0xff pattern:$0x73625140] }
0x1900   : > { %v6359_v62 = vpop.permute.xlu2 %3147 }
0x1901   : > { %8174 = vst [vmem:[#allocation221_spill] sm:$0xff] %v6359_v62 }
0x1909   : > { %v6361_v18 = vpop.permute.xlu2 %3157 }
0x190a   : > { %8175 = vst [vmem:[#allocation222_spill] sm:$0xff] %v6361_v18 }
0x1911   : > { %v3190_v13 = vpop.permute.xlu2 %3189 }
0x1919   : > { %v3194_v12 = vpop.permute.xlu2 %3193 }
0x1920   : > { %v6363_v9 = vpop.permute.xlu1 %3151 }
0x1921   : > { %8176 = vst [vmem:[#allocation223_spill] sm:$0xff] %v6363_v9 }
0x1928   : > { %v3188_v59 = vpop.permute.xlu1 %3187 }
0x1929   : > { %v3195_v29 = vsel %vm3140_vm8, %v3188_v59, %v3190_v13  ;;  %v6378_v59 = vpop.permute.xlu0 %3149 }
0x192a   : > { %3201 = vrot.lane.b32.xlu0 %v3195_v29, %s4823_s28  ;;  %8177 = vst [vmem:[#allocation224_spill] sm:$0xff] %v6378_v59 }
0x1930   : > { %v3192_v21 = vpop.permute.xlu1 %3191 }
0x1931   : > { %v3197_v15 = vsel %vm3140_vm8, %v3192_v21, %v3194_v12  ;;  %v3196_v49 = vsel %vm3140_vm8, %v3190_v13, %v3192_v21  ;;  %v6380_v29 = vpop.permute.xlu0 %3167  ;;  %v4928_v12 = vmov 102  }
0x1932   : > { %3203 = vrot.lane.b32.xlu1 %v3196_v49, %s4823_s28  ;;  %3211 = vperm.xlu0 %4713, %v6237_v30   ;;  %8178 = vst [vmem:[#allocation225_spill] sm:$0xff] %v6380_v29 }
0x1933   : > { %3205 = vrot.lane.b32.xlu2 %v3197_v15, %s4823_s28 }
0x193a   : > { %3221 = vperm.xlu1 %4714, %v6237_v30   ;;  %3247 = vrot.lane.b32.xlu0 %v3240_v48, %s4923_s18 }
0x193b   : > { %3241 = vrot.lane.b32.xlu2 %v3237_v43, %s4923_s18 }
0x1942   : > { %3243 = vrot.lane.b32.xlu1 %v3238_v31, %s4923_s18 }
0x1943   : > { %3245 = vrot.lane.b32.xlu2 %v3239_v8, %s4923_s18  ;;  %4715 = vset.pattern.permute.xlu1 %v4928_v12  ;;  %v3291_v12 = vld.sshfl [vmem:[#allocation1] sm:$0xff pattern:$0x73625140] }
0x1944   : > { %3360 = vst [vmem:[#allocation1] ss:$4 sm:$0xff] %v6288_v6 }
0x198d   : > { %v6382_v13 = vpop.permute.xlu2 %3205 }
0x198e   : > { %8179 = vst [vmem:[#allocation226_spill] sm:$0xff] %v6382_v13 }
0x1995   : > { %v3242_v43 = vpop.permute.xlu2 %3241 }
0x199c   : > { %v3202_v21 = vpop.permute.xlu0 %3201 }
0x199d   : > { %v3209_v48 = vsel %vm416_vm9, %v6382_v13, %v3202_v21  ;;  %v3246_v34 = vpop.permute.xlu2 %3245 }
0x199e   : > { %v3216_v15 = vperm.slane %v3209_v48, 0  ;;  %v3226_v58 = vperm.slane %v3209_v48, 1 }
0x19a4   : > { %v6388_v31 = vpop.permute.xlu1 %3203  ;;  %v6390_v8 = vpop.permute.xlu0 %3211 }
0x19a5   : > { %8180 = vst [vmem:[#allocation227_spill] sm:$0xff] %v6388_v31  ;;  %v3208_v49 = vsel %vm416_vm9, %v3202_v21, %v6388_v31  ;;  %v3219_v33 = vmul.f32 %v3216_v15, %v6390_v8 }
0x19a6   : > { %8181 = vst [vmem:[#allocation228_spill] sm:$0xff] %v6390_v8  ;;  %v3214_v27 = vperm.slane %v3208_v49, 0  ;;  %v3224_v52 = vperm.slane %v3208_v49, 1 }
0x19a8   : > { %v3217_v3 = vmul.f32 %v3214_v27, %v6390_v8 }
0x19ac   : > { %v6398_v35 = vpop.permute.xlu1 %3221  ;;  %v3248_v13 = vpop.permute.xlu0 %3247 }
0x19ad   : > { %8182 = vst [vmem:[#allocation229_spill] sm:$0xff] %v6398_v35  ;;  %v3227_v21 = vmul.f32 %v3224_v52, %v6398_v35  ;;  %v3229_v15 = vmul.f32 %v3226_v58, %v6398_v35  ;;  %v3251_v31 = vsel %vm3140_vm8, %v3246_v34, %v3248_v13  ;;  %v4930_v58 = vmov 104  }
0x19ae   : > { %3259 = vrot.lane.b32.xlu0 %v3251_v31, %s4824_s29 }
0x19af   : > { %v6404_v18 = vadd.f32 %v3227_v21, %v3217_v3  ;;  %v6406_v27 = vadd.f32 %v3229_v15, %v3219_v33 }
0x19b1   : > { %8183 = vst [vmem:[#allocation230_spill] sm:$0xff] %v6404_v18 }
0x19b2   : > { %8184 = vst [vmem:[#allocation231_spill] sm:$0xff] %v6406_v27 }
0x19b4   : > { %v3244_v22 = vpop.permute.xlu1 %3243 }
0x19b5   : > { %v3249_v8 = vsel %vm3140_vm8, %v3242_v43, %v3244_v22  ;;  %v3250_v48 = vsel %vm3140_vm8, %v3244_v22, %v3246_v34  ;;  %v4931_v43 = vmov 105  }
0x19b6   : > { %3255 = vrot.lane.b32.xlu1 %v3249_v8, %s4824_s29  ;;  %3295 = vrot.lane.b32.xlu0 %v3291_v12, %s4923_s18 }
0x19b7   : > { %3257 = vrot.lane.b32.xlu2 %v3250_v48, %s4824_s29 }
0x19be   : > { %3265 = vperm.xlu1 %4715, %v6237_v30   ;;  %3301 = vrot.lane.b32.xlu0 %v3294_v14, %s4923_s18 }
0x19bf   : > { %3275 = vperm.xlu2 %4716, %v6237_v30  }
0x19c6   : > { %3297 = vrot.lane.b32.xlu1 %v3292_v28, %s4923_s18 }
0x19c7   : > { %3299 = vrot.lane.b32.xlu2 %v3293_v38, %s4923_s18  ;;  %4717 = vset.pattern.permute.xlu1 %v4930_v58 }
0x19c8   : > { %4718 = vset.pattern.permute.xlu2 %v4931_v43 }
0x1a11   : > { %v3258_v3 = vpop.permute.xlu2 %3257 }
0x1a19   : > { %v3276_v33 = vpop.permute.xlu2 %3275 }
0x1a20   : > { %v3260_v34 = vpop.permute.xlu0 %3259 }
0x1a21   : > { %v3261_v52 = vsel %vm468_vm10, %v3258_v3, %v3260_v34  ;;  %v3300_v15 = vpop.permute.xlu2 %3299 }
0x1a22   : > { %v3279_v13 = vperm.slane %v3261_v52, 1  ;;  %v3269_v22 = vperm.slane %v3261_v52, 0 }
0x1a24   : > { %v3282_v14 = vmul.f32 %v3279_v13, %v3276_v33 }
0x1a28   : > { %v3256_v31 = vpop.permute.xlu1 %3255  ;;  %v3296_v8 = vpop.permute.xlu0 %3295 }
0x1a29   : > { %v3262_v28 = vsel %vm468_vm10, %v3256_v31, %v3258_v3  ;;  %v3263_v38 = vsel %vm468_vm10, %v3260_v34, %v3256_v31 }
0x1a2a   : > { %v3280_v49 = vperm.slane %v3263_v38, 1  ;;  %v3278_v12 = vperm.slane %v3262_v28, 1  ;;  %v3268_v48 = vperm.slane %v3262_v28, 0  ;;  %v3270_v58 = vperm.slane %v3263_v38, 0 }
0x1a2c   : > { %v3283_v21 = vmul.f32 %v3280_v49, %v3276_v33  ;;  %v3281_v27 = vmul.f32 %v3278_v12, %v3276_v33 }
0x1a30   : > { %v3266_v18 = vpop.permute.xlu1 %3265  ;;  %v3302_v35 = vpop.permute.xlu0 %3301 }
0x1a31   : > { %v3271_v43 = vmul.f32 %v3268_v48, %v3266_v18  ;;  %v3272_v13 = vmul.f32 %v3269_v22, %v3266_v18  ;;  %v3273_v29 = vmul.f32 %v3270_v58, %v3266_v18  ;;  %v3305_v9 = vsel %vm3140_vm8, %v3300_v15, %v3302_v35  ;;  %v3362_v18 = vld.sshfl [vmem:[#allocation1 + $0x8] sm:$0xff pattern:$0x73625140] }
0x1a32   : > { %3313 = vrot.lane.b32.xlu0 %v3305_v9, %s4825_s30  ;;  %v3361_v9 = vld.sshfl [vmem:[#allocation1] sm:$0xff pattern:$0x73625140] }
0x1a33   : > { %v6427_v3 = vadd.f32 %v3281_v27, %v3271_v43  ;;  %v6429_v34 = vadd.f32 %v3282_v14, %v3272_v13  ;;  %v6431_v31 = vadd.f32 %v3283_v21, %v3273_v29  ;;  %v3364_v14 = vld.sshfl [vmem:[#allocation1 + $0x18] sm:$0xff pattern:$0x73625140]  ;;  %v3363_v29 = vld.sshfl [vmem:[#allocation1 + $0x10] sm:$0xff pattern:$0x73625140] }
0x1a34   : > { %3414 = vst [vmem:[#allocation1] ss:$4 sm:$0xff] %v6288_v6 }
0x1a35   : > { %8185 = vst [vmem:[#allocation232_spill] sm:$0xff] %v6427_v3 }
0x1a36   : > { %8186 = vst [vmem:[#allocation233_spill] sm:$0xff] %v6429_v34 }
0x1a37   : > { %8187 = vst [vmem:[#allocation234_spill] sm:$0xff] %v6431_v31 }
0x1a38   : > { %v3298_v49 = vpop.permute.xlu1 %3297 }
0x1a39   : > { %v3303_v52 = vsel %vm3140_vm8, %v3296_v8, %v3298_v49  ;;  %v3304_v33 = vsel %vm3140_vm8, %v3298_v49, %v3300_v15 }
0x1a3a   : > { %3309 = vrot.lane.b32.xlu1 %v3303_v52, %s4825_s30  ;;  %3311 = vrot.lane.b32.xlu2 %v3304_v33, %s4825_s30 }
0x1a42   : > { %3319 = vperm.xlu1 %4717, %v6237_v30   ;;  %3329 = vperm.xlu2 %4718, %v6237_v30  }
0x1a94   : > { %v3312_v35 = vpop.permute.xlu2 %3311 }
0x1a9c   : > { %v3330_v22 = vpop.permute.xlu2 %3329 }
0x1aa4   : > { %v3314_v27 = vpop.permute.xlu0 %3313 }
0x1aa5   : > { %v3315_v8 = vsel %vm520_vm3, %v3312_v35, %v3314_v27 }
0x1aa6   : > { %v3333_v21 = vperm.slane %v3315_v8, 1  ;;  %v3323_v58 = vperm.slane %v3315_v8, 0 }
0x1aa8   : > { %v3336_v49 = vmul.f32 %v3333_v21, %v3330_v22 }
0x1aac   : > { %v3310_v28 = vpop.permute.xlu1 %3309 }
0x1aad   : > { %v3316_v38 = vsel %vm520_vm3, %v3310_v28, %v3312_v35  ;;  %v3317_v12 = vsel %vm520_vm3, %v3314_v27, %v3310_v28  ;;  %v4932_v27 = vmov 106  }
0x1aae   : > { %v3332_v15 = vperm.slane %v3316_v38, 1  ;;  %v3334_v48 = vperm.slane %v3317_v12, 1  ;;  %v3322_v43 = vperm.slane %v3316_v38, 0  ;;  %v3324_v13 = vperm.slane %v3317_v12, 0  ;;  %4719 = vset.pattern.permute.xlu1 %v4932_v27 }
0x1ab0   : > { %v3335_v52 = vmul.f32 %v3332_v15, %v3330_v22  ;;  %v3337_v31 = vmul.f32 %v3334_v48, %v3330_v22  ;;  %v593_v48 = vsel %vm592_vm12, %v5286_v53, %v5199_v19 }
0x1ab4   : > { %v3320_v33 = vpop.permute.xlu1 %3319 }
0x1ab5   : > { %v3325_v34 = vmul.f32 %v3322_v43, %v3320_v33  ;;  %v3326_v3 = vmul.f32 %v3323_v58, %v3320_v33  ;;  %v3327_v62 = vmul.f32 %v3324_v13, %v3320_v33  ;;  %v365_v58 = vsel %vm364_vm13, %v5278_v4, %v5181_v1 }
0x1ab6   : > { %v366_v43 = vsel %vm364_vm13, %v5183_v7, %v5278_v4  ;;  %v601_v13 = vperm.slane %v593_v48, 0  ;;  %v383_v27 = vperm.slane %v365_v58, 1 }
0x1ab7   : > { %v3338_v59 = vadd.f32 %v3335_v52, %v3325_v34  ;;  %v3339_v16 = vadd.f32 %v3336_v49, %v3326_v3  ;;  %v3340_v35 = vadd.f32 %v3337_v31, %v3327_v62  ;;  %v3415_v31 = vld.sshfl [vmem:[#allocation1] sm:$0xff pattern:$0x73625140]  ;;  %v611_v49 = vperm.slane %v593_v48, 1 }
0x1ab8   : > { %v604_v4 = vmul.f32 %v601_v13, %v5159_v42  ;;  %v1060_v13 = vsel %vm592_vm12, %v5443_v10, %v5451_v46 }
0x1ab9   : > { %3348 = vrot.lane.b32.xlu2 %v3340_v35, %s4837_s12  ;;  %3346 = vrot.lane.b32.xlu1 %v3339_v16, %s4837_s12  ;;  %v373_v35 = vperm.slane %v365_v58, 0 }
0x1aba   : > { %3344 = vrot.lane.b32.xlu0 %v3338_v59, %s4837_s12  ;;  %v3416_v59 = vld.sshfl [vmem:[#allocation1 + $0x8] sm:$0xff pattern:$0x73625140] }
0x1ac1   : > { %3367 = vrot.lane.b32.xlu1 %v3362_v18, %s4923_s18  ;;  %3369 = vrot.lane.b32.xlu2 %v3363_v29, %s4923_s18  ;;  %v3418_v18 = vld.sshfl [vmem:[#allocation1 + $0x18] sm:$0xff pattern:$0x73625140] }
0x1ac2   : > { %3365 = vrot.lane.b32.xlu0 %v3361_v9, %s4923_s18  ;;  %v3417_v9 = vld.sshfl [vmem:[#allocation1 + $0x10] sm:$0xff pattern:$0x73625140] }
0x1ac3   : > { %3468 = vst [vmem:[#allocation1] ss:$4 sm:$0xff] %v6288_v6 }
0x1aca   : > { %3371 = vrot.lane.b32.xlu0 %v3364_v14, %s4923_s18  ;;  %v4933_v14 = vmov 107  }
0x1acb   : > { %4720 = vset.pattern.permute.xlu2 %v4933_v14 }
0x1b13   : > { %v6453_v28 = vpop.permute.xlu2 %3348 }
0x1b1b   : > { %v3370_v29 = vpop.permute.xlu2 %3369 }
0x1b2b   : > { %v3347_v62 = vpop.permute.xlu1 %3346 }
0x1b2c   : > { %v6457_v3 = vsel %vm556_vm11, %v3347_v62, %v6453_v28  ;;  %v6459_v16 = vpop.permute.xlu0 %3344 }
0x1b2d   : > { %v6463_v34 = vsel %vm556_vm11, %v6459_v16, %v3347_v62  ;;  %v828_v62 = vsel %vm364_vm13, %v5348_v25, %v5320_v47 }
0x1b33   : > { %v3368_v8 = vpop.permute.xlu1 %3367 }
0x1b34   : > { %v3374_v38 = vsel %vm3140_vm8, %v3368_v8, %v3370_v29  ;;  %v3366_v12 = vpop.permute.xlu0 %3365 }
0x1b35   : > { %v3373_v21 = vsel %vm3140_vm8, %v3366_v12, %v3368_v8  ;;  %3381 = vrot.lane.b32.xlu2 %v3374_v38, %s4826_s7  ;;  %v836_v38 = vperm.slane %v828_v62, 0  ;;  %v846_v12 = vperm.slane %v828_v62, 1 }
0x1b36   : > { %3379 = vrot.lane.b32.xlu1 %v3373_v21, %s4826_s7  ;;  %v376_v21 = vmul.f32 %v373_v35, %v5121_v61  ;;  %v1293_v35 = vsel %vm364_vm13, %v5584_v32, %v5569_v11 }
0x1b3c   : > { %v3372_v15 = vpop.permute.xlu0 %3371 }
0x1b3d   : > { %v3375_v22 = vsel %vm3140_vm8, %v3370_v29, %v3372_v15  ;;  %3399 = vperm.xlu2 %4720, %v6237_v30   ;;  %v386_v15 = vmul.f32 %v383_v27, %v5107_v51 }
0x1b3e   : > { %3389 = vperm.xlu1 %4719, %v6237_v30   ;;  %3383 = vrot.lane.b32.xlu0 %v3375_v22, %s4826_s7  ;;  %v594_v30 = vsel %vm592_vm12, %v5202_v26, %v5286_v53  ;;  %v829_v53 = vsel %vm364_vm13, %v5316_v63, %v5348_v25 }
0x1b3f   : > { %v600_v52 = vperm.slane %v594_v30, 0  ;;  %v610_v33 = vperm.slane %v594_v30, 1  ;;  %v835_v29 = vperm.slane %v829_v53, 0  ;;  %v845_v8 = vperm.slane %v829_v53, 1 }
0x1b40   : > { %v1061_v30 = vsel %vm592_vm12, %v5447_v0, %v5443_v10  ;;  %v389_v27 = vadd.f32 %v386_v15, %v376_v21  ;;  %v1294_v10 = vsel %vm364_vm13, %v5565_v17, %v5584_v32 }
0x1b41   : > { %v613_v14 = vmul.f32 %v610_v33, %v5152_v36  ;;  %v848_v48 = vmul.f32 %v845_v8, %v5350_v41  ;;  %v849_v33 = vmul.f32 %v846_v12, %v5350_v41  ;;  %v1067_v53 = vperm.slane %v1061_v30, 0 }
0x1b42   : > { %v1077_v62 = vperm.slane %v1061_v30, 1  ;;  %v1311_v12 = vperm.slane %v1293_v35, 1  ;;  %v1300_v30 = vperm.slane %v1294_v10, 0 }
0x1b44   : > { %v1080_v21 = vmul.f32 %v1077_v62, %v5455_v60 }
0x1b45   : > { %3423 = vrot.lane.b32.xlu2 %v3417_v9, %s4923_s18  ;;  %v603_v9 = vmul.f32 %v600_v52, %v5159_v42  ;;  %v839_v52 = vmul.f32 %v836_v38, %v5318_v45 }
0x1b46   : > { %3421 = vrot.lane.b32.xlu1 %v3416_v59, %s4923_s18  ;;  %3419 = vrot.lane.b32.xlu0 %v3415_v31, %s4923_s18  ;;  %v372_v59 = vperm.slane %v366_v43, 0  ;;  %v382_v31 = vperm.slane %v366_v43, 1 }
0x1b47   : > { %v616_v43 = vadd.f32 %v613_v14, %v603_v9  ;;  %v1070_v9 = vmul.f32 %v1067_v53, %v5457_v56  ;;  %v1301_v14 = vperm.slane %v1293_v35, 0  ;;  %v852_v38 = vadd.f32 %v849_v33, %v839_v52  ;;  %v8189_v33 = vld [vmem:[#allocation110_spill] sm:$0xff]  ;;  %v8190_v35 = vld [vmem:[#allocation107_spill] sm:$0xff] }
0x1b48   : > { %v375_v25 = vmul.f32 %v372_v59, %v5121_v61  ;;  %v385_v22 = vmul.f32 %v382_v31, %v5107_v51  ;;  %v8205_v51 = vld [vmem:[#allocation145_spill] sm:$0xff] }
0x1b4a   : > { %v388_v59 = vadd.f32 %v385_v22, %v375_v25  ;;  %v1310_v25 = vperm.slane %v1294_v10, 1  ;;  %v1526_v22 = vsel %vm592_vm12, %v5664_v50, %v5662_v5 }
0x1b4b   : > { %v1532_v62 = vperm.slane %v1526_v22, 0 }
0x1b4c   : > { %v619_v8 = vadd.f32 %v616_v43, %v388_v59  ;;  %v1083_v43 = vadd.f32 %v1080_v21, %v1070_v9  ;;  %v1542_v59 = vperm.slane %v1526_v22, 1 }
0x1b4e   : > { %3425 = vrot.lane.b32.xlu0 %v3418_v18, %s4923_s18  ;;  %v614_v18 = vmul.f32 %v611_v49, %v5152_v36  ;;  %v838_v49 = vmul.f32 %v835_v29, %v5318_v45 }
0x1b50   : > { %v617_v58 = vadd.f32 %v614_v18, %v604_v4  ;;  %v851_v31 = vadd.f32 %v848_v48, %v838_v49  ;;  %v1078_v4 = vperm.slane %v1060_v13, 1  ;;  %v1068_v18 = vperm.slane %v1060_v13, 0  ;;  %v8188_v49 = vld [vmem:[#allocation75_spill] sm:$0xff] }
0x1b51   : > { %v1304_v13 = vmul.f32 %v1301_v14, %v5567_v40  ;;  %v1313_v52 = vmul.f32 %v1310_v25, %v8188_v49  ;;  %v1314_v53 = vmul.f32 %v1311_v12, %v8188_v49  ;;  %v1303_v14 = vmul.f32 %v1300_v30, %v5567_v40  ;;  %v8193_v12 = vld [vmem:[#allocation125_spill] sm:$0xff]  ;;  %v8194_v49 = vld [vmem:[#allocation126_spill] sm:$0xff]  ;;  %v8198_v40 = vld [vmem:[#allocation147_spill] sm:$0xff] }
0x1b52   : > { %v620_v29 = vadd.f32 %v617_v58, %v389_v27  ;;  %v1071_v15 = vmul.f32 %v1068_v18, %v5457_v56  ;;  %v854_v48 = vadd.f32 %v851_v31, %v619_v8  ;;  %v1081_v32 = vmul.f32 %v1078_v4, %v5455_v60  ;;  %v8191_v31 = vld [vmem:[#allocation109_spill] sm:$0xff]  ;;  %v8192_v8 = vld [vmem:[#allocation91_spill] sm:$0xff]  ;;  %v8196_v30 = vld [vmem:[#allocation90_spill] sm:$0xff] }
0x1b53   : > { %v1525_v58 = vsel %vm592_vm12, %v5662_v5, %v5670_v37  ;;  %v1759_v27 = vsel %vm364_vm13, %v8190_v35, %v8189_v33  ;;  %v1758_v4 = vsel %vm364_vm13, %v8189_v33, %v8191_v31  ;;  %v1535_v21 = vmul.f32 %v1532_v62, %v8192_v8  ;;  %v8195_v37 = vld [vmem:[#allocation129_spill] sm:$0xff]  ;;  %v8197_v62 = vld [vmem:[#allocation111_spill] sm:$0xff]  ;;  %v8199_v31 = vld [vmem:[#allocation144_spill] sm:$0xff] }
0x1b54   : > { %v855_v5 = vadd.f32 %v852_v38, %v620_v29  ;;  %v1084_v10 = vadd.f32 %v1081_v32, %v1071_v15  ;;  %v1533_v18 = vperm.slane %v1525_v58, 0  ;;  %v1543_v9 = vperm.slane %v1525_v58, 1 }
0x1b55   : > { %v1765_v25 = vperm.slane %v1759_v27, 0  ;;  %v1775_v60 = vperm.slane %v1759_v27, 1  ;;  %v1766_v56 = vperm.slane %v1758_v4, 0  ;;  %v1776_v35 = vperm.slane %v1758_v4, 1 }
0x1b56   : > { %v1991_v22 = vsel %vm592_vm12, %v8194_v49, %v8193_v12  ;;  %v1990_v29 = vsel %vm592_vm12, %v8193_v12, %v8195_v37  ;;  %v1086_v38 = vadd.f32 %v1083_v43, %v854_v48  ;;  %v1316_v15 = vadd.f32 %v1313_v52, %v1303_v14  ;;  %v8200_v43 = vld [vmem:[#allocation108_spill] sm:$0xff]  ;;  %v8202_v14 = vld [vmem:[#allocation146_spill] sm:$0xff] }
0x1b57   : > { %v1317_v32 = vadd.f32 %v1314_v53, %v1304_v13  ;;  %v1545_v58 = vmul.f32 %v1542_v59, %v8196_v30  ;;  %v1536_v33 = vmul.f32 %v1533_v18, %v8192_v8  ;;  %v1546_v27 = vmul.f32 %v1543_v9, %v8196_v30  ;;  %v8201_v59 = vld [vmem:[#allocation128_spill] sm:$0xff] }
0x1b58   : > { %v1778_v4 = vmul.f32 %v1775_v60, %v8197_v62  ;;  %v2224_v49 = vsel %vm364_vm13, %v8199_v31, %v8198_v40  ;;  %v1997_v50 = vperm.slane %v1991_v22, 0  ;;  %v2007_v41 = vperm.slane %v1991_v22, 1 }
0x1b59   : > { %v1998_v45 = vperm.slane %v1990_v29, 0  ;;  %v2008_v12 = vperm.slane %v1990_v29, 1  ;;  %v1548_v48 = vadd.f32 %v1545_v58, %v1535_v21  ;;  %v1768_v13 = vmul.f32 %v1765_v25, %v8200_v43  ;;  %v8203_v21 = vld [vmem:[#allocation127_spill] sm:$0xff] }
0x1b5a   : > { %v1769_v52 = vmul.f32 %v1766_v56, %v8200_v43  ;;  %v1779_v53 = vmul.f32 %v1776_v35, %v8197_v62  ;;  %v2000_v18 = vmul.f32 %v1997_v50, %v8201_v59  ;;  %v2230_v9 = vperm.slane %v2224_v49, 0  ;;  %v8204_v35 = vld [vmem:[#allocation148_spill] sm:$0xff] }
0x1b5b   : > { %v2240_v60 = vperm.slane %v2224_v49, 1  ;;  %v2223_v30 = vsel %vm364_vm13, %v8198_v40, %v8202_v14  ;;  %v1087_v8 = vadd.f32 %v1084_v10, %v855_v5  ;;  %v1319_v22 = vadd.f32 %v1316_v15, %v1086_v38 }
0x1b5c   : > { %v1549_v31 = vadd.f32 %v1546_v27, %v1536_v33  ;;  %v1781_v29 = vadd.f32 %v1778_v4, %v1768_v13  ;;  %v2010_v58 = vmul.f32 %v2007_v41, %v8203_v21  ;;  %v2001_v25 = vmul.f32 %v1998_v45, %v8201_v59 }
0x1b5d   : > { %v2011_v56 = vmul.f32 %v2008_v12, %v8203_v21  ;;  %v2243_v62 = vmul.f32 %v2240_v60, %v8204_v35  ;;  %v1320_v50 = vadd.f32 %v1317_v32, %v1087_v8  ;;  %v1782_v43 = vadd.f32 %v1779_v53, %v1769_v52  ;;  %v8206_v53 = vld [vmem:[#allocation195_spill] sm:$0xff] }
0x1b5e   : > { %v2231_v49 = vperm.slane %v2223_v30, 0  ;;  %v2241_v37 = vperm.slane %v2223_v30, 1  ;;  %v1551_v36 = vadd.f32 %v1548_v48, %v1319_v22  ;;  %v2013_v42 = vadd.f32 %v2010_v58, %v2000_v18  ;;  %v8208_v58 = vld [vmem:[#allocation162_spill] sm:$0xff] }
0x1b5f   : > { %v2233_v40 = vmul.f32 %v2230_v9, %v8205_v51  ;;  %v1552_v5 = vadd.f32 %v1549_v31, %v1320_v50  ;;  %v2456_v41 = vsel %vm592_vm12, %v6061_v23, %v6059_v2  ;;  %v2014_v45 = vadd.f32 %v2011_v56, %v2001_v25 }
0x1b60   : > { %v1784_v10 = vadd.f32 %v1781_v29, %v1551_v36  ;;  %v2455_v8 = vsel %vm592_vm12, %v6059_v2, %v6067_v55  ;;  %v2234_v32 = vmul.f32 %v2231_v49, %v8205_v51  ;;  %v2244_v30 = vmul.f32 %v2241_v37, %v8204_v35  ;;  %v8207_v29 = vld [vmem:[#allocation198_spill] sm:$0xff]  ;;  %v8209_v49 = vld [vmem:[#allocation224_spill] sm:$0xff] }
0x1b61   : > { %v2246_v38 = vadd.f32 %v2243_v62, %v2233_v40  ;;  %v1785_v15 = vadd.f32 %v1782_v43, %v1552_v5  ;;  %v2462_v31 = vperm.slane %v2456_v41, 0  ;;  %v2689_v27 = vsel %vm364_vm13, %v6146_v20, %v6165_v54  ;;  %v8210_v40 = vld [vmem:[#allocation221_spill] sm:$0xff] }
0x1b62   : > { %v2016_v33 = vadd.f32 %v2013_v42, %v1784_v10  ;;  %v2472_v36 = vperm.slane %v2456_v41, 1  ;;  %v2463_v4 = vperm.slane %v2455_v8, 0  ;;  %v2473_v62 = vperm.slane %v2455_v8, 1  ;;  %v8211_v41 = vld [vmem:[#allocation181_spill] sm:$0xff]  ;;  %v8212_v8 = vld [vmem:[#allocation223_spill] sm:$0xff] }
0x1b63   : > { %v2688_v2 = vsel %vm364_vm13, %v6165_v54, %v6150_v44  ;;  %v4934_v48 = vmov 108   ;;  %v2017_v43 = vadd.f32 %v2014_v45, %v1785_v15  ;;  %v2247_v42 = vadd.f32 %v2244_v30, %v2234_v32  ;;  %v8213_v32 = vld [vmem:[#allocation179_spill] sm:$0xff] }
0x1b64   : > { %4721 = vset.pattern.permute.xlu1 %v4934_v48  ;;  %v2249_v37 = vadd.f32 %v2246_v38, %v2016_v33  ;;  %v2465_v13 = vmul.f32 %v2462_v31, %v6065_v39  ;;  %v2695_v52 = vperm.slane %v2689_v27, 0  ;;  %v2921_v18 = vsel %vm592_vm12, %v8206_v53, %v6246_v24  ;;  %v8217_v53 = vld [vmem:[#allocation222_spill] sm:$0xff] }
0x1b65   : > { %v2705_v9 = vperm.slane %v2689_v27, 1  ;;  %v2696_v60 = vperm.slane %v2688_v2, 0  ;;  %v2706_v22 = vperm.slane %v2688_v2, 1  ;;  %v2920_v54 = vsel %vm592_vm12, %v6246_v24, %v8207_v29 }
0x1b66   : > { %v2475_v25 = vmul.f32 %v2472_v36, %v8208_v58  ;;  %v2466_v56 = vmul.f32 %v2463_v4, %v6065_v39  ;;  %v2476_v50 = vmul.f32 %v2473_v62, %v8208_v58  ;;  %v3154_v5 = vsel %vm364_vm13, %v8210_v40, %v8209_v49  ;;  %v8214_v4 = vld [vmem:[#allocation197_spill] sm:$0xff] }
0x1b67   : > { %v2708_v10 = vmul.f32 %v2705_v9, %v8211_v41  ;;  %v2927_v45 = vperm.slane %v2921_v18, 0  ;;  %v2937_v38 = vperm.slane %v2921_v18, 1  ;;  %v3153_v24 = vsel %vm364_vm13, %v8209_v49, %v8212_v8 }
0x1b68   : > { %v2478_v15 = vadd.f32 %v2475_v25, %v2465_v13  ;;  %v2698_v30 = vmul.f32 %v2695_v52, %v8213_v32  ;;  %v2928_v33 = vperm.slane %v2920_v54, 0  ;;  %v2938_v31 = vperm.slane %v2920_v54, 1  ;;  %v8215_v52 = vld [vmem:[#allocation196_spill] sm:$0xff] }
0x1b69   : > { %v2699_v27 = vmul.f32 %v2696_v60, %v8213_v32  ;;  %v2709_v36 = vmul.f32 %v2706_v22, %v8211_v41  ;;  %v2930_v62 = vmul.f32 %v2927_v45, %v8214_v4  ;;  %v3160_v2 = vperm.slane %v3154_v5, 0  ;;  %v8216_v45 = vld [vmem:[#allocation225_spill] sm:$0xff] }
0x1b6a   : > { %v3170_v9 = vperm.slane %v3154_v5, 1  ;;  %v3161_v18 = vperm.slane %v3153_v24, 0  ;;  %v3171_v58 = vperm.slane %v3153_v24, 1  ;;  %v2479_v13 = vadd.f32 %v2476_v50, %v2466_v56 }
0x1b6b   : > { %v2711_v25 = vadd.f32 %v2708_v10, %v2698_v30  ;;  %v2940_v8 = vmul.f32 %v2937_v38, %v8215_v52  ;;  %v2250_v40 = vadd.f32 %v2247_v42, %v2017_v43  ;;  %v2931_v60 = vmul.f32 %v2928_v33, %v8214_v4 }
0x1b6c   : > { %v2941_v22 = vmul.f32 %v2938_v31, %v8215_v52  ;;  %v3173_v41 = vmul.f32 %v3170_v9, %v8216_v45  ;;  %v2481_v32 = vadd.f32 %v2478_v15, %v2249_v37  ;;  %v2712_v5 = vadd.f32 %v2709_v36, %v2699_v27 }
0x1b6d   : > { %v2943_v29 = vadd.f32 %v2940_v8, %v2930_v62  ;;  %v3163_v35 = vmul.f32 %v3160_v2, %v8217_v53  ;;  %v3164_v51 = vmul.f32 %v3161_v18, %v8217_v53  ;;  %v3174_v56 = vmul.f32 %v3171_v58, %v8216_v45  ;;  %v8248_v45 = vld [vmem:[#allocation79_spill] sm:$0xff] }
0x1b6e   : > { %v2482_v50 = vadd.f32 %v2479_v13, %v2250_v40  ;;  %v2714_v10 = vadd.f32 %v2711_v25, %v2481_v32  ;;  %v2944_v38 = vadd.f32 %v2941_v22, %v2931_v60  ;;  %v3470_v32 = vld.sshfl [vmem:[#allocation1 + $0x8] sm:$0xff pattern:$0x73625140]  ;;  %v3472_v13 = vld.sshfl [vmem:[#allocation1 + $0x18] sm:$0xff pattern:$0x73625140] }
0x1b6f   : > { %v3176_v43 = vadd.f32 %v3173_v41, %v3163_v35  ;;  %v3177_v9 = vadd.f32 %v3174_v56, %v3164_v51  ;;  %v3469_v41 = vld.sshfl [vmem:[#allocation1] sm:$0xff pattern:$0x73625140]  ;;  %v4935_v25 = vmov 109  }
0x1b70   : > { %v2715_v30 = vadd.f32 %v2712_v5, %v2482_v50  ;;  %v2946_v33 = vadd.f32 %v2943_v29, %v2714_v10  ;;  %4722 = vset.pattern.permute.xlu2 %v4935_v25 }
0x1b72   : > { %v2947_v62 = vadd.f32 %v2944_v38, %v2715_v30  ;;  %v3179_v35 = vadd.f32 %v3176_v43, %v2946_v33  ;;  %v6655_v43 = vld [vmem:[%s5043_s19] sm:$0xff] }
0x1b73   : > { %v8222_v30 = vld [vmem:[#allocation32_spill] sm:$0xff] }
0x1b8f   : > { %v3382_v12 = vpop.permute.xlu2 %3381 }
0x1b97   : > { %v3400_v49 = vpop.permute.xlu2 %3399 }
0x1b9f   : > { %v3424_v22 = vpop.permute.xlu2 %3423 }
0x1ba8   : > { %v3380_v48 = vpop.permute.xlu1 %3379 }
0x1ba9   : > { %v3386_v39 = vsel %vm592_vm12, %v3380_v48, %v3382_v12 }
0x1baa   : > { %v3402_v54 = vperm.slane %v3386_v39, 1  ;;  %v3392_v42 = vperm.slane %v3386_v39, 0 }
0x1bac   : > { %v3405_v24 = vmul.f32 %v3402_v54, %v3400_v49 }
0x1bb0   : > { %v3390_v31 = vpop.permute.xlu1 %3389  ;;  %v3384_v52 = vpop.permute.xlu0 %3383 }
0x1bb1   : > { %v3395_v37 = vmul.f32 %v3392_v42, %v3390_v31  ;;  %v3385_v8 = vsel %vm592_vm12, %v3382_v12, %v3384_v52  ;;  %v3387_v15 = vsel %vm592_vm12, %v3384_v52, %v3380_v48  ;;  %v3471_v12 = vld.sshfl [vmem:[#allocation1 + $0x10] sm:$0xff pattern:$0x73625140]  ;;  %v3180_v48 = vadd.f32 %v3177_v9, %v2947_v62 }
0x1bb2   : > { %v3393_v27 = vperm.slane %v3385_v8, 0  ;;  %v3394_v36 = vperm.slane %v3387_v15, 0  ;;  %v3403_v58 = vperm.slane %v3385_v8, 1  ;;  %v3404_v40 = vperm.slane %v3387_v15, 1  ;;  %3592 = vst [vmem:[#allocation1] ss:$4 sm:$0xff] %v6288_v6 }
0x1bb3   : > { %v3408_v39 = vadd.f32 %v3405_v24, %v3395_v37  ;;  %v8221_v42 = vld [vmem:[#allocation15_spill] sm:$0xff]  ;;  %v8224_v9 = vld [vmem:[#allocation34_spill] sm:$0xff]  ;;  %v8225_v8 = vld [vmem:[#allocation16_spill] sm:$0xff] }
0x1bb4   : > { %v3396_v29 = vmul.f32 %v3393_v27, %v3390_v31  ;;  %v3397_v2 = vmul.f32 %v3394_v36, %v3390_v31  ;;  %v3406_v18 = vmul.f32 %v3403_v58, %v3400_v49  ;;  %v3407_v51 = vmul.f32 %v3404_v40, %v3400_v49  ;;  %v8223_v31 = vld [vmem:[#allocation19_spill] sm:$0xff]  ;;  %v8226_v27 = vld [vmem:[#allocation20_spill] sm:$0xff] }
0x1bb5   : > { %v6642_v54 = vadd.f32 %v3408_v39, %v3179_v35  ;;  %v417_v33 = vsel %vm416_vm9, %v8222_v30, %v8221_v42  ;;  %v648_v37 = vsel %vm647_vm14, %v8224_v9, %v8223_v31  ;;  %v418_v15 = vsel %vm416_vm9, %v8225_v8, %v8222_v30 }
0x1bb6   : > { %v3409_v52 = vadd.f32 %v3406_v18, %v3396_v29  ;;  %v6645_v60 = vadd.f32 %v3407_v51, %v3397_v2  ;;  %v649_v36 = vsel %vm647_vm14, %v8226_v27, %v8224_v9  ;;  %v650_v58 = vsel %vm647_vm14, %v8223_v31, %v8226_v27 }
0x1bb7   : > { %8218 = vst [vmem:[#allocation110_spill] sm:$0xff] %v6642_v54  ;;  %v425_v40 = vperm.slane %v417_v33, 0  ;;  %v419_v62 = vsel %vm416_vm9, %v8221_v42, %v8225_v8  ;;  %v656_v35 = vperm.slane %v648_v37, 0  ;;  %v666_v39 = vperm.slane %v648_v37, 1  ;;  %v8232_v42 = vld [vmem:[#allocation12_spill] sm:$0xff] }
0x1bb8   : > { %8219 = vst [vmem:[#allocation125_spill] sm:$0xff] %v6645_v60  ;;  %v6647_v5 = vadd.f32 %v3409_v52, %v3180_v48  ;;  %v3422_v24 = vpop.permute.xlu1 %3421  ;;  %v3420_v56 = vpop.permute.xlu0 %3419  ;;  %v655_v29 = vperm.slane %v649_v36, 0  ;;  %v657_v2 = vperm.slane %v650_v58, 0  ;;  %v665_v18 = vperm.slane %v649_v36, 1  ;;  %v8227_v48 = vld [vmem:[#allocation44_spill] sm:$0xff]  ;;  %v8228_v52 = vld [vmem:[#allocation43_spill] sm:$0xff] }
0x1bb9   : > { %v3428_v49 = vsel %vm3140_vm8, %v3422_v24, %v3424_v22  ;;  %v3427_v50 = vsel %vm3140_vm8, %v3420_v56, %v3422_v24  ;;  %v667_v51 = vperm.slane %v650_v58, 1  ;;  %v434_v25 = vperm.slane %v418_v15, 1  ;;  %v8229_v24 = vld [vmem:[#allocation8_spill] sm:$0xff] }
0x1bba   : > { %8220 = vst [vmem:[#allocation147_spill] sm:$0xff] %v6647_v5  ;;  %3435 = vrot.lane.b32.xlu2 %v3428_v49, %s4829_s8  ;;  %3433 = vrot.lane.b32.xlu1 %v3427_v50, %s4829_s8  ;;  %v428_v56 = vmul.f32 %v425_v40, %v8229_v24  ;;  %v8230_v49 = vld [vmem:[#allocation6_spill] sm:$0xff]  ;;  %v669_v30 = vmul.f32 %v666_v39, %v8232_v42 }
0x1bbb   : > { %v668_v37 = vmul.f32 %v665_v18, %v8232_v42  ;;  %v670_v8 = vmul.f32 %v667_v51, %v8232_v42  ;;  %v8238_v42 = vld [vmem:[#allocation62_spill] sm:$0xff] }
0x1bc0   : > { %v3426_v10 = vpop.permute.xlu0 %3425 }
0x1bc1   : > { %v3429_v38 = vsel %vm3140_vm8, %v3424_v22, %v3426_v10  ;;  %v883_v22 = vsel %vm416_vm9, %v8228_v52, %v8227_v48  ;;  %v8231_v10 = vld [vmem:[#allocation13_spill] sm:$0xff] }
0x1bc2   : > { %3443 = vperm.xlu1 %4721, %v6655_v43   ;;  %3437 = vrot.lane.b32.xlu0 %v3429_v38, %s4829_s8  ;;  %v659_v38 = vmul.f32 %v656_v35, %v8231_v10  ;;  %v658_v31 = vmul.f32 %v655_v29, %v8231_v10  ;;  %v660_v9 = vmul.f32 %v657_v2, %v8231_v10  ;;  %v889_v36 = vperm.slane %v883_v22, 0  ;;  %v8234_v29 = vld [vmem:[#allocation46_spill] sm:$0xff]  ;;  %v8235_v10 = vld [vmem:[#allocation61_spill] sm:$0xff] }
0x1bc3   : > { %3453 = vperm.xlu2 %4722, %v6655_v43   ;;  %v899_v58 = vperm.slane %v883_v22, 1  ;;  %v8236_v22 = vld [vmem:[#allocation60_spill] sm:$0xff] }
0x1bc4   : > { %v671_v18 = vadd.f32 %v668_v37, %v658_v31 }
0x1bc5   : > { %v902_v2 = vmul.f32 %v899_v58, %v8234_v29 }
0x1bca   : > { %3475 = vrot.lane.b32.xlu1 %v3470_v32, %s4923_s18  ;;  %3473 = vrot.lane.b32.xlu0 %v3469_v41, %s4923_s18  ;;  %v435_v32 = vperm.slane %v417_v33, 1  ;;  %v424_v41 = vperm.slane %v418_v15, 0  ;;  %v8233_v15 = vld [vmem:[#allocation42_spill] sm:$0xff] }
0x1bcb   : > { %3477 = vrot.lane.b32.xlu2 %v3471_v12, %s4923_s18  ;;  %v436_v12 = vperm.slane %v419_v62, 1  ;;  %v882_v27 = vsel %vm416_vm9, %v8227_v48, %v8233_v15  ;;  %v884_v35 = vsel %vm416_vm9, %v8233_v15, %v8228_v52  ;;  %v1115_v52 = vsel %vm647_vm14, %v8238_v42, %v8236_v22 }
0x1bcc   : > { %v438_v50 = vmul.f32 %v435_v32, %v8230_v49  ;;  %v427_v33 = vmul.f32 %v424_v41, %v8229_v24  ;;  %v437_v32 = vmul.f32 %v434_v25, %v8230_v49  ;;  %v672_v41 = vadd.f32 %v669_v30, %v659_v38 }
0x1bcd   : > { %v890_v51 = vperm.slane %v882_v27, 0  ;;  %v900_v48 = vperm.slane %v882_v27, 1  ;;  %v673_v25 = vadd.f32 %v670_v8, %v660_v9  ;;  %v891_v38 = vperm.slane %v884_v35, 0 }
0x1bce   : > { %v441_v39 = vadd.f32 %v438_v50, %v428_v56  ;;  %v440_v56 = vadd.f32 %v437_v32, %v427_v33  ;;  %v1116_v9 = vsel %vm647_vm14, %v8235_v10, %v8238_v42  ;;  %v1121_v27 = vperm.slane %v1115_v52, 0 }
0x1bcf   : > { %v903_v30 = vmul.f32 %v900_v48, %v8234_v29  ;;  %v8241_v48 = vld [vmem:[#allocation77_spill] sm:$0xff] }
0x1bd0   : > { %v675_v58 = vadd.f32 %v672_v41, %v441_v39  ;;  %v8243_v41 = vld [vmem:[#allocation76_spill] sm:$0xff] }
0x1bd2   : > { %3479 = vrot.lane.b32.xlu0 %v3472_v13, %s4923_s18  ;;  %v426_v13 = vperm.slane %v419_v62, 0  ;;  %v439_v62 = vmul.f32 %v436_v12, %v8230_v49  ;;  %v8237_v12 = vld [vmem:[#allocation45_spill] sm:$0xff] }
0x1bd3   : > { %v892_v49 = vmul.f32 %v889_v36, %v8237_v12  ;;  %v893_v8 = vmul.f32 %v890_v51, %v8237_v12  ;;  %v1131_v36 = vperm.slane %v1115_v52, 1  ;;  %v8242_v51 = vld [vmem:[#allocation63_spill] sm:$0xff]  ;;  %v1123_v52 = vperm.slane %v1116_v9, 0 }
0x1bd4   : > { %v429_v40 = vmul.f32 %v426_v13, %v8229_v24  ;;  %v1114_v13 = vsel %vm647_vm14, %v8236_v22, %v8235_v10  ;;  %v901_v24 = vperm.slane %v884_v35, 1  ;;  %v674_v22 = vadd.f32 %v671_v18, %v440_v56  ;;  %v8239_v35 = vld [vmem:[#allocation64_spill] sm:$0xff] }
0x1bd5   : > { %v905_v37 = vadd.f32 %v902_v2, %v892_v49  ;;  %v1132_v15 = vperm.slane %v1114_v13, 1  ;;  %v906_v32 = vadd.f32 %v903_v30, %v893_v8  ;;  %v8240_v2 = vld [vmem:[#allocation78_spill] sm:$0xff]  ;;  %v1122_v42 = vperm.slane %v1114_v13, 0  ;;  %v8246_v30 = vld [vmem:[#allocation97_spill] sm:$0xff] }
0x1bd6   : > { %v442_v50 = vadd.f32 %v439_v62, %v429_v40  ;;  %v904_v31 = vmul.f32 %v901_v24, %v8234_v29  ;;  %v894_v40 = vmul.f32 %v891_v38, %v8237_v12  ;;  %v1133_v62 = vperm.slane %v1116_v9, 1  ;;  %v8245_v12 = vld [vmem:[#allocation94_spill] sm:$0xff] }
0x1bd7   : > { %v1124_v29 = vmul.f32 %v1121_v27, %v8239_v35  ;;  %v1348_v24 = vsel %vm416_vm9, %v8241_v48, %v8240_v2  ;;  %v908_v10 = vadd.f32 %v905_v37, %v674_v22  ;;  %v1135_v5 = vmul.f32 %v1132_v15, %v8242_v51  ;;  %v8247_v22 = vld [vmem:[#allocation80_spill] sm:$0xff] }
0x1bd8   : > { %v676_v33 = vadd.f32 %v673_v25, %v442_v50  ;;  %v907_v49 = vadd.f32 %v904_v31, %v894_v40  ;;  %v1134_v39 = vmul.f32 %v1131_v36, %v8242_v51  ;;  %v1347_v18 = vsel %vm416_vm9, %v8240_v2, %v8243_v41  ;;  %v8244_v25 = vld [vmem:[#allocation93_spill] sm:$0xff] }
0x1bd9   : > { %v1580_v56 = vsel %vm647_vm14, %v8245_v12, %v8244_v25  ;;  %v1349_v13 = vsel %vm416_vm9, %v8243_v41, %v8241_v48  ;;  %v1354_v50 = vperm.slane %v1348_v24, 0  ;;  %v1364_v38 = vperm.slane %v1348_v24, 1 }
0x1bda   : > { %v1579_v31 = vsel %vm647_vm14, %v8244_v25, %v8246_v30  ;;  %v1136_v37 = vmul.f32 %v1133_v62, %v8242_v51  ;;  %v1125_v15 = vmul.f32 %v1122_v42, %v8239_v35  ;;  %v1126_v9 = vmul.f32 %v1123_v52, %v8239_v35  ;;  %v8249_v51 = vld [vmem:[#allocation96_spill] sm:$0xff] }
0x1bdb   : > { %v1137_v8 = vadd.f32 %v1134_v39, %v1124_v29  ;;  %v1355_v27 = vperm.slane %v1347_v18, 0  ;;  %v1365_v36 = vperm.slane %v1347_v18, 1  ;;  %v1367_v40 = vmul.f32 %v1364_v38, %v8247_v22 }
0x1bdc   : > { %v1596_v2 = vperm.slane %v1580_v56, 1  ;;  %v1366_v48 = vperm.slane %v1349_v13, 1  ;;  %v1586_v41 = vperm.slane %v1580_v56, 0  ;;  %v1587_v24 = vperm.slane %v1579_v31, 0 }
0x1bdd   : > { %v1597_v60 = vperm.slane %v1579_v31, 1  ;;  %v1356_v54 = vperm.slane %v1349_v13, 0  ;;  %v1357_v53 = vmul.f32 %v1354_v50, %v8248_v45  ;;  %v1368_v25 = vmul.f32 %v1365_v36, %v8247_v22  ;;  %v8250_v13 = vld [vmem:[#allocation95_spill] sm:$0xff] }
0x1bde   : > { %v1581_v62 = vsel %vm647_vm14, %v8246_v30, %v8245_v12  ;;  %v1138_v35 = vadd.f32 %v1135_v5, %v1125_v15  ;;  %v1139_v29 = vadd.f32 %v1136_v37, %v1126_v9  ;;  %v1369_v42 = vmul.f32 %v1366_v48, %v8247_v22  ;;  %v8251_v22 = vld [vmem:[#allocation112_spill] sm:$0xff]  ;;  %v8252_v48 = vld [vmem:[#allocation114_spill] sm:$0xff] }
0x1bdf   : > { %v1589_v52 = vmul.f32 %v1586_v41, %v8249_v51  ;;  %v1358_v39 = vmul.f32 %v1355_v27, %v8248_v45  ;;  %v1359_v18 = vmul.f32 %v1356_v54, %v8248_v45  ;;  %v1370_v56 = vadd.f32 %v1367_v40, %v1357_v53  ;;  %v8253_v53 = vld [vmem:[#allocation113_spill] sm:$0xff] }
0x1be0   : > { %v1599_v50 = vmul.f32 %v1596_v2, %v8250_v13  ;;  %v1588_v38 = vperm.slane %v1581_v62, 0  ;;  %v1590_v31 = vmul.f32 %v1587_v24, %v8249_v51  ;;  %v1598_v36 = vperm.slane %v1581_v62, 1 }
0x1be1   : > { %v1600_v4 = vmul.f32 %v1597_v60, %v8250_v13  ;;  %v909_v12 = vadd.f32 %v906_v32, %v675_v58  ;;  %v910_v5 = vadd.f32 %v907_v49, %v676_v33  ;;  %v1140_v30 = vadd.f32 %v1137_v8, %v908_v10 }
0x1be2   : > { %v1371_v37 = vadd.f32 %v1368_v25, %v1358_v39  ;;  %v1372_v15 = vadd.f32 %v1369_v42, %v1359_v18  ;;  %v1602_v9 = vadd.f32 %v1599_v50, %v1589_v52  ;;  %v1812_v45 = vsel %vm416_vm9, %v8252_v48, %v8251_v22  ;;  %v8255_v42 = vld [vmem:[#allocation131_spill] sm:$0xff]  ;;  %v8256_v52 = vld [vmem:[#allocation134_spill] sm:$0xff] }
0x1be3   : > { %v1813_v54 = vsel %vm416_vm9, %v8253_v53, %v8252_v48  ;;  %v1141_v27 = vadd.f32 %v1138_v35, %v909_v12  ;;  %v1142_v40 = vadd.f32 %v1139_v29, %v910_v5  ;;  %v1373_v2 = vadd.f32 %v1370_v56, %v1140_v30  ;;  %v8254_v29 = vld [vmem:[#allocation130_spill] sm:$0xff] }
0x1be4   : > { %v1591_v60 = vmul.f32 %v1588_v38, %v8249_v51  ;;  %v1601_v58 = vmul.f32 %v1598_v36, %v8250_v13  ;;  %v1603_v33 = vadd.f32 %v1600_v4, %v1590_v31  ;;  %v1814_v32 = vsel %vm416_vm9, %v8251_v22, %v8253_v53  ;;  %v8257_v13 = vld [vmem:[#allocation116_spill] sm:$0xff]  ;;  %v8258_v36 = vld [vmem:[#allocation115_spill] sm:$0xff]  ;;  %v8260_v48 = vld [vmem:[#allocation150_spill] sm:$0xff] }
0x1be5   : > { %v1374_v49 = vadd.f32 %v1371_v37, %v1141_v27  ;;  %v1819_v10 = vperm.slane %v1813_v54, 0  ;;  %v1820_v8 = vperm.slane %v1812_v45, 0  ;;  %v1375_v41 = vadd.f32 %v1372_v15, %v1142_v40  ;;  %v8259_v22 = vld [vmem:[#allocation151_spill] sm:$0xff] }
0x1be6   : > { %v1605_v24 = vadd.f32 %v1602_v9, %v1373_v2  ;;  %v1829_v25 = vperm.slane %v1813_v54, 1  ;;  %v1830_v62 = vperm.slane %v1812_v45, 1  ;;  %v1831_v35 = vperm.slane %v1814_v32, 1 }
0x1be7   : > { %v2045_v51 = vsel %vm647_vm14, %v8255_v42, %v8254_v29  ;;  %v2044_v4 = vsel %vm647_vm14, %v8254_v29, %v8256_v52  ;;  %v2046_v39 = vsel %vm647_vm14, %v8256_v52, %v8255_v42  ;;  %v1604_v18 = vadd.f32 %v1601_v58, %v1591_v60 }
0x1be8   : > { %v1606_v56 = vadd.f32 %v1603_v33, %v1374_v49  ;;  %v1832_v50 = vmul.f32 %v1829_v25, %v8257_v13  ;;  %v1833_v38 = vmul.f32 %v1830_v62, %v8257_v13  ;;  %v1821_v31 = vperm.slane %v1814_v32, 0  ;;  %v8261_v33 = vld [vmem:[#allocation149_spill] sm:$0xff] }
0x1be9   : > { %v1822_v12 = vmul.f32 %v1819_v10, %v8258_v36  ;;  %v1823_v5 = vmul.f32 %v1820_v8, %v8258_v36  ;;  %v1834_v30 = vmul.f32 %v1831_v35, %v8257_v13  ;;  %v2061_v37 = vperm.slane %v2045_v51, 1  ;;  %v8262_v10 = vld [vmem:[#allocation133_spill] sm:$0xff]  ;;  %v8263_v35 = vld [vmem:[#allocation132_spill] sm:$0xff] }
0x1bea   : > { %v2052_v15 = vperm.slane %v2044_v4, 0  ;;  %v2053_v9 = vperm.slane %v2046_v39, 0  ;;  %v2278_v45 = vsel %vm416_vm9, %v8260_v48, %v8259_v22  ;;  %v1824_v53 = vmul.f32 %v1821_v31, %v8258_v36  ;;  %v8265_v13 = vld [vmem:[#allocation165_spill] sm:$0xff] }
0x1beb   : > { %v2051_v54 = vperm.slane %v2045_v51, 0  ;;  %v2062_v27 = vperm.slane %v2044_v4, 1  ;;  %v2063_v40 = vperm.slane %v2046_v39, 1  ;;  %v1607_v2 = vadd.f32 %v1604_v18, %v1375_v41  ;;  %v8264_v18 = vld [vmem:[#allocation164_spill] sm:$0xff] }
0x1bec   : > { %v1835_v60 = vadd.f32 %v1832_v50, %v1822_v12  ;;  %v1836_v58 = vadd.f32 %v1833_v38, %v1823_v5  ;;  %v2277_v32 = vsel %vm416_vm9, %v8259_v22, %v8261_v33  ;;  %v1837_v49 = vadd.f32 %v1834_v30, %v1824_v53  ;;  %v8266_v12 = vld [vmem:[#allocation153_spill] sm:$0xff] }
0x1bed   : > { %v2054_v8 = vmul.f32 %v2051_v54, %v8262_v10  ;;  %v2279_v25 = vsel %vm416_vm9, %v8261_v33, %v8260_v48  ;;  %v2284_v62 = vperm.slane %v2278_v45, 0  ;;  %v2064_v29 = vmul.f32 %v2061_v37, %v8263_v35  ;;  %v8268_v54 = vld [vmem:[#allocation168_spill] sm:$0xff] }
0x1bee   : > { %v2055_v41 = vmul.f32 %v2052_v15, %v8262_v10  ;;  %v2056_v42 = vmul.f32 %v2053_v9, %v8262_v10  ;;  %v2294_v51 = vperm.slane %v2278_v45, 1  ;;  %v2065_v52 = vmul.f32 %v2062_v27, %v8263_v35  ;;  %v8267_v15 = vld [vmem:[#allocation152_spill] sm:$0xff] }
0x1bef   : > { %v2066_v4 = vmul.f32 %v2063_v40, %v8263_v35  ;;  %v2295_v39 = vperm.slane %v2277_v32, 1  ;;  %v2510_v50 = vsel %vm647_vm14, %v8265_v13, %v8264_v18  ;;  %v1838_v38 = vadd.f32 %v1835_v60, %v1605_v24 }
0x1bf0   : > { %v2296_v31 = vperm.slane %v2279_v25, 1  ;;  %v2285_v36 = vperm.slane %v2277_v32, 0  ;;  %v2297_v5 = vmul.f32 %v2294_v51, %v8266_v12  ;;  %v2067_v30 = vadd.f32 %v2064_v29, %v2054_v8 }
0x1bf1   : > { %v2286_v37 = vperm.slane %v2279_v25, 0  ;;  %v2287_v9 = vmul.f32 %v2284_v62, %v8267_v15  ;;  %v2298_v22 = vmul.f32 %v2295_v39, %v8266_v12  ;;  %v2516_v45 = vperm.slane %v2510_v50, 0  ;;  %v8269_v25 = vld [vmem:[#allocation167_spill] sm:$0xff] }
0x1bf2   : > { %v2299_v48 = vmul.f32 %v2296_v31, %v8266_v12  ;;  %v2526_v53 = vperm.slane %v2510_v50, 1  ;;  %v2509_v27 = vsel %vm647_vm14, %v8264_v18, %v8268_v54  ;;  %v1839_v24 = vadd.f32 %v1836_v58, %v1606_v56  ;;  %v8270_v58 = vld [vmem:[#allocation166_spill] sm:$0xff] }
0x1bf3   : > { %v2068_v40 = vadd.f32 %v2065_v52, %v2055_v41  ;;  %v2069_v60 = vadd.f32 %v2066_v4, %v2056_v42  ;;  %v2511_v33 = vsel %vm647_vm14, %v8268_v54, %v8265_v13  ;;  %v2288_v32 = vmul.f32 %v2285_v36, %v8267_v15  ;;  %v8274_v54 = vld [vmem:[#allocation199_spill] sm:$0xff] }
0x1bf4   : > { %v2289_v10 = vmul.f32 %v2286_v37, %v8267_v15  ;;  %v2300_v8 = vadd.f32 %v2297_v5, %v2287_v9  ;;  %v2519_v62 = vmul.f32 %v2516_v45, %v8269_v25  ;;  %v1840_v35 = vadd.f32 %v1837_v49, %v1607_v2  ;;  %v8271_v5 = vld [vmem:[#allocation184_spill] sm:$0xff]  ;;  %v8272_v37 = vld [vmem:[#allocation183_spill] sm:$0xff]  ;;  %v8273_v15 = vld [vmem:[#allocation182_spill] sm:$0xff] }
0x1bf5   : > { %v2070_v29 = vadd.f32 %v2067_v30, %v1838_v38  ;;  %v2517_v51 = vperm.slane %v2509_v27, 0  ;;  %v2527_v39 = vperm.slane %v2509_v27, 1  ;;  %v2301_v18 = vadd.f32 %v2298_v22, %v2288_v32  ;;  %v8275_v27 = vld [vmem:[#allocation200_spill] sm:$0xff] }
0x1bf6   : > { %v2302_v56 = vadd.f32 %v2299_v48, %v2289_v10  ;;  %v2529_v41 = vmul.f32 %v2526_v53, %v8270_v58  ;;  %v2518_v42 = vperm.slane %v2511_v33, 0  ;;  %v2528_v52 = vperm.slane %v2511_v33, 1  ;;  %v8276_v33 = vld [vmem:[#allocation203_spill] sm:$0xff] }
0x1bf7   : > { %v2071_v4 = vadd.f32 %v2068_v40, %v1839_v24  ;;  %v2072_v50 = vadd.f32 %v2069_v60, %v1840_v35  ;;  %v2303_v13 = vadd.f32 %v2300_v8, %v2070_v29  ;;  %v2520_v36 = vmul.f32 %v2517_v51, %v8269_v25 }
0x1bf8   : > { %v2532_v31 = vadd.f32 %v2529_v41, %v2519_v62  ;;  %v2530_v12 = vmul.f32 %v2527_v39, %v8270_v58  ;;  %v2743_v2 = vsel %vm416_vm9, %v8272_v37, %v8271_v5  ;;  %v2521_v30 = vmul.f32 %v2518_v42, %v8269_v25 }
0x1bf9   : > { %v2304_v49 = vadd.f32 %v2301_v18, %v2071_v4  ;;  %v2305_v38 = vadd.f32 %v2302_v56, %v2072_v50  ;;  %v2744_v9 = vsel %vm416_vm9, %v8273_v15, %v8272_v37  ;;  %v4936_v48 = vmov 110   ;;  %v8277_v18 = vld [vmem:[#allocation186_spill] sm:$0xff] }
0x1bfa   : > { %4723 = vset.pattern.permute.xlu1 %v4936_v48  ;;  %v2531_v45 = vmul.f32 %v2528_v52, %v8270_v58  ;;  %v2742_v53 = vsel %vm416_vm9, %v8271_v5, %v8273_v15  ;;  %v2975_v24 = vsel %vm647_vm14, %v8275_v27, %v8274_v54  ;;  %v2749_v40 = vperm.slane %v2743_v2, 0  ;;  %v8278_v5 = vld [vmem:[#allocation185_spill] sm:$0xff]  ;;  %v8281_v48 = vld [vmem:[#allocation227_spill] sm:$0xff] }
0x1bfb   : > { %v2759_v60 = vperm.slane %v2743_v2, 1  ;;  %v2974_v32 = vsel %vm647_vm14, %v8274_v54, %v8276_v33  ;;  %v2976_v10 = vsel %vm647_vm14, %v8276_v33, %v8275_v27  ;;  %v4937_v8 = vmov 112  }
0x1bfc   : > { %4725 = vset.pattern.permute.xlu0 %v4937_v8  ;;  %v2535_v25 = vadd.f32 %v2532_v31, %v2303_v13  ;;  %v2533_v62 = vadd.f32 %v2530_v12, %v2520_v36  ;;  %v2751_v35 = vperm.slane %v2744_v9, 0  ;;  %v2761_v29 = vperm.slane %v2744_v9, 1  ;;  %v8279_v36 = vld [vmem:[#allocation202_spill] sm:$0xff] }
0x1bfd   : > { %v2750_v51 = vperm.slane %v2742_v53, 0  ;;  %v2760_v39 = vperm.slane %v2742_v53, 1  ;;  %v2762_v56 = vmul.f32 %v2759_v60, %v8277_v18  ;;  %v2991_v58 = vperm.slane %v2975_v24, 1  ;;  %v8280_v9 = vld [vmem:[#allocation226_spill] sm:$0xff] }
0x1bfe   : > { %v2981_v41 = vperm.slane %v2975_v24, 0  ;;  %v2982_v42 = vperm.slane %v2974_v32, 0  ;;  %v2983_v52 = vperm.slane %v2976_v10, 0  ;;  %v2992_v4 = vperm.slane %v2974_v32, 1 }
0x1bff   : > { %v2534_v50 = vadd.f32 %v2531_v45, %v2521_v30  ;;  %v2752_v37 = vmul.f32 %v2749_v40, %v8278_v5  ;;  %v2754_v2 = vmul.f32 %v2751_v35, %v8278_v5  ;;  %v2993_v15 = vperm.slane %v2976_v10, 1  ;;  %v8282_v45 = vld [vmem:[#allocation201_spill] sm:$0xff] }
0x1c00   : > { %v2763_v13 = vmul.f32 %v2760_v39, %v8277_v18  ;;  %v2764_v31 = vmul.f32 %v2761_v29, %v8277_v18  ;;  %v2984_v12 = vmul.f32 %v2981_v41, %v8279_v36  ;;  %v3207_v53 = vsel %vm416_vm9, %v8281_v48, %v8280_v9 }
0x1c01   : > { %v2753_v27 = vmul.f32 %v2750_v51, %v8278_v5  ;;  %v2765_v30 = vadd.f32 %v2762_v56, %v2752_v37  ;;  %v2994_v24 = vmul.f32 %v2991_v58, %v8282_v45  ;;  %v2985_v33 = vmul.f32 %v2982_v42, %v8279_v36  ;;  %v8283_v5 = vld [vmem:[#allocation229_spill] sm:$0xff] }
0x1c02   : > { %v2986_v32 = vmul.f32 %v2983_v52, %v8279_v36  ;;  %v2995_v10 = vmul.f32 %v2992_v4, %v8282_v45  ;;  %v2996_v35 = vmul.f32 %v2993_v15, %v8282_v45  ;;  %v3215_v29 = vperm.slane %v3207_v53, 0  ;;  %v8284_v36 = vld [vmem:[#allocation228_spill] sm:$0xff] }
0x1c03   : > { %v3225_v39 = vperm.slane %v3207_v53, 1  ;;  %v2766_v51 = vadd.f32 %v2763_v13, %v2753_v27  ;;  %v2767_v18 = vadd.f32 %v2764_v31, %v2754_v2  ;;  %v2997_v56 = vadd.f32 %v2994_v24, %v2984_v12  ;;  %v8285_v24 = vld [vmem:[#allocation230_spill] sm:$0xff] }
0x1c04   : > { %v4938_v41 = vmov 111   ;;  %v2536_v9 = vadd.f32 %v2533_v62, %v2304_v49  ;;  %v2537_v48 = vadd.f32 %v2534_v50, %v2305_v38  ;;  %v2768_v42 = vadd.f32 %v2765_v30, %v2535_v25 }
0x1c05   : > { %4724 = vset.pattern.permute.xlu2 %v4938_v41  ;;  %v3228_v37 = vmul.f32 %v3225_v39, %v8283_v5  ;;  %v2998_v44 = vadd.f32 %v2995_v10, %v2985_v33  ;;  %v2999_v52 = vadd.f32 %v2996_v35, %v2986_v32  ;;  %v3218_v4 = vmul.f32 %v3215_v29, %v8284_v36  ;;  %v8289_v36 = vld [vmem:[#allocation17_spill] sm:$0xff] }
0x1c06   : > { %v2769_v21 = vadd.f32 %v2766_v51, %v2536_v9  ;;  %v2770_v15 = vadd.f32 %v2767_v18, %v2537_v48  ;;  %v3000_v45 = vadd.f32 %v2997_v56, %v2768_v42  ;;  %v4939_v9 = vmov 113   ;;  %v8287_v48 = vld [vmem:[#allocation21_spill] sm:$0xff]  ;;  %v8288_v42 = vld [vmem:[#allocation35_spill] sm:$0xff] }
0x1c07   : > { %v3231_v2 = vadd.f32 %v3228_v37, %v3218_v4  ;;  %v8290_v4 = vld [vmem:[#allocation33_spill] sm:$0xff] }
0x1c08   : > { %v3001_v27 = vadd.f32 %v2998_v44, %v2769_v21  ;;  %v3002_v30 = vadd.f32 %v2999_v52, %v2770_v15  ;;  %v703_v52 = vsel %vm702_vm15, %v8288_v42, %v8287_v48  ;;  %v469_v15 = vsel %vm468_vm10, %v8290_v4, %v8289_v36 }
0x1c0a   : > { %v3234_v29 = vadd.f32 %v3231_v2, %v3001_v27 }
0x1c14   : > { %v6852_v22 = vpop.permute.xlu2 %3435 }
0x1c1d   : > { %v3454_v60 = vpop.permute.xlu2 %3453 }
0x1c25   : > { %v3478_v18 = vpop.permute.xlu2 %3477 }
0x1c2c   : > { %v3434_v54 = vpop.permute.xlu1 %3433 }
0x1c2d   : > { %v3440_v40 = vsel %vm647_vm14, %v3434_v54, %v6852_v22 }
0x1c2e   : > { %v3456_v8 = vperm.slane %v3440_v40, 1  ;;  %v3446_v20 = vperm.slane %v3440_v40, 0  ;;  %v3233_v40 = vadd.f32 %v8285_v24, %v3000_v45  ;;  %v8291_v45 = vld [vmem:[#allocation22_spill] sm:$0xff] }
0x1c30   : > { %v3459_v58 = vmul.f32 %v3456_v8, %v3454_v60 }
0x1c34   : > { %v3444_v53 = vpop.permute.xlu1 %3443  ;;  %v3438_v13 = vpop.permute.xlu0 %3437 }
0x1c35   : > { %v3449_v31 = vmul.f32 %v3446_v20, %v3444_v53  ;;  %v3439_v12 = vsel %vm647_vm14, %v6852_v22, %v3438_v13  ;;  %v3441_v49 = vsel %vm647_vm14, %v3438_v13, %v3434_v54  ;;  %v8286_v22 = vld [vmem:[#allocation231_spill] sm:$0xff]  ;;  %v8292_v13 = vld [vmem:[#allocation18_spill] sm:$0xff] }
0x1c36   : > { %v3447_v38 = vperm.slane %v3439_v12, 0  ;;  %v3448_v25 = vperm.slane %v3441_v49, 0  ;;  %v3457_v62 = vperm.slane %v3439_v12, 1  ;;  %v3458_v50 = vperm.slane %v3441_v49, 1 }
0x1c37   : > { %v3462_v33 = vadd.f32 %v3459_v58, %v3449_v31  ;;  %v3235_v39 = vadd.f32 %v8286_v22, %v3002_v30  ;;  %v471_v2 = vsel %vm468_vm10, %v8289_v36, %v8292_v13  ;;  %v711_v31 = vperm.slane %v703_v52, 0 }
0x1c38   : > { %v3450_v32 = vmul.f32 %v3447_v38, %v3444_v53  ;;  %v3451_v10 = vmul.f32 %v3448_v25, %v3444_v53  ;;  %v3460_v8 = vmul.f32 %v3457_v62, %v3454_v60  ;;  %v3461_v20 = vmul.f32 %v3458_v50, %v3454_v60 }
0x1c39   : > { %v6898_v35 = vadd.f32 %v3462_v33, %v3233_v40  ;;  %v704_v53 = vsel %vm702_vm15, %v8291_v45, %v8288_v42  ;;  %v721_v12 = vperm.slane %v703_v52, 1  ;;  %v705_v49 = vsel %vm702_vm15, %v8287_v48, %v8291_v45  ;;  %v8293_v33 = vld [vmem:[#allocation47_spill] sm:$0xff] }
0x1c3a   : > { %v3463_v51 = vadd.f32 %v3460_v8, %v3450_v32  ;;  %v3464_v54 = vadd.f32 %v3461_v20, %v3451_v10  ;;  %v477_v38 = vperm.slane %v469_v15, 0  ;;  %v487_v25 = vperm.slane %v469_v15, 1  ;;  %v8294_v32 = vld [vmem:[#allocation52_spill] sm:$0xff] }
0x1c3b   : > { %v710_v62 = vperm.slane %v704_v53, 0  ;;  %v720_v50 = vperm.slane %v704_v53, 1  ;;  %v478_v30 = vperm.slane %v471_v2, 0  ;;  %v712_v24 = vperm.slane %v705_v49, 0 }
0x1c3c   : > { %v6901_v56 = vadd.f32 %v3463_v51, %v3234_v29  ;;  %v6903_v41 = vadd.f32 %v3464_v54, %v3235_v39  ;;  %v3476_v44 = vpop.permute.xlu1 %3475  ;;  %v3474_v21 = vpop.permute.xlu0 %3473  ;;  %v722_v40 = vperm.slane %v705_v49, 1  ;;  %v937_v10 = vsel %vm468_vm10, %v8294_v32, %v8293_v33  ;;  %v8295_v29 = vld [vmem:[#allocation14_spill] sm:$0xff]  ;;  %v8296_v39 = vld [vmem:[#allocation31_spill] sm:$0xff]  ;;  %v8297_v54 = vld [vmem:[#allocation9_spill] sm:$0xff] }
0x1c3d   : > { %v3482_v58 = vsel %vm3140_vm8, %v3476_v44, %v3478_v18  ;;  %v3481_v5 = vsel %vm3140_vm8, %v3474_v21, %v3476_v44  ;;  %v488_v20 = vperm.slane %v471_v2, 1  ;;  %v714_v22 = vmul.f32 %v711_v31, %v8295_v29  ;;  %v8298_v44 = vld [vmem:[#allocation7_spill] sm:$0xff] }
0x1c3e   : > { %3489 = vrot.lane.b32.xlu2 %v3482_v58, %s4830_s9  ;;  %3487 = vrot.lane.b32.xlu1 %v3481_v5, %s4830_s9  ;;  %v724_v51 = vmul.f32 %v721_v12, %v8296_v39  ;;  %v490_v21 = vmul.f32 %v487_v25, %v8298_v44  ;;  %v713_v58 = vmul.f32 %v710_v62, %v8295_v29  ;;  %v943_v48 = vperm.slane %v937_v10, 0  ;;  %v8301_v62 = vld [vmem:[#allocation51_spill] sm:$0xff] }
0x1c3f   : > { %v723_v5 = vmul.f32 %v720_v50, %v8296_v39  ;;  %v953_v42 = vperm.slane %v937_v10, 1  ;;  %v481_v36 = vmul.f32 %v478_v30, %v8297_v54  ;;  %v725_v15 = vmul.f32 %v722_v40, %v8296_v39  ;;  %v8303_v30 = vld [vmem:[#allocation68_spill] sm:$0xff]  ;;  %v8304_v40 = vld [vmem:[#allocation65_spill] sm:$0xff] }
0x1c40   : > { %v491_v53 = vmul.f32 %v488_v20, %v8298_v44 }
0x1c41   : > { %v726_v25 = vadd.f32 %v723_v5, %v713_v58  ;;  %v956_v50 = vmul.f32 %v953_v42, %v8301_v62 }
0x1c42   : > { %v494_v39 = vadd.f32 %v491_v53, %v481_v36 }
0x1c44   : > { %v3480_v60 = vpop.permute.xlu0 %3479 }
0x1c45   : > { %v3483_v37 = vsel %vm3140_vm8, %v3478_v18, %v3480_v60  ;;  %v480_v18 = vmul.f32 %v477_v38, %v8297_v54  ;;  %v8299_v60 = vld [vmem:[#allocation50_spill] sm:$0xff]  ;;  %vm3580_vm8 = vcmask 719872  }
0x1c46   : > { %3497 = vperm.xlu1 %4723, %v6655_v43   ;;  %3491 = vrot.lane.b32.xlu0 %v3483_v37, %s4830_s9  ;;  %v936_v37 = vsel %vm468_vm10, %v8293_v33, %v8299_v60  ;;  %v1169_v33 = vsel %vm702_vm15, %v8304_v40, %v8303_v30 }
0x1c47   : > { %3507 = vperm.xlu2 %4724, %v6655_v43   ;;  %v944_v31 = vperm.slane %v936_v37, 0  ;;  %v954_v12 = vperm.slane %v936_v37, 1  ;;  %v1185_v5 = vperm.slane %v1169_v33, 1 }
0x1c4e   : > { %4726 = vset.pattern.permute.xlu1 %v4939_v9  ;;  %3524 = vperm.xlu0 %4725, %v6655_v43   ;;  %v938_v9 = vsel %vm468_vm10, %v8299_v60, %v8294_v32 }
0x1c4f   : > { %3545 = vperm.xlu1 %4726, %v6655_v43   ;;  %v470_v43 = vsel %vm468_vm10, %v8292_v13, %v8290_v4  ;;  %v715_v4 = vmul.f32 %v712_v24, %v8295_v29  ;;  %v727_v13 = vadd.f32 %v724_v51, %v714_v22  ;;  %v945_v49 = vperm.slane %v938_v9, 0 }
0x1c50   : > { %v476_v27 = vperm.slane %v470_v43, 0  ;;  %v486_v8 = vperm.slane %v470_v43, 1  ;;  %v8300_v43 = vld [vmem:[#allocation54_spill] sm:$0xff]  ;;  %v955_v38 = vperm.slane %v938_v9, 1  ;;  %v493_v29 = vadd.f32 %v490_v21, %v480_v18  ;;  %v8306_v18 = vld [vmem:[#allocation81_spill] sm:$0xff] }
0x1c51   : > { %v946_v2 = vmul.f32 %v943_v48, %v8300_v43  ;;  %v728_v32 = vadd.f32 %v725_v15, %v715_v4  ;;  %v947_v10 = vmul.f32 %v944_v31, %v8300_v43  ;;  %v1175_v31 = vperm.slane %v1169_v33, 0 }
0x1c52   : > { %v479_v52 = vmul.f32 %v476_v27, %v8297_v54  ;;  %v489_v45 = vmul.f32 %v486_v8, %v8298_v44  ;;  %v8302_v27 = vld [vmem:[#allocation66_spill] sm:$0xff]  ;;  %v948_v8 = vmul.f32 %v945_v49, %v8300_v43  ;;  %v957_v54 = vmul.f32 %v954_v12, %v8301_v62 }
0x1c53   : > { %v1168_v24 = vsel %vm702_vm15, %v8303_v30, %v8302_v27  ;;  %v1170_v20 = vsel %vm702_vm15, %v8302_v27, %v8304_v40  ;;  %v959_v51 = vadd.f32 %v956_v50, %v946_v2  ;;  %v958_v44 = vmul.f32 %v955_v38, %v8301_v62  ;;  %v8305_v49 = vld [vmem:[#allocation82_spill] sm:$0xff]  ;;  %v8308_v2 = vld [vmem:[#allocation84_spill] sm:$0xff]  ;;  %v8309_v38 = vld [vmem:[#allocation67_spill] sm:$0xff] }
0x1c54   : > { %v492_v22 = vadd.f32 %v489_v45, %v479_v52  ;;  %v1186_v58 = vperm.slane %v1168_v24, 1  ;;  %v1187_v37 = vperm.slane %v1170_v20, 1  ;;  %v730_v9 = vadd.f32 %v727_v13, %v493_v29  ;;  %v8307_v52 = vld [vmem:[#allocation69_spill] sm:$0xff]  ;;  %v8310_v50 = vld [vmem:[#allocation100_spill] sm:$0xff] }
0x1c55   : > { %v731_v48 = vadd.f32 %v728_v32, %v494_v39  ;;  %v960_v42 = vadd.f32 %v957_v54, %v947_v10  ;;  %v961_v4 = vadd.f32 %v958_v44, %v948_v8  ;;  %v1176_v43 = vperm.slane %v1168_v24, 0  ;;  %v8311_v27 = vld [vmem:[#allocation101_spill] sm:$0xff]  ;;  %v8312_v32 = vld [vmem:[#allocation98_spill] sm:$0xff] }
0x1c56   : > { %v729_v60 = vadd.f32 %v726_v25, %v492_v22  ;;  %v1401_v21 = vsel %vm468_vm10, %v8306_v18, %v8305_v49  ;;  %v1189_v36 = vmul.f32 %v1186_v58, %v8307_v52  ;;  %v1177_v45 = vperm.slane %v1170_v20, 0 }
0x1c57   : > { %v1188_v53 = vmul.f32 %v1185_v5, %v8307_v52  ;;  %v1402_v13 = vsel %vm468_vm10, %v8308_v2, %v8306_v18  ;;  %v1190_v12 = vmul.f32 %v1187_v37, %v8307_v52  ;;  %v1178_v25 = vmul.f32 %v1175_v31, %v8309_v38  ;;  %v8313_v5 = vld [vmem:[#allocation85_spill] sm:$0xff] }
0x1c58   : > { %v962_v15 = vadd.f32 %v959_v51, %v729_v60  ;;  %v1403_v62 = vsel %vm468_vm10, %v8305_v49, %v8308_v2  ;;  %v1633_v30 = vsel %vm702_vm15, %v8311_v27, %v8310_v50  ;;  %v1179_v24 = vmul.f32 %v1176_v43, %v8309_v38  ;;  %v8314_v2 = vld [vmem:[#allocation83_spill] sm:$0xff] }
0x1c59   : > { %v1180_v40 = vmul.f32 %v1177_v45, %v8309_v38  ;;  %v1409_v33 = vperm.slane %v1401_v21, 0  ;;  %v1635_v10 = vsel %vm702_vm15, %v8310_v50, %v8312_v32  ;;  %v1419_v8 = vperm.slane %v1401_v21, 1  ;;  %v8315_v50 = vld [vmem:[#allocation99_spill] sm:$0xff] }
0x1c5a   : > { %v1408_v20 = vperm.slane %v1402_v13, 0  ;;  %v1418_v29 = vperm.slane %v1402_v13, 1  ;;  %v1634_v22 = vsel %vm702_vm15, %v8312_v32, %v8311_v27  ;;  %v1410_v39 = vperm.slane %v1403_v62, 0  ;;  %v8316_v27 = vld [vmem:[#allocation102_spill] sm:$0xff] }
0x1c5b   : > { %v1420_v51 = vperm.slane %v1403_v62, 1  ;;  %v1641_v54 = vperm.slane %v1633_v30, 0  ;;  %v1651_v44 = vperm.slane %v1633_v30, 1  ;;  %v1191_v58 = vadd.f32 %v1188_v53, %v1178_v25 }
0x1c5c   : > { %v1411_v60 = vmul.f32 %v1408_v20, %v8313_v5  ;;  %v1642_v37 = vperm.slane %v1635_v10, 0  ;;  %v1652_v43 = vperm.slane %v1635_v10, 1  ;;  %v1412_v31 = vmul.f32 %v1409_v33, %v8313_v5 }
0x1c5d   : > { %v1413_v49 = vmul.f32 %v1410_v39, %v8313_v5  ;;  %v1640_v18 = vperm.slane %v1634_v22, 0  ;;  %v1650_v21 = vperm.slane %v1634_v22, 1  ;;  %v1192_v52 = vadd.f32 %v1189_v36, %v1179_v24  ;;  %v8317_v5 = vld [vmem:[#allocation117_spill] sm:$0xff] }
0x1c5e   : > { %v1193_v45 = vadd.f32 %v1190_v12, %v1180_v40  ;;  %v1422_v13 = vmul.f32 %v1419_v8, %v8314_v2  ;;  %v1421_v38 = vmul.f32 %v1418_v29, %v8314_v2  ;;  %v1423_v62 = vmul.f32 %v1420_v51, %v8314_v2 }
0x1c5f   : > { %v1643_v53 = vmul.f32 %v1640_v18, %v8315_v50  ;;  %v1644_v25 = vmul.f32 %v1641_v54, %v8315_v50  ;;  %v1654_v30 = vmul.f32 %v1651_v44, %v8316_v27  ;;  %v963_v32 = vadd.f32 %v960_v42, %v730_v9  ;;  %v8318_v54 = vld [vmem:[#allocation120_spill] sm:$0xff]  ;;  %v8322_v18 = vld [vmem:[#allocation135_spill] sm:$0xff] }
0x1c60   : > { %v964_v33 = vadd.f32 %v961_v4, %v731_v48  ;;  %v1645_v10 = vmul.f32 %v1642_v37, %v8315_v50  ;;  %v1655_v20 = vmul.f32 %v1652_v43, %v8316_v27  ;;  %v1424_v36 = vadd.f32 %v1421_v38, %v1411_v60  ;;  %v8319_v37 = vld [vmem:[#allocation118_spill] sm:$0xff] }
0x1c61   : > { %v1425_v12 = vadd.f32 %v1422_v13, %v1412_v31  ;;  %v1426_v24 = vadd.f32 %v1423_v62, %v1413_v49  ;;  %v1653_v40 = vmul.f32 %v1650_v21, %v8316_v27  ;;  %v1194_v8 = vadd.f32 %v1191_v58, %v962_v15  ;;  %v8320_v58 = vld [vmem:[#allocation137_spill] sm:$0xff]  ;;  %v8321_v31 = vld [vmem:[#allocation138_spill] sm:$0xff] }
0x1c62   : > { %v1195_v29 = vadd.f32 %v1192_v52, %v963_v32  ;;  %v1196_v22 = vadd.f32 %v1193_v45, %v964_v33  ;;  %v1657_v51 = vadd.f32 %v1654_v30, %v1644_v25  ;;  %v1867_v9 = vsel %vm468_vm10, %v8318_v54, %v8317_v5 }
0x1c63   : > { %v1656_v39 = vadd.f32 %v1653_v40, %v1643_v53  ;;  %v1658_v48 = vadd.f32 %v1655_v20, %v1645_v10  ;;  %v1427_v42 = vadd.f32 %v1424_v36, %v1194_v8  ;;  %v1866_v60 = vsel %vm468_vm10, %v8317_v5, %v8319_v37  ;;  %v8323_v53 = vld [vmem:[#allocation121_spill] sm:$0xff]  ;;  %v8324_v36 = vld [vmem:[#allocation119_spill] sm:$0xff] }
0x1c64   : > { %v1428_v4 = vadd.f32 %v1425_v12, %v1195_v29  ;;  %v1429_v44 = vadd.f32 %v1426_v24, %v1196_v22  ;;  %v1873_v43 = vperm.slane %v1867_v9, 0  ;;  %v1883_v15 = vperm.slane %v1867_v9, 1  ;;  %v8325_v29 = vld [vmem:[#allocation155_spill] sm:$0xff]  ;;  %v8326_v22 = vld [vmem:[#allocation154_spill] sm:$0xff] }
0x1c65   : > { %v2098_v49 = vsel %vm702_vm15, %v8321_v31, %v8320_v58  ;;  %v2100_v21 = vsel %vm702_vm15, %v8320_v58, %v8322_v18  ;;  %v1659_v52 = vadd.f32 %v1656_v39, %v1427_v42  ;;  %v1868_v2 = vsel %vm468_vm10, %v8319_v37, %v8318_v54  ;;  %v8328_v42 = vld [vmem:[#allocation136_spill] sm:$0xff] }
0x1c66   : > { %v1660_v45 = vadd.f32 %v1657_v51, %v1428_v4  ;;  %v2099_v13 = vsel %vm702_vm15, %v8322_v18, %v8321_v31  ;;  %v1661_v38 = vadd.f32 %v1658_v48, %v1429_v44  ;;  %v1874_v62 = vperm.slane %v1866_v60, 0  ;;  %v8327_v51 = vld [vmem:[#allocation157_spill] sm:$0xff] }
0x1c67   : > { %v1884_v50 = vperm.slane %v1866_v60, 1  ;;  %v1876_v25 = vmul.f32 %v1873_v43, %v8323_v53  ;;  %v2106_v27 = vperm.slane %v2098_v49, 0  ;;  %v2107_v30 = vperm.slane %v2100_v21, 0  ;;  %v8329_v60 = vld [vmem:[#allocation139_spill] sm:$0xff] }
0x1c68   : > { %v2116_v32 = vperm.slane %v2098_v49, 1  ;;  %v2117_v33 = vperm.slane %v2100_v21, 1  ;;  %v1875_v10 = vperm.slane %v1868_v2, 0  ;;  %v1885_v20 = vperm.slane %v1868_v2, 1 }
0x1c69   : > { %v1886_v12 = vmul.f32 %v1883_v15, %v8324_v36  ;;  %v2105_v24 = vperm.slane %v2099_v13, 0  ;;  %v1877_v40 = vmul.f32 %v1874_v62, %v8323_v53  ;;  %v2115_v8 = vperm.slane %v2099_v13, 1 }
0x1c6a   : > { %v2331_v39 = vsel %vm468_vm10, %v8326_v22, %v8325_v29  ;;  %v2332_v5 = vsel %vm468_vm10, %v8327_v51, %v8326_v22  ;;  %v1887_v54 = vmul.f32 %v1884_v50, %v8324_v36  ;;  %v1878_v9 = vmul.f32 %v1875_v10, %v8323_v53 }
0x1c6b   : > { %v1889_v48 = vadd.f32 %v1886_v12, %v1876_v25  ;;  %v2108_v4 = vmul.f32 %v2105_v24, %v8328_v42  ;;  %v2109_v44 = vmul.f32 %v2106_v27, %v8328_v42  ;;  %v2110_v37 = vmul.f32 %v2107_v30, %v8328_v42  ;;  %v8330_v25 = vld [vmem:[#allocation158_spill] sm:$0xff]  ;;  %v8331_v30 = vld [vmem:[#allocation172_spill] sm:$0xff] }
0x1c6c   : > { %v2119_v43 = vmul.f32 %v2116_v32, %v8329_v60  ;;  %v2120_v15 = vmul.f32 %v2117_v33, %v8329_v60  ;;  %v1888_v58 = vmul.f32 %v1885_v20, %v8324_v36  ;;  %v2349_v31 = vperm.slane %v2331_v39, 1  ;;  %v8332_v32 = vld [vmem:[#allocation169_spill] sm:$0xff]  ;;  %v8333_v24 = vld [vmem:[#allocation156_spill] sm:$0xff] }
0x1c6d   : > { %v2338_v49 = vperm.slane %v2332_v5, 0  ;;  %v2348_v18 = vperm.slane %v2332_v5, 1  ;;  %v1890_v21 = vadd.f32 %v1887_v54, %v1877_v40  ;;  %v2118_v2 = vmul.f32 %v2115_v8, %v8329_v60  ;;  %v8335_v60 = vld [vmem:[#allocation170_spill] sm:$0xff] }
0x1c6e   : > { %v2339_v13 = vperm.slane %v2331_v39, 0  ;;  %v2333_v62 = vsel %vm468_vm10, %v8325_v29, %v8327_v51  ;;  %v1891_v50 = vadd.f32 %v1888_v58, %v1878_v9  ;;  %v1892_v53 = vadd.f32 %v1889_v48, %v1659_v52  ;;  %v8334_v51 = vld [vmem:[#allocation171_spill] sm:$0xff] }
0x1c6f   : > { %v2341_v27 = vmul.f32 %v2338_v49, %v8330_v25  ;;  %v2564_v33 = vsel %vm702_vm15, %v8332_v32, %v8331_v30  ;;  %v2121_v10 = vadd.f32 %v2118_v2, %v2108_v4  ;;  %v2122_v20 = vadd.f32 %v2119_v43, %v2109_v44 }
0x1c70   : > { %v2123_v36 = vadd.f32 %v2120_v15, %v2110_v37  ;;  %v2342_v12 = vmul.f32 %v2339_v13, %v8330_v25  ;;  %v2352_v40 = vmul.f32 %v2349_v31, %v8333_v24  ;;  %v2340_v8 = vperm.slane %v2333_v62, 0  ;;  %v8336_v13 = vld [vmem:[#allocation173_spill] sm:$0xff] }
0x1c71   : > { %v2350_v22 = vperm.slane %v2333_v62, 1  ;;  %v2351_v29 = vmul.f32 %v2348_v18, %v8333_v24  ;;  %v2570_v39 = vperm.slane %v2564_v33, 0  ;;  %v2580_v52 = vperm.slane %v2564_v33, 1 }
0x1c72   : > { %v2563_v5 = vsel %vm702_vm15, %v8331_v30, %v8334_v51  ;;  %v2565_v54 = vsel %vm702_vm15, %v8334_v51, %v8332_v32  ;;  %v1893_v9 = vadd.f32 %v1890_v21, %v1660_v45  ;;  %v2343_v48 = vmul.f32 %v2340_v8, %v8330_v25  ;;  %v8337_v21 = vld [vmem:[#allocation187_spill] sm:$0xff]  ;;  %v8338_v25 = vld [vmem:[#allocation190_spill] sm:$0xff] }
0x1c73   : > { %v2354_v42 = vadd.f32 %v2351_v29, %v2341_v27  ;;  %v1894_v4 = vadd.f32 %v1891_v50, %v1661_v38  ;;  %v2124_v44 = vadd.f32 %v2121_v10, %v1892_v53  ;;  %v2355_v37 = vadd.f32 %v2352_v40, %v2342_v12  ;;  %v8339_v27 = vld [vmem:[#allocation188_spill] sm:$0xff] }
0x1c74   : > { %v2573_v43 = vmul.f32 %v2570_v39, %v8335_v60  ;;  %v2353_v15 = vmul.f32 %v2350_v22, %v8333_v24  ;;  %v2571_v58 = vperm.slane %v2563_v5, 0  ;;  %v2572_v31 = vperm.slane %v2565_v54, 0  ;;  %v8340_v24 = vld [vmem:[#allocation215_spill] sm:$0xff]  ;;  %v8341_v40 = vld [vmem:[#allocation204_spill] sm:$0xff]  ;;  %v8342_v39 = vld [vmem:[#allocation206_spill] sm:$0xff] }
0x1c75   : > { %v2581_v49 = vperm.slane %v2563_v5, 1  ;;  %v2125_v18 = vadd.f32 %v2122_v20, %v1893_v9  ;;  %v2126_v2 = vadd.f32 %v2123_v36, %v1894_v4  ;;  %v2583_v62 = vmul.f32 %v2580_v52, %v8336_v13  ;;  %v8343_v4 = vld [vmem:[#allocation191_spill] sm:$0xff] }
0x1c76   : > { %v2356_v30 = vadd.f32 %v2353_v15, %v2343_v48  ;;  %v2357_v32 = vadd.f32 %v2354_v42, %v2124_v44  ;;  %v2582_v45 = vperm.slane %v2565_v54, 1  ;;  %v2797_v38 = vsel %vm468_vm10, %v8338_v25, %v8337_v21 }
0x1c77   : > { %v2358_v50 = vadd.f32 %v2355_v37, %v2125_v18  ;;  %v2586_v53 = vadd.f32 %v2583_v62, %v2573_v43  ;;  %v2796_v33 = vsel %vm468_vm10, %v8337_v21, %v8339_v27  ;;  %v2798_v10 = vsel %vm468_vm10, %v8339_v27, %v8338_v25  ;;  %v8344_v18 = vld [vmem:[#allocation189_spill] sm:$0xff] }
0x1c78   : > { %v2574_v20 = vmul.f32 %v2571_v58, %v8335_v60  ;;  %v2575_v36 = vmul.f32 %v2572_v31, %v8335_v60  ;;  %v2584_v12 = vmul.f32 %v2581_v49, %v8336_v13  ;;  %v3029_v8 = vsel %vm702_vm15, %v8341_v40, %v8340_v24 }
0x1c79   : > { %v2803_v22 = vperm.slane %v2797_v38, 0  ;;  %v2813_v29 = vperm.slane %v2797_v38, 1  ;;  %v3028_v52 = vsel %vm702_vm15, %v8340_v24, %v8342_v39  ;;  %v3030_v51 = vsel %vm702_vm15, %v8342_v39, %v8341_v40  ;;  %v8346_v39 = vld [vmem:[#allocation216_spill] sm:$0xff] }
0x1c7a   : > { %v2585_v5 = vmul.f32 %v2582_v45, %v8336_v13  ;;  %v2804_v54 = vperm.slane %v2796_v33, 0  ;;  %v2814_v9 = vperm.slane %v2796_v33, 1  ;;  %v2805_v48 = vperm.slane %v2798_v10, 0  ;;  %v8345_v13 = vld [vmem:[#allocation205_spill] sm:$0xff] }
0x1c7b   : > { %v2815_v42 = vperm.slane %v2798_v10, 1  ;;  %v2806_v44 = vmul.f32 %v2803_v22, %v8343_v4  ;;  %v3035_v37 = vperm.slane %v3029_v8, 0  ;;  %v3045_v60 = vperm.slane %v3029_v8, 1 }
0x1c7c   : > { %v3036_v15 = vperm.slane %v3028_v52, 0  ;;  %v3037_v58 = vperm.slane %v3030_v51, 0  ;;  %v3046_v31 = vperm.slane %v3028_v52, 1  ;;  %v3047_v49 = vperm.slane %v3030_v51, 1 }
0x1c7d   : > { %v2816_v62 = vmul.f32 %v2813_v29, %v8344_v18  ;;  %v2807_v21 = vmul.f32 %v2804_v54, %v8343_v4  ;;  %v2808_v25 = vmul.f32 %v2805_v48, %v8343_v4  ;;  %v3038_v45 = vmul.f32 %v3035_v37, %v8345_v13 }
0x1c7e   : > { %v2359_v27 = vadd.f32 %v2356_v30, %v2126_v2  ;;  %v2587_v33 = vadd.f32 %v2584_v12, %v2574_v20  ;;  %v2588_v10 = vadd.f32 %v2585_v5, %v2575_v36  ;;  %v2817_v40 = vmul.f32 %v2814_v9, %v8344_v18  ;;  %v3595_v5 = vld.sshfl [vmem:[#allocation1 + $0x10] sm:$0xff pattern:$0x73625140]  ;;  %v3593_v9 = vld.sshfl [vmem:[#allocation1] sm:$0xff pattern:$0x73625140] }
0x1c7f   : > { %v2818_v8 = vmul.f32 %v2815_v42, %v8344_v18  ;;  %v2819_v22 = vadd.f32 %v2816_v62, %v2806_v44  ;;  %v3048_v29 = vmul.f32 %v3045_v60, %v8346_v39  ;;  %v3039_v52 = vmul.f32 %v3036_v15, %v8345_v13  ;;  %v3596_v60 = vld.sshfl [vmem:[#allocation1 + $0x18] sm:$0xff pattern:$0x73625140]  ;;  %v3594_v18 = vld.sshfl [vmem:[#allocation1 + $0x8] sm:$0xff pattern:$0x73625140] }
0x1c80   : > { %v3040_v51 = vmul.f32 %v3037_v58, %v8345_v13  ;;  %v3049_v54 = vmul.f32 %v3046_v31, %v8346_v39  ;;  %v3050_v2 = vmul.f32 %v3047_v49, %v8346_v39  ;;  %v2589_v30 = vadd.f32 %v2586_v53, %v2357_v32  ;;  %3647 = vst [vmem:[#allocation1] ss:$4 sm:$0xff] %v6288_v6 }
0x1c81   : > { %v2820_v20 = vadd.f32 %v2817_v40, %v2807_v21  ;;  %v2821_v36 = vadd.f32 %v2818_v8, %v2808_v25  ;;  %v3051_v12 = vadd.f32 %v3048_v29, %v3038_v45  ;;  %v2590_v4 = vadd.f32 %v2587_v33, %v2358_v50 }
0x1c82   : > { %v2591_v42 = vadd.f32 %v2588_v10, %v2359_v27  ;;  %v2822_v44 = vadd.f32 %v2819_v22, %v2589_v30  ;;  %v3052_v15 = vadd.f32 %v3049_v54, %v3039_v52  ;;  %v3053_v62 = vadd.f32 %v3050_v2, %v3040_v51  ;;  %v8347_v22 = vld [vmem:[#allocation232_spill] sm:$0xff] }
0x1c83   : > { %v2823_v31 = vadd.f32 %v2820_v20, %v2590_v4  ;;  %v8348_v20 = vld [vmem:[#allocation233_spill] sm:$0xff] }
0x1c84   : > { %v2824_v49 = vadd.f32 %v2821_v36, %v2591_v42  ;;  %v3054_v32 = vadd.f32 %v3051_v12, %v2822_v44  ;;  %v8349_v36 = vld [vmem:[#allocation234_spill] sm:$0xff] }
0x1c86   : > { %v3056_v8 = vadd.f32 %v3053_v62, %v2824_v49  ;;  %v3287_v39 = vadd.f32 %v8347_v22, %v3054_v32  ;;  %v8350_v62 = vld [vmem:[#allocation207_spill] sm:$0xff]  ;;  %v8352_v32 = vld [vmem:[#allocation209_spill] sm:$0xff] }
0x1c88   : > { %v3289_v12 = vadd.f32 %v8349_v36, %v3056_v8  ;;  %v8357_v8 = vld [vmem:[#allocation214_spill] sm:$0xff] }
0x1c98   : > { %v3490_v43 = vpop.permute.xlu2 %3489 }
0x1ca1   : > { %v3508_v37 = vpop.permute.xlu2 %3507 }
0x1cb0   : > { %v3488_v38 = vpop.permute.xlu1 %3487 }
0x1cb1   : > { %v3494_v24 = vsel %vm702_vm15, %v3488_v38, %v3490_v43 }
0x1cb2   : > { %v3510_v48 = vperm.slane %v3494_v24, 1  ;;  %v3500_v58 = vperm.slane %v3494_v24, 0  ;;  %v3055_v24 = vadd.f32 %v3052_v15, %v2823_v31  ;;  %v8351_v31 = vld [vmem:[#allocation208_spill] sm:$0xff] }
0x1cb4   : > { %v3513_v25 = vmul.f32 %v3510_v48, %v3508_v37 }
0x1cb8   : > { %v3498_v53 = vpop.permute.xlu1 %3497  ;;  %v3492_v21 = vpop.permute.xlu0 %3491 }
0x1cb9   : > { %v3503_v13 = vmul.f32 %v3500_v58, %v3498_v53  ;;  %v3493_v50 = vsel %vm702_vm15, %v3490_v43, %v3492_v21  ;;  %v3495_v45 = vsel %vm702_vm15, %v3492_v21, %v3488_v38  ;;  %v3288_v43 = vadd.f32 %v8348_v20, %v3055_v24  ;;  %v8361_v20 = vld [vmem:[#allocation4_spill] sm:$0xff] }
0x1cba   : > { %v3501_v27 = vperm.slane %v3493_v50, 0  ;;  %v3502_v33 = vperm.slane %v3495_v45, 0  ;;  %v3511_v10 = vperm.slane %v3493_v50, 1  ;;  %v3512_v40 = vperm.slane %v3495_v45, 1  ;;  %v8355_v50 = vld [vmem:[#allocation212_spill] sm:$0xff] }
0x1cbb   : > { %v3516_v29 = vadd.f32 %v3513_v25, %v3503_v13  ;;  %v8354_v25 = vld [vmem:[#allocation211_spill] sm:$0xff] }
0x1cbc   : > { %v3504_v52 = vmul.f32 %v3501_v27, %v3498_v53  ;;  %v3505_v51 = vmul.f32 %v3502_v33, %v3498_v53  ;;  %v3514_v54 = vmul.f32 %v3511_v10, %v3508_v37  ;;  %v3515_v2 = vmul.f32 %v3512_v40, %v3508_v37  ;;  %v8353_v53 = vld [vmem:[#allocation210_spill] sm:$0xff]  ;;  %v8356_v40 = vld [vmem:[#allocation213_spill] sm:$0xff] }
0x1cbd   : > { %v7140_v30 = vadd.f32 %v3516_v29, %v3287_v39  ;;  %v8358_v29 = vld [vmem:[#allocation5_spill] sm:$0xff] }
0x1cbe   : > { %v3517_v38 = vadd.f32 %v3514_v54, %v3504_v52  ;;  %v3518_v48 = vadd.f32 %v3515_v2, %v3505_v51  ;;  %v8359_v52 = vld [vmem:[#allocation26_spill] sm:$0xff]  ;;  %v8360_v54 = vld [vmem:[#allocation28_spill] sm:$0xff] }
0x1cbf   : > { %v331_v51 = vmul.f32 %v8359_v52, %v8358_v29  ;;  %v328_v2 = vmul.f32 %v8360_v54, %v8358_v29  ;;  %v8375_v54 = vld [vmem:[#allocation57_spill] sm:$0xff] }
0x1cc0   : > { %v7144_v4 = vadd.f32 %v3517_v38, %v3288_v43  ;;  %v7146_v42 = vadd.f32 %v3518_v48, %v3289_v12  ;;  %v3525_v44 = vpop.permute.xlu0 %3524  ;;  %v8362_v43 = vld [vmem:[#allocation23_spill] sm:$0xff]  ;;  %v8365_v48 = vld [vmem:[#allocation25_spill] sm:$0xff] }
0x1cc1   : > { %v3546_v15 = vpop.permute.xlu1 %3545  ;;  %v3540_v58 = vmul.f32 %v3525_v44, %v8350_v62  ;;  %v3541_v49 = vmul.f32 %v3525_v44, %v8351_v31  ;;  %v3543_v37 = vmul.f32 %v3525_v44, %v8352_v32  ;;  %v3542_v22 = vmul.f32 %v3525_v44, %v8357_v8  ;;  %v8363_v12 = vld [vmem:[#allocation27_spill] sm:$0xff]  ;;  %v8367_v62 = vld [vmem:[#allocation29_spill] sm:$0xff]  ;;  %v8369_v32 = vld [vmem:[#allocation48_spill] sm:$0xff] }
0x1cc2   : > { %v3560_v21 = vmul.f32 %v3546_v15, %v8353_v53  ;;  %v3561_v13 = vmul.f32 %v3546_v15, %v8354_v25  ;;  %v3563_v45 = vmul.f32 %v3546_v15, %v8355_v50  ;;  %v3562_v24 = vmul.f32 %v3546_v15, %v8356_v40  ;;  %v8370_v53 = vld [vmem:[#allocation49_spill] sm:$0xff]  ;;  %v8373_v8 = vld [vmem:[#allocation39_spill] sm:$0xff] }
0x1cc3   : > { %v311_v36 = vmul.f32 %v8362_v43, %v8361_v20  ;;  %v329_v38 = vmul.f32 %v8363_v12, %v8358_v29  ;;  %v8372_v40 = vld [vmem:[#allocation37_spill] sm:$0xff]  ;;  %v8377_v43 = vld [vmem:[#allocation56_spill] sm:$0xff] }
0x1cc4   : > { %v3567_v27 = vadd.f32 %v3563_v45, %v3543_v37  ;;  %v3565_v33 = vadd.f32 %v3561_v13, %v3541_v49  ;;  %v3564_v10 = vadd.f32 %v3560_v21, %v3540_v58  ;;  %v3566_v39 = vadd.f32 %v3562_v24, %v3542_v22  ;;  %v8368_v49 = vld [vmem:[#allocation53_spill] sm:$0xff]  ;;  %v8374_v22 = vld [vmem:[#allocation36_spill] sm:$0xff] }
0x1cc5   : > { %v335_v44 = vadd.f32 %v331_v51, %v311_v36  ;;  %v310_v58 = vmul.f32 %v8367_v62, %v8361_v20  ;;  %v557_v37 = vsel %vm556_vm11, %v8369_v32, %v8368_v49  ;;  %v558_v21 = vsel %vm556_vm11, %v8368_v49, %v8370_v53 }
0x1cc6   : > { %3578 = vrot.lane.b32.xlu0 %v3567_v27, %s4940_s10  ;;  %3574 = vrot.lane.b32.xlu1 %v3565_v33, %s4940_s10  ;;  %v792_v52 = vsel %vm790_vm0, %v8373_v8, %v8372_v40  ;;  %v1026_v36 = vsel %vm556_vm11, %v8375_v54, %v8377_v43 }
0x1cc7   : > { %3572 = vrot.lane.b32.xlu2 %v3564_v10, %s4940_s10  ;;  %v566_v25 = vadd.f32 %v8370_v53, %v335_v44  ;;  %v8371_v10 = vld [vmem:[#allocation38_spill] sm:$0xff]  ;;  %v8383_v53 = vld [vmem:[#allocation87_spill] sm:$0xff] }
0x1cc8   : > { %v793_v24 = vsel %vm790_vm0, %v8372_v40, %v8371_v10  ;;  %v8386_v40 = vld [vmem:[#allocation104_spill] sm:$0xff] }
0x1cce   : > { %3601 = vrot.lane.b32.xlu0 %v3595_v5, %s4941_s11  ;;  %3597 = vrot.lane.b32.xlu1 %v3593_v9, %s4941_s11  ;;  %v8364_v5 = vld [vmem:[#allocation30_spill] sm:$0xff] }
0x1ccf   : > { %3576 = vrot.lane.b32.xlu2 %v3566_v39, %s4940_s10  ;;  %v330_v9 = vmul.f32 %v8364_v5, %v8358_v29  ;;  %v791_v39 = vsel %vm790_vm0, %v8374_v22, %v8373_v8  ;;  %v801_v29 = vadd.f32 %v8371_v10, %v566_v25  ;;  %v8384_v25 = vld [vmem:[#allocation88_spill] sm:$0xff]  ;;  %v8385_v10 = vld [vmem:[#allocation105_spill] sm:$0xff]  ;;  %v8387_v8 = vld [vmem:[#allocation106_spill] sm:$0xff]  ;;  %vm3605_vm0 = vcmask 285696  }
0x1cd0   : > { %v8388_v22 = vld [vmem:[#allocation103_spill] sm:$0xff] }
0x1cd1   : > { %v334_v50 = vadd.f32 %v330_v9, %v310_v58  ;;  %v1034_v12 = vadd.f32 %v8377_v43, %v801_v29  ;;  %v1722_v29 = vsel %vm1720_vm4, %v8387_v8, %v8386_v40  ;;  %v8390_v43 = vld [vmem:[#allocation123_spill] sm:$0xff] }
0x1cd3   : > { %v565_v33 = vadd.f32 %v558_v21, %v334_v50 }
0x1cd5   : > { %v800_v5 = vadd.f32 %v793_v24, %v565_v33  ;;  %v1723_v24 = vsel %vm1720_vm4, %v8386_v40, %v8385_v10 }
0x1cd6   : > { %3603 = vrot.lane.b32.xlu1 %v3596_v60, %s4941_s11  ;;  %v308_v60 = vmul.f32 %v8365_v48, %v8361_v20  ;;  %v8378_v48 = vld [vmem:[#allocation72_spill] sm:$0xff] }
0x1cd7   : > { %3599 = vrot.lane.b32.xlu2 %v3594_v18, %s4941_s11  ;;  %v8366_v18 = vld [vmem:[#allocation24_spill] sm:$0xff]  ;;  %v1033_v49 = vadd.f32 %v1026_v36, %v800_v5 }
0x1cd8   : > { %v309_v15 = vmul.f32 %v8366_v18, %v8361_v20  ;;  %v332_v31 = vadd.f32 %v328_v2, %v308_v60  ;;  %v8376_v2 = vld [vmem:[#allocation55_spill] sm:$0xff]  ;;  %v8380_v18 = vld [vmem:[#allocation73_spill] sm:$0xff] }
0x1cd9   : > { %v1025_v20 = vsel %vm556_vm11, %v8376_v2, %v8375_v54  ;;  %v8379_v60 = vld [vmem:[#allocation71_spill] sm:$0xff] }
0x1cda   : > { %v333_v13 = vadd.f32 %v329_v38, %v309_v15  ;;  %v563_v45 = vadd.f32 %v8369_v32, %v332_v31  ;;  %v1258_v44 = vsel %vm1255_vm2, %v8379_v60, %v8378_v48  ;;  %v8381_v15 = vld [vmem:[#allocation70_spill] sm:$0xff]  ;;  %v1257_v58 = vsel %vm1255_vm2, %v8380_v18, %v8379_v60 }
0x1cdb   : > { %v1256_v62 = vsel %vm1255_vm2, %v8381_v15, %v8380_v18  ;;  %v1266_v32 = vadd.f32 %v8378_v48, %v1034_v12  ;;  %v1265_v50 = vadd.f32 %v1258_v44, %v1033_v49  ;;  %v8391_v12 = vld [vmem:[#allocation124_spill] sm:$0xff]  ;;  %v8392_v60 = vld [vmem:[#allocation142_spill] sm:$0xff]  ;;  %v8393_v44 = vld [vmem:[#allocation141_spill] sm:$0xff]  ;;  %v4942_v15 = vmov 115  }
0x1cdc   : > { %v564_v27 = vadd.f32 %v557_v37, %v333_v13  ;;  %v798_v51 = vadd.f32 %v791_v39, %v563_v45  ;;  %v8382_v37 = vld [vmem:[#allocation86_spill] sm:$0xff]  ;;  %v1490_v13 = vsel %vm556_vm11, %v8384_v25, %v8383_v53  ;;  %v1721_v39 = vsel %vm1720_vm4, %v8388_v22, %v8387_v8  ;;  %4728 = vset.pattern.permute.xlu0 %v4942_v15  ;;  %v8399_v22 = vld [vmem:[#allocation176_spill] sm:$0xff] }
0x1cdd   : > { %v1491_v21 = vsel %vm556_vm11, %v8383_v53, %v8382_v37  ;;  %v1499_v33 = vadd.f32 %v8382_v37, %v1266_v32  ;;  %v2188_v18 = vsel %vm2185_vm5, %v8393_v44, %v8392_v60  ;;  %v8405_v60 = vld [vmem:[#allocation194_spill] sm:$0xff] }
0x1cde   : > { %v799_v38 = vadd.f32 %v792_v52, %v564_v27  ;;  %v1031_v9 = vadd.f32 %v8376_v2, %v798_v51  ;;  %v1498_v52 = vadd.f32 %v1491_v21, %v1265_v50  ;;  %v8396_v50 = vld [vmem:[#allocation159_spill] sm:$0xff] }
0x1cdf   : > { %v1731_v2 = vadd.f32 %v8385_v10, %v1499_v33  ;;  %v8398_v33 = vld [vmem:[#allocation161_spill] sm:$0xff] }
0x1ce0   : > { %v1032_v31 = vadd.f32 %v1025_v20, %v799_v38  ;;  %v1263_v45 = vadd.f32 %v1256_v62, %v1031_v9  ;;  %v8389_v20 = vld [vmem:[#allocation122_spill] sm:$0xff]  ;;  %v1955_v38 = vsel %vm556_vm11, %v8391_v12, %v8390_v43  ;;  %v1730_v5 = vadd.f32 %v1723_v24, %v1498_v52 }
0x1ce1   : > { %v1956_v36 = vsel %vm556_vm11, %v8390_v43, %v8389_v20  ;;  %v1964_v62 = vadd.f32 %v8389_v20, %v1731_v2 }
0x1ce2   : > { %v1264_v27 = vadd.f32 %v1257_v58, %v1032_v31  ;;  %v1496_v51 = vadd.f32 %v8384_v25, %v1263_v45  ;;  %v8394_v58 = vld [vmem:[#allocation143_spill] sm:$0xff]  ;;  %v8395_v31 = vld [vmem:[#allocation140_spill] sm:$0xff]  ;;  %v1963_v37 = vadd.f32 %v1956_v36, %v1730_v5 }
0x1ce3   : > { %v2186_v49 = vsel %vm2185_vm5, %v8395_v31, %v8394_v58  ;;  %v2187_v32 = vsel %vm2185_vm5, %v8394_v58, %v8393_v44  ;;  %v8397_v45 = vld [vmem:[#allocation160_spill] sm:$0xff] }
0x1ce4   : > { %v1497_v54 = vadd.f32 %v1490_v13, %v1264_v27  ;;  %v1728_v9 = vadd.f32 %v1721_v39, %v1496_v51  ;;  %v2196_v13 = vadd.f32 %v2188_v18, %v1964_v62  ;;  %v2421_v27 = vsel %vm556_vm11, %v8397_v45, %v8396_v50  ;;  %v8400_v39 = vld [vmem:[#allocation175_spill] sm:$0xff]  ;;  %v8401_v51 = vld [vmem:[#allocation177_spill] sm:$0xff]  ;;  %v8403_v5 = vld [vmem:[#allocation192_spill] sm:$0xff] }
0x1ce5   : > { %v2420_v10 = vsel %vm556_vm11, %v8398_v33, %v8397_v45  ;;  %v2195_v8 = vadd.f32 %v2187_v32, %v1963_v37  ;;  %v2652_v20 = vsel %vm2650_vm6, %v8401_v51, %v8400_v39  ;;  %v8408_v37 = vld [vmem:[#allocation220_spill] sm:$0xff] }
0x1ce6   : > { %v1729_v48 = vadd.f32 %v1722_v29, %v1497_v54  ;;  %v1961_v53 = vadd.f32 %v8391_v12, %v1728_v9  ;;  %v2653_v29 = vsel %vm2650_vm6, %v8400_v39, %v8399_v22  ;;  %v2429_v52 = vadd.f32 %v8396_v50, %v2196_v13  ;;  %v8402_v54 = vld [vmem:[#allocation174_spill] sm:$0xff]  ;;  %v8404_v9 = vld [vmem:[#allocation193_spill] sm:$0xff] }
0x1ce7   : > { %v2651_v2 = vsel %vm2650_vm6, %v8402_v54, %v8401_v51  ;;  %v2428_v43 = vadd.f32 %v2421_v27, %v2195_v8  ;;  %v2885_v44 = vsel %vm556_vm11, %v8405_v60, %v8404_v9 }
0x1ce8   : > { %v1962_v21 = vadd.f32 %v1955_v38, %v1729_v48  ;;  %v2193_v40 = vadd.f32 %v8395_v31, %v1961_v53  ;;  %v2661_v38 = vadd.f32 %v2653_v29, %v2429_v52  ;;  %v2886_v48 = vsel %vm556_vm11, %v8404_v9, %v8403_v5  ;;  %v8406_v31 = vld [vmem:[#allocation219_spill] sm:$0xff]  ;;  %v8409_v53 = vld [vmem:[#allocation217_spill] sm:$0xff] }
0x1ce9   : > { %v2660_v62 = vadd.f32 %v2652_v20, %v2428_v43 }
0x1cea   : > { %v2194_v24 = vadd.f32 %v2186_v49, %v1962_v21  ;;  %v2426_v36 = vadd.f32 %v8398_v33, %v2193_v40  ;;  %v2894_v58 = vadd.f32 %v8403_v5, %v2661_v38  ;;  %v8407_v49 = vld [vmem:[#allocation218_spill] sm:$0xff]  ;;  %v3116_v21 = vsel %vm3115_vm7, %v8409_v53, %v8408_v37 }
0x1ceb   : > { %v3118_v32 = vsel %vm3115_vm7, %v8407_v49, %v8406_v31  ;;  %v3117_v13 = vsel %vm3115_vm7, %v8408_v37, %v8407_v49  ;;  %v2893_v50 = vadd.f32 %v2886_v48, %v2660_v62  ;;  %v595_v49 = vsel %vm592_vm12, %v5199_v19, %v5202_v26  ;;  %v8410_v26 = vld [vmem:[#allocation3_spill] sm:$0xff] }
0x1cec   : > { %v2427_v12 = vadd.f32 %v2420_v10, %v2194_v24  ;;  %v2658_v18 = vadd.f32 %v8402_v54, %v2426_v36  ;;  %v3126_v33 = vadd.f32 %v8406_v31, %v2894_v58  ;;  %v7286_v58 = vld [vmem:[%s5043_s19] sm:$0xff]  ;;  %v367_v31 = vsel %vm364_vm13, %v5181_v1, %v5183_v7  ;;  %s4412_s19 = sshll.u32 %s4787_s21, 1 }
0x1ced   : > { %v3125_v10 = vadd.f32 %v3118_v32, %v2893_v50  ;;  %v830_v32 = vsel %vm364_vm13, %v5320_v47, %v5316_v63  ;;  %v374_v37 = vperm.slane %v367_v31, 0  ;;  %v384_v53 = vperm.slane %v367_v31, 1  ;;  %v8411_v47 = vld [vmem:[#allocation11_spill] sm:$0xff]  ;;  %v8424_v31 = vld [vmem:[#allocation129_spill] sm:$0xff]  ;;  %s4063_s17 = scalar_lea.vmem %s7708_s5, %s4412_s19 }
0x1cee   : > { %v2659_v15 = vadd.f32 %v2651_v2, %v2427_v12  ;;  %v2891_v45 = vadd.f32 %v8405_v60, %v2658_v18  ;;  %v3359_v22 = vadd.f32 %v6453_v28, %v3126_v33  ;;  %v3648_v12 = vld.sshfl [vmem:[#allocation1] sm:$0xff pattern:$0x73625140]  ;;  %v3650_v28 = vld.sshfl [vmem:[#allocation1 + $0x10] sm:$0xff pattern:$0x73625140]  ;;  %v1062_v1 = vsel %vm592_vm12, %v5451_v46, %v5447_v0 }
0x1cef   : > { %v3358_v39 = vadd.f32 %v6457_v3, %v3125_v10  ;;  %v4943_v3 = vmov 114   ;;  %v837_v50 = vperm.slane %v830_v32, 0  ;;  %v1295_v7 = vsel %vm364_vm13, %v5569_v11, %v5565_v17  ;;  %v8412_v33 = vld [vmem:[#allocation10_spill] sm:$0xff]  ;;  %v8418_v11 = vld [vmem:[#allocation109_spill] sm:$0xff] }
0x1cf0   : > { %v2892_v27 = vadd.f32 %v2885_v44, %v2659_v15  ;;  %v3123_v24 = vadd.f32 %v3116_v21, %v2891_v45  ;;  %4727 = vset.pattern.permute.xlu2 %v4943_v3  ;;  %v602_v21 = vperm.slane %v595_v49, 0  ;;  %v847_v45 = vperm.slane %v830_v32, 1  ;;  %v8420_v3 = vld [vmem:[#allocation58_spill] sm:$0xff] }
0x1cf1   : > { %v377_v19 = vmul.f32 %v374_v37, %v5121_v61  ;;  %v387_v63 = vmul.f32 %v384_v53, %v8410_v26  ;;  %v1302_v0 = vperm.slane %v1295_v7, 0  ;;  %v1312_v46 = vperm.slane %v1295_v7, 1  ;;  %v8417_v61 = vld [vmem:[#allocation107_spill] sm:$0xff] }
0x1cf2   : > { %v3124_v40 = vadd.f32 %v3117_v13, %v2892_v27  ;;  %v3356_v29 = vadd.f32 %v6459_v16, %v3123_v24  ;;  %v3649_v16 = vld.sshfl [vmem:[#allocation1 + $0x8] sm:$0xff pattern:$0x73625140]  ;;  %v612_v13 = vperm.slane %v595_v49, 1  ;;  %v605_v27 = vmul.f32 %v602_v21, %v8411_v47  ;;  %v8425_v21 = vld [vmem:[#allocation144_spill] sm:$0xff] }
0x1cf4   : > { %v3357_v52 = vadd.f32 %v6463_v34, %v3124_v40  ;;  %v3651_v34 = vld.sshfl [vmem:[#allocation1 + $0x18] sm:$0xff pattern:$0x73625140]  ;;  %v615_v10 = vmul.f32 %v612_v13, %v8412_v33  ;;  %v2225_v13 = vsel %vm364_vm13, %v8202_v14, %v8425_v21 }
0x1cf5   : > { %3701 = vst [vmem:[#allocation1] ss:$4 sm:$0xff] %v6288_v6  ;;  %v8413_v40 = vld [vmem:[#allocation40_spill] sm:$0xff] }
0x1cf6   : > { %v840_v24 = vmul.f32 %v837_v50, %v8413_v40  ;;  %v8426_v50 = vld [vmem:[#allocation91_spill] sm:$0xff] }
0x1d21   : > { %v3573_v25 = vpop.permute.xlu2 %3572 }
0x1d29   : > { %v3577_v8 = vpop.permute.xlu2 %3576 }
0x1d31   : > { %v3600_v48 = vpop.permute.xlu2 %3599 }
0x1d38   : > { %v3579_v51 = vpop.permute.xlu0 %3578  ;;  %v3575_v54 = vpop.permute.xlu1 %3574 }
0x1d39   : > { %v3583_v2 = vsel %vm3580_vm8, %v3577_v8, %v3579_v51  ;;  %v7270_v20 = vadd.f32 %v3579_v51, %v3359_v22  ;;  %v3581_v43 = vsel %vm3580_vm8, %v3573_v25, %v3575_v54  ;;  %v3582_v36 = vsel %vm3580_vm8, %v3575_v54, %v3577_v8  ;;  %v8414_v8 = vld [vmem:[#allocation41_spill] sm:$0xff]  ;;  %v8416_v51 = vld [vmem:[#allocation92_spill] sm:$0xff] }
0x1d3a   : > { %v7272_v38 = vadd.f32 %v3583_v2, %v3358_v39  ;;  %v7274_v5 = vadd.f32 %v3581_v43, %v3356_v29  ;;  %v7276_v9 = vadd.f32 %v3582_v36, %v3357_v52  ;;  %v850_v22 = vmul.f32 %v847_v45, %v8414_v8  ;;  %v8415_v52 = vld [vmem:[#allocation89_spill] sm:$0xff]  ;;  %v8419_v36 = vld [vmem:[#allocation59_spill] sm:$0xff] }
0x1d3b   : > { %v1079_v39 = vperm.slane %v1062_v1, 1  ;;  %v1069_v29 = vperm.slane %v1062_v1, 0  ;;  %v1527_v17 = vsel %vm592_vm12, %v8416_v51, %v8415_v52  ;;  %v1760_v54 = vsel %vm364_vm13, %v8418_v11, %v8417_v61  ;;  %v8427_v1 = vld [vmem:[#allocation90_spill] sm:$0xff]  ;;  %v8432_v51 = vld [vmem:[#allocation180_spill] sm:$0xff] }
0x1d3c   : > { %v390_v2 = vadd.f32 %v387_v63, %v377_v19  ;;  %v618_v43 = vadd.f32 %v615_v10, %v605_v27  ;;  %v1777_v32 = vperm.slane %v1760_v54, 1  ;;  %v8428_v27 = vld [vmem:[#allocation108_spill] sm:$0xff]  ;;  %v8429_v10 = vld [vmem:[#allocation111_spill] sm:$0xff]  ;;  %v2242_v8 = vperm.slane %v2225_v13, 1  ;;  %v8431_v52 = vld [vmem:[#allocation178_spill] sm:$0xff] }
0x1d3e   : > { %v621_v37 = vadd.f32 %v618_v43, %v390_v2  ;;  %v1780_v40 = vmul.f32 %v1777_v32, %v8429_v10  ;;  %v8440_v32 = vld [vmem:[#allocation162_spill] sm:$0xff]  ;;  %v8443_v10 = vld [vmem:[#allocation197_spill] sm:$0xff] }
0x1d40   : > { %v3602_v60 = vpop.permute.xlu0 %3601  ;;  %v3598_v25 = vpop.permute.xlu1 %3597 }
0x1d41   : > { %v3606_v44 = vsel %vm3605_vm0, %v3598_v25, %v3600_v48  ;;  %v3607_v18 = vsel %vm3605_vm0, %v3600_v48, %v3602_v60  ;;  %v1544_v48 = vperm.slane %v1527_v17, 1 }
0x1d42   : > { %3614 = vrot.lane.b32.xlu0 %v3607_v18, %s4822_s22  ;;  %3612 = vrot.lane.b32.xlu2 %v3606_v44, %s4822_s22  ;;  %v8422_v44 = vld [vmem:[#allocation75_spill] sm:$0xff] }
0x1d43   : > { %v1315_v18 = vmul.f32 %v1312_v46, %v8422_v44  ;;  %v1547_v7 = vmul.f32 %v1544_v48, %v8427_v1  ;;  %v8437_v44 = vld [vmem:[#allocation221_spill] sm:$0xff] }
0x1d48   : > { %v3604_v15 = vpop.permute.xlu1 %3603 }
0x1d49   : > { %v3608_v62 = vsel %vm3605_vm0, %v3602_v60, %v3604_v15  ;;  %v8421_v60 = vld [vmem:[#allocation74_spill] sm:$0xff]  ;;  %v1767_v15 = vperm.slane %v1760_v54, 0 }
0x1d4a   : > { %3616 = vrot.lane.b32.xlu1 %v3608_v62, %s4822_s22  ;;  %3632 = vperm.xlu0 %4728, %v7286_v58   ;;  %v1305_v25 = vmul.f32 %v1302_v0, %v8421_v60  ;;  %v8423_v62 = vld [vmem:[#allocation126_spill] sm:$0xff]  ;;  %v8430_v0 = vld [vmem:[#allocation127_spill] sm:$0xff] }
0x1d4b   : > { %3622 = vperm.xlu2 %4727, %v7286_v58   ;;  %v1992_v49 = vsel %vm592_vm12, %v8424_v31, %v8423_v62  ;;  %v1770_v33 = vmul.f32 %v1767_v15, %v8428_v27  ;;  %v4945_v62 = vmov 117   ;;  %v8439_v31 = vld [vmem:[#allocation163_spill] sm:$0xff] }
0x1d4c   : > { %v1999_v19 = vperm.slane %v1992_v49, 0  ;;  %v2009_v26 = vperm.slane %v1992_v49, 1  ;;  %v1318_v47 = vadd.f32 %v1315_v18, %v1305_v25  ;;  %v8438_v18 = vld [vmem:[#allocation223_spill] sm:$0xff]  ;;  %4730 = vset.pattern.permute.xlu1 %v4945_v62 }
0x1d4d   : > { %v1783_v43 = vadd.f32 %v1780_v40, %v1770_v33  ;;  %v3155_v15 = vsel %vm364_vm13, %v8438_v18, %v8437_v44 }
0x1d4e   : > { %v2012_v46 = vmul.f32 %v2009_v26, %v8430_v0  ;;  %v3162_v26 = vperm.slane %v3155_v15, 0 }
0x1d52   : > { %3652 = vrot.lane.b32.xlu1 %v3648_v12, %s4941_s11  ;;  %v1072_v12 = vmul.f32 %v1069_v29, %v8419_v36  ;;  %v2002_v29 = vmul.f32 %v1999_v19, %v8201_v59  ;;  %v8433_v36 = vld [vmem:[#allocation145_spill] sm:$0xff] }
0x1d53   : > { %3654 = vrot.lane.b32.xlu2 %v3649_v16, %s4941_s11  ;;  %v1082_v16 = vmul.f32 %v1079_v39, %v8420_v3  ;;  %v8436_v3 = vld [vmem:[#allocation198_spill] sm:$0xff] }
0x1d54   : > { %v2015_v25 = vadd.f32 %v2012_v46, %v2002_v29  ;;  %v8445_v46 = vld [vmem:[#allocation222_spill] sm:$0xff] }
0x1d55   : > { %v1085_v53 = vadd.f32 %v1082_v16, %v1072_v12  ;;  %v4944_v16 = vmov 116  }
0x1d56   : > { %4729 = vset.pattern.permute.xlu0 %v4944_v16 }
0x1d5a   : > { %3656 = vrot.lane.b32.xlu1 %v3650_v28, %s4941_s11  ;;  %v853_v28 = vadd.f32 %v850_v22, %v840_v24  ;;  %v2232_v24 = vperm.slane %v2225_v13, 0  ;;  %v2457_v22 = vsel %vm592_vm12, %v6067_v55, %v6061_v23  ;;  %v8435_v55 = vld [vmem:[#allocation195_spill] sm:$0xff] }
0x1d5b   : > { %3658 = vrot.lane.b32.xlu2 %v3651_v34, %s4941_s11  ;;  %v1534_v34 = vperm.slane %v1527_v17, 0  ;;  %v2690_v17 = vsel %vm364_vm13, %v8432_v51, %v8431_v52  ;;  %v2464_v11 = vperm.slane %v2457_v22, 0  ;;  %v2474_v54 = vperm.slane %v2457_v22, 1  ;;  %v8446_v51 = vld [vmem:[#allocation225_spill] sm:$0xff] }
0x1d5c   : > { %v856_v63 = vadd.f32 %v853_v28, %v621_v37  ;;  %v2235_v12 = vmul.f32 %v2232_v24, %v8433_v36  ;;  %v8434_v28 = vld [vmem:[#allocation148_spill] sm:$0xff]  ;;  %v2922_v59 = vsel %vm592_vm12, %v8436_v3, %v8435_v55  ;;  %v2707_v48 = vperm.slane %v2690_v17, 1 }
0x1d5d   : > { %v1537_v45 = vmul.f32 %v1534_v34, %v8426_v50  ;;  %v2245_v23 = vmul.f32 %v2242_v8, %v8434_v28  ;;  %v2697_v34 = vperm.slane %v2690_v17, 0  ;;  %v2467_v49 = vmul.f32 %v2464_v11, %v8439_v31  ;;  %v8444_v24 = vld [vmem:[#allocation196_spill] sm:$0xff] }
0x1d5e   : > { %v1088_v14 = vadd.f32 %v1085_v53, %v856_v63  ;;  %v2477_v37 = vmul.f32 %v2474_v54, %v8440_v32  ;;  %v2929_v53 = vperm.slane %v2922_v59, 0  ;;  %v2939_v21 = vperm.slane %v2922_v59, 1  ;;  %v3702_v31 = vld.sshfl [vmem:[#allocation1] sm:$0xff pattern:$0x73625140] }
0x1d5f   : > { %v1550_v39 = vadd.f32 %v1547_v7, %v1537_v45  ;;  %v2248_v50 = vadd.f32 %v2245_v23, %v2235_v12  ;;  %v8441_v45 = vld [vmem:[#allocation179_spill] sm:$0xff]  ;;  %v8442_v7 = vld [vmem:[#allocation181_spill] sm:$0xff]  ;;  %v3172_v63 = vperm.slane %v3155_v15, 1  ;;  %v3165_v52 = vmul.f32 %v3162_v26, %v8445_v46 }
0x1d60   : > { %v1321_v61 = vadd.f32 %v1318_v47, %v1088_v14  ;;  %v2700_v1 = vmul.f32 %v2697_v34, %v8441_v45  ;;  %v2710_v19 = vmul.f32 %v2707_v48, %v8442_v7  ;;  %v2480_v33 = vadd.f32 %v2477_v37, %v2467_v49  ;;  %v3705_v34 = vld.sshfl [vmem:[#allocation1 + $0x18] sm:$0xff pattern:$0x73625140]  ;;  %v3703_v48 = vld.sshfl [vmem:[#allocation1 + $0x8] sm:$0xff pattern:$0x73625140] }
0x1d61   : > { %v2932_v40 = vmul.f32 %v2929_v53, %v8443_v10  ;;  %v2942_v8 = vmul.f32 %v2939_v21, %v8444_v24  ;;  %v3175_v17 = vmul.f32 %v3172_v63, %v8446_v51  ;;  %v3704_v49 = vld.sshfl [vmem:[#allocation1 + $0x10] sm:$0xff pattern:$0x73625140]  ;;  %v8448_v45 = vld [vmem:[#allocation125_spill] sm:$0xff] }
0x1d62   : > { %v1553_v60 = vadd.f32 %v1550_v39, %v1321_v61  ;;  %v2713_v0 = vadd.f32 %v2710_v19, %v2700_v1  ;;  %3755 = vst [vmem:[#allocation1] ss:$4 sm:$0xff] %v6288_v6  ;;  %v8449_v26 = vld [vmem:[#allocation147_spill] sm:$0xff] }
0x1d63   : > { %v2945_v54 = vadd.f32 %v2942_v8, %v2932_v40  ;;  %v3178_v36 = vadd.f32 %v3175_v17, %v3165_v52 }
0x1d64   : > { %v1786_v13 = vadd.f32 %v1783_v43, %v1553_v60 }
0x1d66   : > { %v2018_v47 = vadd.f32 %v2015_v25, %v1786_v13 }
0x1d68   : > { %v2251_v29 = vadd.f32 %v2248_v50, %v2018_v47  ;;  %v8447_v50 = vld [vmem:[#allocation110_spill] sm:$0xff] }
0x1d6a   : > { %v2483_v11 = vadd.f32 %v2480_v33, %v2251_v29 }
0x1d6c   : > { %v2716_v43 = vadd.f32 %v2713_v0, %v2483_v11 }
0x1d6e   : > { %v2948_v55 = vadd.f32 %v2945_v54, %v2716_v43  ;;  %v3756_v54 = vld.sshfl [vmem:[#allocation1] sm:$0xff pattern:$0x73625140]  ;;  %v3759_v43 = vld.sshfl [vmem:[#allocation1 + $0x18] sm:$0xff pattern:$0x73625140] }
0x1d70   : > { %v3181_v15 = vadd.f32 %v3178_v36, %v2948_v55 }
0x1d72   : > { %v3413_v1 = vadd.f32 %v8448_v45, %v3181_v15 }
0x1d9c   : > { %v3613_v2 = vpop.permute.xlu2 %3612 }
0x1da5   : > { %v3623_v14 = vpop.permute.xlu2 %3622 }
0x1dad   : > { %v3655_v13 = vpop.permute.xlu2 %3654 }
0x1db4   : > { %v3615_v27 = vpop.permute.xlu0 %3614 }
0x1db5   : > { %v3619_v22 = vsel %vm364_vm13, %v3613_v2, %v3615_v27  ;;  %v3659_v10 = vpop.permute.xlu2 %3658 }
0x1db6   : > { %v3625_v39 = vperm.slane %v3619_v22, 0  ;;  %v3635_v12 = vperm.slane %v3619_v22, 1 }
0x1db8   : > { %v3628_v61 = vmul.f32 %v3625_v39, %v3623_v14 }
0x1dbc   : > { %v3617_v28 = vpop.permute.xlu1 %3616  ;;  %v3633_v23 = vpop.permute.xlu0 %3632 }
0x1dbd   : > { %v3618_v3 = vsel %vm364_vm13, %v3615_v27, %v3617_v28  ;;  %v3620_v59 = vsel %vm364_vm13, %v3617_v28, %v3613_v2  ;;  %v3638_v16 = vmul.f32 %v3635_v12, %v3633_v23  ;;  %v3757_v28 = vld.sshfl [vmem:[#allocation1 + $0x8] sm:$0xff pattern:$0x73625140]  ;;  %vm4231_vm13 = vcmask 1043456  }
0x1dbe   : > { %v3626_v60 = vperm.slane %v3618_v3, 0  ;;  %v3627_v25 = vperm.slane %v3620_v59, 0  ;;  %v3636_v44 = vperm.slane %v3618_v3, 1  ;;  %v3637_v18 = vperm.slane %v3620_v59, 1 }
0x1dbf   : > { %v3641_v62 = vadd.f32 %v3638_v16, %v3628_v61  ;;  %v4947_v59 = vmov 119  }
0x1dc0   : > { %v3629_v32 = vmul.f32 %v3626_v60, %v3623_v14  ;;  %v3630_v37 = vmul.f32 %v3627_v25, %v3623_v14  ;;  %v3639_v53 = vmul.f32 %v3636_v44, %v3633_v23  ;;  %v3640_v21 = vmul.f32 %v3637_v18, %v3633_v23  ;;  %v3758_v23 = vld.sshfl [vmem:[#allocation1 + $0x10] sm:$0xff pattern:$0x73625140]  ;;  %4732 = vset.pattern.permute.xlu2 %v4947_v59 }
0x1dc1   : > { %v7380_v2 = vadd.f32 %v3641_v62, %v8447_v50  ;;  %v4946_v14 = vmov 118   ;;  %3825 = vst [vmem:[#allocation1] ss:$4 sm:$0xff] %v6288_v6 }
0x1dc2   : > { %v3642_v7 = vadd.f32 %v3639_v53, %v3629_v32  ;;  %v3643_v19 = vadd.f32 %v3640_v21, %v3630_v37 }
0x1dc4   : > { %v7384_v63 = vadd.f32 %v3642_v7, %v8449_v26  ;;  %v7386_v47 = vadd.f32 %v3643_v19, %v3413_v1  ;;  %v3653_v27 = vpop.permute.xlu1 %3652 }
0x1dc5   : > { %v3660_v33 = vsel %vm3605_vm0, %v3653_v27, %v3655_v13  ;;  %v4949_v27 = vmov 121  }
0x1dc6   : > { %3666 = vrot.lane.b32.xlu0 %v3660_v33, %s4823_s28 }
0x1dcc   : > { %v3657_v40 = vpop.permute.xlu1 %3656 }
0x1dcd   : > { %v3661_v24 = vsel %vm3605_vm0, %v3655_v13, %v3657_v40  ;;  %v3662_v8 = vsel %vm3605_vm0, %v3657_v40, %v3659_v10 }
0x1dce   : > { %3668 = vrot.lane.b32.xlu1 %v3661_v24, %s4823_s28  ;;  %3676 = vperm.xlu0 %4729, %v7286_v58  }
0x1dcf   : > { %3670 = vrot.lane.b32.xlu2 %v3662_v8, %s4823_s28 }
0x1dd6   : > { %3686 = vperm.xlu1 %4730, %v7286_v58   ;;  %3712 = vrot.lane.b32.xlu0 %v3705_v34, %s4941_s11 }
0x1dd7   : > { %3706 = vrot.lane.b32.xlu2 %v3702_v31, %s4941_s11 }
0x1dde   : > { %3708 = vrot.lane.b32.xlu1 %v3703_v48, %s4941_s11 }
0x1ddf   : > { %3710 = vrot.lane.b32.xlu2 %v3704_v49, %s4941_s11  ;;  %4731 = vset.pattern.permute.xlu1 %v4946_v14 }
0x1e29   : > { %v3671_v22 = vpop.permute.xlu2 %3670 }
0x1e31   : > { %v3707_v0 = vpop.permute.xlu2 %3706 }
0x1e38   : > { %v3667_v39 = vpop.permute.xlu0 %3666 }
0x1e39   : > { %v3674_v29 = vsel %vm416_vm9, %v3671_v22, %v3667_v39  ;;  %v3711_v16 = vpop.permute.xlu2 %3710 }
0x1e3a   : > { %v3681_v46 = vperm.slane %v3674_v29, 0  ;;  %v3691_v34 = vperm.slane %v3674_v29, 1 }
0x1e40   : > { %v3669_v52 = vpop.permute.xlu1 %3668  ;;  %v3677_v51 = vpop.permute.xlu0 %3676 }
0x1e41   : > { %v3672_v17 = vsel %vm416_vm9, %v3669_v52, %v3671_v22  ;;  %v3673_v61 = vsel %vm416_vm9, %v3667_v39, %v3669_v52  ;;  %v3684_v11 = vmul.f32 %v3681_v46, %v3677_v51 }
0x1e42   : > { %v3679_v36 = vperm.slane %v3673_v61, 0  ;;  %v3680_v12 = vperm.slane %v3672_v17, 0  ;;  %v3689_v48 = vperm.slane %v3673_v61, 1  ;;  %v3690_v60 = vperm.slane %v3672_v17, 1 }
0x1e44   : > { %v3682_v55 = vmul.f32 %v3679_v36, %v3677_v51  ;;  %v3683_v3 = vmul.f32 %v3680_v12, %v3677_v51 }
0x1e48   : > { %v3687_v25 = vpop.permute.xlu1 %3686  ;;  %v3713_v44 = vpop.permute.xlu0 %3712 }
0x1e49   : > { %v3692_v18 = vmul.f32 %v3689_v48, %v3687_v25  ;;  %v3693_v15 = vmul.f32 %v3690_v60, %v3687_v25  ;;  %v3694_v62 = vmul.f32 %v3691_v34, %v3687_v25  ;;  %v3716_v31 = vsel %vm3605_vm0, %v3711_v16, %v3713_v44  ;;  %v3828_v60 = vld.sshfl [vmem:[#allocation1 + $0x10] sm:$0xff pattern:$0x73625140]  ;;  %v3829_v25 = vld.sshfl [vmem:[#allocation1 + $0x18] sm:$0xff pattern:$0x73625140] }
0x1e4a   : > { %3724 = vrot.lane.b32.xlu0 %v3716_v31, %s4824_s29 }
0x1e4b   : > { %v3695_v49 = vadd.f32 %v3692_v18, %v3682_v55  ;;  %v3696_v32 = vadd.f32 %v3693_v15, %v3683_v3  ;;  %v3697_v37 = vadd.f32 %v3694_v62, %v3684_v11 }
0x1e4d   : > { %v7410_v53 = vadd.f32 %v3695_v49, %v6898_v35  ;;  %v7413_v21 = vadd.f32 %v3696_v32, %v6901_v56  ;;  %v7416_v13 = vadd.f32 %v3697_v37, %v6903_v41  ;;  %v4948_v56 = vmov 120  }
0x1e50   : > { %v3709_v50 = vpop.permute.xlu1 %3708 }
0x1e51   : > { %v3714_v45 = vsel %vm3605_vm0, %v3707_v0, %v3709_v50  ;;  %v3715_v1 = vsel %vm3605_vm0, %v3709_v50, %v3711_v16 }
0x1e52   : > { %3720 = vrot.lane.b32.xlu1 %v3714_v45, %s4824_s29  ;;  %3760 = vrot.lane.b32.xlu0 %v3756_v54, %s4941_s11 }
0x1e53   : > { %3722 = vrot.lane.b32.xlu2 %v3715_v1, %s4824_s29  ;;  %s287_s29 = scalar_lea.vmem %s7707_s4, %s4412_s19 }
0x1e5a   : > { %3730 = vperm.xlu1 %4731, %v7286_v58   ;;  %3766 = vrot.lane.b32.xlu0 %v3759_v43, %s4941_s11 }
0x1e5b   : > { %3740 = vperm.xlu2 %4732, %v7286_v58  }
0x1e62   : > { %3762 = vrot.lane.b32.xlu1 %v3757_v28, %s4941_s11 }
0x1e63   : > { %3764 = vrot.lane.b32.xlu2 %v3758_v23, %s4941_s11  ;;  %4733 = vset.pattern.permute.xlu1 %v4948_v56 }
0x1e64   : > { %4734 = vset.pattern.permute.xlu2 %v4949_v27 }
0x1ead   : > { %v3723_v35 = vpop.permute.xlu2 %3722 }
0x1eb5   : > { %v3741_v19 = vpop.permute.xlu2 %3740 }
0x1ebc   : > { %v3725_v41 = vpop.permute.xlu0 %3724 }
0x1ebd   : > { %v3726_v7 = vsel %vm468_vm10, %v3723_v35, %v3725_v41  ;;  %v3765_v0 = vpop.permute.xlu2 %3764 }
0x1ebe   : > { %v3744_v26 = vperm.slane %v3726_v7, 1  ;;  %v3734_v46 = vperm.slane %v3726_v7, 0 }
0x1ec0   : > { %v3747_v33 = vmul.f32 %v3744_v26, %v3741_v19 }
0x1ec4   : > { %v3721_v10 = vpop.permute.xlu1 %3720  ;;  %v3761_v40 = vpop.permute.xlu0 %3760 }
0x1ec5   : > { %v3727_v24 = vsel %vm468_vm10, %v3721_v10, %v3723_v35  ;;  %v3728_v8 = vsel %vm468_vm10, %v3725_v41, %v3721_v10 }
0x1ec6   : > { %v3743_v22 = vperm.slane %v3727_v24, 1  ;;  %v3745_v14 = vperm.slane %v3728_v8, 1  ;;  %v3733_v52 = vperm.slane %v3727_v24, 0  ;;  %v3735_v51 = vperm.slane %v3728_v8, 0 }
0x1ec8   : > { %v3746_v39 = vmul.f32 %v3743_v22, %v3741_v19  ;;  %v3748_v29 = vmul.f32 %v3745_v14, %v3741_v19 }
0x1ecc   : > { %v3731_v17 = vpop.permute.xlu1 %3730  ;;  %v3767_v61 = vpop.permute.xlu0 %3766 }
0x1ecd   : > { %v3736_v11 = vmul.f32 %v3733_v52, %v3731_v17  ;;  %v3737_v54 = vmul.f32 %v3734_v46, %v3731_v17  ;;  %v3738_v43 = vmul.f32 %v3735_v51, %v3731_v17  ;;  %v3770_v36 = vsel %vm3605_vm0, %v3765_v0, %v3767_v61 }
0x1ece   : > { %3778 = vrot.lane.b32.xlu0 %v3770_v36, %s4825_s30 }
0x1ecf   : > { %v3749_v12 = vadd.f32 %v3746_v39, %v3736_v11  ;;  %v3750_v28 = vadd.f32 %v3747_v33, %v3737_v54  ;;  %v3751_v23 = vadd.f32 %v3748_v29, %v3738_v43 }
0x1ed1   : > { %v7437_v55 = vadd.f32 %v3749_v12, %v7140_v30  ;;  %v7440_v3 = vadd.f32 %v3750_v28, %v7144_v4  ;;  %v7443_v59 = vadd.f32 %v3751_v23, %v7146_v42  ;;  %v3827_v30 = vld.sshfl [vmem:[#allocation1 + $0x8] sm:$0xff pattern:$0x73625140]  ;;  %v3826_v4 = vld.sshfl [vmem:[#allocation1] sm:$0xff pattern:$0x73625140] }
0x1ed2   : > { %3879 = vst [vmem:[#allocation1] ss:$4 sm:$0xff] %v6288_v6 }
0x1ed4   : > { %v3763_v16 = vpop.permute.xlu1 %3762 }
0x1ed5   : > { %v3768_v34 = vsel %vm3605_vm0, %v3761_v40, %v3763_v16  ;;  %v3769_v48 = vsel %vm3605_vm0, %v3763_v16, %v3765_v0  ;;  %v4950_v16 = vmov 122  }
0x1ed6   : > { %3774 = vrot.lane.b32.xlu1 %v3768_v34, %s4825_s30  ;;  %3776 = vrot.lane.b32.xlu2 %v3769_v48, %s4825_s30  ;;  %v4951_v48 = vmov 123  }
0x1ed7   : > { %4735 = vset.pattern.permute.xlu0 %v4950_v16 }
0x1ed9   : > { %v3880_v42 = vld.sshfl [vmem:[#allocation1] sm:$0xff pattern:$0x73625140]  ;;  %v3881_v44 = vld.sshfl [vmem:[#allocation1 + $0x8] sm:$0xff pattern:$0x73625140] }
0x1eda   : > { %v3883_v18 = vld.sshfl [vmem:[#allocation1 + $0x18] sm:$0xff pattern:$0x73625140]  ;;  %v3882_v15 = vld.sshfl [vmem:[#allocation1 + $0x10] sm:$0xff pattern:$0x73625140] }
0x1edb   : > { %3933 = vst [vmem:[#allocation1] ss:$4 sm:$0xff] %v6288_v6 }
0x1ede   : > { %3784 = vperm.xlu1 %4733, %v7286_v58   ;;  %3794 = vperm.xlu2 %4734, %v7286_v58  }
0x1ee2   : > { %v3935_v62 = vld.sshfl [vmem:[#allocation1 + $0x8] sm:$0xff pattern:$0x73625140]  ;;  %v3934_v29 = vld.sshfl [vmem:[#allocation1] sm:$0xff pattern:$0x73625140] }
0x1ee3   : > { %v3937_v0 = vld.sshfl [vmem:[#allocation1 + $0x18] sm:$0xff pattern:$0x73625140]  ;;  %v3936_v46 = vld.sshfl [vmem:[#allocation1 + $0x10] sm:$0xff pattern:$0x73625140] }
0x1ee6   : > { %3830 = vrot.lane.b32.xlu2 %v3826_v4, %s4941_s11  ;;  %4736 = vset.pattern.permute.xlu1 %v4951_v48 }
0x1eee   : > { %3836 = vrot.lane.b32.xlu2 %v3829_v25, %s4941_s11 }
0x1ef6   : > { %3888 = vrot.lane.b32.xlu2 %v3882_v15, %s4941_s11 }
0x1efe   : > { %3940 = vrot.lane.b32.xlu2 %v3935_v62, %s4941_s11 }
0x1f30   : > { %v3777_v31 = vpop.permute.xlu2 %3776 }
0x1f38   : > { %v3795_v56 = vpop.permute.xlu2 %3794 }
0x1f40   : > { %v3779_v49 = vpop.permute.xlu0 %3778  ;;  %v3831_v52 = vpop.permute.xlu2 %3830 }
0x1f41   : > { %v3780_v37 = vsel %vm520_vm3, %v3777_v31, %v3779_v49 }
0x1f42   : > { %v3798_v1 = vperm.slane %v3780_v37, 1  ;;  %v3788_v6 = vperm.slane %v3780_v37, 0 }
0x1f44   : > { %v3801_v26 = vmul.f32 %v3798_v1, %v3795_v56  ;;  %v4953_v1 = vmov 127  }
0x1f48   : > { %v3775_v32 = vpop.permute.xlu1 %3774  ;;  %v3837_v51 = vpop.permute.xlu2 %3836 }
0x1f49   : > { %v3781_v50 = vsel %vm520_vm3, %v3775_v32, %v3777_v31  ;;  %v3782_v45 = vsel %vm520_vm3, %v3779_v49, %v3775_v32 }
0x1f4a   : > { %v3797_v35 = vperm.slane %v3781_v50, 1  ;;  %v3799_v41 = vperm.slane %v3782_v45, 1  ;;  %v3787_v7 = vperm.slane %v3781_v50, 0  ;;  %v3789_v19 = vperm.slane %v3782_v45, 0 }
0x1f4c   : > { %v3800_v27 = vmul.f32 %v3797_v35, %v3795_v56  ;;  %v3802_v10 = vmul.f32 %v3799_v41, %v3795_v56  ;;  %v4954_v35 = vmov 125   ;;  %v4955_v56 = vmov 126  }
0x1f4d   : > { %v8450_v41 = vmov 0  }
0x1f50   : > { %v3785_v33 = vpop.permute.xlu1 %3784  ;;  %v3889_v17 = vpop.permute.xlu2 %3888 }
0x1f51   : > { %v3790_v40 = vmul.f32 %v3787_v7, %v3785_v33  ;;  %v3791_v24 = vmul.f32 %v3788_v6, %v3785_v33  ;;  %v3792_v8 = vmul.f32 %v3789_v19, %v3785_v33  ;;  %v8451_v6 = vmov 2  }
0x1f53   : > { %v3803_v22 = vadd.f32 %v3800_v27, %v3790_v40  ;;  %v3804_v14 = vadd.f32 %v3801_v26, %v3791_v24  ;;  %v3805_v39 = vadd.f32 %v3802_v10, %v3792_v8 }
0x1f55   : > { %3813 = vrot.lane.b32.xlu2 %v3805_v39, %s4837_s12  ;;  %3811 = vrot.lane.b32.xlu1 %v3804_v14, %s4837_s12 }
0x1f56   : > { %3809 = vrot.lane.b32.xlu0 %v3803_v22, %s4837_s12 }
0x1f58   : > { %v3941_v61 = vpop.permute.xlu2 %3940 }
0x1f5d   : > { %3834 = vrot.lane.b32.xlu1 %v3828_v60, %s4941_s11 }
0x1f5e   : > { %3832 = vrot.lane.b32.xlu0 %v3827_v30, %s4941_s11 }
0x1f65   : > { %3886 = vrot.lane.b32.xlu1 %v3881_v44, %s4941_s11 }
0x1f66   : > { %3884 = vrot.lane.b32.xlu0 %v3880_v42, %s4941_s11 }
0x1f6d   : > { %3938 = vrot.lane.b32.xlu1 %v3934_v29, %s4941_s11 }
0x1f6e   : > { %3890 = vrot.lane.b32.xlu0 %v3883_v18, %s4941_s11 }
0x1f75   : > { %3944 = vrot.lane.b32.xlu1 %v3937_v0, %s4941_s11 }
0x1f76   : > { %3942 = vrot.lane.b32.xlu0 %v3936_v46, %s4941_s11 }
0x1faf   : > { %v7474_v11 = vpop.permute.xlu2 %3813 }
0x1fc7   : > { %v3812_v54 = vpop.permute.xlu1 %3811 }
0x1fc8   : > { %v3816_v43 = vsel %vm556_vm11, %v3812_v54, %v7474_v11  ;;  %v3810_v36 = vpop.permute.xlu0 %3809 }
0x1fc9   : > { %v7479_v12 = vadd.f32 %v3816_v43, %v7272_v38  ;;  %v3815_v28 = vsel %vm556_vm11, %v3810_v36, %v3812_v54  ;;  %v7483_v23 = vadd.f32 %v3810_v36, %v7274_v5  ;;  %v4952_v5 = vmov 124  }
0x1fca   : > { %v7486_v34 = vadd.f32 %v3815_v28, %v7276_v9  ;;  %4737 = vset.pattern.permute.xlu2 %v4952_v5 }
0x1fcf   : > { %v3835_v30 = vpop.permute.xlu1 %3834 }
0x1fd0   : > { %v3840_v60 = vsel %vm3605_vm0, %v3835_v30, %v3837_v51  ;;  %v3833_v4 = vpop.permute.xlu0 %3832 }
0x1fd1   : > { %v3838_v25 = vsel %vm3605_vm0, %v3831_v52, %v3833_v4  ;;  %v3839_v38 = vsel %vm3605_vm0, %v3833_v4, %v3835_v30  ;;  %3848 = vrot.lane.b32.xlu2 %v3840_v60, %s4826_s7 }
0x1fd2   : > { %3846 = vrot.lane.b32.xlu1 %v3839_v38, %s4826_s7  ;;  %3844 = vrot.lane.b32.xlu0 %v3838_v25, %s4826_s7 }
0x1fd7   : > { %v3887_v9 = vpop.permute.xlu1 %3886 }
0x1fd8   : > { %v3893_v42 = vsel %vm3605_vm0, %v3887_v9, %v3889_v17  ;;  %v3885_v44 = vpop.permute.xlu0 %3884 }
0x1fd9   : > { %v3892_v18 = vsel %vm3605_vm0, %v3885_v44, %v3887_v9 }
0x1fda   : > { %3898 = vrot.lane.b32.xlu0 %v3892_v18, %s4829_s8  ;;  %3900 = vrot.lane.b32.xlu1 %v3893_v42, %s4829_s8 }
0x1fdf   : > { %v3939_v15 = vpop.permute.xlu1 %3938 }
0x1fe0   : > { %v3946_v62 = vsel %vm3605_vm0, %v3939_v15, %v3941_v61  ;;  %v3891_v31 = vpop.permute.xlu0 %3890 }
0x1fe1   : > { %v3894_v49 = vsel %vm3605_vm0, %v3889_v17, %v3891_v31 }
0x1fe2   : > { %3902 = vrot.lane.b32.xlu2 %v3894_v49, %s4829_s8  ;;  %3952 = vrot.lane.b32.xlu0 %v3946_v62, %s4830_s9  ;;  %s3987_s8 = scalar_lea.vmem %s7706_s3, %s4411_s16 }
0x1fe7   : > { %v3945_v32 = vpop.permute.xlu1 %3944 }
0x1fe8   : > { %v3943_v37 = vpop.permute.xlu0 %3942 }
0x1fe9   : > { %v3947_v50 = vsel %vm3605_vm0, %v3941_v61, %v3943_v37  ;;  %v3948_v45 = vsel %vm3605_vm0, %v3943_v37, %v3945_v32 }
0x1fea   : > { %3956 = vrot.lane.b32.xlu2 %v3948_v45, %s4830_s9  ;;  %3954 = vrot.lane.b32.xlu1 %v3947_v50, %s4830_s9 }
0x1feb   : > { %3854 = vperm.xlu0 %4735, %v7286_v58  }
0x1ff2   : > { %3864 = vperm.xlu1 %4736, %v7286_v58   ;;  %3908 = vperm.xlu2 %4737, %v7286_v58  }
0x1ff3   : > { %4740 = vset.pattern.permute.xlu0 %v4953_v1 }
0x1ff4   : > { %3972 = vperm.xlu0 %4740, %v7286_v58  }
0x1ffa   : > { %4738 = vset.pattern.permute.xlu1 %v4954_v35  ;;  %4739 = vset.pattern.permute.xlu2 %v4955_v56 }
0x1ffb   : > { %3918 = vperm.xlu1 %4738, %v7286_v58   ;;  %3962 = vperm.xlu2 %4739, %v7286_v58  }
0x1ffc   : > { %4742 = vset.pattern.permute.xlu0 %v8450_v41 }
0x2003   : > { %4741 = vset.pattern.permute.xlu2 %v8450_v41  ;;  %4743 = vset.pattern.permute.xlu1 %v8451_v6 }
0x202b   : > { %v3849_v7 = vpop.permute.xlu2 %3848 }
0x203c   : > { %v3903_v33 = vpop.permute.xlu2 %3902 }
0x2044   : > { %v3845_v19 = vpop.permute.xlu0 %3844  ;;  %v3847_v26 = vpop.permute.xlu1 %3846 }
0x2045   : > { %v3957_v24 = vpop.permute.xlu2 %3956  ;;  %v3850_v14 = vsel %vm592_vm12, %v3847_v26, %v3849_v7  ;;  %v3851_v58 = vsel %vm592_vm12, %v3845_v19, %v3847_v26  ;;  %v3852_v29 = vsel %vm592_vm12, %v3849_v7, %v3845_v19 }
0x2046   : > { %v3858_v0 = vperm.slane %v3850_v14, 0  ;;  %v3868_v46 = vperm.slane %v3850_v14, 1  ;;  %v3857_v52 = vperm.slane %v3851_v58, 0  ;;  %v3867_v51 = vperm.slane %v3851_v58, 1 }
0x2047   : > { %v3859_v36 = vperm.slane %v3852_v29, 0  ;;  %v3869_v28 = vperm.slane %v3852_v29, 1 }
0x204c   : > { %v3899_v27 = vpop.permute.xlu0 %3898  ;;  %v3901_v10 = vpop.permute.xlu1 %3900 }
0x204d   : > { %v3909_v39 = vpop.permute.xlu2 %3908  ;;  %v3906_v17 = vsel %vm647_vm14, %v3903_v33, %v3899_v27  ;;  %v3905_v61 = vsel %vm647_vm14, %v3899_v27, %v3901_v10  ;;  %v3904_v16 = vsel %vm647_vm14, %v3901_v10, %v3903_v33  ;;  %vm4298_vm14 = vcmask 1041408  }
0x204e   : > { %v3913_v5 = vperm.slane %v3906_v17, 0  ;;  %v3911_v9 = vperm.slane %v3905_v61, 0  ;;  %v3912_v32 = vperm.slane %v3904_v16, 0  ;;  %v3923_v7 = vperm.slane %v3906_v17, 1 }
0x204f   : > { %v3921_v26 = vperm.slane %v3905_v61, 1 }
0x2050   : > { %v3916_v58 = vmul.f32 %v3913_v5, %v3909_v39  ;;  %v4270_v5 = vld [vmem:[%s7704_s1] sm:$0x7] }
0x2054   : > { %v3953_v40 = vpop.permute.xlu0 %3952 }
0x2055   : > { %v3960_v48 = vsel %vm702_vm15, %v3957_v24, %v3953_v40  ;;  %v3963_v57 = vpop.permute.xlu2 %3962 }
0x2056   : > { %v3967_v37 = vperm.slane %v3960_v48, 0  ;;  %v3977_v50 = vperm.slane %v3960_v48, 1 }
0x2058   : > { %v3970_v14 = vmul.f32 %v3967_v37, %v3963_v57 }
0x205c   : > { %v3955_v8 = vpop.permute.xlu1 %3954 }
0x205d   : > { %v3855_v22 = vpop.permute.xlu0 %3854  ;;  %v3958_v54 = vsel %vm702_vm15, %v3955_v8, %v3957_v24  ;;  %v3959_v43 = vsel %vm702_vm15, %v3953_v40, %v3955_v8  ;;  %v3922_v40 = vperm.slane %v3904_v16, 1  ;;  %v3914_v24 = vmul.f32 %v3911_v9, %v3909_v39 }
0x205e   : > { %v3860_v60 = vmul.f32 %v3857_v52, %v3855_v22  ;;  %v3861_v4 = vmul.f32 %v3858_v0, %v3855_v22  ;;  %v3965_v42 = vperm.slane %v3959_v43, 0  ;;  %v3966_v44 = vperm.slane %v3958_v54, 0 }
0x205f   : > { %v3975_v15 = vperm.slane %v3959_v43, 1  ;;  %v3976_v62 = vperm.slane %v3958_v54, 1  ;;  %v3862_v10 = vmul.f32 %v3859_v36, %v3855_v22  ;;  %v3915_v8 = vmul.f32 %v3912_v32, %v3909_v39 }
0x2060   : > { %v3968_v27 = vmul.f32 %v3965_v42, %v3963_v57  ;;  %v3969_v33 = vmul.f32 %v3966_v44, %v3963_v57  ;;  %v8456_v9 = vmov 7   ;;  %v4273_v42 = vperm.slane %v4270_v5, 1 }
0x2061   : > { %v8457_v44 = vmov 6   ;;  %vm4300_vm15 = vcmask 1045508  }
0x2064   : > { %v3865_v30 = vpop.permute.xlu1 %3864 }
0x2065   : > { %v3870_v25 = vmul.f32 %v3867_v51, %v3865_v30  ;;  %v3871_v38 = vmul.f32 %v3868_v46, %v3865_v30  ;;  %v3872_v45 = vmul.f32 %v3869_v28, %v3865_v30 }
0x2066   : > { %v3973_v18 = vpop.permute.xlu0 %3972 }
0x2067   : > { %v3873_v31 = vadd.f32 %v3870_v25, %v3860_v60  ;;  %v3874_v49 = vadd.f32 %v3871_v38, %v3861_v4  ;;  %v3978_v1 = vmul.f32 %v3975_v15, %v3973_v18  ;;  %v3979_v35 = vmul.f32 %v3976_v62, %v3973_v18 }
0x2068   : > { %v3980_v19 = vmul.f32 %v3977_v50, %v3973_v18  ;;  %v3875_v29 = vadd.f32 %v3872_v45, %v3862_v10  ;;  %v8455_v38 = vmov 4   ;;  %v4064_v18 = vld [vmem:[%s4063_s17] sm:$0x3]  ;;  %v3824_v10 = vadd.f32 %v7474_v11, %v7270_v20 }
0x2069   : > { %v3876_v56 = vadd.f32 %v3873_v31, %v7380_v2  ;;  %v3877_v6 = vadd.f32 %v3874_v49, %v7384_v63  ;;  %v3981_v0 = vadd.f32 %v3978_v1, %v3968_v27  ;;  %v3982_v2 = vadd.f32 %v3979_v35, %v3969_v33 }
0x206a   : > { %v3983_v63 = vadd.f32 %v3980_v19, %v3970_v14  ;;  %v3878_v39 = vadd.f32 %v3875_v29, %v7386_v47  ;;  %v288_v47 = vld [vmem:[%s287_s29] sm:$0x3]  ;;  %v4272_v31 = vperm.slane %v4270_v5, 0  ;;  %v4274_v49 = vperm.slane %v4270_v5, 2 }
0x206b   : > { %3997 = vrot.lane.b32.xlu1 %v3876_v56, %s4837_s12  ;;  %3999 = vrot.lane.b32.xlu2 %v3877_v6, %s4837_s12  ;;  %v3984_v43 = vadd.f32 %v3981_v0, %v7437_v55  ;;  %v3985_v36 = vadd.f32 %v3982_v2, %v7440_v3  ;;  %v4199_v55 = vld [vmem:[#allocation2 + $0x2] sm:$0x3f]  ;;  %v8454_v3 = vmov 3  }
0x206c   : > { %v3986_v28 = vadd.f32 %v3983_v63, %v7443_v59  ;;  %4205 = vst [vmem:[#allocation1] ss:$4 sm:$0xff] %v4199_v55 }
0x206d   : > { %v3919_v46 = vpop.permute.xlu1 %3918 }
0x206e   : > { %v3924_v52 = vmul.f32 %v3921_v26, %v3919_v46  ;;  %v3925_v51 = vmul.f32 %v3922_v40, %v3919_v46  ;;  %v3926_v17 = vmul.f32 %v3923_v7, %v3919_v46 }
0x2070   : > { %v3927_v61 = vadd.f32 %v3924_v52, %v3914_v24  ;;  %v3928_v22 = vadd.f32 %v3925_v51, %v3915_v8  ;;  %v3929_v54 = vadd.f32 %v3926_v17, %v3916_v58 }
0x2072   : > { %v3930_v16 = vadd.f32 %v3927_v61, %v7410_v53  ;;  %v3931_v48 = vadd.f32 %v3928_v22, %v7413_v21  ;;  %v3932_v30 = vadd.f32 %v3929_v54, %v7416_v13  ;;  %v3988_v53 = vld [vmem:[%s3987_s8] sm:$0xff]  ;;  %v8452_v21 = vmov 5  }
0x2073   : > { %4001 = vrot.lane.b32.xlu1 %v3878_v39, %s4837_s12  ;;  %v8453_v13 = vmov 1   ;;  %v4207_v59 = vld.sshfl [vmem:[#allocation1 + $0x8] sm:$0xff pattern:$0x73625140] }
0x2074   : > { %v4014_v60 = vadd.f32 %v3985_v36, %v3931_v48  ;;  %v4013_v4 = vadd.f32 %v3984_v43, %v3930_v16  ;;  %v4015_v25 = vadd.f32 %v3986_v28, %v3932_v30  ;;  %v4206_v15 = vld.sshfl [vmem:[#allocation1] sm:$0xff pattern:$0x73625140]  ;;  %v4208_v62 = vld.sshfl [vmem:[#allocation1 + $0x10] sm:$0xff pattern:$0x73625140] }
0x2076   : > { %4021 = vrot.lane.b32.xlu0 %v4014_v60, %s4837_s12  ;;  %4019 = vrot.lane.b32.xlu2 %v4013_v4, %s4837_s12 }
0x207b   : > { %4023 = vrot.lane.b32.xlu1 %v4015_v25, %s4837_s12 }
0x207e   : > { %4072 = vperm.xlu0 %4742, %v288_v47   ;;  %3991 = vperm.xlu2 %4741, %v3988_v53  }
0x2083   : > { %4096 = vperm.xlu1 %4743, %v288_v47  }
0x2086   : > { %4747 = vset.pattern.permute.xlu0 %v8452_v21  ;;  %4744 = vset.pattern.permute.xlu2 %v8453_v13 }
0x2087   : > { %4144 = vperm.xlu0 %4747, %v288_v47   ;;  %4084 = vperm.xlu2 %4744, %v288_v47  }
0x208b   : > { %4745 = vset.pattern.permute.xlu1 %v8454_v3 }
0x208c   : > { %4112 = vperm.xlu1 %4745, %v288_v47  }
0x208f   : > { %4746 = vset.pattern.permute.xlu2 %v8455_v38  ;;  %4211 = vrot.lane.b32.xlu0 %v4207_v59, %s4837_s12 }
0x2090   : > { %4128 = vperm.xlu2 %4746, %v288_v47   ;;  %4751 = vset.pattern.permute.xlu0 %v8456_v9 }
0x2094   : > { %4748 = vset.pattern.permute.xlu1 %v8457_v44 }
0x2095   : > { %4160 = vperm.xlu1 %4748, %v288_v47  }
0x2097   : > { %4277 = vrot.lane.b32.xlu0 %v4273_v42, %s4837_s12 }
0x2098   : > { %4749 = vset.pattern.permute.xlu2 %v8456_v9 }
0x2099   : > { %4176 = vperm.xlu2 %4749, %v288_v47  }
0x209d   : > { %4750 = vset.pattern.permute.xlu1 %v8450_v41 }
0x209e   : > { %4067 = vperm.xlu1 %4750, %v4064_v18  }
0x20a1   : > { %4209 = vrot.lane.b32.xlu2 %v4206_v15, %s4837_s12 }
0x20a6   : > { %4213 = vrot.lane.b32.xlu1 %v4208_v62, %s4837_s12 }
0x20a9   : > { %4275 = vrot.lane.b32.xlu2 %v4272_v31, %s4837_s12 }
0x20ae   : > { %4279 = vrot.lane.b32.xlu1 %v4274_v49, %s4837_s12 }
0x20c5   : > { %v4000_v32 = vpop.permute.xlu2 %3999 }
0x20d0   : > { %v4020_v37 = vpop.permute.xlu2 %4019 }
0x20d8   : > { %v3992_v50 = vpop.permute.xlu2 %3991 }
0x20dd   : > { %v3998_v45 = vpop.permute.xlu1 %3997 }
0x20de   : > { %v4009_v57 = vadd.f32 %v3998_v45, %v7483_v23  ;;  %v4003_v56 = vsel %vm556_vm11, %v3998_v45, %v4000_v32 }
0x20df   : > { %v4010_v26 = vadd.f32 %v4003_v56, %v7486_v34 }
0x20e0   : > { %v4031_v41 = vadd.f32 %v4020_v37, %v4009_v57 }
0x20e1   : > { %v7583_v19 = vpop.permute.xlu2 %4084 }
0x20e2   : > { %v4035_v1 = vadd.f32 %v4031_v41, %v3992_v50 }
0x20e4   : > { %v4043_v35 = vmin.f32 %v4035_v1, 0.0  ;;  %vm4039_vm3 = vcmp.gt.f32.partialorder %v4035_v1, 0.0 }
0x20e5   : > { %v4002_v6 = vpop.permute.xlu1 %4001 }
0x20e6   : > { %v4047_v7 = vmul.f32 1.442695, %v4043_v35  ;;  %v4004_v23 = vsel %vm556_vm11, %v4000_v32, %v4002_v6  ;;  %v4012_v24 = vadd.f32 %v4002_v6, %v3824_v10 }
0x20e7   : > { %v4011_v14 = vadd.f32 %v4004_v23, %v7479_v12 }
0x20e8   : > { %4752 = vpow2.f32 %v4047_v7  ;;  %v4022_v27 = vpop.permute.xlu0 %4021 }
0x20e9   : > { %v4025_v33 = vsel %vm556_vm11, %v4020_v37, %v4022_v27 }
0x20ea   : > { %v4032_v40 = vadd.f32 %v4025_v33, %v4010_v26  ;;  %v7592_v17 = vpop.permute.xlu2 %4128 }
0x20ec   : > { %v4036_v8 = vadd.f32 %v4032_v40, %v3992_v50 }
0x20ed   : > { %v4024_v58 = vpop.permute.xlu1 %4023 }
0x20ee   : > { %v4753_v29 = vpop.eup %4752  ;;  %v4044_v0 = vmin.f32 %v4036_v8, 0.0  ;;  %v4026_v2 = vsel %vm556_vm11, %v4022_v27, %v4024_v58  ;;  %v4034_v34 = vadd.f32 %v4024_v58, %v4012_v24  ;;  %vm4040_vm9 = vcmp.gt.f32.partialorder %v4036_v8, 0.0 }
0x20ef   : > { %v4033_v46 = vadd.f32 %v4026_v2, %v4011_v14  ;;  %v4413_v63 = vadd.f32 -1.0, %v4753_v29 }
0x20f0   : > { %v4049_v52 = vmul.f32 1.442695, %v4044_v0  ;;  %v4038_v51 = vadd.f32 %v4034_v34, %v3992_v50  ;;  %v4073_v22 = vpop.permute.xlu0 %4072 }
0x20f1   : > { %v4037_v20 = vadd.f32 %v4033_v46, %v3992_v50  ;;  %v7594_v54 = vsel %vm4039_vm3, %v4035_v1, %v4413_v63 }
0x20f2   : > { %4754 = vpow2.f32 %v4049_v52  ;;  %v4046_v61 = vmin.f32 %v4038_v51, 0.0  ;;  %v4075_v39 = vperm.slane %v7594_v54, 0  ;;  %v4099_v28 = vperm.slane %v7594_v54, 2 }
0x20f3   : > { %v4045_v11 = vmin.f32 %v4037_v20, 0.0  ;;  %v4087_v48 = vperm.slane %v7594_v54, 1  ;;  %v4131_v60 = vperm.slane %v7594_v54, 4  ;;  %v4179_v25 = vperm.slane %v7594_v54, 7  ;;  %v7601_v47 = vpop.permute.xlu2 %4176 }
0x20f4   : > { %v4053_v43 = vmul.f32 1.442695, %v4046_v61  ;;  %v4079_v55 = vmul.f32 %v4075_v39, %v4073_v22  ;;  %vm4041_vm10 = vcmp.gt.f32.partialorder %v4037_v20, 0.0  ;;  %vm4042_vm12 = vcmp.gt.f32.partialorder %v4038_v51, 0.0 }
0x20f5   : > { %v4051_v12 = vmul.f32 1.442695, %v4045_v11  ;;  %v4097_v36 = vpop.permute.xlu1 %4096  ;;  %v4091_v13 = vmul.f32 %v4087_v48, %v7583_v19  ;;  %v4135_v3 = vmul.f32 %v4131_v60, %v7592_v17  ;;  %v4147_v5 = vperm.slane %v7594_v54, 5 }
0x20f6   : > { %v4103_v4 = vmul.f32 %v4099_v28, %v4097_v36  ;;  %v7611_v44 = vmul.f32 %v4179_v25, %v7601_v47  ;;  %v4115_v15 = vperm.slane %v7594_v54, 3  ;;  %v4163_v62 = vperm.slane %v7594_v54, 6 }
0x20f7   : > { %4756 = vpow2.f32 %v4051_v12 }
0x20f8   : > { %v4755_v16 = vpop.eup %4754  ;;  %4758 = vpow2.f32 %v4053_v43  ;;  %v4107_v59 = vadd.f32 %v4103_v4, %v4079_v55 }
0x20f9   : > { %v4414_v30 = vadd.f32 -1.0, %v4755_v16  ;;  %v7607_v38 = vpop.permute.xlu0 %4144 }
0x20fa   : > { %v4151_v45 = vmul.f32 %v4147_v5, %v7607_v38  ;;  %v4139_v6 = vadd.f32 %v4135_v3, %v4107_v59 }
0x20fb   : > { %v7603_v53 = vsel %vm4040_vm9, %v4036_v8, %v4414_v30  ;;  %v4210_v25 = vpop.permute.xlu2 %4209 }
0x20fc   : > { %v4132_v31 = vperm.slane %v7603_v53, 4  ;;  %v4076_v32 = vperm.slane %v7603_v53, 0  ;;  %v4100_v37 = vperm.slane %v7603_v53, 2  ;;  %v4088_v57 = vperm.slane %v7603_v53, 1 }
0x20fd   : > { %v4757_v21 = vpop.eup %4756  ;;  %v4116_v41 = vperm.slane %v7603_v53, 3  ;;  %v4180_v26 = vperm.slane %v7603_v53, 7  ;;  %v4148_v33 = vperm.slane %v7603_v53, 5  ;;  %v4164_v24 = vperm.slane %v7603_v53, 6 }
0x20fe   : > { %v4759_v9 = vpop.eup %4758  ;;  %v4415_v42 = vadd.f32 -1.0, %v4757_v21  ;;  %v4113_v18 = vpop.permute.xlu1 %4112  ;;  %v4136_v10 = vmul.f32 %v4132_v31, %v7592_v17  ;;  %v4080_v23 = vmul.f32 %v4076_v32, %v4073_v22  ;;  %v4104_v40 = vmul.f32 %v4100_v37, %v4097_v36 }
0x20ff   : > { %v4416_v49 = vadd.f32 -1.0, %v4759_v9  ;;  %v4092_v14 = vmul.f32 %v4088_v57, %v7583_v19  ;;  %v4119_v58 = vmul.f32 %v4115_v15, %v4113_v18  ;;  %v4120_v29 = vmul.f32 %v4116_v41, %v4113_v18 }
0x2100   : > { %v7619_v50 = vsel %vm4041_vm10, %v4037_v20, %v4415_v42  ;;  %v4152_v61 = vmul.f32 %v4148_v33, %v7607_v38  ;;  %v4108_v30 = vadd.f32 %v4104_v40, %v4080_v23  ;;  %v4184_v41 = vmul.f32 %v4180_v26, %v7601_v47 }
0x2101   : > { %v7625_v1 = vsel %vm4042_vm12, %v4038_v51, %v4416_v49  ;;  %v4077_v35 = vperm.slane %v7619_v50, 0  ;;  %v4101_v56 = vperm.slane %v7619_v50, 2  ;;  %v4149_v2 = vperm.slane %v7619_v50, 5  ;;  %v7647_v4 = vpop.permute.xlu0 %4211 }
0x2102   : > { %v4078_v7 = vperm.slane %v7625_v1, 0  ;;  %v4102_v27 = vperm.slane %v7625_v1, 2  ;;  %v4089_v34 = vperm.slane %v7619_v50, 1  ;;  %v4090_v46 = vperm.slane %v7625_v1, 1 }
0x2103   : > { %v4081_v8 = vmul.f32 %v4077_v35, %v4073_v22  ;;  %v4105_v0 = vmul.f32 %v4101_v56, %v4097_v36  ;;  %v4117_v51 = vperm.slane %v7619_v50, 3  ;;  %v4118_v20 = vperm.slane %v7625_v1, 3 }
0x2104   : > { %v4082_v63 = vmul.f32 %v4078_v7, %v4073_v22  ;;  %v4106_v52 = vmul.f32 %v4102_v27, %v4097_v36  ;;  %v4181_v11 = vperm.slane %v7619_v50, 7  ;;  %v4093_v54 = vmul.f32 %v4089_v34, %v7583_v19 }
0x2105   : > { %v4094_v12 = vmul.f32 %v4090_v46, %v7583_v19  ;;  %v4121_v39 = vmul.f32 %v4117_v51, %v4113_v18  ;;  %v4122_v28 = vmul.f32 %v4118_v20, %v4113_v18  ;;  %v4123_v16 = vadd.f32 %v4119_v58, %v4091_v13 }
0x2106   : > { %v4124_v48 = vadd.f32 %v4120_v29, %v4092_v14  ;;  %v4109_v22 = vadd.f32 %v4105_v0, %v4081_v8  ;;  %v4150_v36 = vperm.slane %v7625_v1, 5  ;;  %v4153_v60 = vmul.f32 %v4149_v2, %v7607_v38  ;;  %v4276_v2 = vpop.permute.xlu2 %4275 }
0x2107   : > { %v4161_v43 = vpop.permute.xlu1 %4160  ;;  %v4110_v55 = vadd.f32 %v4106_v52, %v4082_v63  ;;  %v4125_v53 = vadd.f32 %v4121_v39, %v4093_v54  ;;  %v4165_v21 = vperm.slane %v7619_v50, 6  ;;  %v4166_v19 = vperm.slane %v7625_v1, 6 }
0x2108   : > { %v4167_v3 = vmul.f32 %v4163_v62, %v4161_v43  ;;  %v4168_v59 = vmul.f32 %v4164_v24, %v4161_v43  ;;  %v4133_v13 = vperm.slane %v7619_v50, 4  ;;  %v4134_v5 = vperm.slane %v7625_v1, 4 }
0x2109   : > { %v4126_v9 = vadd.f32 %v4122_v28, %v4094_v12  ;;  %v4155_v42 = vadd.f32 %v4151_v45, %v4123_v16  ;;  %v4156_v18 = vadd.f32 %v4152_v61, %v4124_v48  ;;  %v4169_v15 = vmul.f32 %v4165_v21, %v4161_v43  ;;  %v4278_v0 = vpop.permute.xlu0 %4277 }
0x210a   : > { %v4170_v31 = vmul.f32 %v4166_v19, %v4161_v43  ;;  %v4137_v49 = vmul.f32 %v4133_v13, %v7592_v17  ;;  %v4138_v32 = vmul.f32 %v4134_v5, %v7592_v17  ;;  %v4140_v37 = vadd.f32 %v4136_v10, %v4108_v30 }
0x210b   : > { %v4182_v57 = vperm.slane %v7625_v1, 7  ;;  %v4154_v62 = vmul.f32 %v4150_v36, %v7607_v38  ;;  %v4157_v35 = vadd.f32 %v4153_v60, %v4125_v53  ;;  %v4171_v7 = vadd.f32 %v4167_v3, %v4139_v6 }
0x210c   : > { %v4141_v50 = vadd.f32 %v4137_v49, %v4109_v22  ;;  %v4142_v56 = vadd.f32 %v4138_v32, %v4110_v55  ;;  %v4172_v27 = vadd.f32 %v4168_v59, %v4140_v37  ;;  %v4185_v45 = vmul.f32 %v4181_v11, %v7601_v47 }
0x210d   : > { %v4188_v23 = vadd.f32 %v4184_v41, %v4156_v18  ;;  %v4187_v40 = vadd.f32 %v7611_v44, %v4155_v42  ;;  %v4158_v24 = vadd.f32 %v4154_v62, %v4126_v9  ;;  %v4186_v26 = vmul.f32 %v4182_v57, %v7601_v47 }
0x210e   : > { %v4173_v17 = vadd.f32 %v4169_v15, %v4141_v50  ;;  %v4174_v10 = vadd.f32 %v4170_v31, %v4142_v56  ;;  %v4189_v14 = vadd.f32 %v4185_v45, %v4157_v35  ;;  %v4215_v34 = vsel %vm556_vm11, %v4210_v25, %v7647_v4 }
0x210f   : > { %v4190_v46 = vadd.f32 %v4186_v26, %v4158_v24  ;;  %v4281_v20 = vsel %vm556_vm11, %v4276_v2, %v4278_v0 }
0x2110   : > { %v4068_v33 = vpop.permute.xlu1 %4067 }
0x2111   : > { %v4191_v8 = vadd.f32 %v4171_v7, %v4068_v33  ;;  %v4192_v1 = vadd.f32 %v4172_v27, %v4068_v33  ;;  %v4193_v38 = vadd.f32 %v4173_v17, %v4068_v33  ;;  %v4194_v58 = vadd.f32 %v4174_v10, %v4068_v33 }
0x2113   : > { %v4196_v29 = vadd.f32 %v4192_v1, %v4188_v23  ;;  %v4195_v6 = vadd.f32 %v4191_v8, %v4187_v40  ;;  %v4197_v51 = vadd.f32 %v4193_v38, %v4189_v14  ;;  %v4198_v11 = vadd.f32 %v4194_v58, %v4190_v46 }
0x2115   : > { %v4251_v44 = vrot.slane %v4196_v29, 4  ;;  %v4200_v63 = vmul.f32 0.5, %v4195_v6  ;;  %v4201_v52 = vmul.f32 0.5, %v4196_v29  ;;  %v4202_v43 = vmul.f32 0.5, %v4197_v51 }
0x2116   : > { %v4203_v39 = vmul.f32 0.5, %v4198_v11  ;;  %v4252_v28 = vrot.slane %v4198_v11, 4 }
0x2117   : > { %v4221_v47 = vadd.f32 %v4210_v25, %v4200_v63  ;;  %v4222_v61 = vadd.f32 %v4215_v34, %v4201_v52  ;;  %v4253_v54 = vsel %vm4231_vm13, %v4195_v6, %v4251_v44 }
0x2118   : > { %v4214_v12 = vpop.permute.xlu1 %4213  ;;  %v4255_v16 = vrot.slane %v4253_v54, 6  ;;  %v4254_v55 = vsel %vm4231_vm13, %v4197_v51, %v4252_v28 }
0x2119   : > { %v4229_v48 = vrot.slane %v4222_v61, 4  ;;  %v4288_v30 = vmul.f32 %v4281_v20, %v4222_v61  ;;  %v4216_v22 = vsel %vm556_vm11, %v7647_v4, %v4214_v12  ;;  %v4224_v60 = vadd.f32 %v4214_v12, %v4203_v39 }
0x211a   : > { %v4223_v36 = vadd.f32 %v4216_v22, %v4202_v43  ;;  %4257 = vrot.lane.b32.xlu1 %v4255_v16, %s4808_s20  ;;  %v4287_v25 = vmul.f32 %v4276_v2, %v4221_v47  ;;  %v4256_v42 = vrot.slane %v4254_v55, 6 }
0x211b   : > { %v4295_v53 = vrot.slane %v4288_v30, 6  ;;  %v4232_v21 = vsel %vm4231_vm13, %v4221_v47, %v4229_v48  ;;  %v4230_v19 = vrot.slane %v4224_v60, 4 }
0x211c   : > { %4234 = vrot.lane.b32.xlu2 %v4232_v21, %s4808_s20 }
0x211d   : > { %v4299_v3 = vsel %vm4298_vm14, %v4287_v25, %v4295_v53  ;;  %v4233_v59 = vsel %vm4231_vm13, %v4223_v36, %v4230_v19 }
0x211e   : > { %4236 = vrot.lane.b32.xlu0 %v4233_v59, %s4808_s20 }
0x2120   : > { %v4280_v4 = vpop.permute.xlu1 %4279 }
0x2121   : > { %v4282_v13 = vsel %vm556_vm11, %v4278_v0, %v4280_v4  ;;  %v4290_v5 = vmul.f32 %v4280_v4, %v4224_v60 }
0x2122   : > { %v4289_v9 = vmul.f32 %v4282_v13, %v4223_v36 }
0x2123   : > { %v4297_v18 = vrot.slane %v4290_v5, 2 }
0x2124   : > { %v4296_v15 = vrot.slane %v4289_v9, 4  ;;  %4259 = vrot.lane.b32.xlu2 %v4256_v42, %s4808_s20 }
0x2126   : > { %v4301_v31 = vsel %vm4300_vm15, %v4296_v15, %v4297_v18 }
0x2127   : > { %v4302_v49 = vsel %vm4231_vm13, %v4299_v3, %v4301_v31 }
0x2128   : > { %4303 = vrot.lane.b32.xlu0 %v4302_v49, %s4808_s20 }
0x2176   : > { %v4235_v32 = vpop.permute.xlu2 %4234 }
0x2177   : > { %v4238_v27 = vrot.slane %v4235_v32, 4 }
0x217e   : > { %v4260_v37 = vpop.permute.xlu2 %4259 }
0x217f   : > { %v4262_v57 = vrot.slane %v4260_v37, 4 }
0x2181   : > { %v4265_v41 = vsel %vm349_vm1, %v4260_v37, %v4262_v57 }
0x2182   : > { %4269 = vst [vmem:[%s5031_s15 + $0x8] sm:$0xc] %v4265_v41 }
0x218c   : > { %v4258_v62 = vpop.permute.xlu1 %4257 }
0x218d   : > { %v4261_v35 = vrot.slane %v4258_v62, 4 }
0x218f   : > { %v4263_v50 = vsel %vm4231_vm13, %v4261_v35, %v4262_v57 }
0x2190   : > { %v4264_v56 = vsel %vm349_vm1, %v4258_v62, %v4263_v50  ;;  %v4237_v7 = vpop.permute.xlu0 %4236 }
0x2191   : > { %4268 = vst [vmem:[%s5031_s15] sm:$0xcc] %v4264_v56  ;;  %v4239_v45 = vrot.slane %v4237_v7, 4 }
0x2193   : > { %v4240_v33 = vsel %vm4231_vm13, %v4238_v27, %v4239_v45  ;;  %v4242_v23 = vsel %vm349_vm1, %v4237_v7, %v4239_v45 }
0x2194   : > { %v4241_v40 = vsel %vm349_vm1, %v4235_v32, %v4240_v33  ;;  %4246 = vst [vmem:[%s5031_s15 + $0x8] sm:$0x3] %v4242_v23 }
0x2195   : > { %4245 = vst [vmem:[%s5031_s15] sm:$0x33] %v4241_v40 }
0x219a   : > { %v4304_v24 = vpop.permute.xlu0 %4303 }
0x219b   : > { %v4305_v17 = vrot.slane %v4304_v24, 2 }
0x219d   : > { %v4306_v10 = vsel %vm349_vm1, %v4304_v24, %v4305_v17 }
0x219e   : > { %4308 = vst [vmem:[#allocation2 + $0x2] sm:$0x3f] %v4306_v10 }
0x219f PF: > { %s16_s25 = sadd.s32 1, %s4803_s25   ;;  %s8458_s21 = smov %s4795_s23 }
0x21a0   : > { %p13_p8 = scmp.ge.s32.totalorder %s16_s25, 6   ;;  %s8459_s22 = smov %s4799_s24 }
0x21a1   : > { %s8460_s23 = smov %s8463_s26  ;;  %s8461_s24 = smov %s8467_s27 }
0x21a2   :  { %15 = sbr.rel (!%p13_p8) target bundleno = 3 (0x3), region = 82 }

</bundles_post_ra>
